<compile_context>
chip_gen: v6e
topology: v6e:2x2x1
jax: 0.10.0
libtpu: 0.0.40
codegen_flags: <defaults>
</compile_context>

<pallas_src>
import math
import functools

import numpy as np
import jax
import jax.numpy as jnp
from jax.experimental import pallas as pl
from jax.experimental.pallas import tpu as pltpu


_VMEM = pltpu.MemorySpace.VMEM
_NEG = -1e30  # stand-in for -inf in masked attention logits

# Order in which stacked parameters are handed to the fused kernel.
_PARAM_ORDER = (
    "e_wqkv", "e_bqkv", "e_wo", "e_bo", "e_ln1g", "e_ln1b",
    "e_w1", "e_b1", "e_w2", "e_b2", "e_ln2g", "e_ln2b",
    "d_wqkv", "d_bqkv", "d_wo", "d_bo", "d_ln1g", "d_ln1b",
    "d_cwq", "d_cbq", "d_cwkv", "d_cbkv", "d_cwo", "d_cbo", "d_ln2g", "d_ln2b",
    "d_w1", "d_b1", "d_w2", "d_b2", "d_ln3g", "d_ln3b",
    "fin_w", "fin_b",
)


# -----------------------------------------------------------------------------
# Fused whole-model Pallas kernel
# -----------------------------------------------------------------------------
def _fused_transformer_kernel(*refs, d_model, num_heads, num_layers):
    (src_ref, tgt_ref, eb_ref, sb_ref, cb_ref,
     e_wqkv, e_bqkv, e_wo, e_bo, e_ln1g, e_ln1b,
     e_w1, e_b1, e_w2, e_b2, e_ln2g, e_ln2b,
     d_wqkv, d_bqkv, d_wo, d_bo, d_ln1g, d_ln1b,
     d_cwq, d_cbq, d_cwkv, d_cbkv, d_cwo, d_cbo, d_ln2g, d_ln2b,
     d_w1, d_b1, d_w2, d_b2, d_ln3g, d_ln3b,
     fw_ref, fb_ref, out_ref) = refs

    D, H, NL = d_model, num_heads, num_layers
    Dh = D // H

    def layer_norm(x, g, b):
        # PyTorch LayerNorm: biased variance, eps = 1e-5
        mu = jnp.mean(x, axis=-1, keepdims=True)
        var = jnp.mean((x - mu) * (x - mu), axis=-1, keepdims=True)
        return (x - mu) * jax.lax.rsqrt(var + 1e-5) * g + b

    def softmax_rows(s):
        s = s - jnp.max(s, axis=-1, keepdims=True)
        p = jnp.exp(s)
        # EUP reciprocal co-issues with the surrounding VPU work.
        return p * pl.reciprocal(jnp.sum(p, axis=-1, keepdims=True), approx=True)

    def mha(q_all, k_all, v_all, bias, w_out):
        # q_all: (Nq, D) (already 1/sqrt(Dh)-scaled via the folded weights)
        # k_all / v_all: (Nk, D); bias: (Nq, Nk) additive (block-diag over the
        # batch + key-padding [+ causal]), shared by all heads.
        acc = None
        for h in range(H):
            sl = slice(h * Dh, (h + 1) * Dh)
            # q @ k^T without an explicit transpose (NT dot_general).
            s = jax.lax.dot_general(
                q_all[:, sl], k_all[:, sl], (((1,), (1,)), ((), ())),
                preferred_element_type=jnp.float32) + bias
            p = softmax_rows(s)
            oh = jnp.dot(p, v_all[:, sl], preferred_element_type=jnp.float32)
            # Fold concat(heads) @ Wo into per-head partial matmuls:
            # concat_h(o_h) @ Wo == sum_h o_h @ Wo[h*Dh:(h+1)*Dh, :]
            contrib = jnp.dot(oh, w_out[sl, :], preferred_element_type=jnp.float32)
            acc = contrib if acc is None else acc + contrib
        return acc

    enc_bias = eb_ref[...]      # (Ns, Ns)
    self_bias = sb_ref[...]     # (Nt, Nt)
    cross_bias = cb_ref[...]    # (Nt, Ns)

    # ------------------------------ encoder ---------------------------------
    x = src_ref[...]                                         # (Ns, D)
    for l in range(NL):
        qkv = jnp.dot(x, e_wqkv[l], preferred_element_type=jnp.float32) + e_bqkv[l]
        q, k, v = qkv[:, 0:D], qkv[:, D:2 * D], qkv[:, 2 * D:3 * D]
        sa = mha(q, k, v, enc_bias, e_wo[l]) + e_bo[l]
        x = layer_norm(x + sa, e_ln1g[l], e_ln1b[l])
        h1 = jnp.maximum(
            jnp.dot(x, e_w1[l], preferred_element_type=jnp.float32) + e_b1[l], 0.0)
        ff = jnp.dot(h1, e_w2[l], preferred_element_type=jnp.float32) + e_b2[l]
        x = layer_norm(x + ff, e_ln2g[l], e_ln2b[l])
    memory = x                                               # (Ns, D)

    # ------------------------------ decoder ---------------------------------
    y = tgt_ref[...]                                         # (Nt, D)
    for l in range(NL):
        qkv = jnp.dot(y, d_wqkv[l], preferred_element_type=jnp.float32) + d_bqkv[l]
        q, k, v = qkv[:, 0:D], qkv[:, D:2 * D], qkv[:, 2 * D:3 * D]
        sa = mha(q, k, v, self_bias, d_wo[l]) + d_bo[l]
        y = layer_norm(y + sa, d_ln1g[l], d_ln1b[l])

        qc = jnp.dot(y, d_cwq[l], preferred_element_type=jnp.float32) + d_cbq[l]
        kv = jnp.dot(memory, d_cwkv[l], preferred_element_type=jnp.float32) + d_cbkv[l]
        kc, vc = kv[:, 0:D], kv[:, D:2 * D]
        ca = mha(qc, kc, vc, cross_bias, d_cwo[l]) + d_cbo[l]
        y = layer_norm(y + ca, d_ln2g[l], d_ln2b[l])

        h1 = jnp.maximum(
            jnp.dot(y, d_w1[l], preferred_element_type=jnp.float32) + d_b1[l], 0.0)
        ff = jnp.dot(h1, d_w2[l], preferred_element_type=jnp.float32) + d_b2[l]
        y = layer_norm(y + ff, d_ln3g[l], d_ln3b[l])

    # -------------------- final projection (lane-dense, padded) -------------
    out_ref[...] = (jnp.dot(y, fw_ref[...], preferred_element_type=jnp.float32)
                    + fb_ref[...])


# -----------------------------------------------------------------------------
# Parameter preparation: torch layout -> stacked, pre-transposed kernel layout
# -----------------------------------------------------------------------------
def prepare_params(params, config, out_vocab_size):
    d = config["transformer"]["d_model"]
    nh = config["transformer"]["num_heads"]
    dh = d // nh
    qscale = 1.0 / math.sqrt(dh)   # folded into the Q projection (weights+bias)
    f32 = jnp.float32

    def qkv_fused(p):
        w = jnp.asarray(p["in_proj_weight"], f32).T                  # (d, 3d)
        b = jnp.asarray(p["in_proj_bias"], f32).reshape(1, 3 * d)
        col_scale = jnp.concatenate(
            [jnp.full((1, d), qscale, f32), jnp.ones((1, 2 * d), f32)], axis=1)
        return w * col_scale, b * col_scale

    def out_proj(p):
        return (jnp.asarray(p["out_proj_weight"], f32).T,
                jnp.asarray(p["out_proj_bias"], f32).reshape(1, d))

    def ln(p):
        return (jnp.asarray(p["weight"], f32).reshape(1, d),
                jnp.asarray(p["bias"], f32).reshape(1, d))

    enc = {k: [] for k in ("wqkv", "bqkv", "wo", "bo", "ln1g", "ln1b",
                           "w1", "b1", "w2", "b2", "ln2g", "ln2b")}
    for p in params["enc_layers"]:
        wqkv, bqkv = qkv_fused(p["self_attn"])
        wo, bo = out_proj(p["self_attn"])
        g1, be1 = ln(p["norm1"]); g2, be2 = ln(p["norm2"])
        enc["wqkv"].append(wqkv); enc["bqkv"].append(bqkv)
        enc["wo"].append(wo); enc["bo"].append(bo)
        enc["ln1g"].append(g1); enc["ln1b"].append(be1)
        enc["w1"].append(jnp.asarray(p["linear1_w"], f32).T)
        enc["b1"].append(jnp.asarray(p["linear1_b"], f32).reshape(1, -1))
        enc["w2"].append(jnp.asarray(p["linear2_w"], f32).T)
        enc["b2"].append(jnp.asarray(p["linear2_b"], f32).reshape(1, -1))
        enc["ln2g"].append(g2); enc["ln2b"].append(be2)

    dec = {k: [] for k in ("wqkv", "bqkv", "wo", "bo", "ln1g", "ln1b",
                           "cwq", "cbq", "cwkv", "cbkv", "cwo", "cbo",
                           "ln2g", "ln2b", "w1", "b1", "w2", "b2",
                           "ln3g", "ln3b")}
    for p in params["dec_layers"]:
        wqkv, bqkv = qkv_fused(p["self_attn"])
        wo, bo = out_proj(p["self_attn"])
        cw = jnp.asarray(p["cross_attn"]["in_proj_weight"], f32)     # (3d, d)
        cb = jnp.asarray(p["cross_attn"]["in_proj_bias"], f32)
        cwq = cw[:d].T * qscale
        cbq = cb[:d].reshape(1, d) * qscale
        cwkv = cw[d:].T                                              # (d, 2d)
        cbkv = cb[d:].reshape(1, 2 * d)
        cwo, cbo = out_proj(p["cross_attn"])
        g1, be1 = ln(p["norm1"]); g2, be2 = ln(p["norm2"]); g3, be3 = ln(p["norm3"])
        dec["wqkv"].append(wqkv); dec["bqkv"].append(bqkv)
        dec["wo"].append(wo); dec["bo"].append(bo)
        dec["ln1g"].append(g1); dec["ln1b"].append(be1)
        dec["cwq"].append(cwq); dec["cbq"].append(cbq)
        dec["cwkv"].append(cwkv); dec["cbkv"].append(cbkv)
        dec["cwo"].append(cwo); dec["cbo"].append(cbo)
        dec["ln2g"].append(g2); dec["ln2b"].append(be2)
        dec["w1"].append(jnp.asarray(p["linear1_w"], f32).T)
        dec["b1"].append(jnp.asarray(p["linear1_b"], f32).reshape(1, -1))
        dec["w2"].append(jnp.asarray(p["linear2_w"], f32).T)
        dec["b2"].append(jnp.asarray(p["linear2_b"], f32).reshape(1, -1))
        dec["ln3g"].append(g3); dec["ln3b"].append(be3)

    # Final projection padded to a lane-dense (multiple-of-128) output width.
    vpad = ((out_vocab_size + 127) // 128) * 128
    fw = jnp.asarray(params["final_w"], f32).T                       # (d, vocab)
    fw = jnp.pad(fw, ((0, 0), (0, vpad - out_vocab_size)))
    fb = jnp.pad(jnp.asarray(params["final_b"], f32).reshape(1, -1),
                 ((0, 0), (0, vpad - out_vocab_size)))

    # Embedding * sqrt(d_model) folded into the tables at prepare time.
    scale = math.sqrt(d)
    prepped = dict(peak_embed=jnp.asarray(params["peak_embed"], f32) * scale,
                   name_embed=jnp.asarray(params["name_embed"], f32) * scale,
                   fin_w=fw, fin_b=fb)
    for k, v in enc.items():
        prepped["e_" + k] = jnp.stack(v)
    for k, v in dec.items():
        prepped["d_" + k] = jnp.stack(v)
    return prepped


# -----------------------------------------------------------------------------
# Forward wrapper (embedding/PE + mask bias built outside, one fused
# pallas_call inside)
# -----------------------------------------------------------------------------
def make_forward(config, out_vocab_size):
    d = config["transformer"]["d_model"]
    nh = config["transformer"]["num_heads"]
    nl = config["transformer"]["num_layers"]
    vpad = ((out_vocab_size + 127) // 128) * 128

    def forward(prepped, src, tgt, pe_src, pe_tgt):
        b, ls = src.shape
        _, lt = tgt.shape
        ns, nt = b * ls, b * lt
        neg = jnp.float32(_NEG)

        # Embedding (sqrt(d_model) pre-folded) + positional encoding
        # (XLA gather; vocab tables stay in HBM).
        src_emb = (jnp.take(prepped["peak_embed"], src, axis=0)
                   + pe_src[:, :ls]).astype(jnp.float32).reshape(ns, d)
        tgt_emb = (jnp.take(prepped["name_embed"], tgt, axis=0)
                   + pe_tgt[:, :lt]).astype(jnp.float32).reshape(nt, d)

        # generate_mask(): padding where token == 0.
        src_ok = (src != 0).reshape(ns)     # valid keys
        tgt_ok = (tgt != 0).reshape(nt)

        # Block-diagonal batching: rows/cols of different batch elements are
        # masked with -inf so the whole batch shares one score matrix.
        def block_ok(nq, lq, nk, lk):
            qb = jnp.arange(nq) // lq
            kb = jnp.arange(nk) // lk
            return qb[:, None] == kb[None, :]

        enc_ok = block_ok(ns, ls, ns, ls) & src_ok[None, :]
        enc_bias = jnp.where(enc_ok, 0.0, neg).astype(jnp.float32)

        qpos = jnp.arange(nt) % lt
        causal_ok = qpos[:, None] >= qpos[None, :]
        self_ok = block_ok(nt, lt, nt, lt) & causal_ok & tgt_ok[None, :]
        self_bias = jnp.where(self_ok, 0.0, neg).astype(jnp.float32)

        cross_ok = block_ok(nt, lt, ns, ls) & src_ok[None, :]
        cross_bias = jnp.where(cross_ok, 0.0, neg).astype(jnp.float32)

        kernel_inputs = [src_emb, tgt_emb, enc_bias, self_bias, cross_bias] + \
                        [prepped[name] for name in _PARAM_ORDER]
        kernel = functools.partial(
            _fused_transformer_kernel, d_model=d, num_heads=nh, num_layers=nl)

        logits_padded = pl.pallas_call(
            kernel,
            out_shape=jax.ShapeDtypeStruct((nt, vpad), jnp.float32),
            in_specs=[pl.BlockSpec(memory_space=_VMEM)] * len(kernel_inputs),
            out_specs=pl.BlockSpec(memory_space=_VMEM),
            compiler_params=pltpu.CompilerParams(
                vmem_limit_bytes=32 * 1024 * 1024),
        )(*kernel_inputs)

        return logits_padded[:, :out_vocab_size].reshape(b, lt, out_vocab_size)

    return jax.jit(forward)


# -----------------------------------------------------------------------------
# Positional encoding (exact replica of the module's non-standard formula)
# -----------------------------------------------------------------------------
def build_positional_encoding(d_model, max_seq_len):
    pe = np.zeros((max_seq_len, d_model), dtype=np.float32)
    for pos in range(max_seq_len):
        for i in range(0, d_model, 2):
            pe[pos, i] = math.sin(pos / 10000 ** (2 * i / d_model))
            pe[pos, i + 1] = math.cos(pos / 10000 ** (2 * (i + 1) / d_model))
    return jnp.asarray(pe)[None]  # (1, max_seq_len, d_model)


# -----------------------------------------------------------------------------
# Deterministic synthetic parameter initialization (torch layout)
# -----------------------------------------------------------------------------
def init_params(key, config, out_vocab_size):
    d = config["transformer"]["d_model"]
    h = config["transformer"]["ffn_hidden"]
    nl = config["transformer"]["num_layers"]
    in_vocab = (config["input_embedding"]["max_mz"]
                * 10 ** config["input_embedding"]["decimal_accuracy"])
    keys = iter(jax.random.split(key, 512))

    def u(shape, scale=0.1):
        return jax.random.uniform(next(keys), shape, jnp.float32, -scale, scale)

    def attn_params():
        return dict(
            in_proj_weight=u((3 * d, d)),
            in_proj_bias=u((3 * d,)),
            out_proj_weight=u((d, d)),
            out_proj_bias=jnp.zeros((d,), jnp.float32),
        )

    def ln_params():
        return dict(weight=jnp.ones((d,), jnp.float32),
                    bias=jnp.zeros((d,), jnp.float32))

    enc_layers = [
        dict(self_attn=attn_params(),
             linear1_w=u((h, d)), linear1_b=u((h,)),
             linear2_w=u((d, h)), linear2_b=u((d,)),
             norm1=ln_params(), norm2=ln_params())
        for _ in range(nl)
    ]
    dec_layers = [
        dict(self_attn=attn_params(), cross_attn=attn_params(),
             linear1_w=u((h, d)), linear1_b=u((h,)),
             linear2_w=u((d, h)), linear2_b=u((d,)),
             norm1=ln_params(), norm2=ln_params(), norm3=ln_params())
        for _ in range(nl)
    ]
    return dict(
        peak_embed=u((in_vocab, d)),
        name_embed=u((out_vocab_size, d)),
        enc_layers=enc_layers,
        dec_layers=dec_layers,
        final_w=u((out_vocab_size, d)),
        final_b=jnp.zeros((out_vocab_size,), jnp.float32),
    )


# -----------------------------------------------------------------------------
if __name__ == "__main__":
    config = {
        "transformer": {
            "d_model": 32,
            "num_heads": 4,
            "ffn_hidden": 64,
            "num_layers": 2,
            "dropout": 0.0,
            "output_seq_length": 8,
        },
        "input_embedding": {
            "n_peaks": 16,
            "decimal_accuracy": 1,
            "max_mz": 100,  # peak vocab = 100 * 10**1 = 1000
        },
    }
    out_vocab_size = 40  # stands in for len(lipid_components_tokens.yaml)

    key = jax.random.PRNGKey(0)
    pkey, skey, tkey = jax.random.split(key, 3)
    params = init_params(pkey, config, out_vocab_size)
    prepped = prepare_params(params, config, out_vocab_size)

    batch = 2
    n_peaks = config["input_embedding"]["n_peaks"]
    seq_len = config["transformer"]["output_seq_length"]
    in_vocab = (config["input_embedding"]["max_mz"]
                * 10 ** config["input_embedding"]["decimal_accuracy"])

    src = jax.random.randint(skey, (batch, n_peaks), 1, in_vocab, dtype=jnp.int32)
    src = src.at[:, -3:].set(0)  # trailing padding exercises src_padding_mask
    tgt = jax.random.randint(tkey, (batch, seq_len), 1, out_vocab_size, dtype=jnp.int32)
    tgt = tgt.at[:, -2:].set(0)  # trailing padding exercises tgt_padding_mask

    pe_src = build_positional_encoding(config["transformer"]["d_model"], n_peaks)
    pe_tgt = build_positional_encoding(config["transformer"]["d_model"], seq_len)

    forward = make_forward(config, out_vocab_size)
    out = forward(prepped, src, tgt, pe_src, pe_tgt)
    out = jax.block_until_ready(out)

    assert out.shape == (batch, seq_len, out_vocab_size), out.shape
    assert bool(jnp.all(jnp.isfinite(out)))
    print("KERNEL_OK")
</pallas_src>

<mosaic_0001>
module attributes {stable_mosaic.version = 11 : i64} {
  func.func @_fused_transformer_kernel(%arg0: memref<32x32xf32, #tpu.memory_space<vmem>>, %arg1: memref<16x32xf32, #tpu.memory_space<vmem>>, %arg2: memref<32x32xf32, #tpu.memory_space<vmem>>, %arg3: memref<16x16xf32, #tpu.memory_space<vmem>>, %arg4: memref<16x32xf32, #tpu.memory_space<vmem>>, %arg5: memref<2x32x96xf32, #tpu.memory_space<vmem>>, %arg6: memref<2x1x96xf32, #tpu.memory_space<vmem>>, %arg7: memref<2x32x32xf32, #tpu.memory_space<vmem>>, %arg8: memref<2x1x32xf32, #tpu.memory_space<vmem>>, %arg9: memref<2x1x32xf32, #tpu.memory_space<vmem>>, %arg10: memref<2x1x32xf32, #tpu.memory_space<vmem>>, %arg11: memref<2x32x64xf32, #tpu.memory_space<vmem>>, %arg12: memref<2x1x64xf32, #tpu.memory_space<vmem>>, %arg13: memref<2x64x32xf32, #tpu.memory_space<vmem>>, %arg14: memref<2x1x32xf32, #tpu.memory_space<vmem>>, %arg15: memref<2x1x32xf32, #tpu.memory_space<vmem>>, %arg16: memref<2x1x32xf32, #tpu.memory_space<vmem>>, %arg17: memref<2x32x96xf32, #tpu.memory_space<vmem>>, %arg18: memref<2x1x96xf32, #tpu.memory_space<vmem>>, %arg19: memref<2x32x32xf32, #tpu.memory_space<vmem>>, %arg20: memref<2x1x32xf32, #tpu.memory_space<vmem>>, %arg21: memref<2x1x32xf32, #tpu.memory_space<vmem>>, %arg22: memref<2x1x32xf32, #tpu.memory_space<vmem>>, %arg23: memref<2x32x32xf32, #tpu.memory_space<vmem>>, %arg24: memref<2x1x32xf32, #tpu.memory_space<vmem>>, %arg25: memref<2x32x64xf32, #tpu.memory_space<vmem>>, %arg26: memref<2x1x64xf32, #tpu.memory_space<vmem>>, %arg27: memref<2x32x32xf32, #tpu.memory_space<vmem>>, %arg28: memref<2x1x32xf32, #tpu.memory_space<vmem>>, %arg29: memref<2x1x32xf32, #tpu.memory_space<vmem>>, %arg30: memref<2x1x32xf32, #tpu.memory_space<vmem>>, %arg31: memref<2x32x64xf32, #tpu.memory_space<vmem>>, %arg32: memref<2x1x64xf32, #tpu.memory_space<vmem>>, %arg33: memref<2x64x32xf32, #tpu.memory_space<vmem>>, %arg34: memref<2x1x32xf32, #tpu.memory_space<vmem>>, %arg35: memref<2x1x32xf32, #tpu.memory_space<vmem>>, %arg36: memref<2x1x32xf32, #tpu.memory_space<vmem>>, %arg37: memref<32x128xf32, #tpu.memory_space<vmem>>, %arg38: memref<1x128xf32, #tpu.memory_space<vmem>>, %arg39: memref<16x128xf32, #tpu.memory_space<vmem>>) attributes {dimension_semantics = [], scalar_prefetch = 0 : i64, scratch_operands = 0 : i64, tpu.core_type = #tpu.core_type<tc>} {
    %c0 = arith.constant 0 : index
    %c0_0 = arith.constant 0 : index
    %0 = vector.load %arg2[%c0, %c0_0] : memref<32x32xf32, #tpu.memory_space<vmem>>, vector<32x32xf32>
    %c0_1 = arith.constant 0 : index
    %c0_2 = arith.constant 0 : index
    %1 = vector.load %arg3[%c0_1, %c0_2] : memref<16x16xf32, #tpu.memory_space<vmem>>, vector<16x16xf32>
    %c0_3 = arith.constant 0 : index
    %c0_4 = arith.constant 0 : index
    %2 = vector.load %arg4[%c0_3, %c0_4] : memref<16x32xf32, #tpu.memory_space<vmem>>, vector<16x32xf32>
    %c0_5 = arith.constant 0 : index
    %c0_6 = arith.constant 0 : index
    %3 = vector.load %arg0[%c0_5, %c0_6] : memref<32x32xf32, #tpu.memory_space<vmem>>, vector<32x32xf32>
    %c0_7 = arith.constant 0 : index
    %c0_8 = arith.constant 0 : index
    %c0_9 = arith.constant 0 : index
    %4 = vector.load %arg5[%c0_7, %c0_8, %c0_9] : memref<2x32x96xf32, #tpu.memory_space<vmem>>, vector<1x32x96xf32>
    %5 = vector.shape_cast %4 : vector<1x32x96xf32> to vector<32x96xf32>
    %cst = arith.constant dense<0.000000e+00> : vector<32x96xf32>
    %6 = tpu.matmul %3, %5, %cst {dimension_numbers = #tpu.dot_dimension_numbers<[1], [0], [0], [1], [0, 0, 1, 1], [], []>} : vector<32x32xf32>, vector<32x96xf32>, vector<32x96xf32> -> vector<32x96xf32>
    %c0_10 = arith.constant 0 : index
    %c0_11 = arith.constant 0 : index
    %c0_12 = arith.constant 0 : index
    %7 = vector.load %arg6[%c0_10, %c0_11, %c0_12] : memref<2x1x96xf32, #tpu.memory_space<vmem>>, vector<1x1x96xf32>
    %8 = vector.shape_cast %7 : vector<1x1x96xf32> to vector<1x96xf32>
    %9 = vector.broadcast %8 : vector<1x96xf32> to vector<32x96xf32>
    %10 = arith.addf %6, %9 : vector<32x96xf32>
    %11 = vector.extract_strided_slice %10 {offsets = [0, 0], sizes = [32, 32], strides = [1, 1]} : vector<32x96xf32> to vector<32x32xf32>
    %12 = vector.extract_strided_slice %10 {offsets = [0, 32], sizes = [32, 32], strides = [1, 1]} : vector<32x96xf32> to vector<32x32xf32>
    %13 = vector.extract_strided_slice %10 {offsets = [0, 64], sizes = [32, 32], strides = [1, 1]} : vector<32x96xf32> to vector<32x32xf32>
    %c0_13 = arith.constant 0 : index
    %c0_14 = arith.constant 0 : index
    %c0_15 = arith.constant 0 : index
    %14 = vector.load %arg7[%c0_13, %c0_14, %c0_15] : memref<2x32x32xf32, #tpu.memory_space<vmem>>, vector<1x32x32xf32>
    %15 = vector.shape_cast %14 : vector<1x32x32xf32> to vector<32x32xf32>
    %16 = vector.extract_strided_slice %11 {offsets = [0, 0], sizes = [32, 8], strides = [1, 1]} : vector<32x32xf32> to vector<32x8xf32>
    %17 = vector.extract_strided_slice %12 {offsets = [0, 0], sizes = [32, 8], strides = [1, 1]} : vector<32x32xf32> to vector<32x8xf32>
    %cst_16 = arith.constant dense<0.000000e+00> : vector<32x32xf32>
    %18 = tpu.matmul %16, %17, %cst_16 {dimension_numbers = #tpu.dot_dimension_numbers<[1], [1], [0], [0], [0, 0, 1, 0], [], []>} : vector<32x8xf32>, vector<32x8xf32>, vector<32x32xf32> -> vector<32x32xf32>
    %19 = arith.addf %18, %0 : vector<32x32xf32>
    %cst_17 = arith.constant dense<0xFF800000> : vector<32xf32>
    %20 = vector.multi_reduction <maximumf>, %19, %cst_17 [1] : vector<32x32xf32> to vector<32xf32>
    %21 = vector.shape_cast %20 : vector<32xf32> to vector<32x1xf32>
    %22 = vector.broadcast %21 : vector<32x1xf32> to vector<32x32xf32>
    %23 = arith.subf %19, %22 : vector<32x32xf32>
    %24 = math.exp %23 : vector<32x32xf32>
    %cst_18 = arith.constant dense<0.000000e+00> : vector<32xf32>
    %25 = vector.multi_reduction <add>, %24, %cst_18 [1] : vector<32x32xf32> to vector<32xf32>
    %26 = vector.shape_cast %25 : vector<32xf32> to vector<32x1xf32>
    %27 = tpu.reciprocal %26 {approx = true} : vector<32x1xf32> -> vector<32x1xf32>
    %28 = vector.broadcast %27 : vector<32x1xf32> to vector<32x32xf32>
    %29 = arith.mulf %24, %28 : vector<32x32xf32>
    %30 = vector.extract_strided_slice %13 {offsets = [0, 0], sizes = [32, 8], strides = [1, 1]} : vector<32x32xf32> to vector<32x8xf32>
    %cst_19 = arith.constant dense<0.000000e+00> : vector<32x8xf32>
    %31 = tpu.matmul %29, %30, %cst_19 {dimension_numbers = #tpu.dot_dimension_numbers<[1], [0], [0], [1], [0, 0, 1, 1], [], []>} : vector<32x32xf32>, vector<32x8xf32>, vector<32x8xf32> -> vector<32x8xf32>
    %32 = vector.extract_strided_slice %15 {offsets = [0, 0], sizes = [8, 32], strides = [1, 1]} : vector<32x32xf32> to vector<8x32xf32>
    %cst_20 = arith.constant dense<0.000000e+00> : vector<32x32xf32>
    %33 = tpu.matmul %31, %32, %cst_20 {dimension_numbers = #tpu.dot_dimension_numbers<[1], [0], [0], [1], [0, 0, 1, 1], [], []>} : vector<32x8xf32>, vector<8x32xf32>, vector<32x32xf32> -> vector<32x32xf32>
    %34 = vector.extract_strided_slice %11 {offsets = [0, 8], sizes = [32, 8], strides = [1, 1]} : vector<32x32xf32> to vector<32x8xf32>
    %35 = vector.extract_strided_slice %12 {offsets = [0, 8], sizes = [32, 8], strides = [1, 1]} : vector<32x32xf32> to vector<32x8xf32>
    %cst_21 = arith.constant dense<0.000000e+00> : vector<32x32xf32>
    %36 = tpu.matmul %34, %35, %cst_21 {dimension_numbers = #tpu.dot_dimension_numbers<[1], [1], [0], [0], [0, 0, 1, 0], [], []>} : vector<32x8xf32>, vector<32x8xf32>, vector<32x32xf32> -> vector<32x32xf32>
    %37 = arith.addf %36, %0 : vector<32x32xf32>
    %cst_22 = arith.constant dense<0xFF800000> : vector<32xf32>
    %38 = vector.multi_reduction <maximumf>, %37, %cst_22 [1] : vector<32x32xf32> to vector<32xf32>
    %39 = vector.shape_cast %38 : vector<32xf32> to vector<32x1xf32>
    %40 = vector.broadcast %39 : vector<32x1xf32> to vector<32x32xf32>
    %41 = arith.subf %37, %40 : vector<32x32xf32>
    %42 = math.exp %41 : vector<32x32xf32>
    %cst_23 = arith.constant dense<0.000000e+00> : vector<32xf32>
    %43 = vector.multi_reduction <add>, %42, %cst_23 [1] : vector<32x32xf32> to vector<32xf32>
    %44 = vector.shape_cast %43 : vector<32xf32> to vector<32x1xf32>
    %45 = tpu.reciprocal %44 {approx = true} : vector<32x1xf32> -> vector<32x1xf32>
    %46 = vector.broadcast %45 : vector<32x1xf32> to vector<32x32xf32>
    %47 = arith.mulf %42, %46 : vector<32x32xf32>
    %48 = vector.extract_strided_slice %13 {offsets = [0, 8], sizes = [32, 8], strides = [1, 1]} : vector<32x32xf32> to vector<32x8xf32>
    %cst_24 = arith.constant dense<0.000000e+00> : vector<32x8xf32>
    %49 = tpu.matmul %47, %48, %cst_24 {dimension_numbers = #tpu.dot_dimension_numbers<[1], [0], [0], [1], [0, 0, 1, 1], [], []>} : vector<32x32xf32>, vector<32x8xf32>, vector<32x8xf32> -> vector<32x8xf32>
    %50 = vector.extract_strided_slice %15 {offsets = [8, 0], sizes = [8, 32], strides = [1, 1]} : vector<32x32xf32> to vector<8x32xf32>
    %cst_25 = arith.constant dense<0.000000e+00> : vector<32x32xf32>
    %51 = tpu.matmul %49, %50, %cst_25 {dimension_numbers = #tpu.dot_dimension_numbers<[1], [0], [0], [1], [0, 0, 1, 1], [], []>} : vector<32x8xf32>, vector<8x32xf32>, vector<32x32xf32> -> vector<32x32xf32>
    %52 = arith.addf %33, %51 : vector<32x32xf32>
    %53 = vector.extract_strided_slice %11 {offsets = [0, 16], sizes = [32, 8], strides = [1, 1]} : vector<32x32xf32> to vector<32x8xf32>
    %54 = vector.extract_strided_slice %12 {offsets = [0, 16], sizes = [32, 8], strides = [1, 1]} : vector<32x32xf32> to vector<32x8xf32>
    %cst_26 = arith.constant dense<0.000000e+00> : vector<32x32xf32>
    %55 = tpu.matmul %53, %54, %cst_26 {dimension_numbers = #tpu.dot_dimension_numbers<[1], [1], [0], [0], [0, 0, 1, 0], [], []>} : vector<32x8xf32>, vector<32x8xf32>, vector<32x32xf32> -> vector<32x32xf32>
    %56 = arith.addf %55, %0 : vector<32x32xf32>
    %cst_27 = arith.constant dense<0xFF800000> : vector<32xf32>
    %57 = vector.multi_reduction <maximumf>, %56, %cst_27 [1] : vector<32x32xf32> to vector<32xf32>
    %58 = vector.shape_cast %57 : vector<32xf32> to vector<32x1xf32>
    %59 = vector.broadcast %58 : vector<32x1xf32> to vector<32x32xf32>
    %60 = arith.subf %56, %59 : vector<32x32xf32>
    %61 = math.exp %60 : vector<32x32xf32>
    %cst_28 = arith.constant dense<0.000000e+00> : vector<32xf32>
    %62 = vector.multi_reduction <add>, %61, %cst_28 [1] : vector<32x32xf32> to vector<32xf32>
    %63 = vector.shape_cast %62 : vector<32xf32> to vector<32x1xf32>
    %64 = tpu.reciprocal %63 {approx = true} : vector<32x1xf32> -> vector<32x1xf32>
    %65 = vector.broadcast %64 : vector<32x1xf32> to vector<32x32xf32>
    %66 = arith.mulf %61, %65 : vector<32x32xf32>
    %67 = vector.extract_strided_slice %13 {offsets = [0, 16], sizes = [32, 8], strides = [1, 1]} : vector<32x32xf32> to vector<32x8xf32>
    %cst_29 = arith.constant dense<0.000000e+00> : vector<32x8xf32>
    %68 = tpu.matmul %66, %67, %cst_29 {dimension_numbers = #tpu.dot_dimension_numbers<[1], [0], [0], [1], [0, 0, 1, 1], [], []>} : vector<32x32xf32>, vector<32x8xf32>, vector<32x8xf32> -> vector<32x8xf32>
    %69 = vector.extract_strided_slice %15 {offsets = [16, 0], sizes = [8, 32], strides = [1, 1]} : vector<32x32xf32> to vector<8x32xf32>
    %cst_30 = arith.constant dense<0.000000e+00> : vector<32x32xf32>
    %70 = tpu.matmul %68, %69, %cst_30 {dimension_numbers = #tpu.dot_dimension_numbers<[1], [0], [0], [1], [0, 0, 1, 1], [], []>} : vector<32x8xf32>, vector<8x32xf32>, vector<32x32xf32> -> vector<32x32xf32>
    %71 = arith.addf %52, %70 : vector<32x32xf32>
    %72 = vector.extract_strided_slice %11 {offsets = [0, 24], sizes = [32, 8], strides = [1, 1]} : vector<32x32xf32> to vector<32x8xf32>
    %73 = vector.extract_strided_slice %12 {offsets = [0, 24], sizes = [32, 8], strides = [1, 1]} : vector<32x32xf32> to vector<32x8xf32>
    %cst_31 = arith.constant dense<0.000000e+00> : vector<32x32xf32>
    %74 = tpu.matmul %72, %73, %cst_31 {dimension_numbers = #tpu.dot_dimension_numbers<[1], [1], [0], [0], [0, 0, 1, 0], [], []>} : vector<32x8xf32>, vector<32x8xf32>, vector<32x32xf32> -> vector<32x32xf32>
    %75 = arith.addf %74, %0 : vector<32x32xf32>
    %cst_32 = arith.constant dense<0xFF800000> : vector<32xf32>
    %76 = vector.multi_reduction <maximumf>, %75, %cst_32 [1] : vector<32x32xf32> to vector<32xf32>
    %77 = vector.shape_cast %76 : vector<32xf32> to vector<32x1xf32>
    %78 = vector.broadcast %77 : vector<32x1xf32> to vector<32x32xf32>
    %79 = arith.subf %75, %78 : vector<32x32xf32>
    %80 = math.exp %79 : vector<32x32xf32>
    %cst_33 = arith.constant dense<0.000000e+00> : vector<32xf32>
    %81 = vector.multi_reduction <add>, %80, %cst_33 [1] : vector<32x32xf32> to vector<32xf32>
    %82 = vector.shape_cast %81 : vector<32xf32> to vector<32x1xf32>
    %83 = tpu.reciprocal %82 {approx = true} : vector<32x1xf32> -> vector<32x1xf32>
    %84 = vector.broadcast %83 : vector<32x1xf32> to vector<32x32xf32>
    %85 = arith.mulf %80, %84 : vector<32x32xf32>
    %86 = vector.extract_strided_slice %13 {offsets = [0, 24], sizes = [32, 8], strides = [1, 1]} : vector<32x32xf32> to vector<32x8xf32>
    %cst_34 = arith.constant dense<0.000000e+00> : vector<32x8xf32>
    %87 = tpu.matmul %85, %86, %cst_34 {dimension_numbers = #tpu.dot_dimension_numbers<[1], [0], [0], [1], [0, 0, 1, 1], [], []>} : vector<32x32xf32>, vector<32x8xf32>, vector<32x8xf32> -> vector<32x8xf32>
    %88 = vector.extract_strided_slice %15 {offsets = [24, 0], sizes = [8, 32], strides = [1, 1]} : vector<32x32xf32> to vector<8x32xf32>
    %cst_35 = arith.constant dense<0.000000e+00> : vector<32x32xf32>
    %89 = tpu.matmul %87, %88, %cst_35 {dimension_numbers = #tpu.dot_dimension_numbers<[1], [0], [0], [1], [0, 0, 1, 1], [], []>} : vector<32x8xf32>, vector<8x32xf32>, vector<32x32xf32> -> vector<32x32xf32>
    %90 = arith.addf %71, %89 : vector<32x32xf32>
    %c0_36 = arith.constant 0 : index
    %c0_37 = arith.constant 0 : index
    %c0_38 = arith.constant 0 : index
    %91 = vector.load %arg8[%c0_36, %c0_37, %c0_38] : memref<2x1x32xf32, #tpu.memory_space<vmem>>, vector<1x1x32xf32>
    %92 = vector.shape_cast %91 : vector<1x1x32xf32> to vector<1x32xf32>
    %93 = vector.broadcast %92 : vector<1x32xf32> to vector<32x32xf32>
    %94 = arith.addf %90, %93 : vector<32x32xf32>
    %95 = arith.addf %3, %94 : vector<32x32xf32>
    %c0_39 = arith.constant 0 : index
    %c0_40 = arith.constant 0 : index
    %c0_41 = arith.constant 0 : index
    %96 = vector.load %arg9[%c0_39, %c0_40, %c0_41] : memref<2x1x32xf32, #tpu.memory_space<vmem>>, vector<1x1x32xf32>
    %97 = vector.shape_cast %96 : vector<1x1x32xf32> to vector<1x32xf32>
    %c0_42 = arith.constant 0 : index
    %c0_43 = arith.constant 0 : index
    %c0_44 = arith.constant 0 : index
    %98 = vector.load %arg10[%c0_42, %c0_43, %c0_44] : memref<2x1x32xf32, #tpu.memory_space<vmem>>, vector<1x1x32xf32>
    %99 = vector.shape_cast %98 : vector<1x1x32xf32> to vector<1x32xf32>
    %cst_45 = arith.constant dense<0.000000e+00> : vector<32xf32>
    %100 = vector.multi_reduction <add>, %95, %cst_45 [1] : vector<32x32xf32> to vector<32xf32>
    %101 = vector.shape_cast %100 : vector<32xf32> to vector<32x1xf32>
    %cst_46 = arith.constant 3.200000e+01 : f32
    %102 = vector.broadcast %cst_46 : f32 to vector<32x1xf32>
    %103 = arith.divf %101, %102 : vector<32x1xf32>
    %104 = vector.broadcast %103 : vector<32x1xf32> to vector<32x32xf32>
    %105 = arith.subf %95, %104 : vector<32x32xf32>
    %106 = vector.broadcast %103 : vector<32x1xf32> to vector<32x32xf32>
    %107 = arith.subf %95, %106 : vector<32x32xf32>
    %108 = arith.mulf %105, %107 : vector<32x32xf32>
    %cst_47 = arith.constant dense<0.000000e+00> : vector<32xf32>
    %109 = vector.multi_reduction <add>, %108, %cst_47 [1] : vector<32x32xf32> to vector<32xf32>
    %110 = vector.shape_cast %109 : vector<32xf32> to vector<32x1xf32>
    %cst_48 = arith.constant 3.200000e+01 : f32
    %111 = vector.broadcast %cst_48 : f32 to vector<32x1xf32>
    %112 = arith.divf %110, %111 : vector<32x1xf32>
    %113 = vector.broadcast %103 : vector<32x1xf32> to vector<32x32xf32>
    %114 = arith.subf %95, %113 : vector<32x32xf32>
    %cst_49 = arith.constant 9.99999974E-6 : f32
    %115 = vector.broadcast %cst_49 : f32 to vector<32x1xf32>
    %116 = arith.addf %112, %115 : vector<32x1xf32>
    %117 = math.rsqrt %116 : vector<32x1xf32>
    %118 = vector.broadcast %117 : vector<32x1xf32> to vector<32x32xf32>
    %119 = arith.mulf %114, %118 : vector<32x32xf32>
    %120 = vector.broadcast %97 : vector<1x32xf32> to vector<32x32xf32>
    %121 = arith.mulf %119, %120 : vector<32x32xf32>
    %122 = vector.broadcast %99 : vector<1x32xf32> to vector<32x32xf32>
    %123 = arith.addf %121, %122 : vector<32x32xf32>
    %c0_50 = arith.constant 0 : index
    %c0_51 = arith.constant 0 : index
    %c0_52 = arith.constant 0 : index
    %124 = vector.load %arg11[%c0_50, %c0_51, %c0_52] : memref<2x32x64xf32, #tpu.memory_space<vmem>>, vector<1x32x64xf32>
    %125 = vector.shape_cast %124 : vector<1x32x64xf32> to vector<32x64xf32>
    %cst_53 = arith.constant dense<0.000000e+00> : vector<32x64xf32>
    %126 = tpu.matmul %123, %125, %cst_53 {dimension_numbers = #tpu.dot_dimension_numbers<[1], [0], [0], [1], [0, 0, 1, 1], [], []>} : vector<32x32xf32>, vector<32x64xf32>, vector<32x64xf32> -> vector<32x64xf32>
    %c0_54 = arith.constant 0 : index
    %c0_55 = arith.constant 0 : index
    %c0_56 = arith.constant 0 : index
    %127 = vector.load %arg12[%c0_54, %c0_55, %c0_56] : memref<2x1x64xf32, #tpu.memory_space<vmem>>, vector<1x1x64xf32>
    %128 = vector.shape_cast %127 : vector<1x1x64xf32> to vector<1x64xf32>
    %129 = vector.broadcast %128 : vector<1x64xf32> to vector<32x64xf32>
    %130 = arith.addf %126, %129 : vector<32x64xf32>
    %cst_57 = arith.constant 0.000000e+00 : f32
    %131 = vector.broadcast %cst_57 : f32 to vector<32x64xf32>
    %132 = arith.maximumf %130, %131 : vector<32x64xf32>
    %c0_58 = arith.constant 0 : index
    %c0_59 = arith.constant 0 : index
    %c0_60 = arith.constant 0 : index
    %133 = vector.load %arg13[%c0_58, %c0_59, %c0_60] : memref<2x64x32xf32, #tpu.memory_space<vmem>>, vector<1x64x32xf32>
    %134 = vector.shape_cast %133 : vector<1x64x32xf32> to vector<64x32xf32>
    %cst_61 = arith.constant dense<0.000000e+00> : vector<32x32xf32>
    %135 = tpu.matmul %132, %134, %cst_61 {dimension_numbers = #tpu.dot_dimension_numbers<[1], [0], [0], [1], [0, 0, 1, 1], [], []>} : vector<32x64xf32>, vector<64x32xf32>, vector<32x32xf32> -> vector<32x32xf32>
    %c0_62 = arith.constant 0 : index
    %c0_63 = arith.constant 0 : index
    %c0_64 = arith.constant 0 : index
    %136 = vector.load %arg14[%c0_62, %c0_63, %c0_64] : memref<2x1x32xf32, #tpu.memory_space<vmem>>, vector<1x1x32xf32>
    %137 = vector.shape_cast %136 : vector<1x1x32xf32> to vector<1x32xf32>
    %138 = vector.broadcast %137 : vector<1x32xf32> to vector<32x32xf32>
    %139 = arith.addf %135, %138 : vector<32x32xf32>
    %140 = arith.addf %123, %139 : vector<32x32xf32>
    %c0_65 = arith.constant 0 : index
    %c0_66 = arith.constant 0 : index
    %c0_67 = arith.constant 0 : index
    %141 = vector.load %arg15[%c0_65, %c0_66, %c0_67] : memref<2x1x32xf32, #tpu.memory_space<vmem>>, vector<1x1x32xf32>
    %142 = vector.shape_cast %141 : vector<1x1x32xf32> to vector<1x32xf32>
    %c0_68 = arith.constant 0 : index
    %c0_69 = arith.constant 0 : index
    %c0_70 = arith.constant 0 : index
    %143 = vector.load %arg16[%c0_68, %c0_69, %c0_70] : memref<2x1x32xf32, #tpu.memory_space<vmem>>, vector<1x1x32xf32>
    %144 = vector.shape_cast %143 : vector<1x1x32xf32> to vector<1x32xf32>
    %cst_71 = arith.constant dense<0.000000e+00> : vector<32xf32>
    %145 = vector.multi_reduction <add>, %140, %cst_71 [1] : vector<32x32xf32> to vector<32xf32>
    %146 = vector.shape_cast %145 : vector<32xf32> to vector<32x1xf32>
    %cst_72 = arith.constant 3.200000e+01 : f32
    %147 = vector.broadcast %cst_72 : f32 to vector<32x1xf32>
    %148 = arith.divf %146, %147 : vector<32x1xf32>
    %149 = vector.broadcast %148 : vector<32x1xf32> to vector<32x32xf32>
    %150 = arith.subf %140, %149 : vector<32x32xf32>
    %151 = vector.broadcast %148 : vector<32x1xf32> to vector<32x32xf32>
    %152 = arith.subf %140, %151 : vector<32x32xf32>
    %153 = arith.mulf %150, %152 : vector<32x32xf32>
    %cst_73 = arith.constant dense<0.000000e+00> : vector<32xf32>
    %154 = vector.multi_reduction <add>, %153, %cst_73 [1] : vector<32x32xf32> to vector<32xf32>
    %155 = vector.shape_cast %154 : vector<32xf32> to vector<32x1xf32>
    %cst_74 = arith.constant 3.200000e+01 : f32
    %156 = vector.broadcast %cst_74 : f32 to vector<32x1xf32>
    %157 = arith.divf %155, %156 : vector<32x1xf32>
    %158 = vector.broadcast %148 : vector<32x1xf32> to vector<32x32xf32>
    %159 = arith.subf %140, %158 : vector<32x32xf32>
    %cst_75 = arith.constant 9.99999974E-6 : f32
    %160 = vector.broadcast %cst_75 : f32 to vector<32x1xf32>
    %161 = arith.addf %157, %160 : vector<32x1xf32>
    %162 = math.rsqrt %161 : vector<32x1xf32>
    %163 = vector.broadcast %162 : vector<32x1xf32> to vector<32x32xf32>
    %164 = arith.mulf %159, %163 : vector<32x32xf32>
    %165 = vector.broadcast %142 : vector<1x32xf32> to vector<32x32xf32>
    %166 = arith.mulf %164, %165 : vector<32x32xf32>
    %167 = vector.broadcast %144 : vector<1x32xf32> to vector<32x32xf32>
    %168 = arith.addf %166, %167 : vector<32x32xf32>
    %c1 = arith.constant 1 : index
    %c0_76 = arith.constant 0 : index
    %c0_77 = arith.constant 0 : index
    %169 = vector.load %arg5[%c1, %c0_76, %c0_77] : memref<2x32x96xf32, #tpu.memory_space<vmem>>, vector<1x32x96xf32>
    %170 = vector.shape_cast %169 : vector<1x32x96xf32> to vector<32x96xf32>
    %cst_78 = arith.constant dense<0.000000e+00> : vector<32x96xf32>
    %171 = tpu.matmul %168, %170, %cst_78 {dimension_numbers = #tpu.dot_dimension_numbers<[1], [0], [0], [1], [0, 0, 1, 1], [], []>} : vector<32x32xf32>, vector<32x96xf32>, vector<32x96xf32> -> vector<32x96xf32>
    %c1_79 = arith.constant 1 : index
    %c0_80 = arith.constant 0 : index
    %c0_81 = arith.constant 0 : index
    %172 = vector.load %arg6[%c1_79, %c0_80, %c0_81] : memref<2x1x96xf32, #tpu.memory_space<vmem>>, vector<1x1x96xf32>
    %173 = vector.shape_cast %172 : vector<1x1x96xf32> to vector<1x96xf32>
    %174 = vector.broadcast %173 : vector<1x96xf32> to vector<32x96xf32>
    %175 = arith.addf %171, %174 : vector<32x96xf32>
    %176 = vector.extract_strided_slice %175 {offsets = [0, 0], sizes = [32, 32], strides = [1, 1]} : vector<32x96xf32> to vector<32x32xf32>
    %177 = vector.extract_strided_slice %175 {offsets = [0, 32], sizes = [32, 32], strides = [1, 1]} : vector<32x96xf32> to vector<32x32xf32>
    %178 = vector.extract_strided_slice %175 {offsets = [0, 64], sizes = [32, 32], strides = [1, 1]} : vector<32x96xf32> to vector<32x32xf32>
    %c1_82 = arith.constant 1 : index
    %c0_83 = arith.constant 0 : index
    %c0_84 = arith.constant 0 : index
    %179 = vector.load %arg7[%c1_82, %c0_83, %c0_84] : memref<2x32x32xf32, #tpu.memory_space<vmem>>, vector<1x32x32xf32>
    %180 = vector.shape_cast %179 : vector<1x32x32xf32> to vector<32x32xf32>
    %181 = vector.extract_strided_slice %176 {offsets = [0, 0], sizes = [32, 8], strides = [1, 1]} : vector<32x32xf32> to vector<32x8xf32>
    %182 = vector.extract_strided_slice %177 {offsets = [0, 0], sizes = [32, 8], strides = [1, 1]} : vector<32x32xf32> to vector<32x8xf32>
    %cst_85 = arith.constant dense<0.000000e+00> : vector<32x32xf32>
    %183 = tpu.matmul %181, %182, %cst_85 {dimension_numbers = #tpu.dot_dimension_numbers<[1], [1], [0], [0], [0, 0, 1, 0], [], []>} : vector<32x8xf32>, vector<32x8xf32>, vector<32x32xf32> -> vector<32x32xf32>
    %184 = arith.addf %183, %0 : vector<32x32xf32>
    %cst_86 = arith.constant dense<0xFF800000> : vector<32xf32>
    %185 = vector.multi_reduction <maximumf>, %184, %cst_86 [1] : vector<32x32xf32> to vector<32xf32>
    %186 = vector.shape_cast %185 : vector<32xf32> to vector<32x1xf32>
    %187 = vector.broadcast %186 : vector<32x1xf32> to vector<32x32xf32>
    %188 = arith.subf %184, %187 : vector<32x32xf32>
    %189 = math.exp %188 : vector<32x32xf32>
    %cst_87 = arith.constant dense<0.000000e+00> : vector<32xf32>
    %190 = vector.multi_reduction <add>, %189, %cst_87 [1] : vector<32x32xf32> to vector<32xf32>
    %191 = vector.shape_cast %190 : vector<32xf32> to vector<32x1xf32>
    %192 = tpu.reciprocal %191 {approx = true} : vector<32x1xf32> -> vector<32x1xf32>
    %193 = vector.broadcast %192 : vector<32x1xf32> to vector<32x32xf32>
    %194 = arith.mulf %189, %193 : vector<32x32xf32>
    %195 = vector.extract_strided_slice %178 {offsets = [0, 0], sizes = [32, 8], strides = [1, 1]} : vector<32x32xf32> to vector<32x8xf32>
    %cst_88 = arith.constant dense<0.000000e+00> : vector<32x8xf32>
    %196 = tpu.matmul %194, %195, %cst_88 {dimension_numbers = #tpu.dot_dimension_numbers<[1], [0], [0], [1], [0, 0, 1, 1], [], []>} : vector<32x32xf32>, vector<32x8xf32>, vector<32x8xf32> -> vector<32x8xf32>
    %197 = vector.extract_strided_slice %180 {offsets = [0, 0], sizes = [8, 32], strides = [1, 1]} : vector<32x32xf32> to vector<8x32xf32>
    %cst_89 = arith.constant dense<0.000000e+00> : vector<32x32xf32>
    %198 = tpu.matmul %196, %197, %cst_89 {dimension_numbers = #tpu.dot_dimension_numbers<[1], [0], [0], [1], [0, 0, 1, 1], [], []>} : vector<32x8xf32>, vector<8x32xf32>, vector<32x32xf32> -> vector<32x32xf32>
    %199 = vector.extract_strided_slice %176 {offsets = [0, 8], sizes = [32, 8], strides = [1, 1]} : vector<32x32xf32> to vector<32x8xf32>
    %200 = vector.extract_strided_slice %177 {offsets = [0, 8], sizes = [32, 8], strides = [1, 1]} : vector<32x32xf32> to vector<32x8xf32>
    %cst_90 = arith.constant dense<0.000000e+00> : vector<32x32xf32>
    %201 = tpu.matmul %199, %200, %cst_90 {dimension_numbers = #tpu.dot_dimension_numbers<[1], [1], [0], [0], [0, 0, 1, 0], [], []>} : vector<32x8xf32>, vector<32x8xf32>, vector<32x32xf32> -> vector<32x32xf32>
    %202 = arith.addf %201, %0 : vector<32x32xf32>
    %cst_91 = arith.constant dense<0xFF800000> : vector<32xf32>
    %203 = vector.multi_reduction <maximumf>, %202, %cst_91 [1] : vector<32x32xf32> to vector<32xf32>
    %204 = vector.shape_cast %203 : vector<32xf32> to vector<32x1xf32>
    %205 = vector.broadcast %204 : vector<32x1xf32> to vector<32x32xf32>
    %206 = arith.subf %202, %205 : vector<32x32xf32>
    %207 = math.exp %206 : vector<32x32xf32>
    %cst_92 = arith.constant dense<0.000000e+00> : vector<32xf32>
    %208 = vector.multi_reduction <add>, %207, %cst_92 [1] : vector<32x32xf32> to vector<32xf32>
    %209 = vector.shape_cast %208 : vector<32xf32> to vector<32x1xf32>
    %210 = tpu.reciprocal %209 {approx = true} : vector<32x1xf32> -> vector<32x1xf32>
    %211 = vector.broadcast %210 : vector<32x1xf32> to vector<32x32xf32>
    %212 = arith.mulf %207, %211 : vector<32x32xf32>
    %213 = vector.extract_strided_slice %178 {offsets = [0, 8], sizes = [32, 8], strides = [1, 1]} : vector<32x32xf32> to vector<32x8xf32>
    %cst_93 = arith.constant dense<0.000000e+00> : vector<32x8xf32>
    %214 = tpu.matmul %212, %213, %cst_93 {dimension_numbers = #tpu.dot_dimension_numbers<[1], [0], [0], [1], [0, 0, 1, 1], [], []>} : vector<32x32xf32>, vector<32x8xf32>, vector<32x8xf32> -> vector<32x8xf32>
    %215 = vector.extract_strided_slice %180 {offsets = [8, 0], sizes = [8, 32], strides = [1, 1]} : vector<32x32xf32> to vector<8x32xf32>
    %cst_94 = arith.constant dense<0.000000e+00> : vector<32x32xf32>
    %216 = tpu.matmul %214, %215, %cst_94 {dimension_numbers = #tpu.dot_dimension_numbers<[1], [0], [0], [1], [0, 0, 1, 1], [], []>} : vector<32x8xf32>, vector<8x32xf32>, vector<32x32xf32> -> vector<32x32xf32>
    %217 = arith.addf %198, %216 : vector<32x32xf32>
    %218 = vector.extract_strided_slice %176 {offsets = [0, 16], sizes = [32, 8], strides = [1, 1]} : vector<32x32xf32> to vector<32x8xf32>
    %219 = vector.extract_strided_slice %177 {offsets = [0, 16], sizes = [32, 8], strides = [1, 1]} : vector<32x32xf32> to vector<32x8xf32>
    %cst_95 = arith.constant dense<0.000000e+00> : vector<32x32xf32>
    %220 = tpu.matmul %218, %219, %cst_95 {dimension_numbers = #tpu.dot_dimension_numbers<[1], [1], [0], [0], [0, 0, 1, 0], [], []>} : vector<32x8xf32>, vector<32x8xf32>, vector<32x32xf32> -> vector<32x32xf32>
    %221 = arith.addf %220, %0 : vector<32x32xf32>
    %cst_96 = arith.constant dense<0xFF800000> : vector<32xf32>
    %222 = vector.multi_reduction <maximumf>, %221, %cst_96 [1] : vector<32x32xf32> to vector<32xf32>
    %223 = vector.shape_cast %222 : vector<32xf32> to vector<32x1xf32>
    %224 = vector.broadcast %223 : vector<32x1xf32> to vector<32x32xf32>
    %225 = arith.subf %221, %224 : vector<32x32xf32>
    %226 = math.exp %225 : vector<32x32xf32>
    %cst_97 = arith.constant dense<0.000000e+00> : vector<32xf32>
    %227 = vector.multi_reduction <add>, %226, %cst_97 [1] : vector<32x32xf32> to vector<32xf32>
    %228 = vector.shape_cast %227 : vector<32xf32> to vector<32x1xf32>
    %229 = tpu.reciprocal %228 {approx = true} : vector<32x1xf32> -> vector<32x1xf32>
    %230 = vector.broadcast %229 : vector<32x1xf32> to vector<32x32xf32>
    %231 = arith.mulf %226, %230 : vector<32x32xf32>
    %232 = vector.extract_strided_slice %178 {offsets = [0, 16], sizes = [32, 8], strides = [1, 1]} : vector<32x32xf32> to vector<32x8xf32>
    %cst_98 = arith.constant dense<0.000000e+00> : vector<32x8xf32>
    %233 = tpu.matmul %231, %232, %cst_98 {dimension_numbers = #tpu.dot_dimension_numbers<[1], [0], [0], [1], [0, 0, 1, 1], [], []>} : vector<32x32xf32>, vector<32x8xf32>, vector<32x8xf32> -> vector<32x8xf32>
    %234 = vector.extract_strided_slice %180 {offsets = [16, 0], sizes = [8, 32], strides = [1, 1]} : vector<32x32xf32> to vector<8x32xf32>
    %cst_99 = arith.constant dense<0.000000e+00> : vector<32x32xf32>
    %235 = tpu.matmul %233, %234, %cst_99 {dimension_numbers = #tpu.dot_dimension_numbers<[1], [0], [0], [1], [0, 0, 1, 1], [], []>} : vector<32x8xf32>, vector<8x32xf32>, vector<32x32xf32> -> vector<32x32xf32>
    %236 = arith.addf %217, %235 : vector<32x32xf32>
    %237 = vector.extract_strided_slice %176 {offsets = [0, 24], sizes = [32, 8], strides = [1, 1]} : vector<32x32xf32> to vector<32x8xf32>
    %238 = vector.extract_strided_slice %177 {offsets = [0, 24], sizes = [32, 8], strides = [1, 1]} : vector<32x32xf32> to vector<32x8xf32>
    %cst_100 = arith.constant dense<0.000000e+00> : vector<32x32xf32>
    %239 = tpu.matmul %237, %238, %cst_100 {dimension_numbers = #tpu.dot_dimension_numbers<[1], [1], [0], [0], [0, 0, 1, 0], [], []>} : vector<32x8xf32>, vector<32x8xf32>, vector<32x32xf32> -> vector<32x32xf32>
    %240 = arith.addf %239, %0 : vector<32x32xf32>
    %cst_101 = arith.constant dense<0xFF800000> : vector<32xf32>
    %241 = vector.multi_reduction <maximumf>, %240, %cst_101 [1] : vector<32x32xf32> to vector<32xf32>
    %242 = vector.shape_cast %241 : vector<32xf32> to vector<32x1xf32>
    %243 = vector.broadcast %242 : vector<32x1xf32> to vector<32x32xf32>
    %244 = arith.subf %240, %243 : vector<32x32xf32>
    %245 = math.exp %244 : vector<32x32xf32>
    %cst_102 = arith.constant dense<0.000000e+00> : vector<32xf32>
    %246 = vector.multi_reduction <add>, %245, %cst_102 [1] : vector<32x32xf32> to vector<32xf32>
    %247 = vector.shape_cast %246 : vector<32xf32> to vector<32x1xf32>
    %248 = tpu.reciprocal %247 {approx = true} : vector<32x1xf32> -> vector<32x1xf32>
    %249 = vector.broadcast %248 : vector<32x1xf32> to vector<32x32xf32>
    %250 = arith.mulf %245, %249 : vector<32x32xf32>
    %251 = vector.extract_strided_slice %178 {offsets = [0, 24], sizes = [32, 8], strides = [1, 1]} : vector<32x32xf32> to vector<32x8xf32>
    %cst_103 = arith.constant dense<0.000000e+00> : vector<32x8xf32>
    %252 = tpu.matmul %250, %251, %cst_103 {dimension_numbers = #tpu.dot_dimension_numbers<[1], [0], [0], [1], [0, 0, 1, 1], [], []>} : vector<32x32xf32>, vector<32x8xf32>, vector<32x8xf32> -> vector<32x8xf32>
    %253 = vector.extract_strided_slice %180 {offsets = [24, 0], sizes = [8, 32], strides = [1, 1]} : vector<32x32xf32> to vector<8x32xf32>
    %cst_104 = arith.constant dense<0.000000e+00> : vector<32x32xf32>
    %254 = tpu.matmul %252, %253, %cst_104 {dimension_numbers = #tpu.dot_dimension_numbers<[1], [0], [0], [1], [0, 0, 1, 1], [], []>} : vector<32x8xf32>, vector<8x32xf32>, vector<32x32xf32> -> vector<32x32xf32>
    %255 = arith.addf %236, %254 : vector<32x32xf32>
    %c1_105 = arith.constant 1 : index
    %c0_106 = arith.constant 0 : index
    %c0_107 = arith.constant 0 : index
    %256 = vector.load %arg8[%c1_105, %c0_106, %c0_107] : memref<2x1x32xf32, #tpu.memory_space<vmem>>, vector<1x1x32xf32>
    %257 = vector.shape_cast %256 : vector<1x1x32xf32> to vector<1x32xf32>
    %258 = vector.broadcast %257 : vector<1x32xf32> to vector<32x32xf32>
    %259 = arith.addf %255, %258 : vector<32x32xf32>
    %260 = arith.addf %168, %259 : vector<32x32xf32>
    %c1_108 = arith.constant 1 : index
    %c0_109 = arith.constant 0 : index
    %c0_110 = arith.constant 0 : index
    %261 = vector.load %arg9[%c1_108, %c0_109, %c0_110] : memref<2x1x32xf32, #tpu.memory_space<vmem>>, vector<1x1x32xf32>
    %262 = vector.shape_cast %261 : vector<1x1x32xf32> to vector<1x32xf32>
    %c1_111 = arith.constant 1 : index
    %c0_112 = arith.constant 0 : index
    %c0_113 = arith.constant 0 : index
    %263 = vector.load %arg10[%c1_111, %c0_112, %c0_113] : memref<2x1x32xf32, #tpu.memory_space<vmem>>, vector<1x1x32xf32>
    %264 = vector.shape_cast %263 : vector<1x1x32xf32> to vector<1x32xf32>
    %cst_114 = arith.constant dense<0.000000e+00> : vector<32xf32>
    %265 = vector.multi_reduction <add>, %260, %cst_114 [1] : vector<32x32xf32> to vector<32xf32>
    %266 = vector.shape_cast %265 : vector<32xf32> to vector<32x1xf32>
    %cst_115 = arith.constant 3.200000e+01 : f32
    %267 = vector.broadcast %cst_115 : f32 to vector<32x1xf32>
    %268 = arith.divf %266, %267 : vector<32x1xf32>
    %269 = vector.broadcast %268 : vector<32x1xf32> to vector<32x32xf32>
    %270 = arith.subf %260, %269 : vector<32x32xf32>
    %271 = vector.broadcast %268 : vector<32x1xf32> to vector<32x32xf32>
    %272 = arith.subf %260, %271 : vector<32x32xf32>
    %273 = arith.mulf %270, %272 : vector<32x32xf32>
    %cst_116 = arith.constant dense<0.000000e+00> : vector<32xf32>
    %274 = vector.multi_reduction <add>, %273, %cst_116 [1] : vector<32x32xf32> to vector<32xf32>
    %275 = vector.shape_cast %274 : vector<32xf32> to vector<32x1xf32>
    %cst_117 = arith.constant 3.200000e+01 : f32
    %276 = vector.broadcast %cst_117 : f32 to vector<32x1xf32>
    %277 = arith.divf %275, %276 : vector<32x1xf32>
    %278 = vector.broadcast %268 : vector<32x1xf32> to vector<32x32xf32>
    %279 = arith.subf %260, %278 : vector<32x32xf32>
    %cst_118 = arith.constant 9.99999974E-6 : f32
    %280 = vector.broadcast %cst_118 : f32 to vector<32x1xf32>
    %281 = arith.addf %277, %280 : vector<32x1xf32>
    %282 = math.rsqrt %281 : vector<32x1xf32>
    %283 = vector.broadcast %282 : vector<32x1xf32> to vector<32x32xf32>
    %284 = arith.mulf %279, %283 : vector<32x32xf32>
    %285 = vector.broadcast %262 : vector<1x32xf32> to vector<32x32xf32>
    %286 = arith.mulf %284, %285 : vector<32x32xf32>
    %287 = vector.broadcast %264 : vector<1x32xf32> to vector<32x32xf32>
    %288 = arith.addf %286, %287 : vector<32x32xf32>
    %c1_119 = arith.constant 1 : index
    %c0_120 = arith.constant 0 : index
    %c0_121 = arith.constant 0 : index
    %289 = vector.load %arg11[%c1_119, %c0_120, %c0_121] : memref<2x32x64xf32, #tpu.memory_space<vmem>>, vector<1x32x64xf32>
    %290 = vector.shape_cast %289 : vector<1x32x64xf32> to vector<32x64xf32>
    %cst_122 = arith.constant dense<0.000000e+00> : vector<32x64xf32>
    %291 = tpu.matmul %288, %290, %cst_122 {dimension_numbers = #tpu.dot_dimension_numbers<[1], [0], [0], [1], [0, 0, 1, 1], [], []>} : vector<32x32xf32>, vector<32x64xf32>, vector<32x64xf32> -> vector<32x64xf32>
    %c1_123 = arith.constant 1 : index
    %c0_124 = arith.constant 0 : index
    %c0_125 = arith.constant 0 : index
    %292 = vector.load %arg12[%c1_123, %c0_124, %c0_125] : memref<2x1x64xf32, #tpu.memory_space<vmem>>, vector<1x1x64xf32>
    %293 = vector.shape_cast %292 : vector<1x1x64xf32> to vector<1x64xf32>
    %294 = vector.broadcast %293 : vector<1x64xf32> to vector<32x64xf32>
    %295 = arith.addf %291, %294 : vector<32x64xf32>
    %cst_126 = arith.constant 0.000000e+00 : f32
    %296 = vector.broadcast %cst_126 : f32 to vector<32x64xf32>
    %297 = arith.maximumf %295, %296 : vector<32x64xf32>
    %c1_127 = arith.constant 1 : index
    %c0_128 = arith.constant 0 : index
    %c0_129 = arith.constant 0 : index
    %298 = vector.load %arg13[%c1_127, %c0_128, %c0_129] : memref<2x64x32xf32, #tpu.memory_space<vmem>>, vector<1x64x32xf32>
    %299 = vector.shape_cast %298 : vector<1x64x32xf32> to vector<64x32xf32>
    %cst_130 = arith.constant dense<0.000000e+00> : vector<32x32xf32>
    %300 = tpu.matmul %297, %299, %cst_130 {dimension_numbers = #tpu.dot_dimension_numbers<[1], [0], [0], [1], [0, 0, 1, 1], [], []>} : vector<32x64xf32>, vector<64x32xf32>, vector<32x32xf32> -> vector<32x32xf32>
    %c1_131 = arith.constant 1 : index
    %c0_132 = arith.constant 0 : index
    %c0_133 = arith.constant 0 : index
    %301 = vector.load %arg14[%c1_131, %c0_132, %c0_133] : memref<2x1x32xf32, #tpu.memory_space<vmem>>, vector<1x1x32xf32>
    %302 = vector.shape_cast %301 : vector<1x1x32xf32> to vector<1x32xf32>
    %303 = vector.broadcast %302 : vector<1x32xf32> to vector<32x32xf32>
    %304 = arith.addf %300, %303 : vector<32x32xf32>
    %305 = arith.addf %288, %304 : vector<32x32xf32>
    %c1_134 = arith.constant 1 : index
    %c0_135 = arith.constant 0 : index
    %c0_136 = arith.constant 0 : index
    %306 = vector.load %arg15[%c1_134, %c0_135, %c0_136] : memref<2x1x32xf32, #tpu.memory_space<vmem>>, vector<1x1x32xf32>
    %307 = vector.shape_cast %306 : vector<1x1x32xf32> to vector<1x32xf32>
    %c1_137 = arith.constant 1 : index
    %c0_138 = arith.constant 0 : index
    %c0_139 = arith.constant 0 : index
    %308 = vector.load %arg16[%c1_137, %c0_138, %c0_139] : memref<2x1x32xf32, #tpu.memory_space<vmem>>, vector<1x1x32xf32>
    %309 = vector.shape_cast %308 : vector<1x1x32xf32> to vector<1x32xf32>
    %cst_140 = arith.constant dense<0.000000e+00> : vector<32xf32>
    %310 = vector.multi_reduction <add>, %305, %cst_140 [1] : vector<32x32xf32> to vector<32xf32>
    %311 = vector.shape_cast %310 : vector<32xf32> to vector<32x1xf32>
    %cst_141 = arith.constant 3.200000e+01 : f32
    %312 = vector.broadcast %cst_141 : f32 to vector<32x1xf32>
    %313 = arith.divf %311, %312 : vector<32x1xf32>
    %314 = vector.broadcast %313 : vector<32x1xf32> to vector<32x32xf32>
    %315 = arith.subf %305, %314 : vector<32x32xf32>
    %316 = vector.broadcast %313 : vector<32x1xf32> to vector<32x32xf32>
    %317 = arith.subf %305, %316 : vector<32x32xf32>
    %318 = arith.mulf %315, %317 : vector<32x32xf32>
    %cst_142 = arith.constant dense<0.000000e+00> : vector<32xf32>
    %319 = vector.multi_reduction <add>, %318, %cst_142 [1] : vector<32x32xf32> to vector<32xf32>
    %320 = vector.shape_cast %319 : vector<32xf32> to vector<32x1xf32>
    %cst_143 = arith.constant 3.200000e+01 : f32
    %321 = vector.broadcast %cst_143 : f32 to vector<32x1xf32>
    %322 = arith.divf %320, %321 : vector<32x1xf32>
    %323 = vector.broadcast %313 : vector<32x1xf32> to vector<32x32xf32>
    %324 = arith.subf %305, %323 : vector<32x32xf32>
    %cst_144 = arith.constant 9.99999974E-6 : f32
    %325 = vector.broadcast %cst_144 : f32 to vector<32x1xf32>
    %326 = arith.addf %322, %325 : vector<32x1xf32>
    %327 = math.rsqrt %326 : vector<32x1xf32>
    %328 = vector.broadcast %327 : vector<32x1xf32> to vector<32x32xf32>
    %329 = arith.mulf %324, %328 : vector<32x32xf32>
    %330 = vector.broadcast %307 : vector<1x32xf32> to vector<32x32xf32>
    %331 = arith.mulf %329, %330 : vector<32x32xf32>
    %332 = vector.broadcast %309 : vector<1x32xf32> to vector<32x32xf32>
    %333 = arith.addf %331, %332 : vector<32x32xf32>
    %c0_145 = arith.constant 0 : index
    %c0_146 = arith.constant 0 : index
    %334 = vector.load %arg1[%c0_145, %c0_146] : memref<16x32xf32, #tpu.memory_space<vmem>>, vector<16x32xf32>
    %c0_147 = arith.constant 0 : index
    %c0_148 = arith.constant 0 : index
    %c0_149 = arith.constant 0 : index
    %335 = vector.load %arg17[%c0_147, %c0_148, %c0_149] : memref<2x32x96xf32, #tpu.memory_space<vmem>>, vector<1x32x96xf32>
    %336 = vector.shape_cast %335 : vector<1x32x96xf32> to vector<32x96xf32>
    %cst_150 = arith.constant dense<0.000000e+00> : vector<16x96xf32>
    %337 = tpu.matmul %334, %336, %cst_150 {dimension_numbers = #tpu.dot_dimension_numbers<[1], [0], [0], [1], [0, 0, 1, 1], [], []>} : vector<16x32xf32>, vector<32x96xf32>, vector<16x96xf32> -> vector<16x96xf32>
    %c0_151 = arith.constant 0 : index
    %c0_152 = arith.constant 0 : index
    %c0_153 = arith.constant 0 : index
    %338 = vector.load %arg18[%c0_151, %c0_152, %c0_153] : memref<2x1x96xf32, #tpu.memory_space<vmem>>, vector<1x1x96xf32>
    %339 = vector.shape_cast %338 : vector<1x1x96xf32> to vector<1x96xf32>
    %340 = vector.broadcast %339 : vector<1x96xf32> to vector<16x96xf32>
    %341 = arith.addf %337, %340 : vector<16x96xf32>
    %342 = vector.extract_strided_slice %341 {offsets = [0, 0], sizes = [16, 32], strides = [1, 1]} : vector<16x96xf32> to vector<16x32xf32>
    %343 = vector.extract_strided_slice %341 {offsets = [0, 32], sizes = [16, 32], strides = [1, 1]} : vector<16x96xf32> to vector<16x32xf32>
    %344 = vector.extract_strided_slice %341 {offsets = [0, 64], sizes = [16, 32], strides = [1, 1]} : vector<16x96xf32> to vector<16x32xf32>
    %c0_154 = arith.constant 0 : index
    %c0_155 = arith.constant 0 : index
    %c0_156 = arith.constant 0 : index
    %345 = vector.load %arg19[%c0_154, %c0_155, %c0_156] : memref<2x32x32xf32, #tpu.memory_space<vmem>>, vector<1x32x32xf32>
    %346 = vector.shape_cast %345 : vector<1x32x32xf32> to vector<32x32xf32>
    %347 = vector.extract_strided_slice %342 {offsets = [0, 0], sizes = [16, 8], strides = [1, 1]} : vector<16x32xf32> to vector<16x8xf32>
    %348 = vector.extract_strided_slice %343 {offsets = [0, 0], sizes = [16, 8], strides = [1, 1]} : vector<16x32xf32> to vector<16x8xf32>
    %cst_157 = arith.constant dense<0.000000e+00> : vector<16x16xf32>
    %349 = tpu.matmul %347, %348, %cst_157 {dimension_numbers = #tpu.dot_dimension_numbers<[1], [1], [0], [0], [0, 0, 1, 0], [], []>} : vector<16x8xf32>, vector<16x8xf32>, vector<16x16xf32> -> vector<16x16xf32>
    %350 = arith.addf %349, %1 : vector<16x16xf32>
    %cst_158 = arith.constant dense<0xFF800000> : vector<16xf32>
    %351 = vector.multi_reduction <maximumf>, %350, %cst_158 [1] : vector<16x16xf32> to vector<16xf32>
    %352 = vector.shape_cast %351 : vector<16xf32> to vector<16x1xf32>
    %353 = vector.broadcast %352 : vector<16x1xf32> to vector<16x16xf32>
    %354 = arith.subf %350, %353 : vector<16x16xf32>
    %355 = math.exp %354 : vector<16x16xf32>
    %cst_159 = arith.constant dense<0.000000e+00> : vector<16xf32>
    %356 = vector.multi_reduction <add>, %355, %cst_159 [1] : vector<16x16xf32> to vector<16xf32>
    %357 = vector.shape_cast %356 : vector<16xf32> to vector<16x1xf32>
    %358 = tpu.reciprocal %357 {approx = true} : vector<16x1xf32> -> vector<16x1xf32>
    %359 = vector.broadcast %358 : vector<16x1xf32> to vector<16x16xf32>
    %360 = arith.mulf %355, %359 : vector<16x16xf32>
    %361 = vector.extract_strided_slice %344 {offsets = [0, 0], sizes = [16, 8], strides = [1, 1]} : vector<16x32xf32> to vector<16x8xf32>
    %cst_160 = arith.constant dense<0.000000e+00> : vector<16x8xf32>
    %362 = tpu.matmul %360, %361, %cst_160 {dimension_numbers = #tpu.dot_dimension_numbers<[1], [0], [0], [1], [0, 0, 1, 1], [], []>} : vector<16x16xf32>, vector<16x8xf32>, vector<16x8xf32> -> vector<16x8xf32>
    %363 = vector.extract_strided_slice %346 {offsets = [0, 0], sizes = [8, 32], strides = [1, 1]} : vector<32x32xf32> to vector<8x32xf32>
    %cst_161 = arith.constant dense<0.000000e+00> : vector<16x32xf32>
    %364 = tpu.matmul %362, %363, %cst_161 {dimension_numbers = #tpu.dot_dimension_numbers<[1], [0], [0], [1], [0, 0, 1, 1], [], []>} : vector<16x8xf32>, vector<8x32xf32>, vector<16x32xf32> -> vector<16x32xf32>
    %365 = vector.extract_strided_slice %342 {offsets = [0, 8], sizes = [16, 8], strides = [1, 1]} : vector<16x32xf32> to vector<16x8xf32>
    %366 = vector.extract_strided_slice %343 {offsets = [0, 8], sizes = [16, 8], strides = [1, 1]} : vector<16x32xf32> to vector<16x8xf32>
    %cst_162 = arith.constant dense<0.000000e+00> : vector<16x16xf32>
    %367 = tpu.matmul %365, %366, %cst_162 {dimension_numbers = #tpu.dot_dimension_numbers<[1], [1], [0], [0], [0, 0, 1, 0], [], []>} : vector<16x8xf32>, vector<16x8xf32>, vector<16x16xf32> -> vector<16x16xf32>
    %368 = arith.addf %367, %1 : vector<16x16xf32>
    %cst_163 = arith.constant dense<0xFF800000> : vector<16xf32>
    %369 = vector.multi_reduction <maximumf>, %368, %cst_163 [1] : vector<16x16xf32> to vector<16xf32>
    %370 = vector.shape_cast %369 : vector<16xf32> to vector<16x1xf32>
    %371 = vector.broadcast %370 : vector<16x1xf32> to vector<16x16xf32>
    %372 = arith.subf %368, %371 : vector<16x16xf32>
    %373 = math.exp %372 : vector<16x16xf32>
    %cst_164 = arith.constant dense<0.000000e+00> : vector<16xf32>
    %374 = vector.multi_reduction <add>, %373, %cst_164 [1] : vector<16x16xf32> to vector<16xf32>
    %375 = vector.shape_cast %374 : vector<16xf32> to vector<16x1xf32>
    %376 = tpu.reciprocal %375 {approx = true} : vector<16x1xf32> -> vector<16x1xf32>
    %377 = vector.broadcast %376 : vector<16x1xf32> to vector<16x16xf32>
    %378 = arith.mulf %373, %377 : vector<16x16xf32>
    %379 = vector.extract_strided_slice %344 {offsets = [0, 8], sizes = [16, 8], strides = [1, 1]} : vector<16x32xf32> to vector<16x8xf32>
    %cst_165 = arith.constant dense<0.000000e+00> : vector<16x8xf32>
    %380 = tpu.matmul %378, %379, %cst_165 {dimension_numbers = #tpu.dot_dimension_numbers<[1], [0], [0], [1], [0, 0, 1, 1], [], []>} : vector<16x16xf32>, vector<16x8xf32>, vector<16x8xf32> -> vector<16x8xf32>
    %381 = vector.extract_strided_slice %346 {offsets = [8, 0], sizes = [8, 32], strides = [1, 1]} : vector<32x32xf32> to vector<8x32xf32>
    %cst_166 = arith.constant dense<0.000000e+00> : vector<16x32xf32>
    %382 = tpu.matmul %380, %381, %cst_166 {dimension_numbers = #tpu.dot_dimension_numbers<[1], [0], [0], [1], [0, 0, 1, 1], [], []>} : vector<16x8xf32>, vector<8x32xf32>, vector<16x32xf32> -> vector<16x32xf32>
    %383 = arith.addf %364, %382 : vector<16x32xf32>
    %384 = vector.extract_strided_slice %342 {offsets = [0, 16], sizes = [16, 8], strides = [1, 1]} : vector<16x32xf32> to vector<16x8xf32>
    %385 = vector.extract_strided_slice %343 {offsets = [0, 16], sizes = [16, 8], strides = [1, 1]} : vector<16x32xf32> to vector<16x8xf32>
    %cst_167 = arith.constant dense<0.000000e+00> : vector<16x16xf32>
    %386 = tpu.matmul %384, %385, %cst_167 {dimension_numbers = #tpu.dot_dimension_numbers<[1], [1], [0], [0], [0, 0, 1, 0], [], []>} : vector<16x8xf32>, vector<16x8xf32>, vector<16x16xf32> -> vector<16x16xf32>
    %387 = arith.addf %386, %1 : vector<16x16xf32>
    %cst_168 = arith.constant dense<0xFF800000> : vector<16xf32>
    %388 = vector.multi_reduction <maximumf>, %387, %cst_168 [1] : vector<16x16xf32> to vector<16xf32>
    %389 = vector.shape_cast %388 : vector<16xf32> to vector<16x1xf32>
    %390 = vector.broadcast %389 : vector<16x1xf32> to vector<16x16xf32>
    %391 = arith.subf %387, %390 : vector<16x16xf32>
    %392 = math.exp %391 : vector<16x16xf32>
    %cst_169 = arith.constant dense<0.000000e+00> : vector<16xf32>
    %393 = vector.multi_reduction <add>, %392, %cst_169 [1] : vector<16x16xf32> to vector<16xf32>
    %394 = vector.shape_cast %393 : vector<16xf32> to vector<16x1xf32>
    %395 = tpu.reciprocal %394 {approx = true} : vector<16x1xf32> -> vector<16x1xf32>
    %396 = vector.broadcast %395 : vector<16x1xf32> to vector<16x16xf32>
    %397 = arith.mulf %392, %396 : vector<16x16xf32>
    %398 = vector.extract_strided_slice %344 {offsets = [0, 16], sizes = [16, 8], strides = [1, 1]} : vector<16x32xf32> to vector<16x8xf32>
    %cst_170 = arith.constant dense<0.000000e+00> : vector<16x8xf32>
    %399 = tpu.matmul %397, %398, %cst_170 {dimension_numbers = #tpu.dot_dimension_numbers<[1], [0], [0], [1], [0, 0, 1, 1], [], []>} : vector<16x16xf32>, vector<16x8xf32>, vector<16x8xf32> -> vector<16x8xf32>
    %400 = vector.extract_strided_slice %346 {offsets = [16, 0], sizes = [8, 32], strides = [1, 1]} : vector<32x32xf32> to vector<8x32xf32>
    %cst_171 = arith.constant dense<0.000000e+00> : vector<16x32xf32>
    %401 = tpu.matmul %399, %400, %cst_171 {dimension_numbers = #tpu.dot_dimension_numbers<[1], [0], [0], [1], [0, 0, 1, 1], [], []>} : vector<16x8xf32>, vector<8x32xf32>, vector<16x32xf32> -> vector<16x32xf32>
    %402 = arith.addf %383, %401 : vector<16x32xf32>
    %403 = vector.extract_strided_slice %342 {offsets = [0, 24], sizes = [16, 8], strides = [1, 1]} : vector<16x32xf32> to vector<16x8xf32>
    %404 = vector.extract_strided_slice %343 {offsets = [0, 24], sizes = [16, 8], strides = [1, 1]} : vector<16x32xf32> to vector<16x8xf32>
    %cst_172 = arith.constant dense<0.000000e+00> : vector<16x16xf32>
    %405 = tpu.matmul %403, %404, %cst_172 {dimension_numbers = #tpu.dot_dimension_numbers<[1], [1], [0], [0], [0, 0, 1, 0], [], []>} : vector<16x8xf32>, vector<16x8xf32>, vector<16x16xf32> -> vector<16x16xf32>
    %406 = arith.addf %405, %1 : vector<16x16xf32>
    %cst_173 = arith.constant dense<0xFF800000> : vector<16xf32>
    %407 = vector.multi_reduction <maximumf>, %406, %cst_173 [1] : vector<16x16xf32> to vector<16xf32>
    %408 = vector.shape_cast %407 : vector<16xf32> to vector<16x1xf32>
    %409 = vector.broadcast %408 : vector<16x1xf32> to vector<16x16xf32>
    %410 = arith.subf %406, %409 : vector<16x16xf32>
    %411 = math.exp %410 : vector<16x16xf32>
    %cst_174 = arith.constant dense<0.000000e+00> : vector<16xf32>
    %412 = vector.multi_reduction <add>, %411, %cst_174 [1] : vector<16x16xf32> to vector<16xf32>
    %413 = vector.shape_cast %412 : vector<16xf32> to vector<16x1xf32>
    %414 = tpu.reciprocal %413 {approx = true} : vector<16x1xf32> -> vector<16x1xf32>
    %415 = vector.broadcast %414 : vector<16x1xf32> to vector<16x16xf32>
    %416 = arith.mulf %411, %415 : vector<16x16xf32>
    %417 = vector.extract_strided_slice %344 {offsets = [0, 24], sizes = [16, 8], strides = [1, 1]} : vector<16x32xf32> to vector<16x8xf32>
    %cst_175 = arith.constant dense<0.000000e+00> : vector<16x8xf32>
    %418 = tpu.matmul %416, %417, %cst_175 {dimension_numbers = #tpu.dot_dimension_numbers<[1], [0], [0], [1], [0, 0, 1, 1], [], []>} : vector<16x16xf32>, vector<16x8xf32>, vector<16x8xf32> -> vector<16x8xf32>
    %419 = vector.extract_strided_slice %346 {offsets = [24, 0], sizes = [8, 32], strides = [1, 1]} : vector<32x32xf32> to vector<8x32xf32>
    %cst_176 = arith.constant dense<0.000000e+00> : vector<16x32xf32>
    %420 = tpu.matmul %418, %419, %cst_176 {dimension_numbers = #tpu.dot_dimension_numbers<[1], [0], [0], [1], [0, 0, 1, 1], [], []>} : vector<16x8xf32>, vector<8x32xf32>, vector<16x32xf32> -> vector<16x32xf32>
    %421 = arith.addf %402, %420 : vector<16x32xf32>
    %c0_177 = arith.constant 0 : index
    %c0_178 = arith.constant 0 : index
    %c0_179 = arith.constant 0 : index
    %422 = vector.load %arg20[%c0_177, %c0_178, %c0_179] : memref<2x1x32xf32, #tpu.memory_space<vmem>>, vector<1x1x32xf32>
    %423 = vector.shape_cast %422 : vector<1x1x32xf32> to vector<1x32xf32>
    %424 = vector.broadcast %423 : vector<1x32xf32> to vector<16x32xf32>
    %425 = arith.addf %421, %424 : vector<16x32xf32>
    %426 = arith.addf %334, %425 : vector<16x32xf32>
    %c0_180 = arith.constant 0 : index
    %c0_181 = arith.constant 0 : index
    %c0_182 = arith.constant 0 : index
    %427 = vector.load %arg21[%c0_180, %c0_181, %c0_182] : memref<2x1x32xf32, #tpu.memory_space<vmem>>, vector<1x1x32xf32>
    %428 = vector.shape_cast %427 : vector<1x1x32xf32> to vector<1x32xf32>
    %c0_183 = arith.constant 0 : index
    %c0_184 = arith.constant 0 : index
    %c0_185 = arith.constant 0 : index
    %429 = vector.load %arg22[%c0_183, %c0_184, %c0_185] : memref<2x1x32xf32, #tpu.memory_space<vmem>>, vector<1x1x32xf32>
    %430 = vector.shape_cast %429 : vector<1x1x32xf32> to vector<1x32xf32>
    %cst_186 = arith.constant dense<0.000000e+00> : vector<16xf32>
    %431 = vector.multi_reduction <add>, %426, %cst_186 [1] : vector<16x32xf32> to vector<16xf32>
    %432 = vector.shape_cast %431 : vector<16xf32> to vector<16x1xf32>
    %cst_187 = arith.constant 3.200000e+01 : f32
    %433 = vector.broadcast %cst_187 : f32 to vector<16x1xf32>
    %434 = arith.divf %432, %433 : vector<16x1xf32>
    %435 = vector.broadcast %434 : vector<16x1xf32> to vector<16x32xf32>
    %436 = arith.subf %426, %435 : vector<16x32xf32>
    %437 = vector.broadcast %434 : vector<16x1xf32> to vector<16x32xf32>
    %438 = arith.subf %426, %437 : vector<16x32xf32>
    %439 = arith.mulf %436, %438 : vector<16x32xf32>
    %cst_188 = arith.constant dense<0.000000e+00> : vector<16xf32>
    %440 = vector.multi_reduction <add>, %439, %cst_188 [1] : vector<16x32xf32> to vector<16xf32>
    %441 = vector.shape_cast %440 : vector<16xf32> to vector<16x1xf32>
    %cst_189 = arith.constant 3.200000e+01 : f32
    %442 = vector.broadcast %cst_189 : f32 to vector<16x1xf32>
    %443 = arith.divf %441, %442 : vector<16x1xf32>
    %444 = vector.broadcast %434 : vector<16x1xf32> to vector<16x32xf32>
    %445 = arith.subf %426, %444 : vector<16x32xf32>
    %cst_190 = arith.constant 9.99999974E-6 : f32
    %446 = vector.broadcast %cst_190 : f32 to vector<16x1xf32>
    %447 = arith.addf %443, %446 : vector<16x1xf32>
    %448 = math.rsqrt %447 : vector<16x1xf32>
    %449 = vector.broadcast %448 : vector<16x1xf32> to vector<16x32xf32>
    %450 = arith.mulf %445, %449 : vector<16x32xf32>
    %451 = vector.broadcast %428 : vector<1x32xf32> to vector<16x32xf32>
    %452 = arith.mulf %450, %451 : vector<16x32xf32>
    %453 = vector.broadcast %430 : vector<1x32xf32> to vector<16x32xf32>
    %454 = arith.addf %452, %453 : vector<16x32xf32>
    %c0_191 = arith.constant 0 : index
    %c0_192 = arith.constant 0 : index
    %c0_193 = arith.constant 0 : index
    %455 = vector.load %arg23[%c0_191, %c0_192, %c0_193] : memref<2x32x32xf32, #tpu.memory_space<vmem>>, vector<1x32x32xf32>
    %456 = vector.shape_cast %455 : vector<1x32x32xf32> to vector<32x32xf32>
    %cst_194 = arith.constant dense<0.000000e+00> : vector<16x32xf32>
    %457 = tpu.matmul %454, %456, %cst_194 {dimension_numbers = #tpu.dot_dimension_numbers<[1], [0], [0], [1], [0, 0, 1, 1], [], []>} : vector<16x32xf32>, vector<32x32xf32>, vector<16x32xf32> -> vector<16x32xf32>
    %c0_195 = arith.constant 0 : index
    %c0_196 = arith.constant 0 : index
    %c0_197 = arith.constant 0 : index
    %458 = vector.load %arg24[%c0_195, %c0_196, %c0_197] : memref<2x1x32xf32, #tpu.memory_space<vmem>>, vector<1x1x32xf32>
    %459 = vector.shape_cast %458 : vector<1x1x32xf32> to vector<1x32xf32>
    %460 = vector.broadcast %459 : vector<1x32xf32> to vector<16x32xf32>
    %461 = arith.addf %457, %460 : vector<16x32xf32>
    %c0_198 = arith.constant 0 : index
    %c0_199 = arith.constant 0 : index
    %c0_200 = arith.constant 0 : index
    %462 = vector.load %arg25[%c0_198, %c0_199, %c0_200] : memref<2x32x64xf32, #tpu.memory_space<vmem>>, vector<1x32x64xf32>
    %463 = vector.shape_cast %462 : vector<1x32x64xf32> to vector<32x64xf32>
    %cst_201 = arith.constant dense<0.000000e+00> : vector<32x64xf32>
    %464 = tpu.matmul %333, %463, %cst_201 {dimension_numbers = #tpu.dot_dimension_numbers<[1], [0], [0], [1], [0, 0, 1, 1], [], []>} : vector<32x32xf32>, vector<32x64xf32>, vector<32x64xf32> -> vector<32x64xf32>
    %c0_202 = arith.constant 0 : index
    %c0_203 = arith.constant 0 : index
    %c0_204 = arith.constant 0 : index
    %465 = vector.load %arg26[%c0_202, %c0_203, %c0_204] : memref<2x1x64xf32, #tpu.memory_space<vmem>>, vector<1x1x64xf32>
    %466 = vector.shape_cast %465 : vector<1x1x64xf32> to vector<1x64xf32>
    %467 = vector.broadcast %466 : vector<1x64xf32> to vector<32x64xf32>
    %468 = arith.addf %464, %467 : vector<32x64xf32>
    %469 = vector.extract_strided_slice %468 {offsets = [0, 0], sizes = [32, 32], strides = [1, 1]} : vector<32x64xf32> to vector<32x32xf32>
    %470 = vector.extract_strided_slice %468 {offsets = [0, 32], sizes = [32, 32], strides = [1, 1]} : vector<32x64xf32> to vector<32x32xf32>
    %c0_205 = arith.constant 0 : index
    %c0_206 = arith.constant 0 : index
    %c0_207 = arith.constant 0 : index
    %471 = vector.load %arg27[%c0_205, %c0_206, %c0_207] : memref<2x32x32xf32, #tpu.memory_space<vmem>>, vector<1x32x32xf32>
    %472 = vector.shape_cast %471 : vector<1x32x32xf32> to vector<32x32xf32>
    %473 = vector.extract_strided_slice %461 {offsets = [0, 0], sizes = [16, 8], strides = [1, 1]} : vector<16x32xf32> to vector<16x8xf32>
    %474 = vector.extract_strided_slice %469 {offsets = [0, 0], sizes = [32, 8], strides = [1, 1]} : vector<32x32xf32> to vector<32x8xf32>
    %cst_208 = arith.constant dense<0.000000e+00> : vector<16x32xf32>
    %475 = tpu.matmul %473, %474, %cst_208 {dimension_numbers = #tpu.dot_dimension_numbers<[1], [1], [0], [0], [0, 0, 1, 0], [], []>} : vector<16x8xf32>, vector<32x8xf32>, vector<16x32xf32> -> vector<16x32xf32>
    %476 = arith.addf %475, %2 : vector<16x32xf32>
    %cst_209 = arith.constant dense<0xFF800000> : vector<16xf32>
    %477 = vector.multi_reduction <maximumf>, %476, %cst_209 [1] : vector<16x32xf32> to vector<16xf32>
    %478 = vector.shape_cast %477 : vector<16xf32> to vector<16x1xf32>
    %479 = vector.broadcast %478 : vector<16x1xf32> to vector<16x32xf32>
    %480 = arith.subf %476, %479 : vector<16x32xf32>
    %481 = math.exp %480 : vector<16x32xf32>
    %cst_210 = arith.constant dense<0.000000e+00> : vector<16xf32>
    %482 = vector.multi_reduction <add>, %481, %cst_210 [1] : vector<16x32xf32> to vector<16xf32>
    %483 = vector.shape_cast %482 : vector<16xf32> to vector<16x1xf32>
    %484 = tpu.reciprocal %483 {approx = true} : vector<16x1xf32> -> vector<16x1xf32>
    %485 = vector.broadcast %484 : vector<16x1xf32> to vector<16x32xf32>
    %486 = arith.mulf %481, %485 : vector<16x32xf32>
    %487 = vector.extract_strided_slice %470 {offsets = [0, 0], sizes = [32, 8], strides = [1, 1]} : vector<32x32xf32> to vector<32x8xf32>
    %cst_211 = arith.constant dense<0.000000e+00> : vector<16x8xf32>
    %488 = tpu.matmul %486, %487, %cst_211 {dimension_numbers = #tpu.dot_dimension_numbers<[1], [0], [0], [1], [0, 0, 1, 1], [], []>} : vector<16x32xf32>, vector<32x8xf32>, vector<16x8xf32> -> vector<16x8xf32>
    %489 = vector.extract_strided_slice %472 {offsets = [0, 0], sizes = [8, 32], strides = [1, 1]} : vector<32x32xf32> to vector<8x32xf32>
    %cst_212 = arith.constant dense<0.000000e+00> : vector<16x32xf32>
    %490 = tpu.matmul %488, %489, %cst_212 {dimension_numbers = #tpu.dot_dimension_numbers<[1], [0], [0], [1], [0, 0, 1, 1], [], []>} : vector<16x8xf32>, vector<8x32xf32>, vector<16x32xf32> -> vector<16x32xf32>
    %491 = vector.extract_strided_slice %461 {offsets = [0, 8], sizes = [16, 8], strides = [1, 1]} : vector<16x32xf32> to vector<16x8xf32>
    %492 = vector.extract_strided_slice %469 {offsets = [0, 8], sizes = [32, 8], strides = [1, 1]} : vector<32x32xf32> to vector<32x8xf32>
    %cst_213 = arith.constant dense<0.000000e+00> : vector<16x32xf32>
    %493 = tpu.matmul %491, %492, %cst_213 {dimension_numbers = #tpu.dot_dimension_numbers<[1], [1], [0], [0], [0, 0, 1, 0], [], []>} : vector<16x8xf32>, vector<32x8xf32>, vector<16x32xf32> -> vector<16x32xf32>
    %494 = arith.addf %493, %2 : vector<16x32xf32>
    %cst_214 = arith.constant dense<0xFF800000> : vector<16xf32>
    %495 = vector.multi_reduction <maximumf>, %494, %cst_214 [1] : vector<16x32xf32> to vector<16xf32>
    %496 = vector.shape_cast %495 : vector<16xf32> to vector<16x1xf32>
    %497 = vector.broadcast %496 : vector<16x1xf32> to vector<16x32xf32>
    %498 = arith.subf %494, %497 : vector<16x32xf32>
    %499 = math.exp %498 : vector<16x32xf32>
    %cst_215 = arith.constant dense<0.000000e+00> : vector<16xf32>
    %500 = vector.multi_reduction <add>, %499, %cst_215 [1] : vector<16x32xf32> to vector<16xf32>
    %501 = vector.shape_cast %500 : vector<16xf32> to vector<16x1xf32>
    %502 = tpu.reciprocal %501 {approx = true} : vector<16x1xf32> -> vector<16x1xf32>
    %503 = vector.broadcast %502 : vector<16x1xf32> to vector<16x32xf32>
    %504 = arith.mulf %499, %503 : vector<16x32xf32>
    %505 = vector.extract_strided_slice %470 {offsets = [0, 8], sizes = [32, 8], strides = [1, 1]} : vector<32x32xf32> to vector<32x8xf32>
    %cst_216 = arith.constant dense<0.000000e+00> : vector<16x8xf32>
    %506 = tpu.matmul %504, %505, %cst_216 {dimension_numbers = #tpu.dot_dimension_numbers<[1], [0], [0], [1], [0, 0, 1, 1], [], []>} : vector<16x32xf32>, vector<32x8xf32>, vector<16x8xf32> -> vector<16x8xf32>
    %507 = vector.extract_strided_slice %472 {offsets = [8, 0], sizes = [8, 32], strides = [1, 1]} : vector<32x32xf32> to vector<8x32xf32>
    %cst_217 = arith.constant dense<0.000000e+00> : vector<16x32xf32>
    %508 = tpu.matmul %506, %507, %cst_217 {dimension_numbers = #tpu.dot_dimension_numbers<[1], [0], [0], [1], [0, 0, 1, 1], [], []>} : vector<16x8xf32>, vector<8x32xf32>, vector<16x32xf32> -> vector<16x32xf32>
    %509 = arith.addf %490, %508 : vector<16x32xf32>
    %510 = vector.extract_strided_slice %461 {offsets = [0, 16], sizes = [16, 8], strides = [1, 1]} : vector<16x32xf32> to vector<16x8xf32>
    %511 = vector.extract_strided_slice %469 {offsets = [0, 16], sizes = [32, 8], strides = [1, 1]} : vector<32x32xf32> to vector<32x8xf32>
    %cst_218 = arith.constant dense<0.000000e+00> : vector<16x32xf32>
    %512 = tpu.matmul %510, %511, %cst_218 {dimension_numbers = #tpu.dot_dimension_numbers<[1], [1], [0], [0], [0, 0, 1, 0], [], []>} : vector<16x8xf32>, vector<32x8xf32>, vector<16x32xf32> -> vector<16x32xf32>
    %513 = arith.addf %512, %2 : vector<16x32xf32>
    %cst_219 = arith.constant dense<0xFF800000> : vector<16xf32>
    %514 = vector.multi_reduction <maximumf>, %513, %cst_219 [1] : vector<16x32xf32> to vector<16xf32>
    %515 = vector.shape_cast %514 : vector<16xf32> to vector<16x1xf32>
    %516 = vector.broadcast %515 : vector<16x1xf32> to vector<16x32xf32>
    %517 = arith.subf %513, %516 : vector<16x32xf32>
    %518 = math.exp %517 : vector<16x32xf32>
    %cst_220 = arith.constant dense<0.000000e+00> : vector<16xf32>
    %519 = vector.multi_reduction <add>, %518, %cst_220 [1] : vector<16x32xf32> to vector<16xf32>
    %520 = vector.shape_cast %519 : vector<16xf32> to vector<16x1xf32>
    %521 = tpu.reciprocal %520 {approx = true} : vector<16x1xf32> -> vector<16x1xf32>
    %522 = vector.broadcast %521 : vector<16x1xf32> to vector<16x32xf32>
    %523 = arith.mulf %518, %522 : vector<16x32xf32>
    %524 = vector.extract_strided_slice %470 {offsets = [0, 16], sizes = [32, 8], strides = [1, 1]} : vector<32x32xf32> to vector<32x8xf32>
    %cst_221 = arith.constant dense<0.000000e+00> : vector<16x8xf32>
    %525 = tpu.matmul %523, %524, %cst_221 {dimension_numbers = #tpu.dot_dimension_numbers<[1], [0], [0], [1], [0, 0, 1, 1], [], []>} : vector<16x32xf32>, vector<32x8xf32>, vector<16x8xf32> -> vector<16x8xf32>
    %526 = vector.extract_strided_slice %472 {offsets = [16, 0], sizes = [8, 32], strides = [1, 1]} : vector<32x32xf32> to vector<8x32xf32>
    %cst_222 = arith.constant dense<0.000000e+00> : vector<16x32xf32>
    %527 = tpu.matmul %525, %526, %cst_222 {dimension_numbers = #tpu.dot_dimension_numbers<[1], [0], [0], [1], [0, 0, 1, 1], [], []>} : vector<16x8xf32>, vector<8x32xf32>, vector<16x32xf32> -> vector<16x32xf32>
    %528 = arith.addf %509, %527 : vector<16x32xf32>
    %529 = vector.extract_strided_slice %461 {offsets = [0, 24], sizes = [16, 8], strides = [1, 1]} : vector<16x32xf32> to vector<16x8xf32>
    %530 = vector.extract_strided_slice %469 {offsets = [0, 24], sizes = [32, 8], strides = [1, 1]} : vector<32x32xf32> to vector<32x8xf32>
    %cst_223 = arith.constant dense<0.000000e+00> : vector<16x32xf32>
    %531 = tpu.matmul %529, %530, %cst_223 {dimension_numbers = #tpu.dot_dimension_numbers<[1], [1], [0], [0], [0, 0, 1, 0], [], []>} : vector<16x8xf32>, vector<32x8xf32>, vector<16x32xf32> -> vector<16x32xf32>
    %532 = arith.addf %531, %2 : vector<16x32xf32>
    %cst_224 = arith.constant dense<0xFF800000> : vector<16xf32>
    %533 = vector.multi_reduction <maximumf>, %532, %cst_224 [1] : vector<16x32xf32> to vector<16xf32>
    %534 = vector.shape_cast %533 : vector<16xf32> to vector<16x1xf32>
    %535 = vector.broadcast %534 : vector<16x1xf32> to vector<16x32xf32>
    %536 = arith.subf %532, %535 : vector<16x32xf32>
    %537 = math.exp %536 : vector<16x32xf32>
    %cst_225 = arith.constant dense<0.000000e+00> : vector<16xf32>
    %538 = vector.multi_reduction <add>, %537, %cst_225 [1] : vector<16x32xf32> to vector<16xf32>
    %539 = vector.shape_cast %538 : vector<16xf32> to vector<16x1xf32>
    %540 = tpu.reciprocal %539 {approx = true} : vector<16x1xf32> -> vector<16x1xf32>
    %541 = vector.broadcast %540 : vector<16x1xf32> to vector<16x32xf32>
    %542 = arith.mulf %537, %541 : vector<16x32xf32>
    %543 = vector.extract_strided_slice %470 {offsets = [0, 24], sizes = [32, 8], strides = [1, 1]} : vector<32x32xf32> to vector<32x8xf32>
    %cst_226 = arith.constant dense<0.000000e+00> : vector<16x8xf32>
    %544 = tpu.matmul %542, %543, %cst_226 {dimension_numbers = #tpu.dot_dimension_numbers<[1], [0], [0], [1], [0, 0, 1, 1], [], []>} : vector<16x32xf32>, vector<32x8xf32>, vector<16x8xf32> -> vector<16x8xf32>
    %545 = vector.extract_strided_slice %472 {offsets = [24, 0], sizes = [8, 32], strides = [1, 1]} : vector<32x32xf32> to vector<8x32xf32>
    %cst_227 = arith.constant dense<0.000000e+00> : vector<16x32xf32>
    %546 = tpu.matmul %544, %545, %cst_227 {dimension_numbers = #tpu.dot_dimension_numbers<[1], [0], [0], [1], [0, 0, 1, 1], [], []>} : vector<16x8xf32>, vector<8x32xf32>, vector<16x32xf32> -> vector<16x32xf32>
    %547 = arith.addf %528, %546 : vector<16x32xf32>
    %c0_228 = arith.constant 0 : index
    %c0_229 = arith.constant 0 : index
    %c0_230 = arith.constant 0 : index
    %548 = vector.load %arg28[%c0_228, %c0_229, %c0_230] : memref<2x1x32xf32, #tpu.memory_space<vmem>>, vector<1x1x32xf32>
    %549 = vector.shape_cast %548 : vector<1x1x32xf32> to vector<1x32xf32>
    %550 = vector.broadcast %549 : vector<1x32xf32> to vector<16x32xf32>
    %551 = arith.addf %547, %550 : vector<16x32xf32>
    %552 = arith.addf %454, %551 : vector<16x32xf32>
    %c0_231 = arith.constant 0 : index
    %c0_232 = arith.constant 0 : index
    %c0_233 = arith.constant 0 : index
    %553 = vector.load %arg29[%c0_231, %c0_232, %c0_233] : memref<2x1x32xf32, #tpu.memory_space<vmem>>, vector<1x1x32xf32>
    %554 = vector.shape_cast %553 : vector<1x1x32xf32> to vector<1x32xf32>
    %c0_234 = arith.constant 0 : index
    %c0_235 = arith.constant 0 : index
    %c0_236 = arith.constant 0 : index
    %555 = vector.load %arg30[%c0_234, %c0_235, %c0_236] : memref<2x1x32xf32, #tpu.memory_space<vmem>>, vector<1x1x32xf32>
    %556 = vector.shape_cast %555 : vector<1x1x32xf32> to vector<1x32xf32>
    %cst_237 = arith.constant dense<0.000000e+00> : vector<16xf32>
    %557 = vector.multi_reduction <add>, %552, %cst_237 [1] : vector<16x32xf32> to vector<16xf32>
    %558 = vector.shape_cast %557 : vector<16xf32> to vector<16x1xf32>
    %cst_238 = arith.constant 3.200000e+01 : f32
    %559 = vector.broadcast %cst_238 : f32 to vector<16x1xf32>
    %560 = arith.divf %558, %559 : vector<16x1xf32>
    %561 = vector.broadcast %560 : vector<16x1xf32> to vector<16x32xf32>
    %562 = arith.subf %552, %561 : vector<16x32xf32>
    %563 = vector.broadcast %560 : vector<16x1xf32> to vector<16x32xf32>
    %564 = arith.subf %552, %563 : vector<16x32xf32>
    %565 = arith.mulf %562, %564 : vector<16x32xf32>
    %cst_239 = arith.constant dense<0.000000e+00> : vector<16xf32>
    %566 = vector.multi_reduction <add>, %565, %cst_239 [1] : vector<16x32xf32> to vector<16xf32>
    %567 = vector.shape_cast %566 : vector<16xf32> to vector<16x1xf32>
    %cst_240 = arith.constant 3.200000e+01 : f32
    %568 = vector.broadcast %cst_240 : f32 to vector<16x1xf32>
    %569 = arith.divf %567, %568 : vector<16x1xf32>
    %570 = vector.broadcast %560 : vector<16x1xf32> to vector<16x32xf32>
    %571 = arith.subf %552, %570 : vector<16x32xf32>
    %cst_241 = arith.constant 9.99999974E-6 : f32
    %572 = vector.broadcast %cst_241 : f32 to vector<16x1xf32>
    %573 = arith.addf %569, %572 : vector<16x1xf32>
    %574 = math.rsqrt %573 : vector<16x1xf32>
    %575 = vector.broadcast %574 : vector<16x1xf32> to vector<16x32xf32>
    %576 = arith.mulf %571, %575 : vector<16x32xf32>
    %577 = vector.broadcast %554 : vector<1x32xf32> to vector<16x32xf32>
    %578 = arith.mulf %576, %577 : vector<16x32xf32>
    %579 = vector.broadcast %556 : vector<1x32xf32> to vector<16x32xf32>
    %580 = arith.addf %578, %579 : vector<16x32xf32>
    %c0_242 = arith.constant 0 : index
    %c0_243 = arith.constant 0 : index
    %c0_244 = arith.constant 0 : index
    %581 = vector.load %arg31[%c0_242, %c0_243, %c0_244] : memref<2x32x64xf32, #tpu.memory_space<vmem>>, vector<1x32x64xf32>
    %582 = vector.shape_cast %581 : vector<1x32x64xf32> to vector<32x64xf32>
    %cst_245 = arith.constant dense<0.000000e+00> : vector<16x64xf32>
    %583 = tpu.matmul %580, %582, %cst_245 {dimension_numbers = #tpu.dot_dimension_numbers<[1], [0], [0], [1], [0, 0, 1, 1], [], []>} : vector<16x32xf32>, vector<32x64xf32>, vector<16x64xf32> -> vector<16x64xf32>
    %c0_246 = arith.constant 0 : index
    %c0_247 = arith.constant 0 : index
    %c0_248 = arith.constant 0 : index
    %584 = vector.load %arg32[%c0_246, %c0_247, %c0_248] : memref<2x1x64xf32, #tpu.memory_space<vmem>>, vector<1x1x64xf32>
    %585 = vector.shape_cast %584 : vector<1x1x64xf32> to vector<1x64xf32>
    %586 = vector.broadcast %585 : vector<1x64xf32> to vector<16x64xf32>
    %587 = arith.addf %583, %586 : vector<16x64xf32>
    %cst_249 = arith.constant 0.000000e+00 : f32
    %588 = vector.broadcast %cst_249 : f32 to vector<16x64xf32>
    %589 = arith.maximumf %587, %588 : vector<16x64xf32>
    %c0_250 = arith.constant 0 : index
    %c0_251 = arith.constant 0 : index
    %c0_252 = arith.constant 0 : index
    %590 = vector.load %arg33[%c0_250, %c0_251, %c0_252] : memref<2x64x32xf32, #tpu.memory_space<vmem>>, vector<1x64x32xf32>
    %591 = vector.shape_cast %590 : vector<1x64x32xf32> to vector<64x32xf32>
    %cst_253 = arith.constant dense<0.000000e+00> : vector<16x32xf32>
    %592 = tpu.matmul %589, %591, %cst_253 {dimension_numbers = #tpu.dot_dimension_numbers<[1], [0], [0], [1], [0, 0, 1, 1], [], []>} : vector<16x64xf32>, vector<64x32xf32>, vector<16x32xf32> -> vector<16x32xf32>
    %c0_254 = arith.constant 0 : index
    %c0_255 = arith.constant 0 : index
    %c0_256 = arith.constant 0 : index
    %593 = vector.load %arg34[%c0_254, %c0_255, %c0_256] : memref<2x1x32xf32, #tpu.memory_space<vmem>>, vector<1x1x32xf32>
    %594 = vector.shape_cast %593 : vector<1x1x32xf32> to vector<1x32xf32>
    %595 = vector.broadcast %594 : vector<1x32xf32> to vector<16x32xf32>
    %596 = arith.addf %592, %595 : vector<16x32xf32>
    %597 = arith.addf %580, %596 : vector<16x32xf32>
    %c0_257 = arith.constant 0 : index
    %c0_258 = arith.constant 0 : index
    %c0_259 = arith.constant 0 : index
    %598 = vector.load %arg35[%c0_257, %c0_258, %c0_259] : memref<2x1x32xf32, #tpu.memory_space<vmem>>, vector<1x1x32xf32>
    %599 = vector.shape_cast %598 : vector<1x1x32xf32> to vector<1x32xf32>
    %c0_260 = arith.constant 0 : index
    %c0_261 = arith.constant 0 : index
    %c0_262 = arith.constant 0 : index
    %600 = vector.load %arg36[%c0_260, %c0_261, %c0_262] : memref<2x1x32xf32, #tpu.memory_space<vmem>>, vector<1x1x32xf32>
    %601 = vector.shape_cast %600 : vector<1x1x32xf32> to vector<1x32xf32>
    %cst_263 = arith.constant dense<0.000000e+00> : vector<16xf32>
    %602 = vector.multi_reduction <add>, %597, %cst_263 [1] : vector<16x32xf32> to vector<16xf32>
    %603 = vector.shape_cast %602 : vector<16xf32> to vector<16x1xf32>
    %cst_264 = arith.constant 3.200000e+01 : f32
    %604 = vector.broadcast %cst_264 : f32 to vector<16x1xf32>
    %605 = arith.divf %603, %604 : vector<16x1xf32>
    %606 = vector.broadcast %605 : vector<16x1xf32> to vector<16x32xf32>
    %607 = arith.subf %597, %606 : vector<16x32xf32>
    %608 = vector.broadcast %605 : vector<16x1xf32> to vector<16x32xf32>
    %609 = arith.subf %597, %608 : vector<16x32xf32>
    %610 = arith.mulf %607, %609 : vector<16x32xf32>
    %cst_265 = arith.constant dense<0.000000e+00> : vector<16xf32>
    %611 = vector.multi_reduction <add>, %610, %cst_265 [1] : vector<16x32xf32> to vector<16xf32>
    %612 = vector.shape_cast %611 : vector<16xf32> to vector<16x1xf32>
    %cst_266 = arith.constant 3.200000e+01 : f32
    %613 = vector.broadcast %cst_266 : f32 to vector<16x1xf32>
    %614 = arith.divf %612, %613 : vector<16x1xf32>
    %615 = vector.broadcast %605 : vector<16x1xf32> to vector<16x32xf32>
    %616 = arith.subf %597, %615 : vector<16x32xf32>
    %cst_267 = arith.constant 9.99999974E-6 : f32
    %617 = vector.broadcast %cst_267 : f32 to vector<16x1xf32>
    %618 = arith.addf %614, %617 : vector<16x1xf32>
    %619 = math.rsqrt %618 : vector<16x1xf32>
    %620 = vector.broadcast %619 : vector<16x1xf32> to vector<16x32xf32>
    %621 = arith.mulf %616, %620 : vector<16x32xf32>
    %622 = vector.broadcast %599 : vector<1x32xf32> to vector<16x32xf32>
    %623 = arith.mulf %621, %622 : vector<16x32xf32>
    %624 = vector.broadcast %601 : vector<1x32xf32> to vector<16x32xf32>
    %625 = arith.addf %623, %624 : vector<16x32xf32>
    %c1_268 = arith.constant 1 : index
    %c0_269 = arith.constant 0 : index
    %c0_270 = arith.constant 0 : index
    %626 = vector.load %arg17[%c1_268, %c0_269, %c0_270] : memref<2x32x96xf32, #tpu.memory_space<vmem>>, vector<1x32x96xf32>
    %627 = vector.shape_cast %626 : vector<1x32x96xf32> to vector<32x96xf32>
    %cst_271 = arith.constant dense<0.000000e+00> : vector<16x96xf32>
    %628 = tpu.matmul %625, %627, %cst_271 {dimension_numbers = #tpu.dot_dimension_numbers<[1], [0], [0], [1], [0, 0, 1, 1], [], []>} : vector<16x32xf32>, vector<32x96xf32>, vector<16x96xf32> -> vector<16x96xf32>
    %c1_272 = arith.constant 1 : index
    %c0_273 = arith.constant 0 : index
    %c0_274 = arith.constant 0 : index
    %629 = vector.load %arg18[%c1_272, %c0_273, %c0_274] : memref<2x1x96xf32, #tpu.memory_space<vmem>>, vector<1x1x96xf32>
    %630 = vector.shape_cast %629 : vector<1x1x96xf32> to vector<1x96xf32>
    %631 = vector.broadcast %630 : vector<1x96xf32> to vector<16x96xf32>
    %632 = arith.addf %628, %631 : vector<16x96xf32>
    %633 = vector.extract_strided_slice %632 {offsets = [0, 0], sizes = [16, 32], strides = [1, 1]} : vector<16x96xf32> to vector<16x32xf32>
    %634 = vector.extract_strided_slice %632 {offsets = [0, 32], sizes = [16, 32], strides = [1, 1]} : vector<16x96xf32> to vector<16x32xf32>
    %635 = vector.extract_strided_slice %632 {offsets = [0, 64], sizes = [16, 32], strides = [1, 1]} : vector<16x96xf32> to vector<16x32xf32>
    %c1_275 = arith.constant 1 : index
    %c0_276 = arith.constant 0 : index
    %c0_277 = arith.constant 0 : index
    %636 = vector.load %arg19[%c1_275, %c0_276, %c0_277] : memref<2x32x32xf32, #tpu.memory_space<vmem>>, vector<1x32x32xf32>
    %637 = vector.shape_cast %636 : vector<1x32x32xf32> to vector<32x32xf32>
    %638 = vector.extract_strided_slice %633 {offsets = [0, 0], sizes = [16, 8], strides = [1, 1]} : vector<16x32xf32> to vector<16x8xf32>
    %639 = vector.extract_strided_slice %634 {offsets = [0, 0], sizes = [16, 8], strides = [1, 1]} : vector<16x32xf32> to vector<16x8xf32>
    %cst_278 = arith.constant dense<0.000000e+00> : vector<16x16xf32>
    %640 = tpu.matmul %638, %639, %cst_278 {dimension_numbers = #tpu.dot_dimension_numbers<[1], [1], [0], [0], [0, 0, 1, 0], [], []>} : vector<16x8xf32>, vector<16x8xf32>, vector<16x16xf32> -> vector<16x16xf32>
    %641 = arith.addf %640, %1 : vector<16x16xf32>
    %cst_279 = arith.constant dense<0xFF800000> : vector<16xf32>
    %642 = vector.multi_reduction <maximumf>, %641, %cst_279 [1] : vector<16x16xf32> to vector<16xf32>
    %643 = vector.shape_cast %642 : vector<16xf32> to vector<16x1xf32>
    %644 = vector.broadcast %643 : vector<16x1xf32> to vector<16x16xf32>
    %645 = arith.subf %641, %644 : vector<16x16xf32>
    %646 = math.exp %645 : vector<16x16xf32>
    %cst_280 = arith.constant dense<0.000000e+00> : vector<16xf32>
    %647 = vector.multi_reduction <add>, %646, %cst_280 [1] : vector<16x16xf32> to vector<16xf32>
    %648 = vector.shape_cast %647 : vector<16xf32> to vector<16x1xf32>
    %649 = tpu.reciprocal %648 {approx = true} : vector<16x1xf32> -> vector<16x1xf32>
    %650 = vector.broadcast %649 : vector<16x1xf32> to vector<16x16xf32>
    %651 = arith.mulf %646, %650 : vector<16x16xf32>
    %652 = vector.extract_strided_slice %635 {offsets = [0, 0], sizes = [16, 8], strides = [1, 1]} : vector<16x32xf32> to vector<16x8xf32>
    %cst_281 = arith.constant dense<0.000000e+00> : vector<16x8xf32>
    %653 = tpu.matmul %651, %652, %cst_281 {dimension_numbers = #tpu.dot_dimension_numbers<[1], [0], [0], [1], [0, 0, 1, 1], [], []>} : vector<16x16xf32>, vector<16x8xf32>, vector<16x8xf32> -> vector<16x8xf32>
    %654 = vector.extract_strided_slice %637 {offsets = [0, 0], sizes = [8, 32], strides = [1, 1]} : vector<32x32xf32> to vector<8x32xf32>
    %cst_282 = arith.constant dense<0.000000e+00> : vector<16x32xf32>
    %655 = tpu.matmul %653, %654, %cst_282 {dimension_numbers = #tpu.dot_dimension_numbers<[1], [0], [0], [1], [0, 0, 1, 1], [], []>} : vector<16x8xf32>, vector<8x32xf32>, vector<16x32xf32> -> vector<16x32xf32>
    %656 = vector.extract_strided_slice %633 {offsets = [0, 8], sizes = [16, 8], strides = [1, 1]} : vector<16x32xf32> to vector<16x8xf32>
    %657 = vector.extract_strided_slice %634 {offsets = [0, 8], sizes = [16, 8], strides = [1, 1]} : vector<16x32xf32> to vector<16x8xf32>
    %cst_283 = arith.constant dense<0.000000e+00> : vector<16x16xf32>
    %658 = tpu.matmul %656, %657, %cst_283 {dimension_numbers = #tpu.dot_dimension_numbers<[1], [1], [0], [0], [0, 0, 1, 0], [], []>} : vector<16x8xf32>, vector<16x8xf32>, vector<16x16xf32> -> vector<16x16xf32>
    %659 = arith.addf %658, %1 : vector<16x16xf32>
    %cst_284 = arith.constant dense<0xFF800000> : vector<16xf32>
    %660 = vector.multi_reduction <maximumf>, %659, %cst_284 [1] : vector<16x16xf32> to vector<16xf32>
    %661 = vector.shape_cast %660 : vector<16xf32> to vector<16x1xf32>
    %662 = vector.broadcast %661 : vector<16x1xf32> to vector<16x16xf32>
    %663 = arith.subf %659, %662 : vector<16x16xf32>
    %664 = math.exp %663 : vector<16x16xf32>
    %cst_285 = arith.constant dense<0.000000e+00> : vector<16xf32>
    %665 = vector.multi_reduction <add>, %664, %cst_285 [1] : vector<16x16xf32> to vector<16xf32>
    %666 = vector.shape_cast %665 : vector<16xf32> to vector<16x1xf32>
    %667 = tpu.reciprocal %666 {approx = true} : vector<16x1xf32> -> vector<16x1xf32>
    %668 = vector.broadcast %667 : vector<16x1xf32> to vector<16x16xf32>
    %669 = arith.mulf %664, %668 : vector<16x16xf32>
    %670 = vector.extract_strided_slice %635 {offsets = [0, 8], sizes = [16, 8], strides = [1, 1]} : vector<16x32xf32> to vector<16x8xf32>
    %cst_286 = arith.constant dense<0.000000e+00> : vector<16x8xf32>
    %671 = tpu.matmul %669, %670, %cst_286 {dimension_numbers = #tpu.dot_dimension_numbers<[1], [0], [0], [1], [0, 0, 1, 1], [], []>} : vector<16x16xf32>, vector<16x8xf32>, vector<16x8xf32> -> vector<16x8xf32>
    %672 = vector.extract_strided_slice %637 {offsets = [8, 0], sizes = [8, 32], strides = [1, 1]} : vector<32x32xf32> to vector<8x32xf32>
    %cst_287 = arith.constant dense<0.000000e+00> : vector<16x32xf32>
    %673 = tpu.matmul %671, %672, %cst_287 {dimension_numbers = #tpu.dot_dimension_numbers<[1], [0], [0], [1], [0, 0, 1, 1], [], []>} : vector<16x8xf32>, vector<8x32xf32>, vector<16x32xf32> -> vector<16x32xf32>
    %674 = arith.addf %655, %673 : vector<16x32xf32>
    %675 = vector.extract_strided_slice %633 {offsets = [0, 16], sizes = [16, 8], strides = [1, 1]} : vector<16x32xf32> to vector<16x8xf32>
    %676 = vector.extract_strided_slice %634 {offsets = [0, 16], sizes = [16, 8], strides = [1, 1]} : vector<16x32xf32> to vector<16x8xf32>
    %cst_288 = arith.constant dense<0.000000e+00> : vector<16x16xf32>
    %677 = tpu.matmul %675, %676, %cst_288 {dimension_numbers = #tpu.dot_dimension_numbers<[1], [1], [0], [0], [0, 0, 1, 0], [], []>} : vector<16x8xf32>, vector<16x8xf32>, vector<16x16xf32> -> vector<16x16xf32>
    %678 = arith.addf %677, %1 : vector<16x16xf32>
    %cst_289 = arith.constant dense<0xFF800000> : vector<16xf32>
    %679 = vector.multi_reduction <maximumf>, %678, %cst_289 [1] : vector<16x16xf32> to vector<16xf32>
    %680 = vector.shape_cast %679 : vector<16xf32> to vector<16x1xf32>
    %681 = vector.broadcast %680 : vector<16x1xf32> to vector<16x16xf32>
    %682 = arith.subf %678, %681 : vector<16x16xf32>
    %683 = math.exp %682 : vector<16x16xf32>
    %cst_290 = arith.constant dense<0.000000e+00> : vector<16xf32>
    %684 = vector.multi_reduction <add>, %683, %cst_290 [1] : vector<16x16xf32> to vector<16xf32>
    %685 = vector.shape_cast %684 : vector<16xf32> to vector<16x1xf32>
    %686 = tpu.reciprocal %685 {approx = true} : vector<16x1xf32> -> vector<16x1xf32>
    %687 = vector.broadcast %686 : vector<16x1xf32> to vector<16x16xf32>
    %688 = arith.mulf %683, %687 : vector<16x16xf32>
    %689 = vector.extract_strided_slice %635 {offsets = [0, 16], sizes = [16, 8], strides = [1, 1]} : vector<16x32xf32> to vector<16x8xf32>
    %cst_291 = arith.constant dense<0.000000e+00> : vector<16x8xf32>
    %690 = tpu.matmul %688, %689, %cst_291 {dimension_numbers = #tpu.dot_dimension_numbers<[1], [0], [0], [1], [0, 0, 1, 1], [], []>} : vector<16x16xf32>, vector<16x8xf32>, vector<16x8xf32> -> vector<16x8xf32>
    %691 = vector.extract_strided_slice %637 {offsets = [16, 0], sizes = [8, 32], strides = [1, 1]} : vector<32x32xf32> to vector<8x32xf32>
    %cst_292 = arith.constant dense<0.000000e+00> : vector<16x32xf32>
    %692 = tpu.matmul %690, %691, %cst_292 {dimension_numbers = #tpu.dot_dimension_numbers<[1], [0], [0], [1], [0, 0, 1, 1], [], []>} : vector<16x8xf32>, vector<8x32xf32>, vector<16x32xf32> -> vector<16x32xf32>
    %693 = arith.addf %674, %692 : vector<16x32xf32>
    %694 = vector.extract_strided_slice %633 {offsets = [0, 24], sizes = [16, 8], strides = [1, 1]} : vector<16x32xf32> to vector<16x8xf32>
    %695 = vector.extract_strided_slice %634 {offsets = [0, 24], sizes = [16, 8], strides = [1, 1]} : vector<16x32xf32> to vector<16x8xf32>
    %cst_293 = arith.constant dense<0.000000e+00> : vector<16x16xf32>
    %696 = tpu.matmul %694, %695, %cst_293 {dimension_numbers = #tpu.dot_dimension_numbers<[1], [1], [0], [0], [0, 0, 1, 0], [], []>} : vector<16x8xf32>, vector<16x8xf32>, vector<16x16xf32> -> vector<16x16xf32>
    %697 = arith.addf %696, %1 : vector<16x16xf32>
    %cst_294 = arith.constant dense<0xFF800000> : vector<16xf32>
    %698 = vector.multi_reduction <maximumf>, %697, %cst_294 [1] : vector<16x16xf32> to vector<16xf32>
    %699 = vector.shape_cast %698 : vector<16xf32> to vector<16x1xf32>
    %700 = vector.broadcast %699 : vector<16x1xf32> to vector<16x16xf32>
    %701 = arith.subf %697, %700 : vector<16x16xf32>
    %702 = math.exp %701 : vector<16x16xf32>
    %cst_295 = arith.constant dense<0.000000e+00> : vector<16xf32>
    %703 = vector.multi_reduction <add>, %702, %cst_295 [1] : vector<16x16xf32> to vector<16xf32>
    %704 = vector.shape_cast %703 : vector<16xf32> to vector<16x1xf32>
    %705 = tpu.reciprocal %704 {approx = true} : vector<16x1xf32> -> vector<16x1xf32>
    %706 = vector.broadcast %705 : vector<16x1xf32> to vector<16x16xf32>
    %707 = arith.mulf %702, %706 : vector<16x16xf32>
    %708 = vector.extract_strided_slice %635 {offsets = [0, 24], sizes = [16, 8], strides = [1, 1]} : vector<16x32xf32> to vector<16x8xf32>
    %cst_296 = arith.constant dense<0.000000e+00> : vector<16x8xf32>
    %709 = tpu.matmul %707, %708, %cst_296 {dimension_numbers = #tpu.dot_dimension_numbers<[1], [0], [0], [1], [0, 0, 1, 1], [], []>} : vector<16x16xf32>, vector<16x8xf32>, vector<16x8xf32> -> vector<16x8xf32>
    %710 = vector.extract_strided_slice %637 {offsets = [24, 0], sizes = [8, 32], strides = [1, 1]} : vector<32x32xf32> to vector<8x32xf32>
    %cst_297 = arith.constant dense<0.000000e+00> : vector<16x32xf32>
    %711 = tpu.matmul %709, %710, %cst_297 {dimension_numbers = #tpu.dot_dimension_numbers<[1], [0], [0], [1], [0, 0, 1, 1], [], []>} : vector<16x8xf32>, vector<8x32xf32>, vector<16x32xf32> -> vector<16x32xf32>
    %712 = arith.addf %693, %711 : vector<16x32xf32>
    %c1_298 = arith.constant 1 : index
    %c0_299 = arith.constant 0 : index
    %c0_300 = arith.constant 0 : index
    %713 = vector.load %arg20[%c1_298, %c0_299, %c0_300] : memref<2x1x32xf32, #tpu.memory_space<vmem>>, vector<1x1x32xf32>
    %714 = vector.shape_cast %713 : vector<1x1x32xf32> to vector<1x32xf32>
    %715 = vector.broadcast %714 : vector<1x32xf32> to vector<16x32xf32>
    %716 = arith.addf %712, %715 : vector<16x32xf32>
    %717 = arith.addf %625, %716 : vector<16x32xf32>
    %c1_301 = arith.constant 1 : index
    %c0_302 = arith.constant 0 : index
    %c0_303 = arith.constant 0 : index
    %718 = vector.load %arg21[%c1_301, %c0_302, %c0_303] : memref<2x1x32xf32, #tpu.memory_space<vmem>>, vector<1x1x32xf32>
    %719 = vector.shape_cast %718 : vector<1x1x32xf32> to vector<1x32xf32>
    %c1_304 = arith.constant 1 : index
    %c0_305 = arith.constant 0 : index
    %c0_306 = arith.constant 0 : index
    %720 = vector.load %arg22[%c1_304, %c0_305, %c0_306] : memref<2x1x32xf32, #tpu.memory_space<vmem>>, vector<1x1x32xf32>
    %721 = vector.shape_cast %720 : vector<1x1x32xf32> to vector<1x32xf32>
    %cst_307 = arith.constant dense<0.000000e+00> : vector<16xf32>
    %722 = vector.multi_reduction <add>, %717, %cst_307 [1] : vector<16x32xf32> to vector<16xf32>
    %723 = vector.shape_cast %722 : vector<16xf32> to vector<16x1xf32>
    %cst_308 = arith.constant 3.200000e+01 : f32
    %724 = vector.broadcast %cst_308 : f32 to vector<16x1xf32>
    %725 = arith.divf %723, %724 : vector<16x1xf32>
    %726 = vector.broadcast %725 : vector<16x1xf32> to vector<16x32xf32>
    %727 = arith.subf %717, %726 : vector<16x32xf32>
    %728 = vector.broadcast %725 : vector<16x1xf32> to vector<16x32xf32>
    %729 = arith.subf %717, %728 : vector<16x32xf32>
    %730 = arith.mulf %727, %729 : vector<16x32xf32>
    %cst_309 = arith.constant dense<0.000000e+00> : vector<16xf32>
    %731 = vector.multi_reduction <add>, %730, %cst_309 [1] : vector<16x32xf32> to vector<16xf32>
    %732 = vector.shape_cast %731 : vector<16xf32> to vector<16x1xf32>
    %cst_310 = arith.constant 3.200000e+01 : f32
    %733 = vector.broadcast %cst_310 : f32 to vector<16x1xf32>
    %734 = arith.divf %732, %733 : vector<16x1xf32>
    %735 = vector.broadcast %725 : vector<16x1xf32> to vector<16x32xf32>
    %736 = arith.subf %717, %735 : vector<16x32xf32>
    %cst_311 = arith.constant 9.99999974E-6 : f32
    %737 = vector.broadcast %cst_311 : f32 to vector<16x1xf32>
    %738 = arith.addf %734, %737 : vector<16x1xf32>
    %739 = math.rsqrt %738 : vector<16x1xf32>
    %740 = vector.broadcast %739 : vector<16x1xf32> to vector<16x32xf32>
    %741 = arith.mulf %736, %740 : vector<16x32xf32>
    %742 = vector.broadcast %719 : vector<1x32xf32> to vector<16x32xf32>
    %743 = arith.mulf %741, %742 : vector<16x32xf32>
    %744 = vector.broadcast %721 : vector<1x32xf32> to vector<16x32xf32>
    %745 = arith.addf %743, %744 : vector<16x32xf32>
    %c1_312 = arith.constant 1 : index
    %c0_313 = arith.constant 0 : index
    %c0_314 = arith.constant 0 : index
    %746 = vector.load %arg23[%c1_312, %c0_313, %c0_314] : memref<2x32x32xf32, #tpu.memory_space<vmem>>, vector<1x32x32xf32>
    %747 = vector.shape_cast %746 : vector<1x32x32xf32> to vector<32x32xf32>
    %cst_315 = arith.constant dense<0.000000e+00> : vector<16x32xf32>
    %748 = tpu.matmul %745, %747, %cst_315 {dimension_numbers = #tpu.dot_dimension_numbers<[1], [0], [0], [1], [0, 0, 1, 1], [], []>} : vector<16x32xf32>, vector<32x32xf32>, vector<16x32xf32> -> vector<16x32xf32>
    %c1_316 = arith.constant 1 : index
    %c0_317 = arith.constant 0 : index
    %c0_318 = arith.constant 0 : index
    %749 = vector.load %arg24[%c1_316, %c0_317, %c0_318] : memref<2x1x32xf32, #tpu.memory_space<vmem>>, vector<1x1x32xf32>
    %750 = vector.shape_cast %749 : vector<1x1x32xf32> to vector<1x32xf32>
    %751 = vector.broadcast %750 : vector<1x32xf32> to vector<16x32xf32>
    %752 = arith.addf %748, %751 : vector<16x32xf32>
    %c1_319 = arith.constant 1 : index
    %c0_320 = arith.constant 0 : index
    %c0_321 = arith.constant 0 : index
    %753 = vector.load %arg25[%c1_319, %c0_320, %c0_321] : memref<2x32x64xf32, #tpu.memory_space<vmem>>, vector<1x32x64xf32>
    %754 = vector.shape_cast %753 : vector<1x32x64xf32> to vector<32x64xf32>
    %cst_322 = arith.constant dense<0.000000e+00> : vector<32x64xf32>
    %755 = tpu.matmul %333, %754, %cst_322 {dimension_numbers = #tpu.dot_dimension_numbers<[1], [0], [0], [1], [0, 0, 1, 1], [], []>} : vector<32x32xf32>, vector<32x64xf32>, vector<32x64xf32> -> vector<32x64xf32>
    %c1_323 = arith.constant 1 : index
    %c0_324 = arith.constant 0 : index
    %c0_325 = arith.constant 0 : index
    %756 = vector.load %arg26[%c1_323, %c0_324, %c0_325] : memref<2x1x64xf32, #tpu.memory_space<vmem>>, vector<1x1x64xf32>
    %757 = vector.shape_cast %756 : vector<1x1x64xf32> to vector<1x64xf32>
    %758 = vector.broadcast %757 : vector<1x64xf32> to vector<32x64xf32>
    %759 = arith.addf %755, %758 : vector<32x64xf32>
    %760 = vector.extract_strided_slice %759 {offsets = [0, 0], sizes = [32, 32], strides = [1, 1]} : vector<32x64xf32> to vector<32x32xf32>
    %761 = vector.extract_strided_slice %759 {offsets = [0, 32], sizes = [32, 32], strides = [1, 1]} : vector<32x64xf32> to vector<32x32xf32>
    %c1_326 = arith.constant 1 : index
    %c0_327 = arith.constant 0 : index
    %c0_328 = arith.constant 0 : index
    %762 = vector.load %arg27[%c1_326, %c0_327, %c0_328] : memref<2x32x32xf32, #tpu.memory_space<vmem>>, vector<1x32x32xf32>
    %763 = vector.shape_cast %762 : vector<1x32x32xf32> to vector<32x32xf32>
    %764 = vector.extract_strided_slice %752 {offsets = [0, 0], sizes = [16, 8], strides = [1, 1]} : vector<16x32xf32> to vector<16x8xf32>
    %765 = vector.extract_strided_slice %760 {offsets = [0, 0], sizes = [32, 8], strides = [1, 1]} : vector<32x32xf32> to vector<32x8xf32>
    %cst_329 = arith.constant dense<0.000000e+00> : vector<16x32xf32>
    %766 = tpu.matmul %764, %765, %cst_329 {dimension_numbers = #tpu.dot_dimension_numbers<[1], [1], [0], [0], [0, 0, 1, 0], [], []>} : vector<16x8xf32>, vector<32x8xf32>, vector<16x32xf32> -> vector<16x32xf32>
    %767 = arith.addf %766, %2 : vector<16x32xf32>
    %cst_330 = arith.constant dense<0xFF800000> : vector<16xf32>
    %768 = vector.multi_reduction <maximumf>, %767, %cst_330 [1] : vector<16x32xf32> to vector<16xf32>
    %769 = vector.shape_cast %768 : vector<16xf32> to vector<16x1xf32>
    %770 = vector.broadcast %769 : vector<16x1xf32> to vector<16x32xf32>
    %771 = arith.subf %767, %770 : vector<16x32xf32>
    %772 = math.exp %771 : vector<16x32xf32>
    %cst_331 = arith.constant dense<0.000000e+00> : vector<16xf32>
    %773 = vector.multi_reduction <add>, %772, %cst_331 [1] : vector<16x32xf32> to vector<16xf32>
    %774 = vector.shape_cast %773 : vector<16xf32> to vector<16x1xf32>
    %775 = tpu.reciprocal %774 {approx = true} : vector<16x1xf32> -> vector<16x1xf32>
    %776 = vector.broadcast %775 : vector<16x1xf32> to vector<16x32xf32>
    %777 = arith.mulf %772, %776 : vector<16x32xf32>
    %778 = vector.extract_strided_slice %761 {offsets = [0, 0], sizes = [32, 8], strides = [1, 1]} : vector<32x32xf32> to vector<32x8xf32>
    %cst_332 = arith.constant dense<0.000000e+00> : vector<16x8xf32>
    %779 = tpu.matmul %777, %778, %cst_332 {dimension_numbers = #tpu.dot_dimension_numbers<[1], [0], [0], [1], [0, 0, 1, 1], [], []>} : vector<16x32xf32>, vector<32x8xf32>, vector<16x8xf32> -> vector<16x8xf32>
    %780 = vector.extract_strided_slice %763 {offsets = [0, 0], sizes = [8, 32], strides = [1, 1]} : vector<32x32xf32> to vector<8x32xf32>
    %cst_333 = arith.constant dense<0.000000e+00> : vector<16x32xf32>
    %781 = tpu.matmul %779, %780, %cst_333 {dimension_numbers = #tpu.dot_dimension_numbers<[1], [0], [0], [1], [0, 0, 1, 1], [], []>} : vector<16x8xf32>, vector<8x32xf32>, vector<16x32xf32> -> vector<16x32xf32>
    %782 = vector.extract_strided_slice %752 {offsets = [0, 8], sizes = [16, 8], strides = [1, 1]} : vector<16x32xf32> to vector<16x8xf32>
    %783 = vector.extract_strided_slice %760 {offsets = [0, 8], sizes = [32, 8], strides = [1, 1]} : vector<32x32xf32> to vector<32x8xf32>
    %cst_334 = arith.constant dense<0.000000e+00> : vector<16x32xf32>
    %784 = tpu.matmul %782, %783, %cst_334 {dimension_numbers = #tpu.dot_dimension_numbers<[1], [1], [0], [0], [0, 0, 1, 0], [], []>} : vector<16x8xf32>, vector<32x8xf32>, vector<16x32xf32> -> vector<16x32xf32>
    %785 = arith.addf %784, %2 : vector<16x32xf32>
    %cst_335 = arith.constant dense<0xFF800000> : vector<16xf32>
    %786 = vector.multi_reduction <maximumf>, %785, %cst_335 [1] : vector<16x32xf32> to vector<16xf32>
    %787 = vector.shape_cast %786 : vector<16xf32> to vector<16x1xf32>
    %788 = vector.broadcast %787 : vector<16x1xf32> to vector<16x32xf32>
    %789 = arith.subf %785, %788 : vector<16x32xf32>
    %790 = math.exp %789 : vector<16x32xf32>
    %cst_336 = arith.constant dense<0.000000e+00> : vector<16xf32>
    %791 = vector.multi_reduction <add>, %790, %cst_336 [1] : vector<16x32xf32> to vector<16xf32>
    %792 = vector.shape_cast %791 : vector<16xf32> to vector<16x1xf32>
    %793 = tpu.reciprocal %792 {approx = true} : vector<16x1xf32> -> vector<16x1xf32>
    %794 = vector.broadcast %793 : vector<16x1xf32> to vector<16x32xf32>
    %795 = arith.mulf %790, %794 : vector<16x32xf32>
    %796 = vector.extract_strided_slice %761 {offsets = [0, 8], sizes = [32, 8], strides = [1, 1]} : vector<32x32xf32> to vector<32x8xf32>
    %cst_337 = arith.constant dense<0.000000e+00> : vector<16x8xf32>
    %797 = tpu.matmul %795, %796, %cst_337 {dimension_numbers = #tpu.dot_dimension_numbers<[1], [0], [0], [1], [0, 0, 1, 1], [], []>} : vector<16x32xf32>, vector<32x8xf32>, vector<16x8xf32> -> vector<16x8xf32>
    %798 = vector.extract_strided_slice %763 {offsets = [8, 0], sizes = [8, 32], strides = [1, 1]} : vector<32x32xf32> to vector<8x32xf32>
    %cst_338 = arith.constant dense<0.000000e+00> : vector<16x32xf32>
    %799 = tpu.matmul %797, %798, %cst_338 {dimension_numbers = #tpu.dot_dimension_numbers<[1], [0], [0], [1], [0, 0, 1, 1], [], []>} : vector<16x8xf32>, vector<8x32xf32>, vector<16x32xf32> -> vector<16x32xf32>
    %800 = arith.addf %781, %799 : vector<16x32xf32>
    %801 = vector.extract_strided_slice %752 {offsets = [0, 16], sizes = [16, 8], strides = [1, 1]} : vector<16x32xf32> to vector<16x8xf32>
    %802 = vector.extract_strided_slice %760 {offsets = [0, 16], sizes = [32, 8], strides = [1, 1]} : vector<32x32xf32> to vector<32x8xf32>
    %cst_339 = arith.constant dense<0.000000e+00> : vector<16x32xf32>
    %803 = tpu.matmul %801, %802, %cst_339 {dimension_numbers = #tpu.dot_dimension_numbers<[1], [1], [0], [0], [0, 0, 1, 0], [], []>} : vector<16x8xf32>, vector<32x8xf32>, vector<16x32xf32> -> vector<16x32xf32>
    %804 = arith.addf %803, %2 : vector<16x32xf32>
    %cst_340 = arith.constant dense<0xFF800000> : vector<16xf32>
    %805 = vector.multi_reduction <maximumf>, %804, %cst_340 [1] : vector<16x32xf32> to vector<16xf32>
    %806 = vector.shape_cast %805 : vector<16xf32> to vector<16x1xf32>
    %807 = vector.broadcast %806 : vector<16x1xf32> to vector<16x32xf32>
    %808 = arith.subf %804, %807 : vector<16x32xf32>
    %809 = math.exp %808 : vector<16x32xf32>
    %cst_341 = arith.constant dense<0.000000e+00> : vector<16xf32>
    %810 = vector.multi_reduction <add>, %809, %cst_341 [1] : vector<16x32xf32> to vector<16xf32>
    %811 = vector.shape_cast %810 : vector<16xf32> to vector<16x1xf32>
    %812 = tpu.reciprocal %811 {approx = true} : vector<16x1xf32> -> vector<16x1xf32>
    %813 = vector.broadcast %812 : vector<16x1xf32> to vector<16x32xf32>
    %814 = arith.mulf %809, %813 : vector<16x32xf32>
    %815 = vector.extract_strided_slice %761 {offsets = [0, 16], sizes = [32, 8], strides = [1, 1]} : vector<32x32xf32> to vector<32x8xf32>
    %cst_342 = arith.constant dense<0.000000e+00> : vector<16x8xf32>
    %816 = tpu.matmul %814, %815, %cst_342 {dimension_numbers = #tpu.dot_dimension_numbers<[1], [0], [0], [1], [0, 0, 1, 1], [], []>} : vector<16x32xf32>, vector<32x8xf32>, vector<16x8xf32> -> vector<16x8xf32>
    %817 = vector.extract_strided_slice %763 {offsets = [16, 0], sizes = [8, 32], strides = [1, 1]} : vector<32x32xf32> to vector<8x32xf32>
    %cst_343 = arith.constant dense<0.000000e+00> : vector<16x32xf32>
    %818 = tpu.matmul %816, %817, %cst_343 {dimension_numbers = #tpu.dot_dimension_numbers<[1], [0], [0], [1], [0, 0, 1, 1], [], []>} : vector<16x8xf32>, vector<8x32xf32>, vector<16x32xf32> -> vector<16x32xf32>
    %819 = arith.addf %800, %818 : vector<16x32xf32>
    %820 = vector.extract_strided_slice %752 {offsets = [0, 24], sizes = [16, 8], strides = [1, 1]} : vector<16x32xf32> to vector<16x8xf32>
    %821 = vector.extract_strided_slice %760 {offsets = [0, 24], sizes = [32, 8], strides = [1, 1]} : vector<32x32xf32> to vector<32x8xf32>
    %cst_344 = arith.constant dense<0.000000e+00> : vector<16x32xf32>
    %822 = tpu.matmul %820, %821, %cst_344 {dimension_numbers = #tpu.dot_dimension_numbers<[1], [1], [0], [0], [0, 0, 1, 0], [], []>} : vector<16x8xf32>, vector<32x8xf32>, vector<16x32xf32> -> vector<16x32xf32>
    %823 = arith.addf %822, %2 : vector<16x32xf32>
    %cst_345 = arith.constant dense<0xFF800000> : vector<16xf32>
    %824 = vector.multi_reduction <maximumf>, %823, %cst_345 [1] : vector<16x32xf32> to vector<16xf32>
    %825 = vector.shape_cast %824 : vector<16xf32> to vector<16x1xf32>
    %826 = vector.broadcast %825 : vector<16x1xf32> to vector<16x32xf32>
    %827 = arith.subf %823, %826 : vector<16x32xf32>
    %828 = math.exp %827 : vector<16x32xf32>
    %cst_346 = arith.constant dense<0.000000e+00> : vector<16xf32>
    %829 = vector.multi_reduction <add>, %828, %cst_346 [1] : vector<16x32xf32> to vector<16xf32>
    %830 = vector.shape_cast %829 : vector<16xf32> to vector<16x1xf32>
    %831 = tpu.reciprocal %830 {approx = true} : vector<16x1xf32> -> vector<16x1xf32>
    %832 = vector.broadcast %831 : vector<16x1xf32> to vector<16x32xf32>
    %833 = arith.mulf %828, %832 : vector<16x32xf32>
    %834 = vector.extract_strided_slice %761 {offsets = [0, 24], sizes = [32, 8], strides = [1, 1]} : vector<32x32xf32> to vector<32x8xf32>
    %cst_347 = arith.constant dense<0.000000e+00> : vector<16x8xf32>
    %835 = tpu.matmul %833, %834, %cst_347 {dimension_numbers = #tpu.dot_dimension_numbers<[1], [0], [0], [1], [0, 0, 1, 1], [], []>} : vector<16x32xf32>, vector<32x8xf32>, vector<16x8xf32> -> vector<16x8xf32>
    %836 = vector.extract_strided_slice %763 {offsets = [24, 0], sizes = [8, 32], strides = [1, 1]} : vector<32x32xf32> to vector<8x32xf32>
    %cst_348 = arith.constant dense<0.000000e+00> : vector<16x32xf32>
    %837 = tpu.matmul %835, %836, %cst_348 {dimension_numbers = #tpu.dot_dimension_numbers<[1], [0], [0], [1], [0, 0, 1, 1], [], []>} : vector<16x8xf32>, vector<8x32xf32>, vector<16x32xf32> -> vector<16x32xf32>
    %838 = arith.addf %819, %837 : vector<16x32xf32>
    %c1_349 = arith.constant 1 : index
    %c0_350 = arith.constant 0 : index
    %c0_351 = arith.constant 0 : index
    %839 = vector.load %arg28[%c1_349, %c0_350, %c0_351] : memref<2x1x32xf32, #tpu.memory_space<vmem>>, vector<1x1x32xf32>
    %840 = vector.shape_cast %839 : vector<1x1x32xf32> to vector<1x32xf32>
    %841 = vector.broadcast %840 : vector<1x32xf32> to vector<16x32xf32>
    %842 = arith.addf %838, %841 : vector<16x32xf32>
    %843 = arith.addf %745, %842 : vector<16x32xf32>
    %c1_352 = arith.constant 1 : index
    %c0_353 = arith.constant 0 : index
    %c0_354 = arith.constant 0 : index
    %844 = vector.load %arg29[%c1_352, %c0_353, %c0_354] : memref<2x1x32xf32, #tpu.memory_space<vmem>>, vector<1x1x32xf32>
    %845 = vector.shape_cast %844 : vector<1x1x32xf32> to vector<1x32xf32>
    %c1_355 = arith.constant 1 : index
    %c0_356 = arith.constant 0 : index
    %c0_357 = arith.constant 0 : index
    %846 = vector.load %arg30[%c1_355, %c0_356, %c0_357] : memref<2x1x32xf32, #tpu.memory_space<vmem>>, vector<1x1x32xf32>
    %847 = vector.shape_cast %846 : vector<1x1x32xf32> to vector<1x32xf32>
    %cst_358 = arith.constant dense<0.000000e+00> : vector<16xf32>
    %848 = vector.multi_reduction <add>, %843, %cst_358 [1] : vector<16x32xf32> to vector<16xf32>
    %849 = vector.shape_cast %848 : vector<16xf32> to vector<16x1xf32>
    %cst_359 = arith.constant 3.200000e+01 : f32
    %850 = vector.broadcast %cst_359 : f32 to vector<16x1xf32>
    %851 = arith.divf %849, %850 : vector<16x1xf32>
    %852 = vector.broadcast %851 : vector<16x1xf32> to vector<16x32xf32>
    %853 = arith.subf %843, %852 : vector<16x32xf32>
    %854 = vector.broadcast %851 : vector<16x1xf32> to vector<16x32xf32>
    %855 = arith.subf %843, %854 : vector<16x32xf32>
    %856 = arith.mulf %853, %855 : vector<16x32xf32>
    %cst_360 = arith.constant dense<0.000000e+00> : vector<16xf32>
    %857 = vector.multi_reduction <add>, %856, %cst_360 [1] : vector<16x32xf32> to vector<16xf32>
    %858 = vector.shape_cast %857 : vector<16xf32> to vector<16x1xf32>
    %cst_361 = arith.constant 3.200000e+01 : f32
    %859 = vector.broadcast %cst_361 : f32 to vector<16x1xf32>
    %860 = arith.divf %858, %859 : vector<16x1xf32>
    %861 = vector.broadcast %851 : vector<16x1xf32> to vector<16x32xf32>
    %862 = arith.subf %843, %861 : vector<16x32xf32>
    %cst_362 = arith.constant 9.99999974E-6 : f32
    %863 = vector.broadcast %cst_362 : f32 to vector<16x1xf32>
    %864 = arith.addf %860, %863 : vector<16x1xf32>
    %865 = math.rsqrt %864 : vector<16x1xf32>
    %866 = vector.broadcast %865 : vector<16x1xf32> to vector<16x32xf32>
    %867 = arith.mulf %862, %866 : vector<16x32xf32>
    %868 = vector.broadcast %845 : vector<1x32xf32> to vector<16x32xf32>
    %869 = arith.mulf %867, %868 : vector<16x32xf32>
    %870 = vector.broadcast %847 : vector<1x32xf32> to vector<16x32xf32>
    %871 = arith.addf %869, %870 : vector<16x32xf32>
    %c1_363 = arith.constant 1 : index
    %c0_364 = arith.constant 0 : index
    %c0_365 = arith.constant 0 : index
    %872 = vector.load %arg31[%c1_363, %c0_364, %c0_365] : memref<2x32x64xf32, #tpu.memory_space<vmem>>, vector<1x32x64xf32>
    %873 = vector.shape_cast %872 : vector<1x32x64xf32> to vector<32x64xf32>
    %cst_366 = arith.constant dense<0.000000e+00> : vector<16x64xf32>
    %874 = tpu.matmul %871, %873, %cst_366 {dimension_numbers = #tpu.dot_dimension_numbers<[1], [0], [0], [1], [0, 0, 1, 1], [], []>} : vector<16x32xf32>, vector<32x64xf32>, vector<16x64xf32> -> vector<16x64xf32>
    %c1_367 = arith.constant 1 : index
    %c0_368 = arith.constant 0 : index
    %c0_369 = arith.constant 0 : index
    %875 = vector.load %arg32[%c1_367, %c0_368, %c0_369] : memref<2x1x64xf32, #tpu.memory_space<vmem>>, vector<1x1x64xf32>
    %876 = vector.shape_cast %875 : vector<1x1x64xf32> to vector<1x64xf32>
    %877 = vector.broadcast %876 : vector<1x64xf32> to vector<16x64xf32>
    %878 = arith.addf %874, %877 : vector<16x64xf32>
    %cst_370 = arith.constant 0.000000e+00 : f32
    %879 = vector.broadcast %cst_370 : f32 to vector<16x64xf32>
    %880 = arith.maximumf %878, %879 : vector<16x64xf32>
    %c1_371 = arith.constant 1 : index
    %c0_372 = arith.constant 0 : index
    %c0_373 = arith.constant 0 : index
    %881 = vector.load %arg33[%c1_371, %c0_372, %c0_373] : memref<2x64x32xf32, #tpu.memory_space<vmem>>, vector<1x64x32xf32>
    %882 = vector.shape_cast %881 : vector<1x64x32xf32> to vector<64x32xf32>
    %cst_374 = arith.constant dense<0.000000e+00> : vector<16x32xf32>
    %883 = tpu.matmul %880, %882, %cst_374 {dimension_numbers = #tpu.dot_dimension_numbers<[1], [0], [0], [1], [0, 0, 1, 1], [], []>} : vector<16x64xf32>, vector<64x32xf32>, vector<16x32xf32> -> vector<16x32xf32>
    %c1_375 = arith.constant 1 : index
    %c0_376 = arith.constant 0 : index
    %c0_377 = arith.constant 0 : index
    %884 = vector.load %arg34[%c1_375, %c0_376, %c0_377] : memref<2x1x32xf32, #tpu.memory_space<vmem>>, vector<1x1x32xf32>
    %885 = vector.shape_cast %884 : vector<1x1x32xf32> to vector<1x32xf32>
    %886 = vector.broadcast %885 : vector<1x32xf32> to vector<16x32xf32>
    %887 = arith.addf %883, %886 : vector<16x32xf32>
    %888 = arith.addf %871, %887 : vector<16x32xf32>
    %c1_378 = arith.constant 1 : index
    %c0_379 = arith.constant 0 : index
    %c0_380 = arith.constant 0 : index
    %889 = vector.load %arg35[%c1_378, %c0_379, %c0_380] : memref<2x1x32xf32, #tpu.memory_space<vmem>>, vector<1x1x32xf32>
    %890 = vector.shape_cast %889 : vector<1x1x32xf32> to vector<1x32xf32>
    %c1_381 = arith.constant 1 : index
    %c0_382 = arith.constant 0 : index
    %c0_383 = arith.constant 0 : index
    %891 = vector.load %arg36[%c1_381, %c0_382, %c0_383] : memref<2x1x32xf32, #tpu.memory_space<vmem>>, vector<1x1x32xf32>
    %892 = vector.shape_cast %891 : vector<1x1x32xf32> to vector<1x32xf32>
    %cst_384 = arith.constant dense<0.000000e+00> : vector<16xf32>
    %893 = vector.multi_reduction <add>, %888, %cst_384 [1] : vector<16x32xf32> to vector<16xf32>
    %894 = vector.shape_cast %893 : vector<16xf32> to vector<16x1xf32>
    %cst_385 = arith.constant 3.200000e+01 : f32
    %895 = vector.broadcast %cst_385 : f32 to vector<16x1xf32>
    %896 = arith.divf %894, %895 : vector<16x1xf32>
    %897 = vector.broadcast %896 : vector<16x1xf32> to vector<16x32xf32>
    %898 = arith.subf %888, %897 : vector<16x32xf32>
    %899 = vector.broadcast %896 : vector<16x1xf32> to vector<16x32xf32>
    %900 = arith.subf %888, %899 : vector<16x32xf32>
    %901 = arith.mulf %898, %900 : vector<16x32xf32>
    %cst_386 = arith.constant dense<0.000000e+00> : vector<16xf32>
    %902 = vector.multi_reduction <add>, %901, %cst_386 [1] : vector<16x32xf32> to vector<16xf32>
    %903 = vector.shape_cast %902 : vector<16xf32> to vector<16x1xf32>
    %cst_387 = arith.constant 3.200000e+01 : f32
    %904 = vector.broadcast %cst_387 : f32 to vector<16x1xf32>
    %905 = arith.divf %903, %904 : vector<16x1xf32>
    %906 = vector.broadcast %896 : vector<16x1xf32> to vector<16x32xf32>
    %907 = arith.subf %888, %906 : vector<16x32xf32>
    %cst_388 = arith.constant 9.99999974E-6 : f32
    %908 = vector.broadcast %cst_388 : f32 to vector<16x1xf32>
    %909 = arith.addf %905, %908 : vector<16x1xf32>
    %910 = math.rsqrt %909 : vector<16x1xf32>
    %911 = vector.broadcast %910 : vector<16x1xf32> to vector<16x32xf32>
    %912 = arith.mulf %907, %911 : vector<16x32xf32>
    %913 = vector.broadcast %890 : vector<1x32xf32> to vector<16x32xf32>
    %914 = arith.mulf %912, %913 : vector<16x32xf32>
    %915 = vector.broadcast %892 : vector<1x32xf32> to vector<16x32xf32>
    %916 = arith.addf %914, %915 : vector<16x32xf32>
    %c0_389 = arith.constant 0 : index
    %c0_390 = arith.constant 0 : index
    %917 = vector.load %arg37[%c0_389, %c0_390] : memref<32x128xf32, #tpu.memory_space<vmem>>, vector<32x128xf32>
    %cst_391 = arith.constant dense<0.000000e+00> : vector<16x128xf32>
    %918 = tpu.matmul %916, %917, %cst_391 {dimension_numbers = #tpu.dot_dimension_numbers<[1], [0], [0], [1], [0, 0, 1, 1], [], []>} : vector<16x32xf32>, vector<32x128xf32>, vector<16x128xf32> -> vector<16x128xf32>
    %c0_392 = arith.constant 0 : index
    %c0_393 = arith.constant 0 : index
    %919 = vector.load %arg38[%c0_392, %c0_393] : memref<1x128xf32, #tpu.memory_space<vmem>>, vector<1x128xf32>
    %920 = vector.broadcast %919 : vector<1x128xf32> to vector<16x128xf32>
    %921 = arith.addf %918, %920 : vector<16x128xf32>
    %c0_394 = arith.constant 0 : index
    %c0_395 = arith.constant 0 : index
    %922 = vector.load %arg39[%c0_394, %c0_395] : memref<16x128xf32, #tpu.memory_space<vmem>>, vector<16x128xf32>
    tpu.vector_store %arg39[%c0_394, %c0_395], %921 {strides = array<i32>} : memref<16x128xf32, #tpu.memory_space<vmem>>, vector<16x128xf32>,
    return
  }
}

</mosaic_0001>

<bundles_post_ra>
// kernel: forward.1
= control target key start
LH: loop header
LB: loop body
LE: loop exit
PB: predicated region body
PF: predicated region fallthrough
CT: control target
= control target key end

     0   :  { %s12409_s3 = smov 5   ;;  %vm185_vm0 = vcmask 261120   ;;  %s12410_s10 = smov 6   ;;  %vm299_vm1 = vcmask 64512   ;;  %vm1977_vm2 = vcmask 523264   ;;  %vm4327_vm3 = vcmask 130048   ;;  %s14231_s0 = inlined_call_operand.smem [shape: u32[40], index: -1, kind: input, shape index: {}] }
   0x1   :  { %s12467_s6 = sld [smem:[%s14231_s0 + %s12409_s3]]   ;;  %s12411_s14 = smov 96  }
   0x2   :  { %s12472_s9 = sld [smem:[%s14231_s0]]   ;;  %s12412_s15 = smov 64  }
   0x3   :  { %s12489_s13 = sld [smem:[%s14231_s0 + %s12410_s10]]   ;;  %s12413_s16 = smov 2  }
   0x4   :  { %s12535_s19 = sld [smem:[%s14231_s0 + %s12413_s16]]   ;;  %s12414_s20 = smov 88  }
   0x5   :  { %s14246_s21 = smov 120   ;;  %s12416_s22 = smov 7  }
   0x6   :  { %s12595_s25 = sld [smem:[%s14231_s0 + %s12416_s22]]   ;;  %s14244_s26 = smov 56  }
   0x7   :  { %v177_v0 = vld [vmem:[%s12467_s6 + $0x18] sm:$0xff]  ;;  %v176_v1 = vld [vmem:[%s12467_s6 + $0x10] sm:$0xff]  ;;  %v175_v3 = vld [vmem:[%s12467_s6 + $0x8] sm:$0xff]  ;;  %s14242_s27 = smov 80   ;;  %s14240_s28 = smov 112  }
   0x8   :  { %11136 = vmatprep.subr.mxu0 %v177_v0  ;;  %v170_v2 = vld [vmem:[%s12472_s9] sm:$0xff]  ;;  %v171_v5 = vld [vmem:[%s12472_s9 + $0x8] sm:$0xff]  ;;  %v172_v6 = vld [vmem:[%s12472_s9 + $0x10] sm:$0xff]  ;;  %s14238_s29 = smov 72   ;;  %s14236_s30 = smov 104  }
   0x9   :  { %11137 = vmatpush3.msra.mxu0 %v177_v0  ;;  %11144 = vmatprep.mubr.msk.f32.mxu0 %vm185_vm0, %v170_v2  ;;  %v174_v4 = vld [vmem:[%s12467_s6] sm:$0xff]  ;;  %v173_v7 = vld [vmem:[%s12472_s9 + $0x18] sm:$0xff]  ;;  %s14234_s1 = smov 48   ;;  %s14232_s2 = smov 40  }
   0xa   :  { %11138 = vmatprep.subr.mxu0 %v176_v1  ;;  %v10188_v8 = vld [vmem:[%s12489_s13] ss:$0 sm:$0xff]  ;;  %v12538_v25 = vld [vmem:[%s12535_s19 + $0x8] sm:$0xff]  ;;  %v12545_v30 = vld [vmem:[%s12535_s19 + $0x18] sm:$0xff]  ;;  %s12424_s3 = smov 8   ;;  %s12425_s8 = smov 11  }
   0xb   :  { %11139 = vmatpush3.msra.mxu0 %v176_v1  ;;  %v12541_v27 = vld [vmem:[%s12535_s19] sm:$0xff]  ;;  %v12552_v37 = vld [vmem:[%s12535_s19 + $0x10] sm:$0xff]  ;;  %s12773_s7 = sld [smem:[%s14231_s0 + %s12424_s3]]   ;;  %s12426_s12 = smov 13  }
   0xc   :  { %11140 = vmatprep.subr.mxu0 %v175_v3  ;;  %s12807_s11 = sld [smem:[%s14231_s0 + %s12425_s8]]   ;;  %s12427_s22 = smov 9  }
   0xd   :  { %11141 = vmatpush3.msra.mxu0 %v175_v3  ;;  %s12816_s18 = sld [smem:[%s14231_s0 + %s12426_s12]]   ;;  %s12428_s4 = smov 10  }
   0xe   :  { %11142 = vmatprep.subr.mxu0 %v174_v4  ;;  %s12825_s3 = sld [smem:[%s14231_s0 + %s12427_s22]]   ;;  %s12429_s10 = smov 12  }
   0xf   :  { %11143 = vmatpush3.msra.mxu0 %v174_v4  ;;  %s12849_s17 = sld [smem:[%s14231_s0 + %s12429_s10]]   ;;  %s12430_s22 = smov 14  }
  0x10   :  { %11145 = vmatmul.mubr.msk.f32.vlgmr.msra.gmra.mxu0 %vm185_vm0, %v171_v5  ;;  %s12431_s5 = smov 15   ;;  %s12443_s10 = smov 26  }
  0x11   :  { %11147 = vmatprep.mubr.msk.f32.mxu0 %vm185_vm0, %v172_v6  ;;  %s12877_s12 = sld [smem:[%s14231_s0 + %s12431_s5]]   ;;  %s12435_s5 = smov 18  }
  0x12   :  { %s12446_s16 = smov 27  }
  0x14   :  { %11148 = vmatmul.mubr.msk.f32.gmra.mxu0 %vm185_vm0, %v173_v7 }
  0xd0   :  { %v11146_v9 = vpop.f32.mrf.mxu0 }
  0xd1   :  { %v12492_v10 = vadd.f32 %v11146_v9, %v10188_v8 }
  0xd2   :  { %v264_v11 = vpop.f32.mrf.mxu0 }
  0xd3   :  { %v12494_v12 = vadd.f32 %v10188_v8, %v264_v11  ;;  %293 = vrot.lane.b32.xlu1 %v12492_v10, %s12411_s14 }
  0xd4   :  { %v11149_v13 = vpop.f32.mrf.mxu0 }
  0xd5   :  { %v12498_v14 = vadd.f32 %v11149_v13, %v10188_v8  ;;  %11158 = vmatprep.mubr.msk.f32.mxu1 %vm299_vm1, %v12494_v12 }
  0xd6   :  { %v274_v15 = vpop.f32.mrf.mxu0 }
  0xd7   :  { %297 = vrot.lane.b32.xlu0 %v12498_v14, %s12411_s14  ;;  %291 = vrot.lane.b32.xlu1 %v12494_v12, %s12411_s14  ;;  %v12506_v16 = vadd.f32 %v10188_v8, %v274_v15 }
  0xdb   :  { %295 = vrot.lane.b32.xlu0 %v12506_v16, %s12411_s14  ;;  %451 = vrot.lane.b32.xlu1 %v12498_v14, %s12412_s15 }
  0xdf   :  { %449 = vrot.lane.b32.xlu0 %v12506_v16, %s12412_s15  ;;  %447 = vrot.lane.b32.xlu1 %v12492_v10, %s12412_s15 }
  0xe3   :  { %445 = vrot.lane.b32.xlu1 %v12494_v12, %s12412_s15 }
 0x145   :  { %v294_v17 = vpop.permute.xlu1 %293 }
 0x149   :  { %v298_v18 = vpop.permute.xlu0 %297  ;;  %v292_v19 = vpop.permute.xlu1 %291 }
 0x14a   :  { %11150 = vmatprep.subr.msk.mxu1 %vm299_vm1, %v298_v18 }
 0x14b   :  { %11151 = vmatpush3.xpose.msk.msra.mxu1 %vm299_vm1, %v298_v18 }
 0x14d   :  { %v296_v20 = vpop.permute.xlu0 %295  ;;  %v452_v21 = vpop.permute.xlu1 %451 }
 0x14e   :  { %11152 = vmatprep.subr.msk.mxu1 %vm299_vm1, %v296_v20  ;;  %11164 = vmatprep.subr.mxu0 %v452_v21 }
 0x14f   :  { %11153 = vmatpush3.xpose.msk.msra.mxu1 %vm299_vm1, %v296_v20  ;;  %11165 = vmatpush3.msra.mxu0 %v452_v21  ;;  %v283_v21 = vld [vmem:[%s12595_s25] sm:$0xff] }
 0x150   :  { %11154 = vmatprep.subr.msk.mxu1 %vm299_vm1, %v294_v17 }
 0x151   :  { %v450_v22 = vpop.permute.xlu0 %449  ;;  %v448_v23 = vpop.permute.xlu1 %447 }
 0x152   :  { %11166 = vmatprep.subr.mxu0 %v450_v22 }
 0x153   :  { %11155 = vmatpush3.xpose.msk.msra.mxu1 %vm299_vm1, %v294_v17  ;;  %11167 = vmatpush3.msra.mxu0 %v450_v22 }
 0x154   :  { %11156 = vmatprep.subr.msk.mxu1 %vm299_vm1, %v292_v19  ;;  %11168 = vmatprep.subr.mxu0 %v448_v23 }
 0x155   :  { %11169 = vmatpush3.msra.mxu0 %v448_v23  ;;  %v446_v24 = vpop.permute.xlu1 %445 }
 0x156   :  { %11170 = vmatprep.subr.mxu0 %v446_v24 }
 0x157   :  { %11157 = vmatpush3.xpose.msk.msra.mxu1 %vm299_vm1, %v292_v19  ;;  %11171 = vmatpush3.msra.mxu0 %v446_v24 }
 0x15a   :  { %11159 = vmatmul.mubr.msk.f32.vlgmr.msra.gmra.mxu1 %vm299_vm1, %v12492_v10 }
 0x15b   :  { %11161 = vmatprep.mubr.msk.f32.mxu1 %vm299_vm1, %v12506_v16 }
 0x15e   :  { %11162 = vmatmul.mubr.msk.f32.gmra.mxu1 %vm299_vm1, %v12498_v14 }
 0x21a   :  { %v11160_v26 = vpop.f32.mrf.mxu1 }
 0x21b   :  { %v388_v28 = vadd.f32 %v11160_v26, %v12538_v25 }
 0x21c   :  { %v382_v29 = vpop.f32.mrf.mxu1 }
 0x21d   :  { %v383_v31 = vadd.f32 %v382_v29, %v12541_v27  ;;  %v404_v32 = vsel %vm185_vm0, %v388_v28, -inf }
 0x21e   :  { %405 = vmax.xlane.f32.xlu1 %v404_v32  ;;  %v11163_v33 = vpop.f32.mrf.mxu1 }
 0x21f   :  { %v398_v34 = vadd.f32 %v11163_v33, %v12545_v30  ;;  %v401_v35 = vsel %vm185_vm0, %v383_v31, -inf }
 0x220   :  { %v392_v36 = vpop.f32.mrf.mxu1  ;;  %402 = vmax.xlane.f32.xlu0 %v401_v35 }
 0x221   :  { %v393_v38 = vadd.f32 %v392_v36, %v12552_v37  ;;  %v410_v39 = vsel %vm185_vm0, %v398_v34, -inf }
 0x223   :  { %v407_v40 = vsel %vm185_vm0, %v393_v38, -inf }
 0x224   :  { %411 = vmax.xlane.f32.xlu0 %v410_v39 }
 0x228   :  { %408 = vmax.xlane.f32.xlu0 %v407_v40 }
 0x22f   :  { %566 = vrot.lane.b32.xlu1 %v12506_v16, %s12414_s20 }
 0x23e   :  { %568 = vrot.lane.b32.xlu0 %v12498_v14, %s12414_s20 }
 0x2a7   :  { %v406_v41 = vpop.xlane.xlu1 %405 }
 0x2a8   :  { %v414_v42 = vsub.f32 %v388_v28, %v406_v41 }
 0x2a9   :  { %v403_v43 = vpop.xlane.xlu0 %402 }
 0x2aa   :  { %v419_v44 = vmul.f32 1.442695, %v414_v42  ;;  %v413_v45 = vsub.f32 %v383_v31, %v403_v43 }
 0x2ab   :  { %v567_v62 = vpop.permute.xlu1 %566 }
 0x2ac   :  { %12085 = vpow2.f32 %v419_v44  ;;  %v417_v46 = vmul.f32 1.442695, %v413_v45 }
 0x2ad   :  { %v412_v47 = vpop.xlane.xlu0 %411 }
 0x2ae   :  { %12087 = vpow2.f32 %v417_v46  ;;  %v416_v54 = vsub.f32 %v398_v34, %v412_v47 }
 0x2b0   :  { %v423_v56 = vmul.f32 1.442695, %v416_v54 }
 0x2b1   :  { %v409_v48 = vpop.xlane.xlu0 %408 }
 0x2b2   :  { %v415_v55 = vsub.f32 %v393_v38, %v409_v48  ;;  %12089 = vpow2.f32 %v423_v56 }
 0x2b4   :  { %v421_v57 = vmul.f32 1.442695, %v415_v55 }
 0x2b5   :  { %v569_v49 = vpop.permute.xlu0 %568 }
 0x2b6   :  { %11178 = vmatprep.subr.msk.mxu0 %vm299_vm1, %v569_v49  ;;  %12091 = vpow2.f32 %v421_v57 }
 0x2b9   :  { %v12086_v50 = vpop.eup %12085 }
 0x2ba   :  { %v428_v51 = vsel %vm185_vm0, %v12086_v50, 0.0 }
 0x2bb   :  { %v12088_v52 = vpop.eup %12087  ;;  %429 = vadd.xlane.f32.xlu0 %v428_v51 }
 0x2bc   :  { %v425_v53 = vsel %vm185_vm0, %v12088_v52, 0.0 }
 0x2bd   :  { %426 = vadd.xlane.f32.xlu1 %v425_v53 }
 0x2bf   :  { %v12090_v58 = vpop.eup %12089 }
 0x2c0   :  { %v434_v60 = vsel %vm185_vm0, %v12090_v58, 0.0 }
 0x2c3   :  { %v12092_v59 = vpop.eup %12091 }
 0x2c4   :  { %v431_v61 = vsel %vm185_vm0, %v12092_v59, 0.0 }
 0x2ce   :  { %562 = vrot.lane.b32.xlu1 %v12494_v12, %s12414_s20 }
 0x2d1   :  { %564 = vrot.lane.b32.xlu0 %v12492_v10, %s12414_s20 }
 0x2f0   :  { %435 = vadd.xlane.f32.xlu0 %v434_v60 }
 0x2f2   :  { %432 = vadd.xlane.f32.xlu1 %v431_v61 }
 0x303   :  { %556 = vrot.lane.b32.xlu1 %v12492_v10, %s14246_s21 }
 0x306   :  { %554 = vrot.lane.b32.xlu0 %v12494_v12, %s14246_s21 }
 0x307   :  { %560 = vrot.lane.b32.xlu1 %v12498_v14, %s14246_s21 }
 0x30a   :  { %558 = vrot.lane.b32.xlu0 %v12506_v16, %s14246_s21 }
 0x344   :  { %v430_v63 = vpop.xlane.xlu0 %429 }
 0x345   :  { %12093 = vrcp.f32 %v430_v63 }
 0x346   :  { %v427_v0 = vpop.xlane.xlu1 %426 }
 0x347   :  { %12095 = vrcp.f32 %v427_v0 }
 0x348   :  { %v565_v5 = vpop.permute.xlu0 %564 }
 0x34a   :  { %v563_v6 = vpop.permute.xlu1 %562 }
 0x352   :  { %v12094_v1 = vpop.eup %12093 }
 0x353   :  { %v442_v4 = vmul.f32 %v12094_v1, %v12086_v50 }
 0x354   :  { %v12096_v2 = vpop.eup %12095 }
 0x355   :  { %v441_v3 = vmul.f32 %v12096_v2, %v12088_v52 }
 0x357   :  { %11172 = vmatprep.mubr.msk.f32.mxu0 %vm185_vm0, %v441_v3 }
 0x358   :  { %11173 = vmatmul.mubr.msk.f32.vlgmr.msra.gmra.mxu0 %vm185_vm0, %v442_v4 }
 0x359   :  { %11179 = vmatpush3.xpose.msk.msra.mxu0 %vm299_vm1, %v569_v49 }
 0x35a   :  { %11180 = vmatprep.subr.msk.mxu0 %vm299_vm1, %v567_v62 }
 0x35d   :  { %11181 = vmatpush3.xpose.msk.msra.mxu0 %vm299_vm1, %v567_v62 }
 0x35e   :  { %11182 = vmatprep.subr.msk.mxu0 %vm299_vm1, %v565_v5 }
 0x361   :  { %11183 = vmatpush3.xpose.msk.msra.mxu0 %vm299_vm1, %v565_v5 }
 0x362   :  { %11184 = vmatprep.subr.msk.mxu0 %vm299_vm1, %v563_v6 }
 0x365   :  { %11185 = vmatpush3.xpose.msk.msra.mxu0 %vm299_vm1, %v563_v6 }
 0x366   :  { %11214 = vmatprep.subr.mxu0 %v283_v21 }
 0x379   :  { %v436_v7 = vpop.xlane.xlu0 %435 }
 0x37a   :  { %12097 = vrcp.f32 %v436_v7 }
 0x37b   :  { %v433_v8 = vpop.xlane.xlu1 %432 }
 0x37c   :  { %12099 = vrcp.f32 %v433_v8 }
 0x37d   :  { %v555_v15 = vpop.permute.xlu0 %554 }
 0x37f   :  { %v557_v18 = vpop.permute.xlu1 %556 }
 0x381   :  { %v559_v19 = vpop.permute.xlu0 %558 }
 0x383   :  { %v561_v20 = vpop.permute.xlu1 %560 }
 0x387   :  { %v12098_v9 = vpop.eup %12097 }
 0x388   :  { %v444_v17 = vmul.f32 %v12098_v9, %v12090_v58  ;;  %v284_v9 = vld [vmem:[%s12595_s25 + $0x8] sm:$0xff] }
 0x389   :  { %v12100_v11 = vpop.eup %12099 }
 0x38a   :  { %v443_v13 = vmul.f32 %v12100_v11, %v12092_v59 }
 0x38c   :  { %11175 = vmatprep.mubr.msk.f32.mxu0 %vm185_vm0, %v443_v13 }
 0x38d   :  { %11176 = vmatmul.mubr.msk.f32.gmra.mxu0 %vm185_vm0, %v444_v17 }
 0x38e   :  { %11186 = vmatprep.mubr.msk.f32.mxu0 %vm299_vm1, %v555_v15 }
 0x391   :  { %11187 = vmatmul.mubr.msk.f32.vlgmr.msra.gmra.mxu0 %vm299_vm1, %v557_v18 }
 0x392   :  { %11189 = vmatprep.mubr.msk.f32.mxu0 %vm299_vm1, %v559_v19  ;;  %11215 = vmatpush3.msra.mxu0 %v283_v21 }
 0x395   :  { %11190 = vmatmul.mubr.msk.f32.gmra.mxu0 %vm299_vm1, %v561_v20 }
 0x418   :  { %v11174_v22 = vpop.f32.mrf.mxu0 }
 0x41a   :  { %v535_v23 = vpop.f32.mrf.mxu0 }
 0x41b   :  { %11216 = vmatprep.mubr.msk.f32.mxu0 %vm299_vm1, %v535_v23 }
 0x41c   :  { %11217 = vmatmul.mubr.msk.f32.vlgmr.msra.gmra.mxu0 %vm299_vm1, %v11174_v22 }
 0x44d   :  { %v11177_v24 = vpop.f32.mrf.mxu0 }
 0x44f   :  { %v545_v26 = vpop.f32.mrf.mxu0 }
 0x450   :  { %11219 = vmatprep.mubr.msk.f32.mxu0 %vm299_vm1, %v545_v26 }
 0x451   :  { %v11188_v28 = vpop.f32.mrf.mxu0  ;;  %11220 = vmatmul.mubr.msk.f32.gmra.mxu0 %vm299_vm1, %v11177_v24 }
 0x452   :  { %v658_v29 = vadd.f32 %v11188_v28, %v12538_v25 }
 0x453   :  { %v652_v31 = vpop.f32.mrf.mxu0 }
 0x454   :  { %v653_v32 = vadd.f32 %v652_v31, %v12541_v27  ;;  %v674_v33 = vsel %vm185_vm0, %v658_v29, -inf }
 0x455   :  { %675 = vmax.xlane.f32.xlu1 %v674_v33  ;;  %v11191_v34 = vpop.f32.mrf.mxu0 }
 0x456   :  { %v671_v35 = vsel %vm185_vm0, %v653_v32, -inf  ;;  %v668_v39 = vadd.f32 %v11191_v34, %v12545_v30 }
 0x457   :  { %672 = vmax.xlane.f32.xlu0 %v671_v35  ;;  %v662_v36 = vpop.f32.mrf.mxu0 }
 0x458   :  { %v663_v38 = vadd.f32 %v662_v36, %v12552_v37  ;;  %v680_v41 = vsel %vm185_vm0, %v668_v39, -inf }
 0x45a   :  { %v677_v40 = vsel %vm185_vm0, %v663_v38, -inf }
 0x45b   :  { %678 = vmax.xlane.f32.xlu0 %v677_v40 }
 0x45f   :  { %681 = vmax.xlane.f32.xlu0 %v680_v41 }
 0x466   :  { %721 = vrot.lane.b32.xlu1 %v12498_v14, %s14244_s26 }
 0x4de   :  { %v676_v42 = vpop.xlane.xlu1 %675 }
 0x4df   :  { %v684_v43 = vsub.f32 %v658_v29, %v676_v42 }
 0x4e0   :  { %v673_v44 = vpop.xlane.xlu0 %672 }
 0x4e1   :  { %v689_v45 = vmul.f32 1.442695, %v684_v43  ;;  %v683_v46 = vsub.f32 %v653_v32, %v673_v44 }
 0x4e2   :  { %v722_v47 = vpop.permute.xlu1 %721 }
 0x4e3   :  { %12101 = vpow2.f32 %v689_v45  ;;  %v687_v48 = vmul.f32 1.442695, %v683_v46  ;;  %11192 = vmatprep.subr.mxu1 %v722_v47 }
 0x4e4   :  { %11193 = vmatpush3.msra.mxu1 %v722_v47  ;;  %v679_v49 = vpop.xlane.xlu0 %678 }
 0x4e5   :  { %12103 = vpow2.f32 %v687_v48  ;;  %v685_v59 = vsub.f32 %v663_v38, %v679_v49 }
 0x4e7   :  { %v691_v60 = vmul.f32 1.442695, %v685_v59 }
 0x4e8   :  { %v682_v50 = vpop.xlane.xlu0 %681 }
 0x4e9   :  { %v686_v51 = vsub.f32 %v668_v39, %v682_v50 }
 0x4eb   :  { %v693_v52 = vmul.f32 1.442695, %v686_v51 }
 0x4ed   :  { %12105 = vpow2.f32 %v693_v52 }
 0x4ee   :  { %12107 = vpow2.f32 %v691_v60 }
 0x4f0   :  { %v12102_v53 = vpop.eup %12101 }
 0x4f1   :  { %v698_v54 = vsel %vm185_vm0, %v12102_v53, 0.0 }
 0x4f2   :  { %v12104_v55 = vpop.eup %12103  ;;  %699 = vadd.xlane.f32.xlu0 %v698_v54 }
 0x4f3   :  { %v695_v56 = vsel %vm185_vm0, %v12104_v55, 0.0 }
 0x4f4   :  { %696 = vadd.xlane.f32.xlu1 %v695_v56 }
 0x4fa   :  { %v12615_v57 = vpop.eup %12105 }
 0x4fb   :  { %v704_v58 = vsel %vm185_vm0, %v12615_v57, 0.0  ;;  %v12108_v61 = vpop.eup %12107 }
 0x4fc   :  { %705 = vadd.xlane.f32.xlu0 %v704_v58  ;;  %v701_v62 = vsel %vm185_vm0, %v12108_v61, 0.0 }
 0x505   :  { %717 = vrot.lane.b32.xlu1 %v12492_v10, %s14244_s26 }
 0x512   :  { %719 = vrot.lane.b32.xlu0 %v12506_v16, %s14244_s26 }
 0x516   :  { %1032 = vrot.lane.b32.xlu0 %v12498_v14, %s14242_s27 }
 0x51a   :  { %1028 = vrot.lane.b32.xlu0 %v12492_v10, %s14242_s27 }
 0x51e   :  { %1018 = vrot.lane.b32.xlu0 %v12494_v12, %s14240_s28 }
 0x522   :  { %1022 = vrot.lane.b32.xlu0 %v12506_v16, %s14240_s28 }
 0x526   :  { %1403 = vrot.lane.b32.xlu0 %v12498_v14, %s14238_s29 }
 0x529   :  { %702 = vadd.xlane.f32.xlu1 %v701_v62 }
 0x52a   :  { %1399 = vrot.lane.b32.xlu0 %v12492_v10, %s14238_s29 }
 0x52e   :  { %1389 = vrot.lane.b32.xlu0 %v12494_v12, %s14236_s30 }
 0x532   :  { %1393 = vrot.lane.b32.xlu0 %v12506_v16, %s14236_s30 }
 0x53a   :  { %715 = vrot.lane.b32.xlu1 %v12494_v12, %s14244_s26 }
 0x53e   :  { %1030 = vrot.lane.b32.xlu1 %v12506_v16, %s14242_s27 }
 0x542   :  { %1026 = vrot.lane.b32.xlu1 %v12494_v12, %s14242_s27 }
 0x546   :  { %1020 = vrot.lane.b32.xlu1 %v12492_v10, %s14240_s28 }
 0x54a   :  { %1024 = vrot.lane.b32.xlu1 %v12498_v14, %s14240_s28 }
 0x54e   :  { %1401 = vrot.lane.b32.xlu1 %v12506_v16, %s14238_s29 }
 0x552   :  { %1397 = vrot.lane.b32.xlu1 %v12494_v12, %s14238_s29 }
 0x556   :  { %1391 = vrot.lane.b32.xlu1 %v12492_v10, %s14236_s30 }
 0x55a   :  { %1395 = vrot.lane.b32.xlu1 %v12498_v14, %s14236_s30 }
 0x57b   :  { %v700_v0 = vpop.xlane.xlu0 %699 }
 0x57d   :  { %v697_v63 = vpop.xlane.xlu1 %696 }
 0x57e   :  { %12109 = vrcp.f32 %v697_v63 }
 0x57f   :  { %12111 = vrcp.f32 %v700_v0 }
 0x581   :  { %v718_v4 = vpop.permute.xlu1 %717 }
 0x585   :  { %v706_v1 = vpop.xlane.xlu0 %705 }
 0x586   :  { %12113 = vrcp.f32 %v706_v1 }
 0x589   :  { %v720_v2 = vpop.permute.xlu0 %719 }
 0x58a   :  { %11194 = vmatprep.subr.mxu1 %v720_v2 }
 0x58b   :  { %v12110_v3 = vpop.eup %12109  ;;  %11195 = vmatpush3.msra.mxu1 %v720_v2 }
 0x58c   :  { %11196 = vmatprep.subr.mxu1 %v718_v4  ;;  %v711_v5 = vmul.f32 %v12110_v3, %v12104_v55  ;;  %v12112_v7 = vpop.eup %12111 }
 0x58d   :  { %11197 = vmatpush3.msra.mxu1 %v718_v4  ;;  %v712_v11 = vmul.f32 %v12112_v7, %v12102_v53  ;;  %v1033_v13 = vpop.permute.xlu0 %1032 }
 0x58e   :  { %11200 = vmatprep.mubr.msk.f32.mxu1 %vm185_vm0, %v711_v5 }
 0x591   :  { %v1029_v20 = vpop.permute.xlu0 %1028 }
 0x593   :  { %v12114_v15 = vpop.eup %12113 }
 0x594   :  { %v714_v19 = vmul.f32 %v12114_v15, %v12615_v57 }
 0x595   :  { %v1019_v22 = vpop.permute.xlu0 %1018 }
 0x599   :  { %v1023_v28 = vpop.permute.xlu0 %1022 }
 0x59d   :  { %v1404_v32 = vpop.permute.xlu0 %1403 }
 0x5a1   :  { %v1400_v35 = vpop.permute.xlu0 %1399 }
 0x5a5   :  { %v1390_v38 = vpop.permute.xlu0 %1389 }
 0x5a9   :  { %v1394_v41 = vpop.permute.xlu0 %1393 }
 0x5b2   :  { %v703_v6 = vpop.xlane.xlu1 %702 }
 0x5b3   :  { %12115 = vrcp.f32 %v703_v6 }
 0x5b6   :  { %v716_v8 = vpop.permute.xlu1 %715 }
 0x5b7   :  { %11198 = vmatprep.subr.mxu1 %v716_v8 }
 0x5b8   :  { %11199 = vmatpush3.msra.mxu1 %v716_v8 }
 0x5b9   :  { %11201 = vmatmul.mubr.msk.f32.vlgmr.msra.gmra.mxu1 %vm185_vm0, %v712_v11  ;;  %11206 = vmatprep.subr.mxu1 %v284_v9 }
 0x5ba   :  { %11207 = vmatpush3.msra.mxu1 %v284_v9  ;;  %v1031_v21 = vpop.permute.xlu1 %1030 }
 0x5bb   :  { %11222 = vmatprep.subr.msk.mxu1 %vm299_vm1, %v1033_v13 }
 0x5be   :  { %v1027_v26 = vpop.permute.xlu1 %1026 }
 0x5c0   :  { %v12116_v17 = vpop.eup %12115 }
 0x5c1   :  { %v713_v18 = vmul.f32 %v12116_v17, %v12108_v61 }
 0x5c2   :  { %v1021_v29 = vpop.permute.xlu1 %1020 }
 0x5c3   :  { %11203 = vmatprep.mubr.msk.f32.mxu1 %vm185_vm0, %v713_v18 }
 0x5c4   :  { %11204 = vmatmul.mubr.msk.f32.gmra.mxu1 %vm185_vm0, %v714_v19 }
 0x5c6   :  { %v1025_v34 = vpop.permute.xlu1 %1024 }
 0x5ca   :  { %v1402_v36 = vpop.permute.xlu1 %1401 }
 0x5ce   :  { %v1398_v39 = vpop.permute.xlu1 %1397 }
 0x5d2   :  { %v1392_v40 = vpop.permute.xlu1 %1391 }
 0x5d6   :  { %v1396_v42 = vpop.permute.xlu1 %1395 }
 0x679   :  { %v11202_v23 = vpop.f32.mrf.mxu1 }
 0x67b   :  { %v805_v24 = vpop.f32.mrf.mxu1 }
 0x67c   :  { %11208 = vmatprep.mubr.msk.f32.mxu1 %vm299_vm1, %v805_v24 }
 0x67d   :  { %11209 = vmatmul.mubr.msk.f32.vlgmr.msra.gmra.mxu1 %vm299_vm1, %v11202_v23 }
 0x67e   :  { %11223 = vmatpush3.xpose.msk.msra.mxu1 %vm299_vm1, %v1033_v13 }
 0x67f   :  { %11224 = vmatprep.subr.msk.mxu1 %vm299_vm1, %v1031_v21 }
 0x682   :  { %11225 = vmatpush3.xpose.msk.msra.mxu1 %vm299_vm1, %v1031_v21 }
 0x683   :  { %11226 = vmatprep.subr.msk.mxu1 %vm299_vm1, %v1029_v20 }
 0x684   :  { %v11205_v31 = vpop.f32.mrf.mxu1 }
 0x686   :  { %11227 = vmatpush3.xpose.msk.msra.mxu1 %vm299_vm1, %v1029_v20  ;;  %v815_v33 = vpop.f32.mrf.mxu1 }
 0x687   :  { %11228 = vmatprep.subr.msk.mxu1 %vm299_vm1, %v1027_v26  ;;  %11211 = vmatprep.mubr.msk.f32.mxu1 %vm299_vm1, %v815_v33 }
 0x688   :  { %11212 = vmatmul.mubr.msk.f32.gmra.mxu1 %vm299_vm1, %v11205_v31 }
 0x689   :  { %11230 = vmatprep.mubr.msk.f32.mxu1 %vm299_vm1, %v1019_v22 }
 0x68a   :  { %11229 = vmatpush3.xpose.msk.msra.mxu1 %vm299_vm1, %v1027_v26 }
 0x68b   :  { %11258 = vmatprep.subr.msk.mxu1 %vm299_vm1, %v1404_v32 }
 0x68d   :  { %11231 = vmatmul.mubr.msk.f32.vlgmr.msra.gmra.mxu1 %vm299_vm1, %v1021_v29 }
 0x68e   :  { %11233 = vmatprep.mubr.msk.f32.mxu1 %vm299_vm1, %v1023_v28  ;;  %11259 = vmatpush3.xpose.msk.msra.mxu1 %vm299_vm1, %v1404_v32 }
 0x68f   :  { %11260 = vmatprep.subr.msk.mxu1 %vm299_vm1, %v1402_v36 }
 0x691   :  { %11234 = vmatmul.mubr.msk.f32.gmra.mxu1 %vm299_vm1, %v1025_v34 }
 0x692   :  { %11261 = vmatpush3.xpose.msk.msra.mxu1 %vm299_vm1, %v1402_v36  ;;  %11266 = vmatprep.mubr.msk.f32.mxu1 %vm299_vm1, %v1390_v38 }
 0x693   :  { %11262 = vmatprep.subr.msk.mxu1 %vm299_vm1, %v1400_v35 }
 0x696   :  { %11263 = vmatpush3.xpose.msk.msra.mxu1 %vm299_vm1, %v1400_v35 }
 0x697   :  { %11264 = vmatprep.subr.msk.mxu1 %vm299_vm1, %v1398_v39 }
 0x69a   :  { %11265 = vmatpush3.xpose.msk.msra.mxu1 %vm299_vm1, %v1398_v39 }
 0x69d   :  { %11267 = vmatmul.mubr.msk.f32.vlgmr.msra.gmra.mxu1 %vm299_vm1, %v1392_v40 }
 0x69e   :  { %11269 = vmatprep.mubr.msk.f32.mxu1 %vm299_vm1, %v1394_v41  ;;  %v285_v41 = vld [vmem:[%s12595_s25 + $0x10] sm:$0xff] }
 0x6a1   :  { %11270 = vmatmul.mubr.msk.f32.gmra.mxu1 %vm299_vm1, %v1396_v42 }
 0x73d   :  { %v12692_v43 = vpop.f32.mrf.mxu1 }
 0x73f   :  { %v12694_v44 = vpop.f32.mrf.mxu1 }
 0x748   :  { %v12696_v45 = vpop.f32.mrf.mxu1 }
 0x74a   :  { %v12698_v46 = vpop.f32.mrf.mxu1 }
 0x74d   :  { %v11232_v47 = vpop.f32.mrf.mxu1 }
 0x74e   :  { %v1122_v48 = vadd.f32 %v11232_v47, %v12538_v25 }
 0x74f   :  { %v1116_v49 = vpop.f32.mrf.mxu1 }
 0x750   :  { %v1117_v50 = vadd.f32 %v1116_v49, %v12541_v27  ;;  %v1138_v51 = vsel %vm185_vm0, %v1122_v48, -inf }
 0x751   :  { %1139 = vmax.xlane.f32.xlu1 %v1138_v51  ;;  %v11235_v52 = vpop.f32.mrf.mxu1 }
 0x752   :  { %v1135_v53 = vsel %vm185_vm0, %v1117_v50, -inf  ;;  %v1132_v56 = vadd.f32 %v11235_v52, %v12545_v30 }
 0x753   :  { %1136 = vmax.xlane.f32.xlu0 %v1135_v53  ;;  %v1126_v54 = vpop.f32.mrf.mxu1 }
 0x754   :  { %v1127_v55 = vadd.f32 %v1126_v54, %v12552_v37  ;;  %v1144_v58 = vsel %vm185_vm0, %v1132_v56, -inf }
 0x756   :  { %v1141_v57 = vsel %vm185_vm0, %v1127_v55, -inf }
 0x757   :  { %1142 = vmax.xlane.f32.xlu0 %v1141_v57 }
 0x75b   :  { %1145 = vmax.xlane.f32.xlu0 %v1144_v58 }
 0x75d   :  { %v11268_v18 = vpop.f32.mrf.mxu1 }
 0x75f   :  { %v1487_v20 = vpop.f32.mrf.mxu1 }
 0x760   :  { %v1488_v23 = vadd.f32 %v1487_v20, %v12541_v27  ;;  %v1493_v27 = vadd.f32 %v11268_v18, %v12538_v25 }
 0x761   :  { %v11271_v22 = vpop.f32.mrf.mxu1 }
 0x762   :  { %1185 = vrot.lane.b32.xlu1 %v12498_v14, %s14234_s1  ;;  %v1506_v28 = vsel %vm185_vm0, %v1488_v23, -inf  ;;  %v1503_v29 = vadd.f32 %v11271_v22, %v12545_v30 }
 0x763   :  { %v1497_v24 = vpop.f32.mrf.mxu1 }
 0x764   :  { %v12723_v26 = vadd.f32 %v1497_v24, %v12552_v37  ;;  %v1515_v32 = vsel %vm185_vm0, %v1503_v29, -inf  ;;  %v1509_v37 = vsel %vm185_vm0, %v1493_v27, -inf }
 0x766   :  { %v1512_v31 = vsel %vm185_vm0, %v12723_v26, -inf }
 0x7da   :  { %v1140_v59 = vpop.xlane.xlu1 %1139 }
 0x7db   :  { %v1148_v60 = vsub.f32 %v1122_v48, %v1140_v59 }
 0x7dc   :  { %v1137_v61 = vpop.xlane.xlu0 %1136 }
 0x7dd   :  { %v1153_v62 = vmul.f32 1.442695, %v1148_v60  ;;  %v1147_v63 = vsub.f32 %v1117_v50, %v1137_v61 }
 0x7de   :  { %v1186_v0 = vpop.permute.xlu1 %1185 }
 0x7df   :  { %12117 = vpow2.f32 %v1153_v62  ;;  %v1151_v1 = vmul.f32 1.442695, %v1147_v63  ;;  %11236 = vmatprep.subr.mxu0 %v1186_v0 }
 0x7e0   :  { %11237 = vmatpush3.msra.mxu0 %v1186_v0  ;;  %v1143_v2 = vpop.xlane.xlu0 %1142 }
 0x7e1   :  { %12119 = vpow2.f32 %v1151_v1  ;;  %v1149_v15 = vsub.f32 %v1127_v55, %v1143_v2 }
 0x7e3   :  { %v1155_v17 = vmul.f32 1.442695, %v1149_v15 }
 0x7e4   :  { %v1146_v3 = vpop.xlane.xlu0 %1145 }
 0x7e5   :  { %v1150_v4 = vsub.f32 %v1132_v56, %v1146_v3 }
 0x7e7   :  { %v1157_v5 = vmul.f32 1.442695, %v1150_v4 }
 0x7e9   :  { %12121 = vpow2.f32 %v1157_v5 }
 0x7ea   :  { %12123 = vpow2.f32 %v1155_v17 }
 0x7ec   :  { %v12118_v6 = vpop.eup %12117 }
 0x7ed   :  { %v1162_v7 = vsel %vm185_vm0, %v12118_v6, 0.0 }
 0x7ee   :  { %v12120_v8 = vpop.eup %12119  ;;  %1163 = vadd.xlane.f32.xlu0 %v1162_v7  ;;  %v11218_v7 = vpop.f32.mrf.mxu0 }
 0x7ef   :  { %v1159_v9 = vsel %vm185_vm0, %v12120_v8, 0.0 }
 0x7f0   :  { %1160 = vadd.xlane.f32.xlu1 %v1159_v9 }
 0x7f6   :  { %v12712_v11 = vpop.eup %12121 }
 0x7f7   :  { %v1168_v13 = vsel %vm185_vm0, %v12712_v11, 0.0  ;;  %v12124_v19 = vpop.eup %12123 }
 0x7f8   :  { %1169 = vadd.xlane.f32.xlu0 %v1168_v13  ;;  %v1165_v21 = vsel %vm185_vm0, %v12124_v19, 0.0 }
 0x801   :  { %1181 = vrot.lane.b32.xlu1 %v12492_v10, %s14234_s1 }
 0x80e   :  { %1183 = vrot.lane.b32.xlu0 %v12506_v16, %s14234_s1 }
 0x825   :  { %1166 = vadd.xlane.f32.xlu1 %v1165_v21 }
 0x82d   :  { %1507 = vmax.xlane.f32.xlu0 %v1506_v28 }
 0x831   :  { %1513 = vmax.xlane.f32.xlu0 %v1512_v31 }
 0x835   :  { %1516 = vmax.xlane.f32.xlu0 %v1515_v32 }
 0x836   :  { %1179 = vrot.lane.b32.xlu1 %v12494_v12, %s14234_s1 }
 0x85a   :  { %1510 = vmax.xlane.f32.xlu1 %v1509_v37 }
 0x86b   :  { %1556 = vrot.lane.b32.xlu1 %v12498_v14, %s14232_s2 }
 0x877   :  { %v1164_v33 = vpop.xlane.xlu0 %1163 }
 0x879   :  { %v1161_v30 = vpop.xlane.xlu1 %1160 }
 0x87a   :  { %12125 = vrcp.f32 %v1161_v30  ;;  %v286_v30 = vld [vmem:[%s12595_s25 + $0x18] sm:$0xff] }
 0x87b   :  { %12127 = vrcp.f32 %v1164_v33  ;;  %v1005_v33 = vadd.f32 %v11218_v7, %v12692_v43 }
 0x87d   :  { %v1182_v38 = vpop.permute.xlu1 %1181 }
 0x881   :  { %v1170_v34 = vpop.xlane.xlu0 %1169 }
 0x882   :  { %12129 = vrcp.f32 %v1170_v34 }
 0x885   :  { %v1184_v35 = vpop.permute.xlu0 %1183 }
 0x886   :  { %11238 = vmatprep.subr.mxu0 %v1184_v35 }
 0x887   :  { %v12126_v36 = vpop.eup %12125  ;;  %11239 = vmatpush3.msra.mxu0 %v1184_v35 }
 0x888   :  { %11240 = vmatprep.subr.mxu0 %v1182_v38  ;;  %v1175_v39 = vmul.f32 %v12126_v36, %v12120_v8  ;;  %v12128_v14 = vpop.eup %12127  ;;  %v999_v8 = vpop.f32.mrf.mxu0 }
 0x889   :  { %11241 = vmatpush3.msra.mxu0 %v1182_v38  ;;  %v1176_v42 = vmul.f32 %v12128_v14, %v12118_v6  ;;  %v1000_v35 = vadd.f32 %v999_v8, %v12694_v44 }
 0x88a   :  { %11244 = vmatprep.mubr.msk.f32.mxu0 %vm185_vm0, %v1175_v39  ;;  %v11221_v9 = vpop.f32.mrf.mxu0 }
 0x88c   :  { %v1009_v13 = vpop.f32.mrf.mxu0 }
 0x88f   :  { %v12130_v50 = vpop.eup %12129 }
 0x890   :  { %v1178_v53 = vmul.f32 %v12130_v50, %v12712_v11 }
 0x8ae   :  { %v1167_v25 = vpop.xlane.xlu1 %1166 }
 0x8af   :  { %12131 = vrcp.f32 %v1167_v25  ;;  %v1015_v25 = vadd.f32 %v11221_v9, %v12696_v45 }
 0x8b2   :  { %v1180_v40 = vpop.permute.xlu1 %1179 }
 0x8b3   :  { %11242 = vmatprep.subr.mxu0 %v1180_v40 }
 0x8b4   :  { %11243 = vmatpush3.msra.mxu0 %v1180_v40  ;;  %v1010_v40 = vadd.f32 %v1009_v13, %v12698_v46  ;;  %v10257_v46 = vld [vmem:[%s12773_s7] ss:$0 sm:$0xff] }
 0x8b5   :  { %11245 = vmatmul.mubr.msk.f32.vlgmr.msra.gmra.mxu0 %vm185_vm0, %v1176_v42  ;;  %11250 = vmatprep.subr.mxu0 %v285_v41 }
 0x8b6   :  { %v1508_v47 = vpop.xlane.xlu0 %1507  ;;  %11251 = vmatpush3.msra.mxu0 %v285_v41 }
 0x8b7   :  { %v1518_v48 = vsub.f32 %v1488_v23, %v1508_v47 }
 0x8b9   :  { %v1522_v49 = vmul.f32 1.442695, %v1518_v48 }
 0x8ba   :  { %v1514_v56 = vpop.xlane.xlu0 %1513 }
 0x8bb   :  { %12133 = vpow2.f32 %v1522_v49  ;;  %v1520_v61 = vsub.f32 %v12723_v26, %v1514_v56 }
 0x8bc   :  { %v12132_v51 = vpop.eup %12131 }
 0x8bd   :  { %v1177_v52 = vmul.f32 %v12132_v51, %v12124_v19  ;;  %v1526_v1 = vmul.f32 1.442695, %v1520_v61 }
 0x8be   :  { %v1517_v57 = vpop.xlane.xlu0 %1516 }
 0x8bf   :  { %11247 = vmatprep.mubr.msk.f32.mxu0 %vm185_vm0, %v1177_v52  ;;  %v1521_v58 = vsub.f32 %v1503_v29, %v1517_v57 }
 0x8c0   :  { %11248 = vmatmul.mubr.msk.f32.gmra.mxu0 %vm185_vm0, %v1178_v53 }
 0x8c1   :  { %v1528_v62 = vmul.f32 1.442695, %v1521_v58  ;;  %v12398_v58 = vld [vmem:[%s12472_s9] sm:$0xff] }
 0x8c8   :  { %v12134_v54 = vpop.eup %12133 }
 0x8c9   :  { %v1530_v55 = vsel %vm185_vm0, %v12134_v54, 0.0 }
 0x8ca   :  { %1531 = vadd.xlane.f32.xlu1 %v1530_v55  ;;  %v12397_v55 = vld [vmem:[%s12472_s9 + $0x8] sm:$0xff] }
 0x8db   :  { %1552 = vrot.lane.b32.xlu1 %v12492_v10, %s14232_s2 }
 0x8e3   :  { %v1511_v59 = vpop.xlane.xlu1 %1510 }
 0x8e4   :  { %v1519_v60 = vsub.f32 %v1493_v27, %v1511_v59 }
 0x8e6   :  { %v1524_v63 = vmul.f32 1.442695, %v1519_v60 }
 0x8e7   :  { %v1557_v0 = vpop.permute.xlu1 %1556 }
 0x8e8   :  { %12135 = vpow2.f32 %v1524_v63  ;;  %11272 = vmatprep.subr.mxu0 %v1557_v0 }
 0x8e9   :  { %12137 = vpow2.f32 %v1528_v62 }
 0x8ea   :  { %12139 = vpow2.f32 %v1526_v1 }
 0x8f5   :  { %v12136_v2 = vpop.eup %12135 }
 0x8f6   :  { %v1533_v3 = vsel %vm185_vm0, %v12136_v2, 0.0  ;;  %v12138_v4 = vpop.eup %12137 }
 0x8f7   :  { %1534 = vadd.xlane.f32.xlu0 %v1533_v3  ;;  %v1539_v10 = vsel %vm185_vm0, %v12138_v4, 0.0  ;;  %v12140_v5 = vpop.eup %12139  ;;  %v12399_v3 = vld [vmem:[%s12472_s9 + $0x10] sm:$0xff] }
 0x8f8   :  { %v1536_v6 = vsel %vm185_vm0, %v12140_v5, 0.0 }
 0x8fb   :  { %1540 = vadd.xlane.f32.xlu0 %v1539_v10 }
 0x8ff   :  { %1537 = vadd.xlane.f32.xlu1 %v1536_v6 }
 0x910   :  { %1550 = vrot.lane.b32.xlu1 %v12494_v12, %s14232_s2 }
 0x911   :  { %1554 = vrot.lane.b32.xlu0 %v12506_v16, %s14232_s2 }
 0x953   :  { %v1532_v11 = vpop.xlane.xlu1 %1531 }
 0x954   :  { %12141 = vrcp.f32 %v1532_v11 }
 0x957   :  { %v1553_v21 = vpop.permute.xlu1 %1552 }
 0x961   :  { %v12142_v18 = vpop.eup %12141 }
 0x962   :  { %v1546_v16 = vmul.f32 %v12142_v18, %v12134_v54 }
 0x975   :  { %v11246_v15 = vpop.f32.mrf.mxu0 }
 0x977   :  { %v1269_v17 = vpop.f32.mrf.mxu0 }
 0x978   :  { %11252 = vmatprep.mubr.msk.f32.mxu0 %vm299_vm1, %v1269_v17 }
 0x979   :  { %11253 = vmatmul.mubr.msk.f32.vlgmr.msra.gmra.mxu0 %vm299_vm1, %v11246_v15 }
 0x97a   :  { %11273 = vmatpush3.msra.mxu0 %v1557_v0 }
 0x980   :  { %v11249_v19 = vpop.f32.mrf.mxu0  ;;  %v1535_v20 = vpop.xlane.xlu0 %1534 }
 0x981   :  { %12143 = vrcp.f32 %v1535_v20 }
 0x982   :  { %v1279_v12 = vpop.f32.mrf.mxu0 }
 0x983   :  { %11255 = vmatprep.mubr.msk.f32.mxu0 %vm299_vm1, %v1279_v12 }
 0x984   :  { %11256 = vmatmul.mubr.msk.f32.gmra.mxu0 %vm299_vm1, %v11249_v19  ;;  %v1541_v22 = vpop.xlane.xlu0 %1540 }
 0x985   :  { %11280 = vmatprep.mubr.msk.f32.mxu0 %vm185_vm0, %v1546_v16  ;;  %12145 = vrcp.f32 %v1541_v22 }
 0x988   :  { %v1538_v23 = vpop.xlane.xlu1 %1537  ;;  %v1555_v24 = vpop.permute.xlu0 %1554 }
 0x989   :  { %12147 = vrcp.f32 %v1538_v23  ;;  %11274 = vmatprep.subr.mxu0 %v1555_v24 }
 0x98a   :  { %11275 = vmatpush3.msra.mxu0 %v1555_v24 }
 0x98b   :  { %11276 = vmatprep.subr.mxu0 %v1553_v21 }
 0x98c   :  { %v1551_v26 = vpop.permute.xlu1 %1550  ;;  %11277 = vmatpush3.msra.mxu0 %v1553_v21 }
 0x98d   :  { %11278 = vmatprep.subr.mxu0 %v1551_v26 }
 0x98e   :  { %v12144_v28 = vpop.eup %12143  ;;  %11279 = vmatpush3.msra.mxu0 %v1551_v26 }
 0x98f   :  { %v1547_v29 = vmul.f32 %v12144_v28, %v12136_v2  ;;  %11286 = vmatprep.subr.mxu0 %v286_v30 }
 0x991   :  { %11281 = vmatmul.mubr.msk.f32.vlgmr.msra.gmra.mxu0 %vm185_vm0, %v1547_v29 }
 0x992   :  { %v12146_v31 = vpop.eup %12145  ;;  %11287 = vmatpush3.msra.mxu0 %v286_v30  ;;  %v1851_v30 = vld [vmem:[%s12807_s11 + $0x8] sm:$0xff] }
 0x993   :  { %v1549_v37 = vmul.f32 %v12146_v31, %v12138_v4 }
 0x996   :  { %v12148_v32 = vpop.eup %12147 }
 0x997   :  { %v1548_v27 = vmul.f32 %v12148_v32, %v12140_v5  ;;  %v12400_v5 = vld [vmem:[%s12472_s9 + $0x18] sm:$0xff]  ;;  %s12830_s9 = sld [smem:[%s14231_s0 + %s12428_s4]]  }
 0x998   :  { %s12859_s4 = sld [smem:[%s14231_s0 + %s12430_s22]]  }
 0x999   :  { %11283 = vmatprep.mubr.msk.f32.mxu0 %vm185_vm0, %v1548_v27  ;;  %v1853_v27 = vld [vmem:[%s12807_s11 + $0x18] sm:$0xff] }
 0x99a   :  { %11284 = vmatmul.mubr.msk.f32.gmra.mxu0 %vm185_vm0, %v1549_v37  ;;  %v1852_v37 = vld [vmem:[%s12807_s11 + $0x10] sm:$0xff]  ;;  %11294 = vmatprep.subr.mxu1 %v1853_v27 }
 0x99b   :  { %11295 = vmatpush3.msra.mxu1 %v1853_v27 }
 0x99c   :  { %11296 = vmatprep.subr.mxu1 %v1852_v37 }
 0x99d   :  { %11297 = vmatpush3.msra.mxu1 %v1852_v37 }
 0x99e   :  { %11298 = vmatprep.subr.mxu1 %v1851_v30 }
 0x99f   :  { %11299 = vmatpush3.msra.mxu1 %v1851_v30 }
 0xa39   :  { %v11254_v34 = vpop.f32.mrf.mxu0 }
 0xa3a   :  { %v1386_v36 = vadd.f32 %v11254_v34, %v1005_v33  ;;  %v1850_v33 = vld [vmem:[%s12807_s11] sm:$0xff]  ;;  %v1969_v34 = vld [vmem:[%s12816_s18 + $0x38] sm:$0xff] }
 0xa3b   :  { %v1366_v38 = vpop.f32.mrf.mxu0  ;;  %11300 = vmatprep.subr.mxu1 %v1850_v33  ;;  %11308 = vmatprep.subr.mxu0 %v1969_v34 }
 0xa3c   :  { %v1385_v39 = vadd.f32 %v1366_v38, %v1000_v35  ;;  %11301 = vmatpush3.msra.mxu1 %v1850_v33  ;;  %v1968_v35 = vld [vmem:[%s12816_s18 + $0x30] sm:$0xff]  ;;  %v1966_v38 = vld [vmem:[%s12816_s18 + $0x20] sm:$0xff] }
 0xa44   :  { %v11257_v14 = vpop.f32.mrf.mxu0 }
 0xa45   :  { %v1388_v41 = vadd.f32 %v11257_v14, %v1015_v25 }
 0xa46   :  { %v1376_v42 = vpop.f32.mrf.mxu0 }
 0xa47   :  { %v1387_v47 = vadd.f32 %v1376_v42, %v1010_v40 }
 0xa51   :  { %v11282_v48 = vpop.f32.mrf.mxu0 }
 0xa53   :  { %v1640_v49 = vpop.f32.mrf.mxu0 }
 0xa54   :  { %11288 = vmatprep.mubr.msk.f32.mxu0 %vm299_vm1, %v1640_v49 }
 0xa55   :  { %11289 = vmatmul.mubr.msk.f32.vlgmr.msra.gmra.mxu0 %vm299_vm1, %v11282_v48 }
 0xa56   :  { %11309 = vmatpush3.msra.mxu0 %v1969_v34 }
 0xa57   :  { %11310 = vmatprep.subr.mxu0 %v1968_v35 }
 0xa58   :  { %11311 = vmatpush3.msra.mxu0 %v1968_v35 }
 0xa5a   :  { %v11285_v43 = vpop.f32.mrf.mxu0 }
 0xa5c   :  { %v1650_v44 = vpop.f32.mrf.mxu0 }
 0xa5d   :  { %11291 = vmatprep.mubr.msk.f32.mxu0 %vm299_vm1, %v1650_v44 }
 0xa5e   :  { %11292 = vmatmul.mubr.msk.f32.gmra.mxu0 %vm299_vm1, %v11285_v43 }
 0xb15   :  { %v11290_v45 = vpop.f32.mrf.mxu0 }
 0xb16   :  { %v1757_v50 = vadd.f32 %v11290_v45, %v1386_v36  ;;  %v1967_v36 = vld [vmem:[%s12816_s18 + $0x28] sm:$0xff] }
 0xb17   :  { %v1737_v51 = vpop.f32.mrf.mxu0  ;;  %11312 = vmatprep.subr.mxu0 %v1967_v36 }
 0xb18   :  { %v1768_v52 = vadd.f32 %v10257_v46, %v1757_v50  ;;  %v1756_v53 = vadd.f32 %v1737_v51, %v1385_v39  ;;  %11313 = vmatpush3.msra.mxu0 %v1967_v36  ;;  %v10258_v51 = vld [vmem:[%s12825_s3] ss:$0 sm:$0xff] }
 0xb19   :  { %11314 = vmatprep.subr.mxu0 %v1966_v38 }
 0xb1a   :  { %v1767_v54 = vadd.f32 %v10257_v46, %v1756_v53  ;;  %v1772_v56 = vadd.f32 %v12397_v55, %v1768_v52  ;;  %11315 = vmatpush3.msra.mxu0 %v1966_v38  ;;  %v10259_v55 = vld [vmem:[%s12830_s9] ss:$0 sm:$0xff] }
 0xb1c   :  { %v1780_v57 = vsel %vm185_vm0, %v1772_v56, 0.0  ;;  %v1771_v59 = vadd.f32 %v12398_v58, %v1767_v54 }
 0xb1d   :  { %1781 = vadd.xlane.f32.xlu1 %v1780_v57 }
 0xb1e   :  { %v11293_v60 = vpop.f32.mrf.mxu0  ;;  %v1777_v61 = vsel %vm185_vm0, %v1771_v59, 0.0 }
 0xb1f   :  { %v1759_v62 = vadd.f32 %v11293_v60, %v1388_v41  ;;  %1778 = vadd.xlane.f32.xlu0 %v1777_v61 }
 0xb20   :  { %v1747_v63 = vpop.f32.mrf.mxu0 }
 0xb21   :  { %v1758_v0 = vadd.f32 %v1747_v63, %v1387_v47  ;;  %v1770_v1 = vadd.f32 %v10257_v46, %v1759_v62 }
 0xb23   :  { %v1769_v2 = vadd.f32 %v10257_v46, %v1758_v0  ;;  %v1774_v6 = vadd.f32 %v12400_v5, %v1770_v1  ;;  %v1962_v5 = vld [vmem:[%s12816_s18] sm:$0xff] }
 0xb25   :  { %v1773_v4 = vadd.f32 %v12399_v3, %v1769_v2  ;;  %v1786_v7 = vsel %vm185_vm0, %v1774_v6, 0.0  ;;  %v1965_v3 = vld [vmem:[%s12816_s18 + $0x18] sm:$0xff] }
 0xb26   :  { %11316 = vmatprep.subr.mxu0 %v1965_v3 }
 0xb27   :  { %v1783_v10 = vsel %vm185_vm0, %v1773_v4, 0.0  ;;  %11317 = vmatpush3.msra.mxu0 %v1965_v3 }
 0xb28   :  { %1784 = vadd.xlane.f32.xlu0 %v1783_v10  ;;  %v1963_v10 = vld [vmem:[%s12816_s18 + $0x8] sm:$0xff] }
 0xb2c   :  { %1787 = vadd.xlane.f32.xlu0 %v1786_v7 }
 0xba6   :  { %v1782_v8 = vpop.xlane.xlu1 %1781 }
 0xba7   :  { %v1791_v9 = vmul.f32 0.03125, %v1782_v8 }
 0xba8   :  { %v1779_v11 = vpop.xlane.xlu0 %1778 }
 0xba9   :  { %v12784_v13 = vsub.f32 %v1772_v56, %v1791_v9  ;;  %v1790_v15 = vmul.f32 0.03125, %v1779_v11 }
 0xbab   :  { %v12786_v17 = vsub.f32 %v1771_v59, %v1790_v15  ;;  %v1799_v18 = vmul.f32 %v12784_v13, %v12784_v13 }
 0xbad   :  { %v1805_v19 = vsel %vm185_vm0, %v1799_v18, 0.0  ;;  %v1798_v20 = vmul.f32 %v12786_v17, %v12786_v17 }
 0xbae   :  { %1806 = vadd.xlane.f32.xlu0 %v1805_v19 }
 0xbaf   :  { %v1802_v12 = vsel %vm185_vm0, %v1798_v20, 0.0 }
 0xbb0   :  { %1803 = vadd.xlane.f32.xlu1 %v1802_v12 }
 0xbb1   :  { %v1785_v16 = vpop.xlane.xlu0 %1784 }
 0xbb2   :  { %v1792_v21 = vmul.f32 0.03125, %v1785_v16 }
 0xbb4   :  { %v12794_v22 = vsub.f32 %v1773_v4, %v1792_v21  ;;  %v1964_v4 = vld [vmem:[%s12816_s18 + $0x10] sm:$0xff]  ;;  %v10265_v21 = vld [vmem:[%s12859_s4] ss:$0 sm:$0xff] }
 0xbb5   :  { %v1788_v23 = vpop.xlane.xlu0 %1787  ;;  %11318 = vmatprep.subr.mxu0 %v1964_v4 }
 0xbb6   :  { %v1793_v24 = vmul.f32 0.03125, %v1788_v23  ;;  %v1800_v26 = vmul.f32 %v12794_v22, %v12794_v22  ;;  %11319 = vmatpush3.msra.mxu0 %v1964_v4 }
 0xbb7   :  { %11320 = vmatprep.subr.mxu0 %v1963_v10 }
 0xbb8   :  { %v12798_v28 = vsub.f32 %v1774_v6, %v1793_v24  ;;  %v1808_v29 = vsel %vm185_vm0, %v1800_v26, 0.0  ;;  %11321 = vmatpush3.msra.mxu0 %v1963_v10  ;;  %v10260_v6 = vld [vmem:[%s12849_s17] ss:$0 sm:$0xff] }
 0xbb9   :  { %1809 = vadd.xlane.f32.xlu1 %v1808_v29  ;;  %11322 = vmatprep.subr.mxu0 %v1962_v5 }
 0xbba   :  { %v1801_v31 = vmul.f32 %v12798_v28, %v12798_v28  ;;  %11323 = vmatpush3.msra.mxu0 %v1962_v5 }
 0xbbc   :  { %v1811_v32 = vsel %vm185_vm0, %v1801_v31, 0.0 }
 0xbbd   :  { %1812 = vadd.xlane.f32.xlu0 %v1811_v32 }
 0xc37   :  { %v1807_v39 = vpop.xlane.xlu0 %1806 }
 0xc38   :  { %v1815_v25 = vmul.f32 0.03125, %v1807_v39 }
 0xc39   :  { %v1804_v14 = vpop.xlane.xlu1 %1803 }
 0xc3a   :  { %v1819_v40 = vadd.f32 1e-05, %v1815_v25  ;;  %v1814_v41 = vmul.f32 0.03125, %v1804_v14 }
 0xc3c   :  { %12149 = vrsqrt.f32 %v1819_v40  ;;  %v1818_v42 = vadd.f32 1e-05, %v1814_v41 }
 0xc3e   :  { %12151 = vrsqrt.f32 %v1818_v42 }
 0xc42   :  { %v1810_v47 = vpop.xlane.xlu1 %1809 }
 0xc43   :  { %v1816_v48 = vmul.f32 0.03125, %v1810_v47 }
 0xc45   :  { %v1820_v49 = vadd.f32 1e-05, %v1816_v48 }
 0xc46   :  { %v1813_v43 = vpop.xlane.xlu0 %1812 }
 0xc47   :  { %12153 = vrsqrt.f32 %v1820_v49  ;;  %v1817_v44 = vmul.f32 0.03125, %v1813_v43 }
 0xc49   :  { %v12150_v45 = vpop.eup %12149  ;;  %v1821_v46 = vadd.f32 1e-05, %v1817_v44 }
 0xc4a   :  { %v1827_v50 = vmul.f32 %v12150_v45, %v12784_v13 }
 0xc4b   :  { %v12152_v52 = vpop.eup %12151  ;;  %12155 = vrsqrt.f32 %v1821_v46 }
 0xc4c   :  { %v1826_v53 = vmul.f32 %v12152_v52, %v12786_v17  ;;  %v1837_v54 = vmul.f32 %v10258_v51, %v1827_v50 }
 0xc4e   :  { %v1836_v56 = vmul.f32 %v10258_v51, %v1826_v53  ;;  %v1847_v58 = vadd.f32 %v10259_v55, %v1837_v54 }
 0xc50   :  { %v1846_v57 = vadd.f32 %v10259_v55, %v1836_v56 }
 0xc52   :  { %11302 = vmatprep.mubr.msk.f32.mxu1 %vm185_vm0, %v1846_v57 }
 0xc53   :  { %11303 = vmatmul.mubr.msk.f32.vlgmr.msra.gmra.mxu1 %vm185_vm0, %v1847_v58 }
 0xc54   :  { %v12154_v59 = vpop.eup %12153 }
 0xc55   :  { %v1828_v60 = vmul.f32 %v12154_v59, %v12794_v22  ;;  %v10273_v59 = vld [vmem:[%s12467_s6 + $0x28] sm:$0xff] }
 0xc57   :  { %v1838_v61 = vmul.f32 %v10258_v51, %v1828_v60  ;;  %v10272_v60 = vld [vmem:[%s12467_s6 + $0x20] sm:$0xff] }
 0xc58   :  { %v12156_v62 = vpop.eup %12155 }
 0xc59   :  { %v1848_v63 = vadd.f32 %v10259_v55, %v1838_v61  ;;  %v1829_v0 = vmul.f32 %v12156_v62, %v12798_v28 }
 0xc5b   :  { %11305 = vmatprep.mubr.msk.f32.mxu1 %vm185_vm0, %v1848_v63  ;;  %v1839_v1 = vmul.f32 %v10258_v51, %v1829_v0 }
 0xc5d   :  { %v1849_v2 = vadd.f32 %v10259_v55, %v1839_v1 }
 0xc5f   :  { %11306 = vmatmul.mubr.msk.f32.gmra.mxu1 %vm185_vm0, %v1849_v2 }
 0xd13   :  { %v11304_v7 = vpop.f32.mrf.mxu1 }
 0xd14   :  { %v1945_v8 = vadd.f32 %v11304_v7, %v10260_v6 }
 0xd15   :  { %v1939_v9 = vpop.f32.mrf.mxu1 }
 0xd16   :  { %v1940_v11 = vadd.f32 %v10260_v6, %v1939_v9  ;;  %v1959_v15 = vmax.f32 %v1945_v8, 0.0 }
 0xd18   :  { %v1958_v13 = vmax.f32 %v1940_v11, 0.0  ;;  %v10270_v11 = vld [vmem:[%s12877_s12] ss:$0 sm:$0xff] }
 0xd1a   :  { %11324 = vmatprep.mubr.msk.f32.mxu0 %vm1977_vm2, %v1958_v13 }
 0xd1b   :  { %11325 = vmatmul.mubr.msk.f32.vlgmr.msra.gmra.mxu0 %vm1977_vm2, %v1959_v15 }
 0xd1f   :  { %v11307_v17 = vpop.f32.mrf.mxu1 }
 0xd20   :  { %v1955_v18 = vadd.f32 %v11307_v17, %v10260_v6 }
 0xd21   :  { %v1949_v19 = vpop.f32.mrf.mxu1 }
 0xd22   :  { %v1950_v20 = vadd.f32 %v10260_v6, %v1949_v19  ;;  %v1961_v16 = vmax.f32 %v1955_v18, 0.0 }
 0xd24   :  { %v1960_v12 = vmax.f32 %v1950_v20, 0.0 }
 0xd26   :  { %11327 = vmatprep.mubr.msk.f32.mxu0 %vm1977_vm2, %v1960_v12 }
 0xd27   :  { %11328 = vmatmul.mubr.msk.f32.gmra.mxu0 %vm1977_vm2, %v1961_v16 }
 0xddb   :  { %v11326_v22 = vpop.f32.mrf.mxu0 }
 0xddc   :  { %v2062_v23 = vadd.f32 %v11326_v22, %v10265_v21 }
 0xddd   :  { %v2056_v24 = vpop.f32.mrf.mxu0 }
 0xdde   :  { %v2057_v26 = vadd.f32 %v10265_v21, %v2056_v24  ;;  %v2076_v28 = vadd.f32 %v2062_v23, %v1847_v58  ;;  %v10274_v58 = vld [vmem:[%s12467_s6 + $0x30] sm:$0xff] }
 0xde0   :  { %v2084_v29 = vsel %vm185_vm0, %v2076_v28, 0.0  ;;  %v2075_v31 = vadd.f32 %v2057_v26, %v1846_v57  ;;  %v10275_v57 = vld [vmem:[%s12467_s6 + $0x38] sm:$0xff]  ;;  %s12432_s6 = smov 16  }
 0xde1   :  { %2085 = vadd.xlane.f32.xlu0 %v2084_v29  ;;  %11330 = vmatprep.subr.mxu1 %v10275_v57  ;;  %s12882_s23 = sld [smem:[%s14231_s0 + %s12432_s6]]  }
 0xde2   :  { %v2081_v32 = vsel %vm185_vm0, %v2075_v31, 0.0  ;;  %11331 = vmatpush3.msra.mxu1 %v10275_v57  ;;  %s13250_s6 = sld [smem:[%s14231_s0 + %s12435_s5]]   ;;  %s12439_s5 = smov 25  }
 0xde3   :  { %2082 = vadd.xlane.f32.xlu1 %v2081_v32  ;;  %11332 = vmatprep.subr.mxu1 %v10274_v58  ;;  %v10277_v32 = vld [vmem:[%s12489_s13 + $0x1] ss:$0 sm:$0xff]  ;;  %s12433_s13 = smov 17  }
 0xde4   :  { %11333 = vmatpush3.msra.mxu1 %v10274_v58 }
 0xde5   :  { %11334 = vmatprep.subr.mxu1 %v10273_v59 }
 0xde6   :  { %11335 = vmatpush3.msra.mxu1 %v10273_v59 }
 0xde7   :  { %v11329_v27 = vpop.f32.mrf.mxu0  ;;  %11336 = vmatprep.subr.mxu1 %v10272_v60  ;;  %v10271_v18 = vld [vmem:[%s12882_s23] ss:$0 sm:$0xff] }
 0xde8   :  { %v2072_v37 = vadd.f32 %v11329_v27, %v10265_v21  ;;  %11337 = vmatpush3.msra.mxu1 %v10272_v60 }
 0xde9   :  { %v2066_v30 = vpop.f32.mrf.mxu0 }
 0xdea   :  { %v2067_v33 = vadd.f32 %v10265_v21, %v2066_v30  ;;  %v2078_v34 = vadd.f32 %v2072_v37, %v1849_v2 }
 0xdec   :  { %v2090_v35 = vsel %vm185_vm0, %v2078_v34, 0.0  ;;  %v2077_v36 = vadd.f32 %v2067_v33, %v1848_v63 }
 0xded   :  { %2091 = vadd.xlane.f32.xlu0 %v2090_v35 }
 0xdee   :  { %v2087_v38 = vsel %vm185_vm0, %v2077_v36, 0.0 }
 0xdef   :  { %2088 = vadd.xlane.f32.xlu1 %v2087_v38 }
 0xe6a   :  { %v2086_v39 = vpop.xlane.xlu0 %2085 }
 0xe6b   :  { %v2094_v25 = vmul.f32 0.03125, %v2086_v39 }
 0xe6c   :  { %v2083_v14 = vpop.xlane.xlu1 %2082 }
 0xe6d   :  { %v2098_v40 = vsub.f32 %v2076_v28, %v2094_v25  ;;  %v2093_v41 = vmul.f32 0.03125, %v2083_v14 }
 0xe6f   :  { %v2097_v42 = vsub.f32 %v2075_v31, %v2093_v41  ;;  %v2102_v47 = vmul.f32 %v2098_v40, %v2098_v40 }
 0xe71   :  { %v2108_v48 = vsel %vm185_vm0, %v2102_v47, 0.0  ;;  %v2101_v49 = vmul.f32 %v2097_v42, %v2097_v42 }
 0xe72   :  { %2109 = vadd.xlane.f32.xlu0 %v2108_v48 }
 0xe73   :  { %v2105_v43 = vsel %vm185_vm0, %v2101_v49, 0.0  ;;  %v12944_v49 = vld [vmem:[%s12535_s19 + $0x8] sm:$0xff] }
 0xe74   :  { %2106 = vadd.xlane.f32.xlu1 %v2105_v43 }
 0xe76   :  { %v2092_v44 = vpop.xlane.xlu0 %2091 }
 0xe77   :  { %v2096_v45 = vmul.f32 0.03125, %v2092_v44 }
 0xe78   :  { %v2089_v46 = vpop.xlane.xlu1 %2088 }
 0xe79   :  { %v2100_v50 = vsub.f32 %v2078_v34, %v2096_v45  ;;  %v2095_v51 = vmul.f32 0.03125, %v2089_v46  ;;  %v12948_v45 = vld [vmem:[%s12535_s19] sm:$0xff] }
 0xe7b   :  { %v2099_v52 = vsub.f32 %v2077_v36, %v2095_v51  ;;  %v2104_v53 = vmul.f32 %v2100_v50, %v2100_v50 }
 0xe7d   :  { %v2114_v54 = vsel %vm185_vm0, %v2104_v53, 0.0  ;;  %v2103_v55 = vmul.f32 %v2099_v52, %v2099_v52 }
 0xe7e   :  { %2115 = vadd.xlane.f32.xlu0 %v2114_v54 }
 0xe7f   :  { %v2111_v56 = vsel %vm185_vm0, %v2103_v55, 0.0 }
 0xe80   :  { %2112 = vadd.xlane.f32.xlu1 %v2111_v56  ;;  %v12958_v56 = vld [vmem:[%s12535_s19 + $0x10] sm:$0xff] }
 0xefb   :  { %v2110_v61 = vpop.xlane.xlu0 %2109 }
 0xefc   :  { %v2118_v62 = vmul.f32 0.03125, %v2110_v61 }
 0xefd   :  { %v2107_v63 = vpop.xlane.xlu1 %2106 }
 0xefe   :  { %v2122_v0 = vadd.f32 1e-05, %v2118_v62  ;;  %v2117_v1 = vmul.f32 0.03125, %v2107_v63 }
 0xf00   :  { %12157 = vrsqrt.f32 %v2122_v0  ;;  %v2121_v2 = vadd.f32 1e-05, %v2117_v1 }
 0xf02   :  { %12159 = vrsqrt.f32 %v2121_v2 }
 0xf07   :  { %v2116_v3 = vpop.xlane.xlu0 %2115 }
 0xf08   :  { %v2120_v4 = vmul.f32 0.03125, %v2116_v3 }
 0xf09   :  { %v2113_v10 = vpop.xlane.xlu1 %2112 }
 0xf0a   :  { %v2124_v5 = vadd.f32 1e-05, %v2120_v4  ;;  %v2119_v6 = vmul.f32 0.03125, %v2113_v10 }
 0xf0c   :  { %12161 = vrsqrt.f32 %v2124_v5  ;;  %v2123_v7 = vadd.f32 1e-05, %v2119_v6 }
 0xf0d   :  { %v12158_v8 = vpop.eup %12157 }
 0xf0e   :  { %v2130_v9 = vmul.f32 %v12158_v8, %v2098_v40  ;;  %12163 = vrsqrt.f32 %v2123_v7 }
 0xf0f   :  { %v12160_v13 = vpop.eup %12159 }
 0xf10   :  { %v2129_v15 = vmul.f32 %v12160_v13, %v2097_v42  ;;  %v2140_v17 = vmul.f32 %v10270_v11, %v2130_v9 }
 0xf12   :  { %v2139_v19 = vmul.f32 %v10270_v11, %v2129_v15  ;;  %v12888_v12 = vadd.f32 %v10271_v18, %v2140_v17 }
 0xf14   :  { %v12886_v20 = vadd.f32 %v10271_v18, %v2139_v19 }
 0xf16   :  { %11338 = vmatprep.mubr.msk.f32.mxu1 %vm185_vm0, %v12886_v20 }
 0xf17   :  { %11339 = vmatmul.mubr.msk.f32.vlgmr.msra.gmra.mxu1 %vm185_vm0, %v12888_v12 }
 0xf19   :  { %v12162_v16 = vpop.eup %12161 }
 0xf1a   :  { %v2132_v21 = vmul.f32 %v12162_v16, %v2100_v50 }
 0xf1b   :  { %v12164_v22 = vpop.eup %12163 }
 0xf1c   :  { %v2131_v23 = vmul.f32 %v12164_v22, %v2099_v52  ;;  %v2142_v24 = vmul.f32 %v10270_v11, %v2132_v21  ;;  %v12953_v52 = vld [vmem:[%s12535_s19 + $0x18] sm:$0xff]  ;;  %s13630_s19 = sld [smem:[%s14231_s0 + %s12446_s16]]  }
 0xf1e   :  { %v2141_v26 = vmul.f32 %v10270_v11, %v2131_v23  ;;  %v12896_v29 = vadd.f32 %v10271_v18, %v2142_v24 }
 0xf20   :  { %v12894_v28 = vadd.f32 %v10271_v18, %v2141_v26 }
 0xf22   :  { %11341 = vmatprep.mubr.msk.f32.mxu1 %vm185_vm0, %v12894_v28 }
 0xf23   :  { %11342 = vmatmul.mubr.msk.f32.gmra.mxu1 %vm185_vm0, %v12896_v29 }
 0xfd7   :  { %v11340_v31 = vpop.f32.mrf.mxu1 }
 0xfd8   :  { %v12913_v36 = vadd.f32 %v11340_v31, %v10277_v32 }
 0xfd9   :  { %v2244_v27 = vpop.f32.mrf.mxu1 }
 0xfda   :  { %v12903_v37 = vadd.f32 %v10277_v32, %v2244_v27 }
 0xfdc   :  { %11352 = vmatprep.mubr.msk.f32.mxu1 %vm299_vm1, %v12903_v37 }
 0xfe3   :  { %v11343_v30 = vpop.f32.mrf.mxu1 }
 0xfe4   :  { %v12907_v33 = vadd.f32 %v11343_v30, %v10277_v32 }
 0xfe5   :  { %v2254_v34 = vpop.f32.mrf.mxu1 }
 0xfe6   :  { %v12909_v35 = vadd.f32 %v10277_v32, %v2254_v34  ;;  %2278 = vrot.lane.b32.xlu1 %v12907_v33, %s12411_s14 }
 0xfe8   :  { %2276 = vrot.lane.b32.xlu0 %v12909_v35, %s12411_s14 }
 0xfea   :  { %2274 = vrot.lane.b32.xlu1 %v12913_v36, %s12411_s14 }
 0xfec   :  { %2429 = vrot.lane.b32.xlu0 %v12909_v35, %s12412_s15 }
 0xfee   :  { %2272 = vrot.lane.b32.xlu1 %v12903_v37, %s12411_s14 }
 0xff2   :  { %2431 = vrot.lane.b32.xlu1 %v12907_v33, %s12412_s15 }
 0xff6   :  { %2427 = vrot.lane.b32.xlu1 %v12913_v36, %s12412_s15 }
 0xffa   :  { %2425 = vrot.lane.b32.xlu1 %v12903_v37, %s12412_s15 }
0x1058   :  { %v2279_v38 = vpop.permute.xlu1 %2278 }
0x1059   :  { %11344 = vmatprep.subr.msk.mxu1 %vm299_vm1, %v2279_v38 }
0x105a   :  { %11345 = vmatpush3.xpose.msk.msra.mxu1 %vm299_vm1, %v2279_v38  ;;  %v2277_v39 = vpop.permute.xlu0 %2276 }
0x105b   :  { %11346 = vmatprep.subr.msk.mxu1 %vm299_vm1, %v2277_v39 }
0x105c   :  { %v2275_v25 = vpop.permute.xlu1 %2274 }
0x105e   :  { %11347 = vmatpush3.xpose.msk.msra.mxu1 %vm299_vm1, %v2277_v39  ;;  %v2430_v41 = vpop.permute.xlu0 %2429 }
0x105f   :  { %11348 = vmatprep.subr.msk.mxu1 %vm299_vm1, %v2275_v25 }
0x1060   :  { %v2273_v14 = vpop.permute.xlu1 %2272 }
0x1062   :  { %11349 = vmatpush3.xpose.msk.msra.mxu1 %vm299_vm1, %v2275_v25 }
0x1063   :  { %11350 = vmatprep.subr.msk.mxu1 %vm299_vm1, %v2273_v14 }
0x1064   :  { %v2432_v40 = vpop.permute.xlu1 %2431 }
0x1065   :  { %11358 = vmatprep.subr.mxu0 %v2432_v40 }
0x1066   :  { %11351 = vmatpush3.xpose.msk.msra.mxu1 %vm299_vm1, %v2273_v14  ;;  %11359 = vmatpush3.msra.mxu0 %v2432_v40 }
0x1067   :  { %11360 = vmatprep.subr.mxu0 %v2430_v41 }
0x1068   :  { %v2428_v42 = vpop.permute.xlu1 %2427  ;;  %11361 = vmatpush3.msra.mxu0 %v2430_v41 }
0x1069   :  { %11353 = vmatmul.mubr.msk.f32.vlgmr.msra.gmra.mxu1 %vm299_vm1, %v12913_v36  ;;  %11362 = vmatprep.subr.mxu0 %v2428_v42 }
0x106a   :  { %11355 = vmatprep.mubr.msk.f32.mxu1 %vm299_vm1, %v12909_v35  ;;  %11363 = vmatpush3.msra.mxu0 %v2428_v42 }
0x106c   :  { %v2426_v47 = vpop.permute.xlu1 %2425 }
0x106d   :  { %11356 = vmatmul.mubr.msk.f32.gmra.mxu1 %vm299_vm1, %v12907_v33  ;;  %11364 = vmatprep.subr.mxu0 %v2426_v47 }
0x106e   :  { %11365 = vmatpush3.msra.mxu0 %v2426_v47 }
0x1129   :  { %v11354_v48 = vpop.f32.mrf.mxu1 }
0x112a   :  { %v2368_v43 = vadd.f32 %v12944_v49, %v11354_v48  ;;  %v10282_v48 = vld [vmem:[%s12595_s25 + $0x20] sm:$0xff] }
0x112b   :  { %v2362_v44 = vpop.f32.mrf.mxu1 }
0x112c   :  { %v2363_v46 = vadd.f32 %v12948_v45, %v2362_v44  ;;  %v2384_v50 = vsel %vm185_vm0, %v2368_v43, -inf }
0x112d   :  { %2385 = vmax.xlane.f32.xlu1 %v2384_v50  ;;  %v11357_v51 = vpop.f32.mrf.mxu1 }
0x112e   :  { %v2378_v53 = vadd.f32 %v12953_v52, %v11357_v51  ;;  %v2381_v54 = vsel %vm185_vm0, %v2363_v46, -inf }
0x112f   :  { %v2372_v55 = vpop.f32.mrf.mxu1  ;;  %2382 = vmax.xlane.f32.xlu0 %v2381_v54 }
0x1130   :  { %v2373_v57 = vadd.f32 %v12958_v56, %v2372_v55  ;;  %v2390_v58 = vsel %vm185_vm0, %v2378_v53, -inf }
0x1132   :  { %v2387_v59 = vsel %vm185_vm0, %v2373_v57, -inf }
0x1133   :  { %2391 = vmax.xlane.f32.xlu0 %v2390_v58 }
0x1137   :  { %2388 = vmax.xlane.f32.xlu0 %v2387_v59 }
0x113e   :  { %2546 = vrot.lane.b32.xlu1 %v12909_v35, %s12414_s20 }
0x114d   :  { %2548 = vrot.lane.b32.xlu0 %v12907_v33, %s12414_s20 }
0x11b6   :  { %v2386_v60 = vpop.xlane.xlu1 %2385 }
0x11b7   :  { %v2394_v61 = vsub.f32 %v2368_v43, %v2386_v60 }
0x11b8   :  { %v2383_v62 = vpop.xlane.xlu0 %2382 }
0x11b9   :  { %v2399_v63 = vmul.f32 1.442695, %v2394_v61  ;;  %v2393_v0 = vsub.f32 %v2363_v46, %v2383_v62 }
0x11ba   :  { %v2547_v16 = vpop.permute.xlu1 %2546 }
0x11bb   :  { %12165 = vpow2.f32 %v2399_v63  ;;  %v2397_v1 = vmul.f32 1.442695, %v2393_v0 }
0x11bc   :  { %v2392_v2 = vpop.xlane.xlu0 %2391 }
0x11bd   :  { %12167 = vpow2.f32 %v2397_v1  ;;  %v2396_v8 = vsub.f32 %v2378_v53, %v2392_v2 }
0x11bf   :  { %v2403_v11 = vmul.f32 1.442695, %v2396_v8 }
0x11c0   :  { %v2389_v3 = vpop.xlane.xlu0 %2388 }
0x11c1   :  { %v2395_v9 = vsub.f32 %v2373_v57, %v2389_v3  ;;  %12169 = vpow2.f32 %v2403_v11 }
0x11c3   :  { %v2401_v13 = vmul.f32 1.442695, %v2395_v9 }
0x11c4   :  { %v2549_v4 = vpop.permute.xlu0 %2548 }
0x11c5   :  { %11372 = vmatprep.subr.msk.mxu0 %vm299_vm1, %v2549_v4  ;;  %12171 = vpow2.f32 %v2401_v13 }
0x11c8   :  { %v12166_v10 = vpop.eup %12165 }
0x11c9   :  { %v2408_v5 = vsel %vm185_vm0, %v12166_v10, 0.0 }
0x11ca   :  { %v12168_v6 = vpop.eup %12167  ;;  %2409 = vadd.xlane.f32.xlu0 %v2408_v5 }
0x11cb   :  { %v2405_v7 = vsel %vm185_vm0, %v12168_v6, 0.0 }
0x11cc   :  { %2406 = vadd.xlane.f32.xlu1 %v2405_v7 }
0x11ce   :  { %v12170_v15 = vpop.eup %12169 }
0x11cf   :  { %v2414_v18 = vsel %vm185_vm0, %v12170_v15, 0.0 }
0x11d2   :  { %v12172_v17 = vpop.eup %12171 }
0x11d3   :  { %v2411_v19 = vsel %vm185_vm0, %v12172_v17, 0.0 }
0x11dd   :  { %2542 = vrot.lane.b32.xlu1 %v12903_v37, %s12414_s20 }
0x11e0   :  { %2544 = vrot.lane.b32.xlu0 %v12913_v36, %s12414_s20 }
0x11ff   :  { %2415 = vadd.xlane.f32.xlu0 %v2414_v18 }
0x1201   :  { %2412 = vadd.xlane.f32.xlu1 %v2411_v19 }
0x1212   :  { %2536 = vrot.lane.b32.xlu1 %v12913_v36, %s14246_s21 }
0x1215   :  { %2534 = vrot.lane.b32.xlu0 %v12903_v37, %s14246_s21 }
0x1216   :  { %2540 = vrot.lane.b32.xlu1 %v12907_v33, %s14246_s21 }
0x1219   :  { %2538 = vrot.lane.b32.xlu0 %v12909_v35, %s14246_s21 }
0x1253   :  { %v2410_v21 = vpop.xlane.xlu0 %2409 }
0x1254   :  { %12173 = vrcp.f32 %v2410_v21 }
0x1255   :  { %v2407_v22 = vpop.xlane.xlu1 %2406 }
0x1256   :  { %12175 = vrcp.f32 %v2407_v22 }
0x1257   :  { %v2545_v32 = vpop.permute.xlu0 %2544 }
0x1259   :  { %v2543_v27 = vpop.permute.xlu1 %2542 }
0x1261   :  { %v12174_v23 = vpop.eup %12173 }
0x1262   :  { %v2422_v31 = vmul.f32 %v12174_v23, %v12166_v10 }
0x1263   :  { %v12176_v24 = vpop.eup %12175 }
0x1264   :  { %v2421_v26 = vmul.f32 %v12176_v24, %v12168_v6 }
0x1266   :  { %11366 = vmatprep.mubr.msk.f32.mxu0 %vm185_vm0, %v2421_v26 }
0x1267   :  { %11367 = vmatmul.mubr.msk.f32.vlgmr.msra.gmra.mxu0 %vm185_vm0, %v2422_v31 }
0x1268   :  { %11373 = vmatpush3.xpose.msk.msra.mxu0 %vm299_vm1, %v2549_v4 }
0x1269   :  { %11374 = vmatprep.subr.msk.mxu0 %vm299_vm1, %v2547_v16 }
0x126c   :  { %11375 = vmatpush3.xpose.msk.msra.mxu0 %vm299_vm1, %v2547_v16 }
0x126d   :  { %11376 = vmatprep.subr.msk.mxu0 %vm299_vm1, %v2545_v32 }
0x1270   :  { %11377 = vmatpush3.xpose.msk.msra.mxu0 %vm299_vm1, %v2545_v32 }
0x1271   :  { %11378 = vmatprep.subr.msk.mxu0 %vm299_vm1, %v2543_v27 }
0x1274   :  { %11379 = vmatpush3.xpose.msk.msra.mxu0 %vm299_vm1, %v2543_v27 }
0x1275   :  { %11408 = vmatprep.subr.mxu0 %v10282_v48 }
0x1288   :  { %v2416_v30 = vpop.xlane.xlu0 %2415 }
0x1289   :  { %12177 = vrcp.f32 %v2416_v30 }
0x128a   :  { %v2413_v34 = vpop.xlane.xlu1 %2412 }
0x128b   :  { %12179 = vrcp.f32 %v2413_v34 }
0x128c   :  { %v2535_v14 = vpop.permute.xlu0 %2534 }
0x128e   :  { %v2537_v41 = vpop.permute.xlu1 %2536 }
0x1290   :  { %v2539_v42 = vpop.permute.xlu0 %2538 }
0x1292   :  { %v2541_v47 = vpop.permute.xlu1 %2540 }
0x1296   :  { %v12178_v38 = vpop.eup %12177 }
0x1297   :  { %v2424_v40 = vmul.f32 %v12178_v38, %v12170_v15 }
0x1298   :  { %v12180_v39 = vpop.eup %12179 }
0x1299   :  { %v2423_v25 = vmul.f32 %v12180_v39, %v12172_v17 }
0x129b   :  { %11369 = vmatprep.mubr.msk.f32.mxu0 %vm185_vm0, %v2423_v25 }
0x129c   :  { %11370 = vmatmul.mubr.msk.f32.gmra.mxu0 %vm185_vm0, %v2424_v40  ;;  %v10283_v40 = vld [vmem:[%s12595_s25 + $0x28] sm:$0xff] }
0x129d   :  { %11380 = vmatprep.mubr.msk.f32.mxu0 %vm299_vm1, %v2535_v14 }
0x12a0   :  { %11381 = vmatmul.mubr.msk.f32.vlgmr.msra.gmra.mxu0 %vm299_vm1, %v2537_v41 }
0x12a1   :  { %11383 = vmatprep.mubr.msk.f32.mxu0 %vm299_vm1, %v2539_v42  ;;  %11409 = vmatpush3.msra.mxu0 %v10282_v48 }
0x12a4   :  { %11384 = vmatmul.mubr.msk.f32.gmra.mxu0 %vm299_vm1, %v2541_v47 }
0x1327   :  { %v11368_v43 = vpop.f32.mrf.mxu0 }
0x1329   :  { %v2515_v44 = vpop.f32.mrf.mxu0 }
0x132a   :  { %11410 = vmatprep.mubr.msk.f32.mxu0 %vm299_vm1, %v2515_v44 }
0x132b   :  { %11411 = vmatmul.mubr.msk.f32.vlgmr.msra.gmra.mxu0 %vm299_vm1, %v11368_v43 }
0x135c   :  { %v11371_v46 = vpop.f32.mrf.mxu0 }
0x135e   :  { %v2525_v50 = vpop.f32.mrf.mxu0 }
0x135f   :  { %11413 = vmatprep.mubr.msk.f32.mxu0 %vm299_vm1, %v2525_v50 }
0x1360   :  { %v11382_v51 = vpop.f32.mrf.mxu0  ;;  %11414 = vmatmul.mubr.msk.f32.gmra.mxu0 %vm299_vm1, %v11371_v46 }
0x1361   :  { %v2638_v53 = vadd.f32 %v12944_v49, %v11382_v51 }
0x1362   :  { %v2632_v54 = vpop.f32.mrf.mxu0 }
0x1363   :  { %v2633_v55 = vadd.f32 %v12948_v45, %v2632_v54  ;;  %v2654_v57 = vsel %vm185_vm0, %v2638_v53, -inf }
0x1364   :  { %2655 = vmax.xlane.f32.xlu1 %v2654_v57  ;;  %v11385_v58 = vpop.f32.mrf.mxu0 }
0x1365   :  { %v2651_v59 = vsel %vm185_vm0, %v2633_v55, -inf  ;;  %v2648_v62 = vadd.f32 %v12953_v52, %v11385_v58 }
0x1366   :  { %2652 = vmax.xlane.f32.xlu0 %v2651_v59  ;;  %v2642_v60 = vpop.f32.mrf.mxu0 }
0x1367   :  { %v2643_v61 = vadd.f32 %v12958_v56, %v2642_v60  ;;  %v2660_v0 = vsel %vm185_vm0, %v2648_v62, -inf }
0x1369   :  { %v2657_v63 = vsel %vm185_vm0, %v2643_v61, -inf }
0x136a   :  { %2658 = vmax.xlane.f32.xlu0 %v2657_v63 }
0x136e   :  { %2661 = vmax.xlane.f32.xlu0 %v2660_v0 }
0x1375   :  { %2701 = vrot.lane.b32.xlu1 %v12907_v33, %s14244_s26 }
0x13ed   :  { %v2656_v1 = vpop.xlane.xlu1 %2655 }
0x13ee   :  { %v2664_v2 = vsub.f32 %v2638_v53, %v2656_v1 }
0x13ef   :  { %v2653_v3 = vpop.xlane.xlu0 %2652 }
0x13f0   :  { %v2669_v4 = vmul.f32 1.442695, %v2664_v2  ;;  %v2663_v10 = vsub.f32 %v2633_v55, %v2653_v3 }
0x13f1   :  { %v2702_v5 = vpop.permute.xlu1 %2701 }
0x13f2   :  { %12181 = vpow2.f32 %v2669_v4  ;;  %v2667_v6 = vmul.f32 1.442695, %v2663_v10  ;;  %11386 = vmatprep.subr.mxu1 %v2702_v5 }
0x13f3   :  { %11387 = vmatpush3.msra.mxu1 %v2702_v5  ;;  %v2659_v7 = vpop.xlane.xlu0 %2658 }
0x13f4   :  { %12183 = vpow2.f32 %v2667_v6  ;;  %v2665_v21 = vsub.f32 %v2643_v61, %v2659_v7 }
0x13f6   :  { %v2671_v22 = vmul.f32 1.442695, %v2665_v21 }
0x13f7   :  { %v2662_v8 = vpop.xlane.xlu0 %2661 }
0x13f8   :  { %v2666_v9 = vsub.f32 %v2648_v62, %v2662_v8 }
0x13fa   :  { %v2673_v11 = vmul.f32 1.442695, %v2666_v9 }
0x13fc   :  { %12185 = vpow2.f32 %v2673_v11 }
0x13fd   :  { %12187 = vpow2.f32 %v2671_v22 }
0x13ff   :  { %v12182_v13 = vpop.eup %12181 }
0x1400   :  { %v2678_v15 = vsel %vm185_vm0, %v12182_v13, 0.0 }
0x1401   :  { %v12184_v17 = vpop.eup %12183  ;;  %2679 = vadd.xlane.f32.xlu0 %v2678_v15 }
0x1402   :  { %v2675_v18 = vsel %vm185_vm0, %v12184_v17, 0.0 }
0x1403   :  { %2676 = vadd.xlane.f32.xlu1 %v2675_v18 }
0x1409   :  { %v12186_v19 = vpop.eup %12185 }
0x140a   :  { %v2684_v16 = vsel %vm185_vm0, %v12186_v19, 0.0  ;;  %v12188_v23 = vpop.eup %12187 }
0x140b   :  { %2685 = vadd.xlane.f32.xlu0 %v2684_v16  ;;  %v2681_v24 = vsel %vm185_vm0, %v12188_v23, 0.0 }
0x1414   :  { %2697 = vrot.lane.b32.xlu1 %v12913_v36, %s14244_s26 }
0x1421   :  { %2699 = vrot.lane.b32.xlu0 %v12909_v35, %s14244_s26 }
0x1425   :  { %3012 = vrot.lane.b32.xlu0 %v12907_v33, %s14242_s27 }
0x1429   :  { %3008 = vrot.lane.b32.xlu0 %v12913_v36, %s14242_s27 }
0x142d   :  { %2998 = vrot.lane.b32.xlu0 %v12903_v37, %s14240_s28 }
0x1431   :  { %3002 = vrot.lane.b32.xlu0 %v12909_v35, %s14240_s28 }
0x1435   :  { %3383 = vrot.lane.b32.xlu0 %v12907_v33, %s14238_s29 }
0x1438   :  { %2682 = vadd.xlane.f32.xlu1 %v2681_v24 }
0x1439   :  { %3379 = vrot.lane.b32.xlu0 %v12913_v36, %s14238_s29 }
0x143d   :  { %3369 = vrot.lane.b32.xlu0 %v12903_v37, %s14236_s30 }
0x1441   :  { %3373 = vrot.lane.b32.xlu0 %v12909_v35, %s14236_s30 }
0x1449   :  { %2695 = vrot.lane.b32.xlu1 %v12903_v37, %s14244_s26 }
0x144d   :  { %3010 = vrot.lane.b32.xlu1 %v12909_v35, %s14242_s27 }
0x1451   :  { %3006 = vrot.lane.b32.xlu1 %v12903_v37, %s14242_s27 }
0x1455   :  { %3000 = vrot.lane.b32.xlu1 %v12913_v36, %s14240_s28 }
0x1459   :  { %3004 = vrot.lane.b32.xlu1 %v12907_v33, %s14240_s28 }
0x145d   :  { %3381 = vrot.lane.b32.xlu1 %v12909_v35, %s14238_s29 }
0x1461   :  { %3377 = vrot.lane.b32.xlu1 %v12903_v37, %s14238_s29 }
0x1465   :  { %3371 = vrot.lane.b32.xlu1 %v12913_v36, %s14236_s30 }
0x1469   :  { %3375 = vrot.lane.b32.xlu1 %v12907_v33, %s14236_s30 }
0x148a   :  { %v2680_v31 = vpop.xlane.xlu0 %2679 }
0x148c   :  { %v2677_v26 = vpop.xlane.xlu1 %2676 }
0x148d   :  { %12189 = vrcp.f32 %v2677_v26 }
0x148e   :  { %12191 = vrcp.f32 %v2680_v31 }
0x1490   :  { %v2698_v34 = vpop.permute.xlu1 %2697 }
0x1494   :  { %v2686_v32 = vpop.xlane.xlu0 %2685 }
0x1495   :  { %12193 = vrcp.f32 %v2686_v32 }
0x1498   :  { %v2700_v27 = vpop.permute.xlu0 %2699 }
0x1499   :  { %11388 = vmatprep.subr.mxu1 %v2700_v27 }
0x149a   :  { %v12190_v30 = vpop.eup %12189  ;;  %11389 = vmatpush3.msra.mxu1 %v2700_v27 }
0x149b   :  { %11390 = vmatprep.subr.mxu1 %v2698_v34  ;;  %v2691_v38 = vmul.f32 %v12190_v30, %v12184_v17  ;;  %v12192_v25 = vpop.eup %12191 }
0x149c   :  { %11391 = vmatpush3.msra.mxu1 %v2698_v34  ;;  %v2692_v41 = vmul.f32 %v12192_v25, %v12182_v13  ;;  %v3013_v42 = vpop.permute.xlu0 %3012 }
0x149d   :  { %11394 = vmatprep.mubr.msk.f32.mxu1 %vm185_vm0, %v2691_v38 }
0x14a0   :  { %v3009_v46 = vpop.permute.xlu0 %3008 }
0x14a2   :  { %v12194_v47 = vpop.eup %12193 }
0x14a3   :  { %v2694_v44 = vmul.f32 %v12194_v47, %v12186_v19 }
0x14a4   :  { %v2999_v51 = vpop.permute.xlu0 %2998 }
0x14a8   :  { %v3003_v57 = vpop.permute.xlu0 %3002 }
0x14ac   :  { %v3384_v60 = vpop.permute.xlu0 %3383 }
0x14b0   :  { %v3380_v63 = vpop.permute.xlu0 %3379 }
0x14b4   :  { %v3370_v1 = vpop.permute.xlu0 %3369 }
0x14b8   :  { %v3374_v4 = vpop.permute.xlu0 %3373 }
0x14c1   :  { %v2683_v39 = vpop.xlane.xlu1 %2682 }
0x14c2   :  { %12195 = vrcp.f32 %v2683_v39 }
0x14c5   :  { %v2696_v14 = vpop.permute.xlu1 %2695 }
0x14c6   :  { %11392 = vmatprep.subr.mxu1 %v2696_v14 }
0x14c7   :  { %11393 = vmatpush3.msra.mxu1 %v2696_v14 }
0x14c8   :  { %11395 = vmatmul.mubr.msk.f32.vlgmr.msra.gmra.mxu1 %vm185_vm0, %v2692_v41  ;;  %11400 = vmatprep.subr.mxu1 %v10283_v40 }
0x14c9   :  { %11401 = vmatpush3.msra.mxu1 %v10283_v40  ;;  %v3011_v50 = vpop.permute.xlu1 %3010 }
0x14ca   :  { %11416 = vmatprep.subr.msk.mxu1 %vm299_vm1, %v3013_v42 }
0x14cd   :  { %v3007_v55 = vpop.permute.xlu1 %3006 }
0x14cf   :  { %v12196_v48 = vpop.eup %12195 }
0x14d0   :  { %v2693_v43 = vmul.f32 %v12196_v48, %v12188_v23 }
0x14d1   :  { %v3001_v58 = vpop.permute.xlu1 %3000 }
0x14d2   :  { %11397 = vmatprep.mubr.msk.f32.mxu1 %vm185_vm0, %v2693_v43 }
0x14d3   :  { %11398 = vmatmul.mubr.msk.f32.gmra.mxu1 %vm185_vm0, %v2694_v44 }
0x14d5   :  { %v3005_v62 = vpop.permute.xlu1 %3004 }
0x14d9   :  { %v3382_v0 = vpop.permute.xlu1 %3381 }
0x14dd   :  { %v3378_v2 = vpop.permute.xlu1 %3377 }
0x14e1   :  { %v3372_v3 = vpop.permute.xlu1 %3371 }
0x14e5   :  { %v3376_v10 = vpop.permute.xlu1 %3375 }
0x1588   :  { %v11396_v53 = vpop.f32.mrf.mxu1 }
0x158a   :  { %v2785_v54 = vpop.f32.mrf.mxu1 }
0x158b   :  { %11402 = vmatprep.mubr.msk.f32.mxu1 %vm299_vm1, %v2785_v54 }
0x158c   :  { %11403 = vmatmul.mubr.msk.f32.vlgmr.msra.gmra.mxu1 %vm299_vm1, %v11396_v53 }
0x158d   :  { %11417 = vmatpush3.xpose.msk.msra.mxu1 %vm299_vm1, %v3013_v42 }
0x158e   :  { %11418 = vmatprep.subr.msk.mxu1 %vm299_vm1, %v3011_v50 }
0x1591   :  { %11419 = vmatpush3.xpose.msk.msra.mxu1 %vm299_vm1, %v3011_v50 }
0x1592   :  { %11420 = vmatprep.subr.msk.mxu1 %vm299_vm1, %v3009_v46 }
0x1593   :  { %v11399_v59 = vpop.f32.mrf.mxu1 }
0x1595   :  { %11421 = vmatpush3.xpose.msk.msra.mxu1 %vm299_vm1, %v3009_v46  ;;  %v2795_v61 = vpop.f32.mrf.mxu1 }
0x1596   :  { %11422 = vmatprep.subr.msk.mxu1 %vm299_vm1, %v3007_v55  ;;  %11405 = vmatprep.mubr.msk.f32.mxu1 %vm299_vm1, %v2795_v61 }
0x1597   :  { %11406 = vmatmul.mubr.msk.f32.gmra.mxu1 %vm299_vm1, %v11399_v59 }
0x1598   :  { %11424 = vmatprep.mubr.msk.f32.mxu1 %vm299_vm1, %v2999_v51 }
0x1599   :  { %11423 = vmatpush3.xpose.msk.msra.mxu1 %vm299_vm1, %v3007_v55 }
0x159a   :  { %11452 = vmatprep.subr.msk.mxu1 %vm299_vm1, %v3384_v60 }
0x159c   :  { %11425 = vmatmul.mubr.msk.f32.vlgmr.msra.gmra.mxu1 %vm299_vm1, %v3001_v58 }
0x159d   :  { %11427 = vmatprep.mubr.msk.f32.mxu1 %vm299_vm1, %v3003_v57  ;;  %11453 = vmatpush3.xpose.msk.msra.mxu1 %vm299_vm1, %v3384_v60 }
0x159e   :  { %11454 = vmatprep.subr.msk.mxu1 %vm299_vm1, %v3382_v0 }
0x15a0   :  { %11428 = vmatmul.mubr.msk.f32.gmra.mxu1 %vm299_vm1, %v3005_v62 }
0x15a1   :  { %11455 = vmatpush3.xpose.msk.msra.mxu1 %vm299_vm1, %v3382_v0  ;;  %11460 = vmatprep.mubr.msk.f32.mxu1 %vm299_vm1, %v3370_v1 }
0x15a2   :  { %11456 = vmatprep.subr.msk.mxu1 %vm299_vm1, %v3380_v63 }
0x15a5   :  { %11457 = vmatpush3.xpose.msk.msra.mxu1 %vm299_vm1, %v3380_v63 }
0x15a6   :  { %11458 = vmatprep.subr.msk.mxu1 %vm299_vm1, %v3378_v2 }
0x15a9   :  { %11459 = vmatpush3.xpose.msk.msra.mxu1 %vm299_vm1, %v3378_v2 }
0x15ac   :  { %11461 = vmatmul.mubr.msk.f32.vlgmr.msra.gmra.mxu1 %vm299_vm1, %v3372_v3 }
0x15ad   :  { %11463 = vmatprep.mubr.msk.f32.mxu1 %vm299_vm1, %v3374_v4 }
0x15b0   :  { %11464 = vmatmul.mubr.msk.f32.gmra.mxu1 %vm299_vm1, %v3376_v10 }
0x164c   :  { %v13089_v5 = vpop.f32.mrf.mxu1 }
0x164e   :  { %v13091_v6 = vpop.f32.mrf.mxu1 }
0x1657   :  { %v13093_v7 = vpop.f32.mrf.mxu1 }
0x1659   :  { %v13095_v8 = vpop.f32.mrf.mxu1 }
0x165c   :  { %v11426_v9 = vpop.f32.mrf.mxu1 }
0x165d   :  { %v3102_v11 = vadd.f32 %v12944_v49, %v11426_v9 }
0x165e   :  { %v3096_v13 = vpop.f32.mrf.mxu1 }
0x165f   :  { %v3097_v15 = vadd.f32 %v12948_v45, %v3096_v13  ;;  %v3118_v17 = vsel %vm185_vm0, %v3102_v11, -inf  ;;  %v10284_v13 = vld [vmem:[%s12595_s25 + $0x30] sm:$0xff] }
0x1660   :  { %3119 = vmax.xlane.f32.xlu1 %v3118_v17  ;;  %v11429_v18 = vpop.f32.mrf.mxu1 }
0x1661   :  { %v3115_v19 = vsel %vm185_vm0, %v3097_v15, -inf  ;;  %v3112_v22 = vadd.f32 %v12953_v52, %v11429_v18 }
0x1662   :  { %3116 = vmax.xlane.f32.xlu0 %v3115_v19  ;;  %v3106_v16 = vpop.f32.mrf.mxu1 }
0x1663   :  { %v3107_v21 = vadd.f32 %v12958_v56, %v3106_v16  ;;  %v3124_v24 = vsel %vm185_vm0, %v3112_v22, -inf }
0x1665   :  { %v3121_v23 = vsel %vm185_vm0, %v3107_v21, -inf }
0x1666   :  { %3122 = vmax.xlane.f32.xlu0 %v3121_v23 }
0x166a   :  { %3125 = vmax.xlane.f32.xlu0 %v3124_v24 }
0x166c   :  { %v11462_v51 = vpop.f32.mrf.mxu1 }
0x166e   :  { %v3467_v54 = vpop.f32.mrf.mxu1 }
0x166f   :  { %v3468_v58 = vadd.f32 %v12948_v45, %v3467_v54  ;;  %v3473_v45 = vadd.f32 %v12944_v49, %v11462_v51 }
0x1670   :  { %v11465_v57 = vpop.f32.mrf.mxu1 }
0x1671   :  { %3165 = vrot.lane.b32.xlu1 %v12907_v33, %s14234_s1  ;;  %v3486_v61 = vsel %vm185_vm0, %v3468_v58, -inf  ;;  %v3483_v62 = vadd.f32 %v12953_v52, %v11465_v57 }
0x1672   :  { %v3477_v59 = vpop.f32.mrf.mxu1 }
0x1673   :  { %v13117_v60 = vadd.f32 %v12958_v56, %v3477_v59  ;;  %v3495_v0 = vsel %vm185_vm0, %v3483_v62, -inf  ;;  %v3489_v56 = vsel %vm185_vm0, %v3473_v45, -inf }
0x1675   :  { %v3492_v63 = vsel %vm185_vm0, %v13117_v60, -inf }
0x16e9   :  { %v3120_v26 = vpop.xlane.xlu1 %3119 }
0x16ea   :  { %v3128_v31 = vsub.f32 %v3102_v11, %v3120_v26 }
0x16eb   :  { %v3117_v32 = vpop.xlane.xlu0 %3116 }
0x16ec   :  { %v3133_v27 = vmul.f32 1.442695, %v3128_v31  ;;  %v3127_v30 = vsub.f32 %v3097_v15, %v3117_v32 }
0x16ed   :  { %v3166_v34 = vpop.permute.xlu1 %3165 }
0x16ee   :  { %12197 = vpow2.f32 %v3133_v27  ;;  %v3131_v38 = vmul.f32 1.442695, %v3127_v30  ;;  %11430 = vmatprep.subr.mxu0 %v3166_v34 }
0x16ef   :  { %11431 = vmatpush3.msra.mxu0 %v3166_v34  ;;  %v3123_v39 = vpop.xlane.xlu0 %3122 }
0x16f0   :  { %12199 = vpow2.f32 %v3131_v38  ;;  %v3129_v46 = vsub.f32 %v3107_v21, %v3123_v39 }
0x16f2   :  { %v3135_v50 = vmul.f32 1.442695, %v3129_v46 }
0x16f3   :  { %v3126_v25 = vpop.xlane.xlu0 %3125 }
0x16f4   :  { %v3130_v14 = vsub.f32 %v3112_v22, %v3126_v25 }
0x16f6   :  { %v3137_v40 = vmul.f32 1.442695, %v3130_v14 }
0x16f8   :  { %12201 = vpow2.f32 %v3137_v40 }
0x16f9   :  { %12203 = vpow2.f32 %v3135_v50 }
0x16fb   :  { %v12198_v41 = vpop.eup %12197 }
0x16fc   :  { %v3142_v42 = vsel %vm185_vm0, %v12198_v41, 0.0 }
0x16fd   :  { %v12200_v47 = vpop.eup %12199  ;;  %3143 = vadd.xlane.f32.xlu0 %v3142_v42 }
0x16fe   :  { %v3139_v48 = vsel %vm185_vm0, %v12200_v47, 0.0 }
0x16ff   :  { %3140 = vadd.xlane.f32.xlu1 %v3139_v48 }
0x1705   :  { %v12202_v43 = vpop.eup %12201 }
0x1706   :  { %v3148_v44 = vsel %vm185_vm0, %v12202_v43, 0.0  ;;  %v12204_v53 = vpop.eup %12203 }
0x1707   :  { %3149 = vadd.xlane.f32.xlu0 %v3148_v44  ;;  %v3145_v55 = vsel %vm185_vm0, %v12204_v53, 0.0  ;;  %v11412_v44 = vpop.f32.mrf.mxu0 }
0x1709   :  { %v2979_v46 = vpop.f32.mrf.mxu0 }
0x170b   :  { %v11415_v50 = vpop.f32.mrf.mxu0 }
0x1710   :  { %3161 = vrot.lane.b32.xlu1 %v12913_v36, %s14234_s1 }
0x171d   :  { %3163 = vrot.lane.b32.xlu0 %v12909_v35, %s14234_s1 }
0x1734   :  { %3146 = vadd.xlane.f32.xlu1 %v3145_v55 }
0x173c   :  { %3487 = vmax.xlane.f32.xlu0 %v3486_v61 }
0x1740   :  { %3493 = vmax.xlane.f32.xlu0 %v3492_v63 }
0x1744   :  { %3496 = vmax.xlane.f32.xlu0 %v3495_v0 }
0x1745   :  { %3159 = vrot.lane.b32.xlu1 %v12903_v37, %s14234_s1 }
0x1769   :  { %3490 = vmax.xlane.f32.xlu1 %v3489_v56 }
0x177a   :  { %3536 = vrot.lane.b32.xlu1 %v12907_v33, %s14232_s2 }
0x1786   :  { %v3144_v52 = vpop.xlane.xlu0 %3143 }
0x1788   :  { %v3141_v1 = vpop.xlane.xlu1 %3140 }
0x1789   :  { %12205 = vrcp.f32 %v3141_v1 }
0x178a   :  { %12207 = vrcp.f32 %v3144_v52 }
0x178c   :  { %v3162_v10 = vpop.permute.xlu1 %3161 }
0x1790   :  { %v3150_v2 = vpop.xlane.xlu0 %3149 }
0x1791   :  { %12209 = vrcp.f32 %v3150_v2 }
0x1794   :  { %v3164_v3 = vpop.permute.xlu0 %3163 }
0x1795   :  { %11432 = vmatprep.subr.mxu0 %v3164_v3 }
0x1796   :  { %v12206_v4 = vpop.eup %12205  ;;  %11433 = vmatpush3.msra.mxu0 %v3164_v3 }
0x1797   :  { %11434 = vmatprep.subr.mxu0 %v3162_v10  ;;  %v3155_v9 = vmul.f32 %v12206_v4, %v12200_v47  ;;  %v12208_v33 = vpop.eup %12207  ;;  %v10285_v4 = vld [vmem:[%s12595_s25 + $0x38] sm:$0xff] }
0x1798   :  { %11435 = vmatpush3.msra.mxu0 %v3162_v10  ;;  %v3156_v15 = vmul.f32 %v12208_v33, %v12198_v41  ;;  %v2985_v10 = vadd.f32 %v11412_v44, %v13089_v5 }
0x1799   :  { %11438 = vmatprep.mubr.msk.f32.mxu0 %vm185_vm0, %v3155_v9 }
0x179e   :  { %v12210_v16 = vpop.eup %12209 }
0x179f   :  { %v3158_v23 = vmul.f32 %v12210_v16, %v12202_v43 }
0x17bd   :  { %v3147_v49 = vpop.xlane.xlu1 %3146 }
0x17be   :  { %12211 = vrcp.f32 %v3147_v49  ;;  %v2980_v49 = vadd.f32 %v2979_v46, %v13091_v6 }
0x17c1   :  { %v3160_v11 = vpop.permute.xlu1 %3159 }
0x17c2   :  { %11436 = vmatprep.subr.mxu0 %v3160_v11 }
0x17c3   :  { %11437 = vmatpush3.msra.mxu0 %v3160_v11 }
0x17c4   :  { %11439 = vmatmul.mubr.msk.f32.vlgmr.msra.gmra.mxu0 %vm185_vm0, %v3156_v15  ;;  %11444 = vmatprep.subr.mxu0 %v10284_v13  ;;  %v2995_v15 = vadd.f32 %v11415_v50, %v13093_v7  ;;  %v10351_v7 = vld [vmem:[%s12773_s7 + $0x1] ss:$0 sm:$0xff]  ;;  %s13199_s7 = sld [smem:[%s14231_s0 + %s12433_s13]]  }
0x17c5   :  { %v3488_v17 = vpop.xlane.xlu0 %3487  ;;  %11445 = vmatpush3.msra.mxu0 %v10284_v13 }
0x17c6   :  { %v3498_v18 = vsub.f32 %v3468_v58, %v3488_v17 }
0x17c8   :  { %v3502_v19 = vmul.f32 1.442695, %v3498_v18 }
0x17c9   :  { %v3494_v31 = vpop.xlane.xlu0 %3493 }
0x17ca   :  { %12213 = vpow2.f32 %v3502_v19  ;;  %v3500_v38 = vsub.f32 %v13117_v60, %v3494_v31 }
0x17cb   :  { %v12212_v21 = vpop.eup %12211 }
0x17cc   :  { %v3157_v22 = vmul.f32 %v12212_v21, %v12204_v53  ;;  %v3506_v40 = vmul.f32 1.442695, %v3500_v38  ;;  %v2989_v53 = vpop.f32.mrf.mxu0 }
0x17cd   :  { %v3497_v32 = vpop.xlane.xlu0 %3496  ;;  %v2990_v18 = vadd.f32 %v2989_v53, %v13095_v8 }
0x17ce   :  { %11441 = vmatprep.mubr.msk.f32.mxu0 %vm185_vm0, %v3157_v22  ;;  %v3501_v27 = vsub.f32 %v3483_v62, %v3497_v32 }
0x17cf   :  { %11442 = vmatmul.mubr.msk.f32.gmra.mxu0 %vm185_vm0, %v3158_v23 }
0x17d0   :  { %v3508_v39 = vmul.f32 1.442695, %v3501_v27 }
0x17d7   :  { %v12214_v24 = vpop.eup %12213 }
0x17d8   :  { %v3510_v26 = vsel %vm185_vm0, %v12214_v24, 0.0 }
0x17d9   :  { %3511 = vadd.xlane.f32.xlu1 %v3510_v26 }
0x17ea   :  { %3532 = vrot.lane.b32.xlu1 %v12913_v36, %s14232_s2 }
0x17f2   :  { %v3491_v30 = vpop.xlane.xlu1 %3490 }
0x17f3   :  { %v3499_v34 = vsub.f32 %v3473_v45, %v3491_v30 }
0x17f5   :  { %v3504_v25 = vmul.f32 1.442695, %v3499_v34 }
0x17f6   :  { %v3537_v14 = vpop.permute.xlu1 %3536 }
0x17f7   :  { %12215 = vpow2.f32 %v3504_v25  ;;  %11466 = vmatprep.subr.mxu0 %v3537_v14 }
0x17f8   :  { %12217 = vpow2.f32 %v3508_v39 }
0x17f9   :  { %12219 = vpow2.f32 %v3506_v40 }
0x1804   :  { %v12216_v41 = vpop.eup %12215 }
0x1805   :  { %v3513_v42 = vsel %vm185_vm0, %v12216_v41, 0.0  ;;  %v12218_v47 = vpop.eup %12217 }
0x1806   :  { %3514 = vadd.xlane.f32.xlu0 %v3513_v42  ;;  %v3519_v36 = vsel %vm185_vm0, %v12218_v47, 0.0  ;;  %v12220_v48 = vpop.eup %12219 }
0x1807   :  { %v3516_v43 = vsel %vm185_vm0, %v12220_v48, 0.0 }
0x180a   :  { %3520 = vadd.xlane.f32.xlu0 %v3519_v36 }
0x180e   :  { %3517 = vadd.xlane.f32.xlu1 %v3516_v43 }
0x181f   :  { %3530 = vrot.lane.b32.xlu1 %v12903_v37, %s14232_s2 }
0x1820   :  { %3534 = vrot.lane.b32.xlu0 %v12909_v35, %s14232_s2 }
0x1862   :  { %v3512_v51 = vpop.xlane.xlu1 %3511 }
0x1863   :  { %12221 = vrcp.f32 %v3512_v51 }
0x1866   :  { %v3533_v60 = vpop.permute.xlu1 %3532 }
0x1870   :  { %v12222_v57 = vpop.eup %12221 }
0x1871   :  { %v3526_v35 = vmul.f32 %v12222_v57, %v12214_v24 }
0x1884   :  { %v11440_v54 = vpop.f32.mrf.mxu0 }
0x1886   :  { %v3249_v55 = vpop.f32.mrf.mxu0 }
0x1887   :  { %11446 = vmatprep.mubr.msk.f32.mxu0 %vm299_vm1, %v3249_v55 }
0x1888   :  { %11447 = vmatmul.mubr.msk.f32.vlgmr.msra.gmra.mxu0 %vm299_vm1, %v11440_v54 }
0x1889   :  { %11467 = vmatpush3.msra.mxu0 %v3537_v14 }
0x188f   :  { %v11443_v58 = vpop.f32.mrf.mxu0  ;;  %v3515_v59 = vpop.xlane.xlu0 %3514 }
0x1890   :  { %12223 = vrcp.f32 %v3515_v59 }
0x1891   :  { %v3259_v37 = vpop.f32.mrf.mxu0 }
0x1892   :  { %11449 = vmatprep.mubr.msk.f32.mxu0 %vm299_vm1, %v3259_v37 }
0x1893   :  { %11450 = vmatmul.mubr.msk.f32.gmra.mxu0 %vm299_vm1, %v11443_v58  ;;  %v3521_v61 = vpop.xlane.xlu0 %3520 }
0x1894   :  { %11474 = vmatprep.mubr.msk.f32.mxu0 %vm185_vm0, %v3526_v35  ;;  %12225 = vrcp.f32 %v3521_v61 }
0x1897   :  { %v3518_v62 = vpop.xlane.xlu1 %3517  ;;  %v3535_v63 = vpop.permute.xlu0 %3534 }
0x1898   :  { %12227 = vrcp.f32 %v3518_v62  ;;  %11468 = vmatprep.subr.mxu0 %v3535_v63 }
0x1899   :  { %11469 = vmatpush3.msra.mxu0 %v3535_v63 }
0x189a   :  { %11470 = vmatprep.subr.mxu0 %v3533_v60 }
0x189b   :  { %v3531_v0 = vpop.permute.xlu1 %3530  ;;  %11471 = vmatpush3.msra.mxu0 %v3533_v60 }
0x189c   :  { %11472 = vmatprep.subr.mxu0 %v3531_v0 }
0x189d   :  { %v12224_v45 = vpop.eup %12223  ;;  %11473 = vmatpush3.msra.mxu0 %v3531_v0 }
0x189e   :  { %v3527_v56 = vmul.f32 %v12224_v45, %v12216_v41  ;;  %11480 = vmatprep.subr.mxu0 %v10285_v4  ;;  %v10359_v45 = vld [vmem:[%s12807_s11 + $0x38] sm:$0xff] }
0x189f   :  { %11488 = vmatprep.subr.mxu1 %v10359_v45 }
0x18a0   :  { %11475 = vmatmul.mubr.msk.f32.vlgmr.msra.gmra.mxu0 %vm185_vm0, %v3527_v56  ;;  %v10358_v56 = vld [vmem:[%s12807_s11 + $0x30] sm:$0xff]  ;;  %11489 = vmatpush3.msra.mxu1 %v10359_v45 }
0x18a1   :  { %v12226_v1 = vpop.eup %12225  ;;  %11481 = vmatpush3.msra.mxu0 %v10285_v4  ;;  %11490 = vmatprep.subr.mxu1 %v10358_v56  ;;  %v10372_v4 = vld [vmem:[%s12816_s18 + $0x70] sm:$0xff] }
0x18a2   :  { %v3529_v3 = vmul.f32 %v12226_v1, %v12218_v47  ;;  %v10357_v1 = vld [vmem:[%s12807_s11 + $0x28] sm:$0xff]  ;;  %11491 = vmatpush3.msra.mxu1 %v10358_v56 }
0x18a3   :  { %11492 = vmatprep.subr.mxu1 %v10357_v1 }
0x18a4   :  { %11493 = vmatpush3.msra.mxu1 %v10357_v1 }
0x18a5   :  { %v12228_v52 = vpop.eup %12227 }
0x18a6   :  { %v3528_v2 = vmul.f32 %v12228_v52, %v12220_v48  ;;  %v10356_v52 = vld [vmem:[%s12807_s11 + $0x20] sm:$0xff]  ;;  %s12434_s11 = smov 1  }
0x18a7   :  { %11494 = vmatprep.subr.mxu1 %v10356_v52  ;;  %s10149_s24 = sld [smem:[%s14231_s0 + %s12434_s11]]   ;;  %s12438_s11 = smov 20  }
0x18a8   :  { %11477 = vmatprep.mubr.msk.f32.mxu0 %vm185_vm0, %v3528_v2  ;;  %11495 = vmatpush3.msra.mxu1 %v10356_v52  ;;  %v4145_v2 = vld [vmem:[%s13199_s7 + $0x18] sm:$0xff] }
0x18a9   :  { %11478 = vmatmul.mubr.msk.f32.gmra.mxu0 %vm185_vm0, %v3529_v3  ;;  %11524 = vmatprep.subr.mxu1 %v4145_v2  ;;  %v10373_v3 = vld [vmem:[%s12816_s18 + $0x78] sm:$0xff] }
0x18aa   :  { %11502 = vmatprep.subr.mxu0 %v10373_v3 }
0x1948   :  { %v11448_v9 = vpop.f32.mrf.mxu0 }
0x1949   :  { %v3366_v33 = vadd.f32 %v11448_v9, %v2985_v10  ;;  %v10371_v10 = vld [vmem:[%s12816_s18 + $0x68] sm:$0xff]  ;;  %v10370_v9 = vld [vmem:[%s12816_s18 + $0x60] sm:$0xff] }
0x194a   :  { %v3346_v11 = vpop.f32.mrf.mxu0 }
0x194b   :  { %v3365_v13 = vadd.f32 %v3346_v11, %v2980_v49 }
0x1953   :  { %v11451_v17 = vpop.f32.mrf.mxu0 }
0x1954   :  { %v3368_v19 = vadd.f32 %v11451_v17, %v2995_v15 }
0x1955   :  { %v3356_v16 = vpop.f32.mrf.mxu0 }
0x1956   :  { %v3367_v21 = vadd.f32 %v3356_v16, %v2990_v18 }
0x1960   :  { %v11476_v22 = vpop.f32.mrf.mxu0 }
0x1962   :  { %v3620_v23 = vpop.f32.mrf.mxu0 }
0x1963   :  { %11482 = vmatprep.mubr.msk.f32.mxu0 %vm299_vm1, %v3620_v23 }
0x1964   :  { %11483 = vmatmul.mubr.msk.f32.vlgmr.msra.gmra.mxu0 %vm299_vm1, %v11476_v22 }
0x1965   :  { %11503 = vmatpush3.msra.mxu0 %v10373_v3 }
0x1966   :  { %11504 = vmatprep.subr.mxu0 %v10372_v4 }
0x1967   :  { %11505 = vmatpush3.msra.mxu0 %v10372_v4 }
0x1968   :  { %11506 = vmatprep.subr.mxu0 %v10371_v10 }
0x1969   :  { %v11479_v5 = vpop.f32.mrf.mxu0  ;;  %11507 = vmatpush3.msra.mxu0 %v10371_v10 }
0x196a   :  { %11508 = vmatprep.subr.mxu0 %v10370_v9 }
0x196b   :  { %v3630_v6 = vpop.f32.mrf.mxu0  ;;  %11509 = vmatpush3.msra.mxu0 %v10370_v9  ;;  %v13288_v9 = vld [vmem:[%s12859_s4 + $0x1] ss:$0 sm:$0xff]  ;;  %s12437_s4 = smov 19  }
0x196c   :  { %11485 = vmatprep.mubr.msk.f32.mxu0 %vm299_vm1, %v3630_v6  ;;  %s13330_s25 = sld [smem:[%s14231_s0 + %s12437_s4]]  }
0x196d   :  { %11486 = vmatmul.mubr.msk.f32.gmra.mxu0 %vm299_vm1, %v11479_v5  ;;  %s13537_s4 = sld [smem:[%s14231_s0 + %s12443_s10]]   ;;  %s12449_s10 = smov 33  }
0x1a24   :  { %v11484_v24 = vpop.f32.mrf.mxu0 }
0x1a25   :  { %v3737_v26 = vadd.f32 %v11484_v24, %v3366_v33  ;;  %v10354_v24 = vld [vmem:[%s12825_s3 + $0x1] ss:$0 sm:$0xff]  ;;  %s12442_s3 = smov 22  }
0x1a26   :  { %v3717_v31 = vpop.f32.mrf.mxu0  ;;  %s13520_s8 = sld [smem:[%s14231_s0 + %s12442_s3]]  }
0x1a27   :  { %v3749_v8 = vadd.f32 %v10351_v7, %v3737_v26  ;;  %v3736_v32 = vadd.f32 %v3717_v31, %v3365_v13 }
0x1a29   :  { %v3748_v27 = vadd.f32 %v10351_v7, %v3736_v32  ;;  %v3753_v30 = vadd.f32 %v3749_v8, %v12888_v12  ;;  %v10355_v8 = vld [vmem:[%s12830_s9 + $0x1] ss:$0 sm:$0xff]  ;;  %s12445_s9 = smov 4  }
0x1a2b   :  { %v3763_v34 = vsel %vm185_vm0, %v3753_v30, 0.0  ;;  %v3752_v38 = vadd.f32 %v3748_v27, %v12886_v20 }
0x1a2c   :  { %3764 = vadd.xlane.f32.xlu1 %v3763_v34  ;;  %v4144_v34 = vld [vmem:[%s13199_s7 + $0x10] sm:$0xff] }
0x1a2d   :  { %v11487_v39 = vpop.f32.mrf.mxu0  ;;  %v3760_v25 = vsel %vm185_vm0, %v3752_v38, 0.0 }
0x1a2e   :  { %v3739_v14 = vadd.f32 %v11487_v39, %v3368_v19  ;;  %3761 = vadd.xlane.f32.xlu0 %v3760_v25  ;;  %v4143_v39 = vld [vmem:[%s13199_s7 + $0x8] sm:$0xff] }
0x1a2f   :  { %v3727_v40 = vpop.f32.mrf.mxu0 }
0x1a30   :  { %v3738_v41 = vadd.f32 %v3727_v40, %v3367_v21  ;;  %v3751_v42 = vadd.f32 %v10351_v7, %v3739_v14  ;;  %v4142_v14 = vld [vmem:[%s13199_s7] sm:$0xff] }
0x1a32   :  { %v3750_v47 = vadd.f32 %v10351_v7, %v3738_v41  ;;  %v3755_v12 = vadd.f32 %v3751_v42, %v12896_v29 }
0x1a34   :  { %v3754_v36 = vadd.f32 %v3750_v47, %v12894_v28  ;;  %v3769_v43 = vsel %vm185_vm0, %v3755_v12, 0.0 }
0x1a36   :  { %v3766_v48 = vsel %vm185_vm0, %v3754_v36, 0.0 }
0x1a37   :  { %3767 = vadd.xlane.f32.xlu0 %v3766_v48 }
0x1a3b   :  { %3770 = vadd.xlane.f32.xlu0 %v3769_v43  ;;  %v13238_v43 = vld [vmem:[%s10149_s24 + $0x8] sm:$0xff] }
0x1ab5   :  { %v3765_v20 = vpop.xlane.xlu1 %3764 }
0x1ab6   :  { %v3773_v44 = vmul.f32 0.03125, %v3765_v20  ;;  %v10369_v20 = vld [vmem:[%s12816_s18 + $0x58] sm:$0xff] }
0x1ab7   :  { %v3762_v46 = vpop.xlane.xlu0 %3761  ;;  %11510 = vmatprep.subr.mxu0 %v10369_v20 }
0x1ab8   :  { %v13172_v50 = vsub.f32 %v3753_v30, %v3773_v44  ;;  %v3772_v51 = vmul.f32 0.03125, %v3762_v46  ;;  %11511 = vmatpush3.msra.mxu0 %v10369_v20  ;;  %v10368_v44 = vld [vmem:[%s12816_s18 + $0x50] sm:$0xff]  ;;  %v10367_v46 = vld [vmem:[%s12816_s18 + $0x48] sm:$0xff] }
0x1ab9   :  { %11512 = vmatprep.subr.mxu0 %v10368_v44 }
0x1aba   :  { %v13174_v53 = vsub.f32 %v3752_v38, %v3772_v51  ;;  %v3781_v54 = vmul.f32 %v13172_v50, %v13172_v50  ;;  %11513 = vmatpush3.msra.mxu0 %v10368_v44  ;;  %v10361_v51 = vld [vmem:[%s12849_s17 + $0x1] ss:$0 sm:$0xff]  ;;  %s12440_s17 = smov 23  }
0x1abb   :  { %11514 = vmatprep.subr.mxu0 %v10367_v46  ;;  %s13487_s13 = sld [smem:[%s14231_s0 + %s12440_s17]]  }
0x1abc   :  { %v3787_v28 = vsel %vm185_vm0, %v3781_v54, 0.0  ;;  %v3780_v29 = vmul.f32 %v13174_v53, %v13174_v53  ;;  %11515 = vmatpush3.msra.mxu0 %v10367_v46  ;;  %s13581_s17 = sld [smem:[%s14231_s0 + %s12445_s9]]   ;;  %s12447_s9 = smov 28  }
0x1abd   :  { %3788 = vadd.xlane.f32.xlu0 %v3787_v28  ;;  %s13747_s16 = sld [smem:[%s14231_s0 + %s12447_s9]]  }
0x1abe   :  { %v3784_v55 = vsel %vm185_vm0, %v3780_v29, 0.0  ;;  %s13769_s9 = sld [smem:[%s14231_s0 + %s12449_s10]]   ;;  %s12450_s10 = smov 29  }
0x1abf   :  { %3785 = vadd.xlane.f32.xlu1 %v3784_v55 }
0x1ac0   :  { %v3768_v57 = vpop.xlane.xlu0 %3767 }
0x1ac1   :  { %v3774_v58 = vmul.f32 0.03125, %v3768_v57 }
0x1ac3   :  { %v13182_v59 = vsub.f32 %v3754_v36, %v3774_v58 }
0x1ac4   :  { %v3771_v37 = vpop.xlane.xlu0 %3770 }
0x1ac5   :  { %v3775_v35 = vmul.f32 0.03125, %v3771_v37  ;;  %v3782_v60 = vmul.f32 %v13182_v59, %v13182_v59 }
0x1ac7   :  { %v13186_v61 = vsub.f32 %v3755_v12, %v3775_v35  ;;  %v3790_v62 = vsel %vm185_vm0, %v3782_v60, 0.0  ;;  %v13232_v12 = vld [vmem:[%s10149_s24] sm:$0xff]  ;;  %s13433_s24 = sld [smem:[%s14231_s0 + %s12438_s11]]  }
0x1ac8   :  { %3791 = vadd.xlane.f32.xlu1 %v3790_v62  ;;  %v10384_v35 = vld [vmem:[%s13250_s6] ss:$0 sm:$0xff] }
0x1ac9   :  { %v3783_v63 = vmul.f32 %v13186_v61, %v13186_v61 }
0x1acb   :  { %v3793_v0 = vsel %vm185_vm0, %v3783_v63, 0.0 }
0x1acc   :  { %3794 = vadd.xlane.f32.xlu0 %v3793_v0 }
0x1b46   :  { %v3789_v49 = vpop.xlane.xlu0 %3788 }
0x1b47   :  { %v3797_v33 = vmul.f32 0.03125, %v3789_v49 }
0x1b48   :  { %v3786_v11 = vpop.xlane.xlu1 %3785 }
0x1b49   :  { %v3801_v13 = vadd.f32 1e-05, %v3797_v33  ;;  %v3796_v15 = vmul.f32 0.03125, %v3786_v11 }
0x1b4b   :  { %12229 = vrsqrt.f32 %v3801_v13  ;;  %v3800_v17 = vadd.f32 1e-05, %v3796_v15 }
0x1b4d   :  { %12231 = vrsqrt.f32 %v3800_v17 }
0x1b51   :  { %v3792_v18 = vpop.xlane.xlu1 %3791 }
0x1b52   :  { %v3798_v19 = vmul.f32 0.03125, %v3792_v18 }
0x1b54   :  { %v3802_v16 = vadd.f32 1e-05, %v3798_v19 }
0x1b55   :  { %v3795_v21 = vpop.xlane.xlu0 %3794 }
0x1b56   :  { %12233 = vrsqrt.f32 %v3802_v16  ;;  %v3799_v22 = vmul.f32 0.03125, %v3795_v21 }
0x1b58   :  { %v12230_v23 = vpop.eup %12229  ;;  %v3803_v5 = vadd.f32 1e-05, %v3799_v22 }
0x1b59   :  { %v3809_v6 = vmul.f32 %v12230_v23, %v13172_v50  ;;  %v10366_v50 = vld [vmem:[%s12816_s18 + $0x40] sm:$0xff]  ;;  %s12436_s18 = smov 3  }
0x1b5a   :  { %v12232_v7 = vpop.eup %12231  ;;  %12235 = vrsqrt.f32 %v3803_v5  ;;  %11516 = vmatprep.subr.mxu0 %v10366_v50  ;;  %s13301_s22 = sld [smem:[%s14231_s0 + %s12436_s18]]  }
0x1b5b   :  { %v3808_v26 = vmul.f32 %v12232_v7, %v13174_v53  ;;  %v3819_v31 = vmul.f32 %v10354_v24, %v3809_v6  ;;  %11517 = vmatpush3.msra.mxu0 %v10366_v50  ;;  %s13465_s18 = sld [smem:[%s14231_s0 + %s12439_s5]]  }
0x1b5d   :  { %v3818_v32 = vmul.f32 %v10354_v24, %v3808_v26  ;;  %v13212_v30 = vadd.f32 %v10355_v8, %v3819_v31 }
0x1b5f   :  { %v13210_v27 = vadd.f32 %v10355_v8, %v3818_v32 }
0x1b60   :  { %v13304_v17 = vld [vmem:[%s13301_s22 + $0x8] sm:$0xff]  ;;  %v13307_v19 = vld [vmem:[%s13301_s22] sm:$0xff] }
0x1b61   :  { %11496 = vmatprep.mubr.msk.f32.mxu1 %vm185_vm0, %v13210_v27 }
0x1b62   :  { %11497 = vmatmul.mubr.msk.f32.vlgmr.msra.gmra.mxu1 %vm185_vm0, %v13212_v30 }
0x1b63   :  { %v12234_v38 = vpop.eup %12233  ;;  %11525 = vmatpush3.msra.mxu1 %v4145_v2 }
0x1b64   :  { %v3810_v25 = vmul.f32 %v12234_v38, %v13182_v59  ;;  %11526 = vmatprep.subr.mxu1 %v4144_v34 }
0x1b65   :  { %11527 = vmatpush3.msra.mxu1 %v4144_v34 }
0x1b66   :  { %v3820_v40 = vmul.f32 %v10354_v24, %v3810_v25  ;;  %11528 = vmatprep.subr.mxu1 %v4143_v39 }
0x1b67   :  { %v12236_v41 = vpop.eup %12235  ;;  %11529 = vmatpush3.msra.mxu1 %v4143_v39 }
0x1b68   :  { %v13225_v42 = vadd.f32 %v10355_v8, %v3820_v40  ;;  %v3811_v47 = vmul.f32 %v12236_v41, %v13186_v61  ;;  %11530 = vmatprep.subr.mxu1 %v4142_v14 }
0x1b69   :  { %11531 = vmatpush3.msra.mxu1 %v4142_v14 }
0x1b6a   :  { %11499 = vmatprep.mubr.msk.f32.mxu1 %vm185_vm0, %v13225_v42  ;;  %v3821_v36 = vmul.f32 %v10354_v24, %v3811_v47 }
0x1b6c   :  { %v13230_v48 = vadd.f32 %v10355_v8, %v3821_v36 }
0x1b6e   :  { %11500 = vmatmul.mubr.msk.f32.gmra.mxu1 %vm185_vm0, %v13230_v48 }
0x1b6f   :  { %11532 = vmatprep.mubr.msk.f32.mxu1 %vm185_vm0, %v13232_v12 }
0x1b72   :  { %11533 = vmatmul.mubr.msk.f32.vlgmr.msra.gmra.mxu1 %vm185_vm0, %v13238_v43 }
0x1c22   :  { %v11498_v53 = vpop.f32.mrf.mxu1 }
0x1c23   :  { %v3929_v54 = vadd.f32 %v11498_v53, %v10361_v51 }
0x1c24   :  { %v3923_v28 = vpop.f32.mrf.mxu1 }
0x1c25   :  { %v3924_v29 = vadd.f32 %v10361_v51, %v3923_v28  ;;  %v3943_v57 = vmax.f32 %v3929_v54, 0.0 }
0x1c27   :  { %v3942_v55 = vmax.f32 %v3924_v29, 0.0 }
0x1c29   :  { %11518 = vmatprep.mubr.msk.f32.mxu0 %vm1977_vm2, %v3942_v55 }
0x1c2a   :  { %11519 = vmatmul.mubr.msk.f32.vlgmr.msra.gmra.mxu0 %vm1977_vm2, %v3943_v57 }
0x1c2e   :  { %v11501_v58 = vpop.f32.mrf.mxu1 }
0x1c2f   :  { %v3939_v59 = vadd.f32 %v11501_v58, %v10361_v51 }
0x1c30   :  { %v3933_v37 = vpop.f32.mrf.mxu1 }
0x1c31   :  { %v3934_v60 = vadd.f32 %v10361_v51, %v3933_v37  ;;  %v3945_v0 = vmax.f32 %v3939_v59, 0.0  ;;  %v4235_v59 = vld [vmem:[%s13330_s25 + $0x8] sm:$0xff] }
0x1c32   :  { %v11534_v61 = vpop.f32.mrf.mxu1 }
0x1c33   :  { %v3944_v62 = vmax.f32 %v3934_v60, 0.0  ;;  %v13255_v63 = vadd.f32 %v11534_v61, %v10384_v35 }
0x1c34   :  { %v4225_v45 = vpop.f32.mrf.mxu1 }
0x1c35   :  { %v13257_v56 = vadd.f32 %v10384_v35, %v4225_v45  ;;  %4242 = vrot.lane.b32.xlu1 %v13255_v63, %s12411_s14  ;;  %11521 = vmatprep.mubr.msk.f32.mxu0 %vm1977_vm2, %v3944_v62 }
0x1c36   :  { %11522 = vmatmul.mubr.msk.f32.gmra.mxu0 %vm1977_vm2, %v3945_v0 }
0x1c37   :  { %4240 = vrot.lane.b32.xlu0 %v13257_v56, %s12411_s14  ;;  %11539 = vmatprep.mubr.msk.f32.mxu1 %vm299_vm1, %v13257_v56 }
0x1c39   :  { %4443 = vrot.lane.b32.xlu1 %v13255_v63, %s12414_s20 }
0x1c3b   :  { %4437 = vrot.lane.b32.xlu0 %v13257_v56, %s14246_s21 }
0x1c3d   :  { %4441 = vrot.lane.b32.xlu1 %v13257_v56, %s12414_s20 }
0x1c41   :  { %4439 = vrot.lane.b32.xlu1 %v13255_v63, %s14246_s21 }
0x1ca7   :  { %v4243_v1 = vpop.permute.xlu1 %4242 }
0x1ca8   :  { %11535 = vmatprep.subr.msk.mxu1 %vm299_vm1, %v4243_v1 }
0x1ca9   :  { %11536 = vmatpush3.xpose.msk.msra.mxu1 %vm299_vm1, %v4243_v1  ;;  %v4241_v52 = vpop.permute.xlu0 %4240 }
0x1caa   :  { %11537 = vmatprep.subr.msk.mxu1 %vm299_vm1, %v4241_v52 }
0x1cab   :  { %v4444_v2 = vpop.permute.xlu1 %4443 }
0x1cac   :  { %11549 = vmatprep.subr.msk.mxu0 %vm299_vm1, %v4444_v2 }
0x1cad   :  { %11538 = vmatpush3.xpose.msk.msra.mxu1 %vm299_vm1, %v4241_v52  ;;  %11550 = vmatpush3.xpose.msk.msra.mxu0 %vm299_vm1, %v4444_v2  ;;  %v4438_v3 = vpop.permute.xlu0 %4437 }
0x1cae   :  { %11553 = vmatprep.mubr.msk.f32.mxu0 %vm299_vm1, %v4438_v3 }
0x1caf   :  { %v4442_v4 = vpop.permute.xlu1 %4441 }
0x1cb0   :  { %11540 = vmatmul.mubr.msk.f32.vlgmr.msra.gmra.mxu1 %vm299_vm1, %v13255_v63  ;;  %11551 = vmatprep.subr.msk.mxu0 %vm299_vm1, %v4442_v4 }
0x1cb1   :  { %11552 = vmatpush3.xpose.msk.msra.mxu0 %vm299_vm1, %v4442_v4 }
0x1cb2   :  { %11563 = vmatprep.subr.mxu0 %v4235_v59 }
0x1cb3   :  { %v4440_v10 = vpop.permute.xlu1 %4439 }
0x1cb4   :  { %11554 = vmatmul.mubr.msk.f32.vlgmr.msra.gmra.mxu0 %vm299_vm1, %v4440_v10 }
0x1cb5   :  { %11564 = vmatpush3.msra.mxu0 %v4235_v59 }
0x1cea   :  { %v11520_v49 = vpop.f32.mrf.mxu0 }
0x1ceb   :  { %v13291_v33 = vadd.f32 %v11520_v49, %v13288_v9 }
0x1cec   :  { %v13293_v11 = vpop.f32.mrf.mxu0 }
0x1cf6   :  { %v11523_v13 = vpop.f32.mrf.mxu0 }
0x1cf7   :  { %v13296_v15 = vadd.f32 %v11523_v13, %v13288_v9 }
0x1cf8   :  { %v13310_v21 = vpop.f32.mrf.mxu0 }
0x1d70   :  { %v11541_v18 = vpop.f32.mrf.mxu1 }
0x1d71   :  { %v4324_v16 = vadd.f32 %v11541_v18, %v13304_v17 }
0x1d72   :  { %v4318_v22 = vpop.f32.mrf.mxu1 }
0x1d73   :  { %v4319_v23 = vadd.f32 %v4318_v22, %v13307_v19  ;;  %v4331_v5 = vsel %vm4327_vm3, %v4324_v16, -inf }
0x1d74   :  { %4332 = vmax.xlane.f32.xlu1 %v4331_v5  ;;  %v11555_v6 = vpop.f32.mrf.mxu0 }
0x1d75   :  { %v4328_v24 = vsel %vm4327_vm3, %v4319_v23, -inf  ;;  %v4525_v31 = vadd.f32 %v11555_v6, %v13304_v17 }
0x1d76   :  { %4329 = vmax.xlane.f32.xlu0 %v4328_v24  ;;  %v4519_v7 = vpop.f32.mrf.mxu0 }
0x1d77   :  { %v4520_v26 = vadd.f32 %v4519_v7, %v13307_v19  ;;  %v4531_v32 = vsel %vm4327_vm3, %v4525_v31, -inf }
0x1d79   :  { %v4528_v8 = vsel %vm4327_vm3, %v4520_v26, -inf }
0x1d7a   :  { %4529 = vmax.xlane.f32.xlu0 %v4528_v8 }
0x1d7e   :  { %4532 = vmax.xlane.f32.xlu0 %v4531_v32 }
0x1d85   :  { %4352 = vrot.lane.b32.xlu1 %v13255_v63, %s12412_s15 }
0x1d89   :  { %4552 = vrot.lane.b32.xlu1 %v13255_v63, %s14244_s26 }
0x1dfd   :  { %v4333_v34 = vpop.xlane.xlu1 %4332 }
0x1dfe   :  { %v4335_v38 = vsub.f32 %v4324_v16, %v4333_v34  ;;  %v4234_v16 = vld [vmem:[%s13330_s25] sm:$0xff] }
0x1dff   :  { %v4330_v39 = vpop.xlane.xlu0 %4329 }
0x1e00   :  { %v4338_v25 = vmul.f32 1.442695, %v4335_v38  ;;  %v4334_v14 = vsub.f32 %v4319_v23, %v4330_v39 }
0x1e01   :  { %v4353_v40 = vpop.permute.xlu1 %4352 }
0x1e02   :  { %12237 = vpow2.f32 %v4338_v25  ;;  %v4336_v41 = vmul.f32 1.442695, %v4334_v14  ;;  %11542 = vmatprep.subr.mxu1 %v4353_v40 }
0x1e03   :  { %11543 = vmatpush3.msra.mxu1 %v4353_v40  ;;  %v4530_v47 = vpop.xlane.xlu0 %4529 }
0x1e04   :  { %12239 = vpow2.f32 %v4336_v41  ;;  %v4534_v36 = vsub.f32 %v4520_v26, %v4530_v47 }
0x1e05   :  { %v4553_v37 = vpop.permute.xlu1 %4552 }
0x1e06   :  { %v4536_v20 = vmul.f32 1.442695, %v4534_v36 }
0x1e07   :  { %v4533_v44 = vpop.xlane.xlu0 %4532 }
0x1e08   :  { %12241 = vpow2.f32 %v4536_v20  ;;  %v4535_v46 = vsub.f32 %v4525_v31, %v4533_v44 }
0x1e0a   :  { %v4538_v50 = vmul.f32 1.442695, %v4535_v46 }
0x1e0c   :  { %12243 = vpow2.f32 %v4538_v50 }
0x1e0f   :  { %v12238_v51 = vpop.eup %12237 }
0x1e10   :  { %v4343_v53 = vsel %vm4327_vm3, %v12238_v51, 0.0 }
0x1e11   :  { %v12240_v54 = vpop.eup %12239  ;;  %4344 = vadd.xlane.f32.xlu0 %v4343_v53 }
0x1e12   :  { %v4340_v28 = vsel %vm4327_vm3, %v12240_v54, 0.0 }
0x1e13   :  { %4341 = vadd.xlane.f32.xlu1 %v4340_v28 }
0x1e15   :  { %v12242_v29 = vpop.eup %12241 }
0x1e16   :  { %v4540_v55 = vsel %vm4327_vm3, %v12242_v29, 0.0 }
0x1e17   :  { %4541 = vadd.xlane.f32.xlu1 %v4540_v55 }
0x1e19   :  { %v12244_v57 = vpop.eup %12243 }
0x1e1a   :  { %v4543_v58 = vsel %vm4327_vm3, %v12244_v57, 0.0 }
0x1e1b   :  { %4544 = vadd.xlane.f32.xlu0 %v4543_v58 }
0x1e28   :  { %4550 = vrot.lane.b32.xlu1 %v13257_v56, %s14244_s26 }
0x1e2c   :  { %4803 = vrot.lane.b32.xlu1 %v13257_v56, %s14242_s27 }
0x1e30   :  { %4801 = vrot.lane.b32.xlu1 %v13255_v63, %s14240_s28 }
0x1e31   :  { %4350 = vrot.lane.b32.xlu0 %v13257_v56, %s12412_s15 }
0x1e34   :  { %5086 = vrot.lane.b32.xlu1 %v13257_v56, %s14238_s29 }
0x1e35   :  { %4805 = vrot.lane.b32.xlu0 %v13255_v63, %s14242_s27 }
0x1e38   :  { %5084 = vrot.lane.b32.xlu1 %v13255_v63, %s14236_s30 }
0x1e39   :  { %4799 = vrot.lane.b32.xlu0 %v13257_v56, %s14240_s28 }
0x1e3d   :  { %5088 = vrot.lane.b32.xlu0 %v13255_v63, %s14238_s29 }
0x1e41   :  { %5082 = vrot.lane.b32.xlu0 %v13257_v56, %s14236_s30 }
0x1e9a   :  { %v4345_v35 = vpop.xlane.xlu0 %4344 }
0x1e9b   :  { %12245 = vrcp.f32 %v4345_v35 }
0x1e9c   :  { %v4342_v60 = vpop.xlane.xlu1 %4341 }
0x1e9d   :  { %12247 = vrcp.f32 %v4342_v60 }
0x1ea0   :  { %v4542_v61 = vpop.xlane.xlu1 %4541 }
0x1ea1   :  { %12249 = vrcp.f32 %v4542_v61 }
0x1ea4   :  { %v4545_v62 = vpop.xlane.xlu0 %4544  ;;  %v4551_v10 = vpop.permute.xlu1 %4550 }
0x1ea5   :  { %12251 = vrcp.f32 %v4545_v62 }
0x1ea8   :  { %v4351_v0 = vpop.permute.xlu0 %4350  ;;  %v12246_v45 = vpop.eup %12245 }
0x1ea9   :  { %11544 = vmatprep.subr.mxu1 %v4351_v0  ;;  %v4349_v3 = vmul.f32 %v12246_v45, %v12238_v51  ;;  %v4804_v24 = vpop.permute.xlu1 %4803 }
0x1eaa   :  { %v12248_v1 = vpop.eup %12247  ;;  %11545 = vmatpush3.msra.mxu1 %v4351_v0 }
0x1eab   :  { %11556 = vmatprep.subr.mxu1 %v4553_v37  ;;  %v4348_v52 = vmul.f32 %v12248_v1, %v12240_v54 }
0x1eac   :  { %v4806_v2 = vpop.permute.xlu0 %4805 }
0x1ead   :  { %11546 = vmatprep.mubr.msk.f32.mxu1 %vm4327_vm3, %v4348_v52  ;;  %11573 = vmatprep.subr.msk.mxu0 %vm299_vm1, %v4806_v2  ;;  %v4802_v31 = vpop.permute.xlu1 %4801 }
0x1eae   :  { %v12250_v4 = vpop.eup %12249  ;;  %11547 = vmatmul.mubr.msk.f32.vlgmr.msra.gmra.mxu1 %vm4327_vm3, %v4349_v3  ;;  %v4042_v3 = vadd.f32 %v13288_v9, %v13293_v11 }
0x1eaf   :  { %11557 = vmatpush3.msra.mxu1 %v4553_v37  ;;  %v4548_v49 = vmul.f32 %v12250_v4, %v12242_v29 }
0x1eb0   :  { %11558 = vmatprep.subr.mxu1 %v4551_v10  ;;  %v4800_v5 = vpop.permute.xlu0 %4799  ;;  %v13398_v4 = vadd.f32 %v4042_v3, %v13210_v27 }
0x1eb1   :  { %11559 = vmatpush3.msra.mxu1 %v4551_v10  ;;  %11560 = vmatprep.mubr.msk.f32.mxu1 %vm4327_vm3, %v4548_v49  ;;  %v5087_v32 = vpop.permute.xlu1 %5086  ;;  %v4052_v10 = vadd.f32 %v13288_v9, %v13310_v21 }
0x1eb2   :  { %v12252_v13 = vpop.eup %12251  ;;  %11568 = vmatprep.subr.mxu1 %v4234_v16  ;;  %v4068_v49 = vsel %vm185_vm0, %v13398_v4, 0.0 }
0x1eb3   :  { %v4549_v18 = vmul.f32 %v12252_v13, %v12244_v57 }
0x1eb4   :  { %v5089_v26 = vpop.permute.xlu0 %5088 }
0x1eb5   :  { %11561 = vmatmul.mubr.msk.f32.vlgmr.msra.gmra.mxu1 %vm4327_vm3, %v4549_v18  ;;  %v5085_v34 = vpop.permute.xlu1 %5084  ;;  %v4236_v18 = vld [vmem:[%s13330_s25 + $0x10] sm:$0xff] }
0x1eb6   :  { %11569 = vmatpush3.msra.mxu1 %v4234_v16 }
0x1eb8   :  { %v5083_v8 = vpop.permute.xlu0 %5082 }
0x1f6e   :  { %v11548_v22 = vpop.f32.mrf.mxu1 }
0x1f70   :  { %v4428_v23 = vpop.f32.mrf.mxu1 }
0x1f71   :  { %11570 = vmatprep.mubr.msk.f32.mxu1 %vm299_vm1, %v4428_v23 }
0x1f72   :  { %11571 = vmatmul.mubr.msk.f32.vlgmr.msra.gmra.mxu1 %vm299_vm1, %v11548_v22 }
0x1f75   :  { %v11562_v6 = vpop.f32.mrf.mxu1 }
0x1f77   :  { %v4628_v7 = vpop.f32.mrf.mxu1 }
0x1f78   :  { %11565 = vmatprep.mubr.msk.f32.mxu0 %vm299_vm1, %v4628_v7 }
0x1f79   :  { %11566 = vmatmul.mubr.msk.f32.vlgmr.msra.gmra.mxu0 %vm299_vm1, %v11562_v6 }
0x1f7a   :  { %11574 = vmatpush3.xpose.msk.msra.mxu0 %vm299_vm1, %v4806_v2  ;;  %11577 = vmatprep.mubr.msk.f32.mxu0 %vm299_vm1, %v4800_v5 }
0x1f7b   :  { %11575 = vmatprep.subr.msk.mxu0 %vm299_vm1, %v4804_v24 }
0x1f7e   :  { %11576 = vmatpush3.xpose.msk.msra.mxu0 %vm299_vm1, %v4804_v24 }
0x1f7f   :  { %11592 = vmatprep.subr.msk.mxu0 %vm299_vm1, %v5089_v26 }
0x1f81   :  { %11578 = vmatmul.mubr.msk.f32.vlgmr.msra.gmra.mxu0 %vm299_vm1, %v4802_v31  ;;  %v4061_v31 = vadd.f32 %v13291_v33, %v13212_v30 }
0x1f82   :  { %11593 = vmatpush3.xpose.msk.msra.mxu0 %vm299_vm1, %v5089_v26  ;;  %11596 = vmatprep.mubr.msk.f32.mxu0 %vm299_vm1, %v5083_v8  ;;  %v4063_v8 = vadd.f32 %v13296_v15, %v13230_v48 }
0x1f83   :  { %11594 = vmatprep.subr.msk.mxu0 %vm299_vm1, %v5087_v32 }
0x1f86   :  { %11595 = vmatpush3.xpose.msk.msra.mxu0 %vm299_vm1, %v5087_v32  ;;  %v4071_v32 = vsel %vm185_vm0, %v4061_v31, 0.0 }
0x1f89   :  { %11597 = vmatmul.mubr.msk.f32.vlgmr.msra.gmra.mxu0 %vm299_vm1, %v5085_v34  ;;  %v4077_v34 = vsel %vm185_vm0, %v4063_v8, 0.0 }
0x2032   :  { %v11572_v38 = vpop.f32.mrf.mxu1 }
0x2039   :  { %v11567_v39 = vpop.f32.mrf.mxu0 }
0x203a   :  { %v13374_v25 = vadd.f32 %v11572_v38, %v11567_v39  ;;  %v4790_v38 = vpop.f32.mrf.mxu1 }
0x203b   :  { %v13376_v14 = vpop.f32.mrf.mxu0 }
0x2041   :  { %v11579_v40 = vpop.f32.mrf.mxu0 }
0x2042   :  { %v4887_v41 = vadd.f32 %v11579_v40, %v13304_v17 }
0x2043   :  { %v4881_v47 = vpop.f32.mrf.mxu0 }
0x2044   :  { %v4882_v36 = vadd.f32 %v4881_v47, %v13307_v19  ;;  %v4893_v20 = vsel %vm4327_vm3, %v4887_v41, -inf  ;;  %v4237_v47 = vld [vmem:[%s13330_s25 + $0x18] sm:$0xff] }
0x2045   :  { %4894 = vmax.xlane.f32.xlu1 %v4893_v20  ;;  %v4791_v20 = vadd.f32 %v4790_v38, %v13376_v14 }
0x2046   :  { %v4890_v44 = vsel %vm4327_vm3, %v4882_v36, -inf }
0x2047   :  { %4891 = vmax.xlane.f32.xlu0 %v4890_v44 }
0x2049   :  { %v11598_v46 = vpop.f32.mrf.mxu0 }
0x204a   :  { %v5170_v1 = vadd.f32 %v11598_v46, %v13304_v17  ;;  %v13403_v17 = vadd.f32 %v4052_v10, %v13225_v42 }
0x204b   :  { %v5164_v50 = vpop.f32.mrf.mxu0 }
0x204c   :  { %v5165_v51 = vadd.f32 %v5164_v50, %v13307_v19  ;;  %v5176_v2 = vsel %vm4327_vm3, %v5170_v1, -inf  ;;  %v4074_v13 = vsel %vm185_vm0, %v13403_v17, 0.0 }
0x204e   :  { %v5173_v53 = vsel %vm4327_vm3, %v5165_v51, -inf }
0x2056   :  { %4914 = vrot.lane.b32.xlu1 %v13255_v63, %s14234_s1 }
0x207a   :  { %5174 = vmax.xlane.f32.xlu1 %v5173_v53 }
0x20ce   :  { %v4895_v54 = vpop.xlane.xlu1 %4894 }
0x20cf   :  { %v4897_v28 = vsub.f32 %v4887_v41, %v4895_v54 }
0x20d0   :  { %v4892_v29 = vpop.xlane.xlu0 %4891 }
0x20d1   :  { %v4900_v55 = vmul.f32 1.442695, %v4897_v28  ;;  %v4896_v57 = vsub.f32 %v4882_v36, %v4892_v29 }
0x20d2   :  { %v4915_v58 = vpop.permute.xlu1 %4914 }
0x20d3   :  { %12253 = vpow2.f32 %v4900_v55  ;;  %v4898_v59 = vmul.f32 1.442695, %v4896_v57  ;;  %11580 = vmatprep.subr.mxu1 %v4915_v58  ;;  %v10419_v55 = vld [vmem:[%s13433_s24] ss:$0 sm:$0xff] }
0x20d4   :  { %11581 = vmatpush3.msra.mxu1 %v4915_v58 }
0x20d5   :  { %12255 = vpow2.f32 %v4898_v59 }
0x20e0   :  { %v12254_v37 = vpop.eup %12253 }
0x20e1   :  { %v4905_v35 = vsel %vm4327_vm3, %v12254_v37, 0.0 }
0x20e2   :  { %v12256_v60 = vpop.eup %12255  ;;  %4906 = vadd.xlane.f32.xlu0 %v4905_v35 }
0x20e3   :  { %v4902_v19 = vsel %vm4327_vm3, %v12256_v60, 0.0 }
0x20e6   :  { %4903 = vadd.xlane.f32.xlu0 %v4902_v19 }
0x20fc   :  { %4912 = vrot.lane.b32.xlu0 %v13257_v56, %s14234_s1  ;;  %s12451_s1 = smov 30  }
0x2103   :  { %v5175_v61 = vpop.xlane.xlu1 %5174 }
0x2104   :  { %v5179_v62 = vsub.f32 %v5165_v51, %v5175_v61 }
0x2106   :  { %v5181_v0 = vmul.f32 1.442695, %v5179_v62 }
0x2108   :  { %12257 = vpow2.f32 %v5181_v0 }
0x2115   :  { %v12258_v45 = vpop.eup %12257 }
0x2116   :  { %v5185_v52 = vsel %vm4327_vm3, %v12258_v45, 0.0 }
0x2117   :  { %5186 = vadd.xlane.f32.xlu1 %v5185_v52 }
0x211b   :  { %5177 = vmax.xlane.f32.xlu0 %v5176_v2 }
0x2128   :  { %5197 = vrot.lane.b32.xlu1 %v13255_v63, %s14232_s2 }
0x214c   :  { %4069 = vadd.xlane.f32.xlu1 %v4068_v49 }
0x2150   :  { %4075 = vadd.xlane.f32.xlu1 %v4074_v13 }
0x216b   :  { %v4907_v63 = vpop.xlane.xlu0 %4906 }
0x216c   :  { %12259 = vrcp.f32 %v4907_v63 }
0x216f   :  { %v4904_v11 = vpop.xlane.xlu0 %4903 }
0x2170   :  { %12261 = vrcp.f32 %v4904_v11 }
0x2173   :  { %v4913_v27 = vpop.permute.xlu0 %4912 }
0x2174   :  { %11582 = vmatprep.subr.mxu1 %v4913_v27 }
0x2175   :  { %11583 = vmatpush3.msra.mxu1 %v4913_v27 }
0x2176   :  { %11587 = vmatprep.subr.mxu1 %v4236_v18 }
0x2179   :  { %v12260_v9 = vpop.eup %12259 }
0x217a   :  { %v4911_v16 = vmul.f32 %v12260_v9, %v12254_v37  ;;  %v5514_v9 = vld [vmem:[%s13465_s18 + $0x10] sm:$0xff] }
0x217d   :  { %v12262_v42 = vpop.eup %12261 }
0x217e   :  { %v4910_v21 = vmul.f32 %v12262_v42, %v12256_v60  ;;  %v5513_v42 = vld [vmem:[%s13465_s18 + $0x8] sm:$0xff] }
0x2180   :  { %11584 = vmatprep.mubr.msk.f32.mxu1 %vm4327_vm3, %v4910_v21  ;;  %v5512_v21 = vld [vmem:[%s13465_s18] sm:$0xff] }
0x2181   :  { %11585 = vmatmul.mubr.msk.f32.vlgmr.msra.gmra.mxu1 %vm4327_vm3, %v4911_v16 }
0x2182   :  { %11588 = vmatpush3.msra.mxu1 %v4236_v18  ;;  %v5515_v18 = vld [vmem:[%s13465_s18 + $0x18] sm:$0xff] }
0x21a0   :  { %v5187_v22 = vpop.xlane.xlu1 %5186 }
0x21a4   :  { %v5198_v23 = vpop.permute.xlu1 %5197  ;;  %v5178_v5 = vpop.xlane.xlu0 %5177 }
0x21a5   :  { %v5180_v6 = vsub.f32 %v5170_v1, %v5178_v5  ;;  %11599 = vmatprep.subr.mxu1 %v5198_v23 }
0x21a7   :  { %v5183_v24 = vmul.f32 1.442695, %v5180_v6 }
0x21a9   :  { %12263 = vpow2.f32 %v5183_v24 }
0x21aa   :  { %12265 = vrcp.f32 %v5187_v22 }
0x21b6   :  { %v12264_v7 = vpop.eup %12263 }
0x21b7   :  { %v5188_v26 = vsel %vm4327_vm3, %v12264_v7, 0.0  ;;  %v12266_v39 = vpop.eup %12265 }
0x21b8   :  { %5189 = vadd.xlane.f32.xlu0 %v5188_v26  ;;  %v5193_v30 = vmul.f32 %v12266_v39, %v12258_v45 }
0x21ce   :  { %5195 = vrot.lane.b32.xlu0 %v13257_v56, %s14232_s2  ;;  %s13778_s2 = sld [smem:[%s14231_s0 + %s12450_s10]]  }
0x21d5   :  { %v4070_v28 = vpop.xlane.xlu1 %4069 }
0x21d6   :  { %v4080_v57 = vmul.f32 0.03125, %v4070_v28 }
0x21d8   :  { %v13439_v62 = vsub.f32 %v13398_v4, %v4080_v57 }
0x21d9   :  { %v4076_v59 = vpop.xlane.xlu1 %4075 }
0x21da   :  { %v4082_v0 = vmul.f32 0.03125, %v4076_v59  ;;  %v4088_v13 = vmul.f32 %v13439_v62, %v13439_v62 }
0x21dc   :  { %v13449_v49 = vsub.f32 %v13403_v17, %v4082_v0 }
0x21de   :  { %v4090_v11 = vmul.f32 %v13449_v49, %v13449_v49 }
0x21e0   :  { %v4098_v27 = vsel %vm185_vm0, %v4090_v11, 0.0 }
0x21ed   :  { %4072 = vadd.xlane.f32.xlu0 %v4071_v32 }
0x21f1   :  { %4078 = vadd.xlane.f32.xlu0 %v4077_v34 }
0x2241   :  { %v11586_v40 = vpop.f32.mrf.mxu1  ;;  %v5190_v41 = vpop.xlane.xlu0 %5189 }
0x2242   :  { %12267 = vrcp.f32 %v5190_v41 }
0x2243   :  { %v4990_v56 = vpop.f32.mrf.mxu1 }
0x2244   :  { %11589 = vmatprep.mubr.msk.f32.mxu1 %vm299_vm1, %v4990_v56 }
0x2245   :  { %11590 = vmatmul.mubr.msk.f32.vlgmr.msra.gmra.mxu1 %vm299_vm1, %v11586_v40  ;;  %v5196_v48 = vpop.permute.xlu0 %5195 }
0x2246   :  { %11600 = vmatpush3.msra.mxu1 %v5198_v23  ;;  %11603 = vmatprep.mubr.msk.f32.mxu1 %vm4327_vm3, %v5193_v30 }
0x2247   :  { %11601 = vmatprep.subr.mxu1 %v5196_v48 }
0x2248   :  { %11602 = vmatpush3.msra.mxu1 %v5196_v48 }
0x2249   :  { %11606 = vmatprep.subr.mxu1 %v4237_v47 }
0x224f   :  { %v12268_v33 = vpop.eup %12267 }
0x2250   :  { %v5194_v15 = vmul.f32 %v12268_v33, %v12264_v7 }
0x2252   :  { %11604 = vmatmul.mubr.msk.f32.vlgmr.msra.gmra.mxu1 %vm4327_vm3, %v5194_v15 }
0x2253   :  { %11607 = vmatpush3.msra.mxu1 %v4237_v47 }
0x2254   :  { %11622 = vmatprep.subr.mxu1 %v5515_v18 }
0x2276   :  { %v4073_v54 = vpop.xlane.xlu0 %4072 }
0x2277   :  { %v4081_v14 = vmul.f32 0.03125, %v4073_v54  ;;  %v10383_v54 = vld [vmem:[%s12882_s23 + $0x1] ss:$0 sm:$0xff]  ;;  %s12453_s23 = smov 34  }
0x2278   :  { %s13804_s26 = sld [smem:[%s14231_s0 + %s12453_s23]]   ;;  %s14255_s23 = smov 40  }
0x2279   :  { %v13436_v35 = vsub.f32 %v4061_v31, %v4081_v14 }
0x227a   :  { %v4079_v29 = vpop.xlane.xlu0 %4078 }
0x227b   :  { %v4083_v60 = vmul.f32 0.03125, %v4079_v29  ;;  %v4089_v10 = vmul.f32 %v13436_v35, %v13436_v35 }
0x227d   :  { %v13442_v52 = vsub.f32 %v4063_v8, %v4083_v60 }
0x227f   :  { %v4091_v63 = vmul.f32 %v13442_v52, %v13442_v52 }
0x2281   :  { %v4101_v17 = vsel %vm185_vm0, %v4091_v63, 0.0 }
0x2305   :  { %v11591_v36 = vpop.f32.mrf.mxu1 }
0x2306   :  { %v5081_v44 = vadd.f32 %v11591_v36, %v13374_v25 }
0x2307   :  { %v5071_v46 = vpop.f32.mrf.mxu1 }
0x2308   :  { %v5080_v50 = vadd.f32 %v5071_v46, %v4791_v20  ;;  %v10382_v20 = vld [vmem:[%s12877_s12 + $0x1] ss:$0 sm:$0xff]  ;;  %s12441_s12 = smov 21  }
0x2309   :  { %s13515_s11 = sld [smem:[%s14231_s0 + %s12441_s12]]   ;;  %s12444_s12 = smov 24  }
0x230a   :  { %s13567_s3 = sld [smem:[%s14231_s0 + %s12444_s12]]   ;;  %s12448_s12 = smov 31  }
0x230b   :  { %s13760_s5 = sld [smem:[%s14231_s0 + %s12448_s12]]  }
0x2312   :  { %v11605_v51 = vpop.f32.mrf.mxu1 }
0x2314   :  { %v5273_v53 = vpop.f32.mrf.mxu1 }
0x2315   :  { %11608 = vmatprep.mubr.msk.f32.mxu1 %vm299_vm1, %v5273_v53 }
0x2316   :  { %11609 = vmatmul.mubr.msk.f32.vlgmr.msra.gmra.mxu1 %vm299_vm1, %v11605_v51 }
0x2317   :  { %11623 = vmatpush3.msra.mxu1 %v5515_v18 }
0x2318   :  { %11624 = vmatprep.subr.mxu1 %v5514_v9 }
0x2319   :  { %11625 = vmatpush3.msra.mxu1 %v5514_v9 }
0x231a   :  { %11626 = vmatprep.subr.mxu1 %v5513_v42 }
0x231b   :  { %11627 = vmatpush3.msra.mxu1 %v5513_v42  ;;  %v10425_v42 = vld [vmem:[%s13537_s4] ss:$0 sm:$0xff] }
0x231c   :  { %11628 = vmatprep.subr.mxu1 %v5512_v21 }
0x231d   :  { %11629 = vmatpush3.msra.mxu1 %v5512_v21 }
0x23d6   :  { %v11610_v25 = vpop.f32.mrf.mxu1 }
0x23d7   :  { %v5364_v58 = vadd.f32 %v11610_v25, %v5081_v44 }
0x23d8   :  { %v5354_v37 = vpop.f32.mrf.mxu1 }
0x23d9   :  { %v5373_v19 = vadd.f32 %v10419_v55, %v5364_v58  ;;  %v5363_v61 = vadd.f32 %v5354_v37, %v5080_v50  ;;  %v5423_v37 = vld [vmem:[%s13487_s13 + $0x18] sm:$0xff] }
0x23da   :  { %11611 = vmatprep.subr.mxu0 %v5423_v37 }
0x23db   :  { %v5372_v45 = vadd.f32 %v10419_v55, %v5363_v61  ;;  %v5375_v1 = vadd.f32 %v5373_v19, %v13238_v43  ;;  %v4095_v43 = vsel %vm185_vm0, %v4089_v10, 0.0  ;;  %11612 = vmatpush3.msra.mxu0 %v5423_v37  ;;  %v5421_v19 = vld [vmem:[%s13487_s13 + $0x8] sm:$0xff] }
0x23dd   :  { %v5381_v2 = vsel %vm185_vm0, %v5375_v1, 0.0  ;;  %v5374_v3 = vadd.f32 %v5372_v45, %v13232_v12  ;;  %v4092_v12 = vsel %vm185_vm0, %v4088_v13, 0.0 }
0x23de   :  { %5382 = vadd.xlane.f32.xlu0 %v5381_v2 }
0x23df   :  { %v5378_v4 = vsel %vm185_vm0, %v5374_v3, 0.0 }
0x23e0   :  { %5379 = vadd.xlane.f32.xlu1 %v5378_v4 }
0x23e2   :  { %4096 = vadd.xlane.f32.xlu0 %v4095_v43 }
0x23e4   :  { %4093 = vadd.xlane.f32.xlu1 %v4092_v12  ;;  %v10421_v12 = vld [vmem:[%s13520_s8] ss:$0 sm:$0xff] }
0x23e6   :  { %4102 = vadd.xlane.f32.xlu0 %v4101_v17 }
0x23e8   :  { %4099 = vadd.xlane.f32.xlu1 %v4098_v27 }
0x2467   :  { %v5383_v16 = vpop.xlane.xlu0 %5382 }
0x2468   :  { %v5385_v22 = vmul.f32 0.03125, %v5383_v16 }
0x2469   :  { %v5380_v23 = vpop.xlane.xlu1 %5379 }
0x246a   :  { %v13471_v5 = vsub.f32 %v5375_v1, %v5385_v22  ;;  %v5384_v6 = vmul.f32 0.03125, %v5380_v23 }
0x246b   :  { %v4097_v24 = vpop.xlane.xlu0 %4096 }
0x246c   :  { %v13473_v7 = vsub.f32 %v5374_v3, %v5384_v6  ;;  %v4105_v26 = vmul.f32 0.03125, %v4097_v24  ;;  %v5389_v31 = vmul.f32 %v13471_v5, %v13471_v5 }
0x246d   :  { %v4094_v8 = vpop.xlane.xlu1 %4093 }
0x246e   :  { %v4109_v32 = vadd.f32 1e-05, %v4105_v26  ;;  %v4104_v34 = vmul.f32 0.03125, %v4094_v8  ;;  %v5393_v38 = vsel %vm185_vm0, %v5389_v31, 0.0  ;;  %v5388_v39 = vmul.f32 %v13473_v7, %v13473_v7 }
0x246f   :  { %5394 = vadd.xlane.f32.xlu0 %v5393_v38  ;;  %v4103_v40 = vpop.xlane.xlu0 %4102  ;;  %v13587_v38 = vld [vmem:[%s13581_s17] sm:$0xff] }
0x2470   :  { %12269 = vrsqrt.f32 %v4109_v32  ;;  %v4108_v41 = vadd.f32 1e-05, %v4104_v34  ;;  %v4107_v56 = vmul.f32 0.03125, %v4103_v40  ;;  %v5390_v30 = vsel %vm185_vm0, %v5388_v39, 0.0  ;;  %v13584_v32 = vld [vmem:[%s13581_s17 + $0x8] sm:$0xff] }
0x2471   :  { %5391 = vadd.xlane.f32.xlu1 %v5390_v30  ;;  %v4100_v48 = vpop.xlane.xlu1 %4099 }
0x2472   :  { %12271 = vrsqrt.f32 %v4108_v41  ;;  %v4111_v33 = vadd.f32 1e-05, %v4107_v56  ;;  %v4106_v15 = vmul.f32 0.03125, %v4100_v48 }
0x2474   :  { %12273 = vrsqrt.f32 %v4111_v33  ;;  %v4110_v47 = vadd.f32 1e-05, %v4106_v15 }
0x2476   :  { %12275 = vrsqrt.f32 %v4110_v47 }
0x247d   :  { %v12270_v36 = vpop.eup %12269 }
0x247e   :  { %v4117_v44 = vmul.f32 %v12270_v36, %v13436_v35  ;;  %v5422_v35 = vld [vmem:[%s13487_s13 + $0x10] sm:$0xff] }
0x247f   :  { %v12272_v46 = vpop.eup %12271  ;;  %11613 = vmatprep.subr.mxu0 %v5422_v35 }
0x2480   :  { %v4116_v50 = vmul.f32 %v12272_v46, %v13439_v62  ;;  %v4127_v53 = vmul.f32 %v10382_v20, %v4117_v44  ;;  %11614 = vmatpush3.msra.mxu0 %v5422_v35  ;;  %v5420_v62 = vld [vmem:[%s13487_s13] sm:$0xff] }
0x2481   :  { %v12274_v51 = vpop.eup %12273  ;;  %11615 = vmatprep.subr.mxu0 %v5421_v19 }
0x2482   :  { %v4126_v28 = vmul.f32 %v10382_v20, %v4116_v50  ;;  %v4119_v14 = vmul.f32 %v12274_v51, %v13442_v52  ;;  %v13494_v57 = vadd.f32 %v10383_v54, %v4127_v53  ;;  %11616 = vmatpush3.msra.mxu0 %v5421_v19 }
0x2483   :  { %v12276_v29 = vpop.eup %12275  ;;  %11617 = vmatprep.subr.mxu0 %v5420_v62 }
0x2484   :  { %v13491_v25 = vadd.f32 %v10383_v54, %v4126_v28  ;;  %v4118_v55 = vmul.f32 %v12276_v29, %v13449_v49  ;;  %v4129_v58 = vmul.f32 %v10382_v20, %v4119_v14  ;;  %11618 = vmatpush3.msra.mxu0 %v5420_v62  ;;  %v10420_v49 = vld [vmem:[%s13515_s11] ss:$0 sm:$0xff] }
0x2486   :  { %11630 = vmatprep.mubr.msk.f32.mxu1 %vm185_vm0, %v13491_v25  ;;  %v4128_v59 = vmul.f32 %v10382_v20, %v4118_v55  ;;  %v13505_v61 = vadd.f32 %v10383_v54, %v4129_v58 }
0x2487   :  { %11631 = vmatmul.mubr.msk.f32.vlgmr.msra.gmra.mxu1 %vm185_vm0, %v13494_v57 }
0x2488   :  { %v13502_v60 = vadd.f32 %v10383_v54, %v4128_v59 }
0x248a   :  { %11633 = vmatprep.mubr.msk.f32.mxu1 %vm185_vm0, %v13502_v60 }
0x248b   :  { %11634 = vmatmul.mubr.msk.f32.gmra.mxu1 %vm185_vm0, %v13505_v61 }
0x24f8   :  { %v5395_v0 = vpop.xlane.xlu0 %5394 }
0x24f9   :  { %v5397_v45 = vmul.f32 0.03125, %v5395_v0 }
0x24fa   :  { %v5392_v1 = vpop.xlane.xlu1 %5391 }
0x24fb   :  { %v5399_v52 = vadd.f32 1e-05, %v5397_v45  ;;  %v5396_v2 = vmul.f32 0.03125, %v5392_v1 }
0x24fd   :  { %12277 = vrsqrt.f32 %v5399_v52  ;;  %v5398_v3 = vadd.f32 1e-05, %v5396_v2  ;;  %v5620_v2 = vld [vmem:[%s13630_s19] sm:$0xff] }
0x24ff   :  { %12279 = vrsqrt.f32 %v5398_v3 }
0x250a   :  { %v12278_v10 = vpop.eup %12277 }
0x250b   :  { %v5403_v4 = vmul.f32 %v12278_v10, %v13471_v5 }
0x250c   :  { %v12280_v13 = vpop.eup %12279 }
0x250d   :  { %v5402_v43 = vmul.f32 %v12280_v13, %v13473_v7  ;;  %v5411_v63 = vmul.f32 %v10420_v49, %v5403_v4  ;;  %v10422_v7 = vld [vmem:[%s13567_s3] ss:$0 sm:$0xff] }
0x250f   :  { %v5410_v11 = vmul.f32 %v10420_v49, %v5402_v43  ;;  %v13528_v27 = vadd.f32 %v10421_v12, %v5411_v63 }
0x2511   :  { %v13526_v17 = vadd.f32 %v10421_v12, %v5410_v11 }
0x2513   :  { %11619 = vmatprep.mubr.msk.f32.mxu0 %vm185_vm0, %v13526_v17 }
0x2514   :  { %11620 = vmatmul.mubr.msk.f32.vlgmr.msra.gmra.mxu0 %vm185_vm0, %v13528_v27 }
0x2547   :  { %v11632_v18 = vpop.f32.mrf.mxu1 }
0x2548   :  { %v13550_v5 = vadd.f32 %v11632_v18, %v10425_v42 }
0x2549   :  { %v5601_v9 = vpop.f32.mrf.mxu1 }
0x254a   :  { %v13556_v6 = vadd.f32 %v10425_v42, %v5601_v9 }
0x254b   :  { %v11635_v21 = vpop.f32.mrf.mxu1 }
0x254c   :  { %v13540_v16 = vadd.f32 %v11635_v21, %v10425_v42 }
0x254d   :  { %v5611_v22 = vpop.f32.mrf.mxu1 }
0x254e   :  { %v13542_v23 = vadd.f32 %v10425_v42, %v5611_v22  ;;  %11636 = vmatprep.subr.msk.mxu0 %vm299_vm1, %v13540_v16 }
0x254f   :  { %11637 = vmatpush3.xpose.msk.msra.mxu0 %vm299_vm1, %v13540_v16 }
0x2550   :  { %11638 = vmatprep.subr.msk.mxu0 %vm299_vm1, %v13542_v23 }
0x2553   :  { %11639 = vmatpush3.xpose.msk.msra.mxu0 %vm299_vm1, %v13542_v23 }
0x2554   :  { %11640 = vmatprep.subr.msk.mxu0 %vm299_vm1, %v13550_v5 }
0x2557   :  { %11641 = vmatpush3.xpose.msk.msra.mxu0 %vm299_vm1, %v13550_v5 }
0x2558   :  { %11642 = vmatprep.subr.msk.mxu0 %vm299_vm1, %v13556_v6 }
0x255b   :  { %11643 = vmatpush3.xpose.msk.msra.mxu0 %vm299_vm1, %v13556_v6 }
0x25d4   :  { %v11621_v24 = vpop.f32.mrf.mxu0 }
0x25d5   :  { %v13572_v8 = vadd.f32 %v11621_v24, %v10422_v7 }
0x25d6   :  { %v5503_v26 = vpop.f32.mrf.mxu0 }
0x25d7   :  { %v13570_v31 = vadd.f32 %v10422_v7, %v5503_v26 }
0x25d9   :  { %11644 = vmatprep.mubr.msk.f32.mxu0 %vm299_vm1, %v13570_v31 }
0x25da   :  { %11645 = vmatmul.mubr.msk.f32.vlgmr.msra.gmra.mxu0 %vm299_vm1, %v13572_v8 }
0x269a   :  { %v11646_v34 = vpop.f32.mrf.mxu0 }
0x269b   :  { %v5714_v39 = vadd.f32 %v11646_v34, %v13584_v32 }
0x269c   :  { %v5708_v40 = vpop.f32.mrf.mxu0 }
0x269d   :  { %v5709_v41 = vadd.f32 %v5708_v40, %v13587_v38  ;;  %v5720_v56 = vsel %vm185_vm0, %v5714_v39, -inf }
0x269e   :  { %5721 = vmax.xlane.f32.xlu0 %v5720_v56 }
0x269f   :  { %v5717_v30 = vsel %vm185_vm0, %v5709_v41, -inf }
0x26a0   :  { %5718 = vmax.xlane.f32.xlu1 %v5717_v30 }
0x26b1   :  { %5745 = vrot.lane.b32.xlu1 %v13540_v16, %s12411_s14 }
0x26b4   :  { %5743 = vrot.lane.b32.xlu0 %v13542_v23, %s12411_s14 }
0x26b5   :  { %5741 = vrot.lane.b32.xlu1 %v13550_v5, %s12411_s14 }
0x26b9   :  { %5739 = vrot.lane.b32.xlu1 %v13556_v6, %s12411_s14 }
0x2727   :  { %v5722_v48 = vpop.xlane.xlu0 %5721 }
0x2728   :  { %v5724_v33 = vsub.f32 %v5714_v39, %v5722_v48 }
0x2729   :  { %v5719_v15 = vpop.xlane.xlu1 %5718 }
0x272a   :  { %v5727_v47 = vmul.f32 1.442695, %v5724_v33  ;;  %v5723_v36 = vsub.f32 %v5709_v41, %v5719_v15  ;;  %v5621_v33 = vld [vmem:[%s13630_s19 + $0x8] sm:$0xff] }
0x272b   :  { %v5744_v46 = vpop.permute.xlu0 %5743 }
0x272c   :  { %12281 = vpow2.f32 %v5727_v47  ;;  %v5725_v20 = vmul.f32 1.442695, %v5723_v36 }
0x272d   :  { %v5746_v44 = vpop.permute.xlu1 %5745 }
0x272e   :  { %12283 = vpow2.f32 %v5725_v20  ;;  %11647 = vmatprep.subr.mxu1 %v5746_v44 }
0x272f   :  { %11648 = vmatpush3.msra.mxu1 %v5746_v44 }
0x2730   :  { %11649 = vmatprep.subr.mxu1 %v5744_v46 }
0x2731   :  { %11650 = vmatpush3.msra.mxu1 %v5744_v46  ;;  %v5742_v50 = vpop.permute.xlu1 %5741 }
0x2732   :  { %11651 = vmatprep.subr.mxu1 %v5742_v50 }
0x2733   :  { %11652 = vmatpush3.msra.mxu1 %v5742_v50 }
0x2735   :  { %v5740_v51 = vpop.permute.xlu1 %5739 }
0x2736   :  { %11653 = vmatprep.subr.mxu1 %v5740_v51 }
0x2737   :  { %11654 = vmatpush3.msra.mxu1 %v5740_v51 }
0x2739   :  { %v12282_v53 = vpop.eup %12281 }
0x273a   :  { %v5732_v54 = vsel %vm185_vm0, %v12282_v53, 0.0 }
0x273b   :  { %v12284_v28 = vpop.eup %12283  ;;  %5733 = vadd.xlane.f32.xlu0 %v5732_v54 }
0x273c   :  { %v5729_v14 = vsel %vm185_vm0, %v12284_v28, 0.0 }
0x273d   :  { %5730 = vadd.xlane.f32.xlu1 %v5729_v14 }
0x274e   :  { %5840 = vrot.lane.b32.xlu1 %v13542_v23, %s14246_s21 }
0x2751   :  { %5842 = vrot.lane.b32.xlu0 %v13540_v16, %s14246_s21 }
0x2752   :  { %5836 = vrot.lane.b32.xlu1 %v13556_v6, %s14246_s21 }
0x2755   :  { %5838 = vrot.lane.b32.xlu0 %v13550_v5, %s14246_s21 }
0x2756   :  { %5834 = vrot.lane.b32.xlu1 %v13572_v8, %s14246_s21 }
0x2759   :  { %5832 = vrot.lane.b32.xlu0 %v13570_v31, %s14246_s21 }
0x27c4   :  { %v5734_v29 = vpop.xlane.xlu0 %5733 }
0x27c5   :  { %12285 = vrcp.f32 %v5734_v29 }
0x27c6   :  { %v5731_v55 = vpop.xlane.xlu1 %5730 }
0x27c7   :  { %12287 = vrcp.f32 %v5731_v55 }
0x27c8   :  { %v5843_v58 = vpop.permute.xlu0 %5842 }
0x27c9   :  { %11658 = vmatprep.subr.msk.mxu1 %vm299_vm1, %v5843_v58 }
0x27ca   :  { %v5841_v45 = vpop.permute.xlu1 %5840 }
0x27cc   :  { %v5839_v59 = vpop.permute.xlu0 %5838 }
0x27ce   :  { %v5837_v1 = vpop.permute.xlu1 %5836 }
0x27d0   :  { %v5833_v0 = vpop.permute.xlu0 %5832 }
0x27d2   :  { %v12286_v37 = vpop.eup %12285  ;;  %v5835_v52 = vpop.permute.xlu1 %5834 }
0x27d3   :  { %v5738_v62 = vmul.f32 %v12286_v37, %v12282_v53 }
0x27d4   :  { %v12288_v35 = vpop.eup %12287 }
0x27d5   :  { %v5737_v19 = vmul.f32 %v12288_v35, %v12284_v28 }
0x27d7   :  { %11655 = vmatprep.mubr.msk.f32.mxu1 %vm185_vm0, %v5737_v19 }
0x27d8   :  { %11656 = vmatmul.mubr.msk.f32.vlgmr.msra.gmra.mxu1 %vm185_vm0, %v5738_v62 }
0x27d9   :  { %11659 = vmatpush3.xpose.msk.msra.mxu1 %vm299_vm1, %v5843_v58  ;;  %11666 = vmatprep.mubr.msk.f32.mxu1 %vm299_vm1, %v5833_v0 }
0x27da   :  { %11660 = vmatprep.subr.msk.mxu1 %vm299_vm1, %v5841_v45 }
0x27dd   :  { %11661 = vmatpush3.xpose.msk.msra.mxu1 %vm299_vm1, %v5841_v45 }
0x27de   :  { %11662 = vmatprep.subr.msk.mxu1 %vm299_vm1, %v5839_v59 }
0x27e1   :  { %11663 = vmatpush3.xpose.msk.msra.mxu1 %vm299_vm1, %v5839_v59 }
0x27e2   :  { %11664 = vmatprep.subr.msk.mxu1 %vm299_vm1, %v5837_v1 }
0x27e5   :  { %11665 = vmatpush3.xpose.msk.msra.mxu1 %vm299_vm1, %v5837_v1 }
0x27e6   :  { %11685 = vmatprep.subr.mxu1 %v5620_v2 }
0x27e8   :  { %11667 = vmatmul.mubr.msk.f32.vlgmr.msra.gmra.mxu1 %vm299_vm1, %v5835_v52 }
0x27e9   :  { %11686 = vmatpush3.msra.mxu1 %v5620_v2 }
0x2898   :  { %v11657_v3 = vpop.f32.mrf.mxu1 }
0x289a   :  { %v5823_v10 = vpop.f32.mrf.mxu1 }
0x289b   :  { %11687 = vmatprep.mubr.msk.f32.mxu1 %vm299_vm1, %v5823_v10 }
0x289c   :  { %11688 = vmatmul.mubr.msk.f32.vlgmr.msra.gmra.mxu1 %vm299_vm1, %v11657_v3 }
0x28a8   :  { %v11668_v49 = vpop.f32.mrf.mxu1 }
0x28a9   :  { %v5928_v4 = vadd.f32 %v11668_v49, %v13584_v32 }
0x28aa   :  { %v5922_v13 = vpop.f32.mrf.mxu1 }
0x28ab   :  { %v5923_v43 = vadd.f32 %v5922_v13, %v13587_v38  ;;  %v5934_v63 = vsel %vm185_vm0, %v5928_v4, -inf }
0x28ac   :  { %5935 = vmax.xlane.f32.xlu1 %v5934_v63 }
0x28ad   :  { %v5931_v12 = vsel %vm185_vm0, %v5923_v43, -inf }
0x28ae   :  { %5932 = vmax.xlane.f32.xlu0 %v5931_v12 }
0x28bd   :  { %5959 = vrot.lane.b32.xlu1 %v13540_v16, %s12414_s20 }
0x28c1   :  { %5955 = vrot.lane.b32.xlu1 %v13550_v5, %s12414_s20 }
0x28c5   :  { %5953 = vrot.lane.b32.xlu1 %v13556_v6, %s12414_s20 }
0x28c9   :  { %6216 = vrot.lane.b32.xlu1 %v13542_v23, %s14240_s28 }
0x28cd   :  { %6212 = vrot.lane.b32.xlu1 %v13556_v6, %s14240_s28 }
0x28d1   :  { %6210 = vrot.lane.b32.xlu1 %v13572_v8, %s14240_s28 }
0x2935   :  { %v5936_v11 = vpop.xlane.xlu1 %5935 }
0x2936   :  { %v5938_v18 = vsub.f32 %v5928_v4, %v5936_v11 }
0x2937   :  { %v5933_v9 = vpop.xlane.xlu0 %5932 }
0x2938   :  { %v5941_v42 = vmul.f32 1.442695, %v5938_v18  ;;  %v5937_v21 = vsub.f32 %v5923_v43, %v5933_v9  ;;  %v5622_v9 = vld [vmem:[%s13630_s19 + $0x10] sm:$0xff] }
0x2939   :  { %v5960_v22 = vpop.permute.xlu1 %5959 }
0x293a   :  { %12289 = vpow2.f32 %v5941_v42  ;;  %v5939_v24 = vmul.f32 1.442695, %v5937_v21  ;;  %11669 = vmatprep.subr.mxu0 %v5960_v22 }
0x293b   :  { %11670 = vmatpush3.msra.mxu0 %v5960_v22 }
0x293c   :  { %12291 = vpow2.f32 %v5939_v24 }
0x293d   :  { %v5956_v56 = vpop.permute.xlu1 %5955 }
0x2941   :  { %v5954_v48 = vpop.permute.xlu1 %5953 }
0x2945   :  { %v6217_v54 = vpop.permute.xlu1 %6216 }
0x2947   :  { %v12290_v7 = vpop.eup %12289 }
0x2948   :  { %v5946_v26 = vsel %vm185_vm0, %v12290_v7, 0.0 }
0x2949   :  { %v12292_v34 = vpop.eup %12291  ;;  %5947 = vadd.xlane.f32.xlu0 %v5946_v26  ;;  %v6213_v28 = vpop.permute.xlu1 %6212 }
0x294a   :  { %v5943_v39 = vsel %vm185_vm0, %v12292_v34, 0.0 }
0x294d   :  { %5944 = vadd.xlane.f32.xlu0 %v5943_v39  ;;  %v6211_v14 = vpop.permute.xlu1 %6210 }
0x2963   :  { %5957 = vrot.lane.b32.xlu0 %v13542_v23, %s12414_s20 }
0x2967   :  { %6218 = vrot.lane.b32.xlu0 %v13540_v16, %s14240_s28 }
0x296b   :  { %6214 = vrot.lane.b32.xlu0 %v13550_v5, %s14240_s28 }
0x296f   :  { %6208 = vrot.lane.b32.xlu0 %v13570_v31, %s14240_s28  ;;  %s13783_s28 = sld [smem:[%s14231_s0 + %s12451_s1]]  }
0x29d2   :  { %v5948_v40 = vpop.xlane.xlu0 %5947 }
0x29d3   :  { %12293 = vrcp.f32 %v5948_v40 }
0x29d6   :  { %v5945_v41 = vpop.xlane.xlu0 %5944 }
0x29d7   :  { %12295 = vrcp.f32 %v5945_v41 }
0x29da   :  { %v5958_v30 = vpop.permute.xlu0 %5957 }
0x29db   :  { %11671 = vmatprep.subr.mxu0 %v5958_v30 }
0x29dc   :  { %11672 = vmatpush3.msra.mxu0 %v5958_v30 }
0x29dd   :  { %11673 = vmatprep.subr.mxu0 %v5956_v56 }
0x29de   :  { %11674 = vmatpush3.msra.mxu0 %v5956_v56  ;;  %v6219_v44 = vpop.permute.xlu0 %6218 }
0x29df   :  { %11675 = vmatprep.subr.mxu0 %v5954_v48 }
0x29e0   :  { %11676 = vmatpush3.msra.mxu0 %v5954_v48  ;;  %v12294_v15 = vpop.eup %12293 }
0x29e1   :  { %11680 = vmatprep.subr.mxu0 %v5621_v33  ;;  %v5952_v20 = vmul.f32 %v12294_v15, %v12290_v7  ;;  %v11689_v7 = vpop.f32.mrf.mxu1 }
0x29e2   :  { %v6215_v46 = vpop.permute.xlu0 %6214 }
0x29e3   :  { %v6199_v26 = vpop.f32.mrf.mxu1 }
0x29e4   :  { %v12296_v47 = vpop.eup %12295 }
0x29e5   :  { %v5951_v36 = vmul.f32 %v12296_v47, %v12292_v34 }
0x29e6   :  { %v6209_v53 = vpop.permute.xlu0 %6208 }
0x29e7   :  { %11677 = vmatprep.mubr.msk.f32.mxu0 %vm185_vm0, %v5951_v36 }
0x29e8   :  { %11678 = vmatmul.mubr.msk.f32.vlgmr.msra.gmra.mxu0 %vm185_vm0, %v5952_v20 }
0x29e9   :  { %11681 = vmatpush3.msra.mxu0 %v5621_v33 }
0x29ea   :  { %11690 = vmatprep.subr.msk.mxu0 %vm299_vm1, %v6219_v44 }
0x2aa8   :  { %v11679_v50 = vpop.f32.mrf.mxu0 }
0x2aaa   :  { %v6037_v51 = vpop.f32.mrf.mxu0 }
0x2aab   :  { %11682 = vmatprep.mubr.msk.f32.mxu0 %vm299_vm1, %v6037_v51 }
0x2aac   :  { %11683 = vmatmul.mubr.msk.f32.vlgmr.msra.gmra.mxu0 %vm299_vm1, %v11679_v50 }
0x2aad   :  { %11691 = vmatpush3.xpose.msk.msra.mxu0 %vm299_vm1, %v6219_v44  ;;  %11698 = vmatprep.mubr.msk.f32.mxu0 %vm299_vm1, %v6209_v53 }
0x2aae   :  { %11692 = vmatprep.subr.msk.mxu0 %vm299_vm1, %v6217_v54 }
0x2ab1   :  { %11693 = vmatpush3.xpose.msk.msra.mxu0 %vm299_vm1, %v6217_v54 }
0x2ab2   :  { %11694 = vmatprep.subr.msk.mxu0 %vm299_vm1, %v6215_v46 }
0x2ab5   :  { %11695 = vmatpush3.xpose.msk.msra.mxu0 %vm299_vm1, %v6215_v46 }
0x2ab6   :  { %11696 = vmatprep.subr.msk.mxu0 %vm299_vm1, %v6213_v28 }
0x2ab9   :  { %11697 = vmatpush3.xpose.msk.msra.mxu0 %vm299_vm1, %v6213_v28 }
0x2abc   :  { %11699 = vmatmul.mubr.msk.f32.vlgmr.msra.gmra.mxu0 %vm299_vm1, %v6211_v14 }
0x2b6c   :  { %v13676_v29 = vpop.f32.mrf.mxu0 }
0x2b6d   :  { %v6205_v33 = vadd.f32 %v11689_v7, %v13676_v29 }
0x2b6e   :  { %v13678_v55 = vpop.f32.mrf.mxu0 }
0x2b6f   :  { %v6200_v47 = vadd.f32 %v6199_v26, %v13678_v55 }
0x2b7c   :  { %v11700_v58 = vpop.f32.mrf.mxu0 }
0x2b7d   :  { %v6304_v59 = vadd.f32 %v11700_v58, %v13584_v32 }
0x2b7e   :  { %v6298_v37 = vpop.f32.mrf.mxu0 }
0x2b7f   :  { %v6299_v35 = vadd.f32 %v6298_v37, %v13587_v38  ;;  %v6310_v19 = vsel %vm185_vm0, %v6304_v59, -inf }
0x2b80   :  { %6311 = vmax.xlane.f32.xlu1 %v6310_v19 }
0x2b81   :  { %v6307_v62 = vsel %vm185_vm0, %v6299_v35, -inf }
0x2b82   :  { %6308 = vmax.xlane.f32.xlu0 %v6307_v62 }
0x2b91   :  { %6335 = vrot.lane.b32.xlu1 %v13540_v16, %s14242_s27 }
0x2b95   :  { %6331 = vrot.lane.b32.xlu1 %v13550_v5, %s14242_s27 }
0x2b99   :  { %6329 = vrot.lane.b32.xlu1 %v13556_v6, %s14242_s27 }
0x2b9d   :  { %6513 = vrot.lane.b32.xlu1 %v13542_v23, %s14236_s30 }
0x2ba1   :  { %6509 = vrot.lane.b32.xlu1 %v13556_v6, %s14236_s30 }
0x2ba5   :  { %6507 = vrot.lane.b32.xlu1 %v13572_v8, %s14236_s30 }
0x2c09   :  { %v6312_v0 = vpop.xlane.xlu1 %6311 }
0x2c0a   :  { %v6314_v45 = vsub.f32 %v6304_v59, %v6312_v0 }
0x2c0b   :  { %v6309_v1 = vpop.xlane.xlu0 %6308 }
0x2c0c   :  { %v6317_v52 = vmul.f32 1.442695, %v6314_v45  ;;  %v6313_v2 = vsub.f32 %v6299_v35, %v6309_v1 }
0x2c0d   :  { %v6336_v3 = vpop.permute.xlu1 %6335 }
0x2c0e   :  { %12297 = vpow2.f32 %v6317_v52  ;;  %v6315_v10 = vmul.f32 1.442695, %v6313_v2  ;;  %11701 = vmatprep.subr.mxu1 %v6336_v3 }
0x2c0f   :  { %11702 = vmatpush3.msra.mxu1 %v6336_v3 }
0x2c10   :  { %12299 = vpow2.f32 %v6315_v10 }
0x2c11   :  { %v6332_v12 = vpop.permute.xlu1 %6331 }
0x2c15   :  { %v6330_v18 = vpop.permute.xlu1 %6329 }
0x2c19   :  { %v6514_v56 = vpop.permute.xlu1 %6513 }
0x2c1b   :  { %v12298_v49 = vpop.eup %12297 }
0x2c1c   :  { %v6322_v4 = vsel %vm185_vm0, %v12298_v49, 0.0 }
0x2c1d   :  { %v12300_v13 = vpop.eup %12299  ;;  %6323 = vadd.xlane.f32.xlu0 %v6322_v4  ;;  %v6510_v30 = vpop.permute.xlu1 %6509 }
0x2c1e   :  { %v6319_v43 = vsel %vm185_vm0, %v12300_v13, 0.0 }
0x2c21   :  { %6320 = vadd.xlane.f32.xlu0 %v6319_v43  ;;  %v6508_v48 = vpop.permute.xlu1 %6507 }
0x2c37   :  { %6333 = vrot.lane.b32.xlu0 %v13542_v23, %s14242_s27  ;;  %s12454_s27 = smov 35  }
0x2c38   :  { %s13818_s1 = sld [smem:[%s14231_s0 + %s12454_s27]]   ;;  %s14251_s27 = smov 112  }
0x2c3b   :  { %6515 = vrot.lane.b32.xlu0 %v13540_v16, %s14236_s30 }
0x2c3f   :  { %6511 = vrot.lane.b32.xlu0 %v13550_v5, %s14236_s30 }
0x2c43   :  { %6505 = vrot.lane.b32.xlu0 %v13570_v31, %s14236_s30  ;;  %s14253_s30 = smov 104  }
0x2ca6   :  { %v6324_v8 = vpop.xlane.xlu0 %6323 }
0x2ca7   :  { %12301 = vrcp.f32 %v6324_v8 }
0x2caa   :  { %v6321_v63 = vpop.xlane.xlu0 %6320 }
0x2cab   :  { %12303 = vrcp.f32 %v6321_v63 }
0x2cae   :  { %v6334_v11 = vpop.permute.xlu0 %6333 }
0x2caf   :  { %11703 = vmatprep.subr.mxu1 %v6334_v11 }
0x2cb0   :  { %11704 = vmatpush3.msra.mxu1 %v6334_v11 }
0x2cb1   :  { %11705 = vmatprep.subr.mxu1 %v6332_v12 }
0x2cb2   :  { %11706 = vmatpush3.msra.mxu1 %v6332_v12  ;;  %v6516_v31 = vpop.permute.xlu0 %6515 }
0x2cb3   :  { %11707 = vmatprep.subr.mxu1 %v6330_v18 }
0x2cb4   :  { %11708 = vmatpush3.msra.mxu1 %v6330_v18  ;;  %v12302_v42 = vpop.eup %12301 }
0x2cb5   :  { %11712 = vmatprep.subr.mxu1 %v5622_v9  ;;  %v6328_v24 = vmul.f32 %v12302_v42, %v12298_v49 }
0x2cb6   :  { %v6512_v34 = vpop.permute.xlu0 %6511 }
0x2cb8   :  { %v12304_v21 = vpop.eup %12303 }
0x2cb9   :  { %v6327_v22 = vmul.f32 %v12304_v21, %v12300_v13  ;;  %v10470_v13 = vld [vmem:[%s13747_s16] ss:$0 sm:$0xff] }
0x2cba   :  { %v6506_v41 = vpop.permute.xlu0 %6505 }
0x2cbb   :  { %11709 = vmatprep.mubr.msk.f32.mxu1 %vm185_vm0, %v6327_v22 }
0x2cbc   :  { %11710 = vmatmul.mubr.msk.f32.vlgmr.msra.gmra.mxu1 %vm185_vm0, %v6328_v24 }
0x2cbd   :  { %11713 = vmatpush3.msra.mxu1 %v5622_v9 }
0x2cbe   :  { %11717 = vmatprep.subr.msk.mxu1 %vm299_vm1, %v6516_v31 }
0x2d7c   :  { %v11711_v39 = vpop.f32.mrf.mxu1 }
0x2d7e   :  { %v6413_v40 = vpop.f32.mrf.mxu1 }
0x2d7f   :  { %11714 = vmatprep.mubr.msk.f32.mxu1 %vm299_vm1, %v6413_v40 }
0x2d80   :  { %11715 = vmatmul.mubr.msk.f32.vlgmr.msra.gmra.mxu1 %vm299_vm1, %v11711_v39 }
0x2d81   :  { %11718 = vmatpush3.xpose.msk.msra.mxu1 %vm299_vm1, %v6516_v31  ;;  %11725 = vmatprep.mubr.msk.f32.mxu1 %vm299_vm1, %v6506_v41 }
0x2d82   :  { %11719 = vmatprep.subr.msk.mxu1 %vm299_vm1, %v6514_v56 }
0x2d85   :  { %11720 = vmatpush3.xpose.msk.msra.mxu1 %vm299_vm1, %v6514_v56  ;;  %v6859_v56 = vld [vmem:[%s13760_s5 + $0x10] sm:$0xff] }
0x2d86   :  { %11721 = vmatprep.subr.msk.mxu1 %vm299_vm1, %v6512_v34 }
0x2d89   :  { %11722 = vmatpush3.xpose.msk.msra.mxu1 %vm299_vm1, %v6512_v34 }
0x2d8a   :  { %11723 = vmatprep.subr.msk.mxu1 %vm299_vm1, %v6510_v30 }
0x2d8d   :  { %11724 = vmatpush3.xpose.msk.msra.mxu1 %vm299_vm1, %v6510_v30  ;;  %v6858_v30 = vld [vmem:[%s13760_s5 + $0x8] sm:$0xff] }
0x2d90   :  { %11726 = vmatmul.mubr.msk.f32.vlgmr.msra.gmra.mxu1 %vm299_vm1, %v6508_v48  ;;  %v6857_v48 = vld [vmem:[%s13760_s5] sm:$0xff] }
0x2e40   :  { %v11716_v15 = vpop.f32.mrf.mxu1 }
0x2e41   :  { %v6504_v36 = vadd.f32 %v11716_v15, %v6205_v33  ;;  %v6958_v33 = vld [vmem:[%s13769_s9 + $0x38] sm:$0xff]  ;;  %v6957_v15 = vld [vmem:[%s13769_s9 + $0x30] sm:$0xff] }
0x2e42   :  { %v6494_v20 = vpop.f32.mrf.mxu1  ;;  %11755 = vmatprep.subr.mxu1 %v6958_v33 }
0x2e43   :  { %v13723_v44 = vadd.f32 %v6494_v20, %v6200_v47  ;;  %11756 = vmatpush3.msra.mxu1 %v6958_v33  ;;  %v6956_v47 = vld [vmem:[%s13769_s9 + $0x28] sm:$0xff] }
0x2e44   :  { %11757 = vmatprep.subr.mxu1 %v6957_v15 }
0x2e45   :  { %11758 = vmatpush3.msra.mxu1 %v6957_v15  ;;  %v10479_v15 = vld [vmem:[%s13818_s1] ss:$0 sm:$0xff] }
0x2e46   :  { %11759 = vmatprep.subr.mxu1 %v6956_v47 }
0x2e47   :  { %11760 = vmatpush3.msra.mxu1 %v6956_v47 }
0x2e50   :  { %v11727_v46 = vpop.f32.mrf.mxu1 }
0x2e51   :  { %v6601_v50 = vadd.f32 %v11727_v46, %v13584_v32 }
0x2e52   :  { %v6595_v51 = vpop.f32.mrf.mxu1 }
0x2e53   :  { %v6596_v53 = vadd.f32 %v6595_v51, %v13587_v38  ;;  %v6607_v54 = vsel %vm185_vm0, %v6601_v50, -inf }
0x2e54   :  { %6608 = vmax.xlane.f32.xlu1 %v6607_v54 }
0x2e55   :  { %v6604_v28 = vsel %vm185_vm0, %v6596_v53, -inf }
0x2e56   :  { %6605 = vmax.xlane.f32.xlu0 %v6604_v28  ;;  %v10471_v28 = vld [vmem:[%s13778_s2] ss:$0 sm:$0xff] }
0x2e65   :  { %6632 = vrot.lane.b32.xlu1 %v13540_v16, %s14238_s29 }
0x2e69   :  { %6628 = vrot.lane.b32.xlu1 %v13550_v5, %s14238_s29 }
0x2e6d   :  { %6626 = vrot.lane.b32.xlu1 %v13556_v6, %s14238_s29 }
0x2edd   :  { %v6609_v14 = vpop.xlane.xlu1 %6608 }
0x2ede   :  { %v6611_v32 = vsub.f32 %v6601_v50, %v6609_v14 }
0x2edf   :  { %v6606_v29 = vpop.xlane.xlu0 %6605 }
0x2ee0   :  { %v6614_v55 = vmul.f32 1.442695, %v6611_v32  ;;  %v6610_v38 = vsub.f32 %v6596_v53, %v6606_v29  ;;  %v10472_v32 = vld [vmem:[%s13783_s28] ss:$0 sm:$0xff] }
0x2ee1   :  { %v6633_v58 = vpop.permute.xlu1 %6632 }
0x2ee2   :  { %12305 = vpow2.f32 %v6614_v55  ;;  %v6612_v59 = vmul.f32 1.442695, %v6610_v38  ;;  %11728 = vmatprep.subr.mxu0 %v6633_v58 }
0x2ee3   :  { %11729 = vmatpush3.msra.mxu0 %v6633_v58 }
0x2ee4   :  { %12307 = vpow2.f32 %v6612_v59 }
0x2ee5   :  { %v6629_v62 = vpop.permute.xlu1 %6628 }
0x2ee9   :  { %v6627_v45 = vpop.permute.xlu1 %6626 }
0x2eef   :  { %v12306_v37 = vpop.eup %12305 }
0x2ef0   :  { %v6619_v16 = vsel %vm185_vm0, %v12306_v37, 0.0 }
0x2ef1   :  { %v12308_v35 = vpop.eup %12307  ;;  %6620 = vadd.xlane.f32.xlu0 %v6619_v16  ;;  %v6954_v16 = vld [vmem:[%s13769_s9 + $0x18] sm:$0xff] }
0x2ef2   :  { %v6616_v5 = vsel %vm185_vm0, %v12308_v35, 0.0 }
0x2ef5   :  { %6617 = vadd.xlane.f32.xlu0 %v6616_v5  ;;  %v6952_v5 = vld [vmem:[%s13769_s9 + $0x8] sm:$0xff] }
0x2f0b   :  { %6630 = vrot.lane.b32.xlu0 %v13542_v23, %s14238_s29  ;;  %v5623_v23 = vld [vmem:[%s13630_s19 + $0x18] sm:$0xff]  ;;  %s12452_s29 = smov 32  }
0x2f0c   :  { %s13796_s10 = sld [smem:[%s14231_s0 + %s12452_s29]]   ;;  %s14252_s29 = smov 72  }
0x2f7a   :  { %v6621_v6 = vpop.xlane.xlu0 %6620 }
0x2f7b   :  { %12309 = vrcp.f32 %v6621_v6  ;;  %v6951_v6 = vld [vmem:[%s13769_s9] sm:$0xff] }
0x2f7e   :  { %v6618_v19 = vpop.xlane.xlu0 %6617 }
0x2f7f   :  { %12311 = vrcp.f32 %v6618_v19  ;;  %v10473_v19 = vld [vmem:[%s13796_s10] ss:$0 sm:$0xff] }
0x2f82   :  { %v6631_v0 = vpop.permute.xlu0 %6630 }
0x2f83   :  { %11730 = vmatprep.subr.mxu0 %v6631_v0 }
0x2f84   :  { %11731 = vmatpush3.msra.mxu0 %v6631_v0 }
0x2f85   :  { %11732 = vmatprep.subr.mxu0 %v6629_v62 }
0x2f86   :  { %11733 = vmatpush3.msra.mxu0 %v6629_v62 }
0x2f87   :  { %11734 = vmatprep.subr.mxu0 %v6627_v45 }
0x2f88   :  { %11735 = vmatpush3.msra.mxu0 %v6627_v45  ;;  %v12310_v1 = vpop.eup %12309 }
0x2f89   :  { %v6625_v3 = vmul.f32 %v12310_v1, %v12306_v37  ;;  %11739 = vmatprep.subr.mxu0 %v5623_v23 }
0x2f8c   :  { %v12312_v52 = vpop.eup %12311 }
0x2f8d   :  { %v6624_v2 = vmul.f32 %v12312_v52, %v12308_v35  ;;  %v6953_v35 = vld [vmem:[%s13769_s9 + $0x10] sm:$0xff] }
0x2f8f   :  { %11736 = vmatprep.mubr.msk.f32.mxu0 %vm185_vm0, %v6624_v2 }
0x2f90   :  { %11737 = vmatmul.mubr.msk.f32.vlgmr.msra.gmra.mxu0 %vm185_vm0, %v6625_v3  ;;  %v10476_v3 = vld [vmem:[%s13804_s26] ss:$0 sm:$0xff] }
0x2f91   :  { %11740 = vmatpush3.msra.mxu0 %v5623_v23 }
0x3050   :  { %v11738_v10 = vpop.f32.mrf.mxu0 }
0x3052   :  { %v6710_v49 = vpop.f32.mrf.mxu0 }
0x3053   :  { %11741 = vmatprep.mubr.msk.f32.mxu0 %vm299_vm1, %v6710_v49 }
0x3054   :  { %11742 = vmatmul.mubr.msk.f32.vlgmr.msra.gmra.mxu0 %vm299_vm1, %v11738_v10 }
0x3114   :  { %v11743_v4 = vpop.f32.mrf.mxu0 }
0x3115   :  { %v6801_v43 = vadd.f32 %v11743_v4, %v6504_v36  ;;  %v6955_v36 = vld [vmem:[%s13769_s9 + $0x20] sm:$0xff] }
0x3116   :  { %v6791_v8 = vpop.f32.mrf.mxu0  ;;  %11761 = vmatprep.subr.mxu1 %v6955_v36 }
0x3117   :  { %v6810_v63 = vadd.f32 %v10470_v13, %v6801_v43  ;;  %v6800_v12 = vadd.f32 %v6791_v8, %v13723_v44  ;;  %11762 = vmatpush3.msra.mxu1 %v6955_v36 }
0x3118   :  { %11763 = vmatprep.subr.mxu1 %v6954_v16 }
0x3119   :  { %v6809_v11 = vadd.f32 %v10470_v13, %v6800_v12  ;;  %v6812_v18 = vadd.f32 %v6810_v63, %v13528_v27  ;;  %11764 = vmatpush3.msra.mxu1 %v6954_v16 }
0x311a   :  { %11765 = vmatprep.subr.mxu1 %v6953_v35 }
0x311b   :  { %v6818_v9 = vsel %vm185_vm0, %v6812_v18, 0.0  ;;  %v6811_v42 = vadd.f32 %v6809_v11, %v13526_v17  ;;  %v6860_v17 = vld [vmem:[%s13760_s5 + $0x18] sm:$0xff]  ;;  %11766 = vmatpush3.msra.mxu1 %v6953_v35  ;;  %v13857_v35 = vld [vmem:[%s13301_s22] sm:$0xff] }
0x311c   :  { %6819 = vadd.xlane.f32.xlu1 %v6818_v9  ;;  %11744 = vmatprep.subr.mxu0 %v6860_v17 }
0x311d   :  { %v6815_v21 = vsel %vm185_vm0, %v6811_v42, 0.0  ;;  %11745 = vmatpush3.msra.mxu0 %v6860_v17  ;;  %11767 = vmatprep.subr.mxu1 %v6952_v5 }
0x311e   :  { %6816 = vadd.xlane.f32.xlu0 %v6815_v21  ;;  %11746 = vmatprep.subr.mxu0 %v6859_v56 }
0x311f   :  { %11747 = vmatpush3.msra.mxu0 %v6859_v56  ;;  %11768 = vmatpush3.msra.mxu1 %v6952_v5 }
0x3120   :  { %11748 = vmatprep.subr.mxu0 %v6858_v30  ;;  %11769 = vmatprep.subr.mxu1 %v6951_v6 }
0x3121   :  { %11749 = vmatpush3.msra.mxu0 %v6858_v30  ;;  %11770 = vmatpush3.msra.mxu1 %v6951_v6 }
0x3122   :  { %11750 = vmatprep.subr.mxu0 %v6857_v48 }
0x3123   :  { %11751 = vmatpush3.msra.mxu0 %v6857_v48 }
0x31a5   :  { %v6820_v22 = vpop.xlane.xlu1 %6819 }
0x31a6   :  { %v6822_v24 = vmul.f32 0.03125, %v6820_v22 }
0x31a7   :  { %v6817_v31 = vpop.xlane.xlu0 %6816 }
0x31a8   :  { %v6821_v7 = vmul.f32 0.03125, %v6817_v31  ;;  %v6824_v26 = vsub.f32 %v6812_v18, %v6822_v24 }
0x31aa   :  { %v6823_v34 = vsub.f32 %v6811_v42, %v6821_v7  ;;  %v6826_v41 = vmul.f32 %v6824_v26, %v6824_v26 }
0x31ac   :  { %v6825_v39 = vmul.f32 %v6823_v34, %v6823_v34  ;;  %v6830_v27 = vsel %vm185_vm0, %v6826_v41, 0.0 }
0x31ae   :  { %v6827_v40 = vsel %vm185_vm0, %v6825_v39, 0.0  ;;  %v10482_v39 = vld [vmem:[%s13199_s7 + $0x28] sm:$0xff] }
0x31af   :  { %6828 = vadd.xlane.f32.xlu0 %v6827_v40  ;;  %v10481_v40 = vld [vmem:[%s13199_s7 + $0x20] sm:$0xff] }
0x31b3   :  { %6831 = vadd.xlane.f32.xlu0 %v6830_v27 }
0x3238   :  { %v6829_v20 = vpop.xlane.xlu0 %6828 }
0x3239   :  { %v6833_v44 = vmul.f32 0.03125, %v6829_v20 }
0x323b   :  { %v6835_v46 = vadd.f32 1e-05, %v6833_v44 }
0x323c   :  { %v6832_v50 = vpop.xlane.xlu0 %6831 }
0x323d   :  { %12313 = vrsqrt.f32 %v6835_v46  ;;  %v6834_v51 = vmul.f32 0.03125, %v6832_v50 }
0x323f   :  { %v6836_v53 = vadd.f32 1e-05, %v6834_v51 }
0x3241   :  { %12315 = vrsqrt.f32 %v6836_v53 }
0x324a   :  { %v12314_v54 = vpop.eup %12313 }
0x324b   :  { %v6839_v14 = vmul.f32 %v12314_v54, %v6823_v34  ;;  %v10483_v34 = vld [vmem:[%s13199_s7 + $0x30] sm:$0xff]  ;;  %v10486_v54 = vld [vmem:[%s13250_s6 + $0x1] ss:$0 sm:$0xff]  ;;  %s14248_s6 = smov 120  }
0x324d   :  { %v6847_v29 = vmul.f32 %v10471_v28, %v6839_v14 }
0x324e   :  { %v12316_v55 = vpop.eup %12315 }
0x324f   :  { %v6840_v38 = vmul.f32 %v12316_v55, %v6824_v26  ;;  %v6855_v58 = vadd.f32 %v10472_v32, %v6847_v29  ;;  %v10484_v26 = vld [vmem:[%s13199_s7 + $0x38] sm:$0xff]  ;;  %s12455_s7 = smov 36  }
0x3250   :  { %11774 = vmatprep.subr.mxu0 %v10484_v26  ;;  %s13823_s21 = sld [smem:[%s14231_s0 + %s12455_s7]]   ;;  %s14254_s7 = smov 48  }
0x3251   :  { %v6848_v59 = vmul.f32 %v10471_v28, %v6840_v38  ;;  %11752 = vmatprep.mubr.msk.f32.mxu0 %vm185_vm0, %v6855_v58 }
0x3253   :  { %v6856_v37 = vadd.f32 %v10472_v32, %v6848_v59  ;;  %v13853_v59 = vld [vmem:[%s13301_s22 + $0x8] sm:$0xff]  ;;  %s14250_s22 = smov 80  }
0x3255   :  { %11753 = vmatmul.mubr.msk.f32.vlgmr.msra.gmra.mxu0 %vm185_vm0, %v6856_v37 }
0x3256   :  { %11775 = vmatpush3.msra.mxu0 %v10484_v26  ;;  %v10480_v46 = vld [vmem:[%s13823_s21] ss:$0 sm:$0xff] }
0x3257   :  { %11776 = vmatprep.subr.mxu0 %v10483_v34 }
0x3258   :  { %11777 = vmatpush3.msra.mxu0 %v10483_v34 }
0x3259   :  { %11778 = vmatprep.subr.mxu0 %v10482_v39 }
0x325a   :  { %11779 = vmatpush3.msra.mxu0 %v10482_v39 }
0x325b   :  { %11780 = vmatprep.subr.mxu0 %v10481_v40 }
0x325c   :  { %11781 = vmatpush3.msra.mxu0 %v10481_v40 }
0x3315   :  { %v11754_v62 = vpop.f32.mrf.mxu0 }
0x3316   :  { %v6946_v0 = vadd.f32 %v11754_v62, %v10473_v19 }
0x3317   :  { %v6940_v45 = vpop.f32.mrf.mxu0 }
0x3318   :  { %v6941_v1 = vadd.f32 %v10473_v19, %v6940_v45  ;;  %v6950_v2 = vmax.f32 %v6946_v0, 0.0 }
0x331a   :  { %v6949_v52 = vmax.f32 %v6941_v1, 0.0 }
0x331c   :  { %11771 = vmatprep.mubr.msk.f32.mxu1 %vm1977_vm2, %v6949_v52 }
0x331d   :  { %11772 = vmatmul.mubr.msk.f32.vlgmr.msra.gmra.mxu1 %vm1977_vm2, %v6950_v2 }
0x33dd   :  { %v11773_v23 = vpop.f32.mrf.mxu1 }
0x33de   :  { %v7044_v10 = vadd.f32 %v11773_v23, %v10476_v3 }
0x33df   :  { %v7038_v49 = vpop.f32.mrf.mxu1 }
0x33e0   :  { %v7048_v4 = vadd.f32 %v7044_v10, %v6856_v37  ;;  %v7039_v13 = vadd.f32 %v10476_v3, %v7038_v49 }
0x33e2   :  { %v7047_v43 = vadd.f32 %v7039_v13, %v6855_v58  ;;  %v7054_v8 = vsel %vm185_vm0, %v7048_v4, 0.0 }
0x33e3   :  { %7055 = vadd.xlane.f32.xlu0 %v7054_v8 }
0x33e4   :  { %v7051_v63 = vsel %vm185_vm0, %v7047_v43, 0.0 }
0x33e5   :  { %7052 = vadd.xlane.f32.xlu1 %v7051_v63 }
0x346c   :  { %v7056_v12 = vpop.xlane.xlu0 %7055 }
0x346d   :  { %v7058_v11 = vmul.f32 0.03125, %v7056_v12 }
0x346e   :  { %v7053_v18 = vpop.xlane.xlu1 %7052 }
0x346f   :  { %v7060_v9 = vsub.f32 %v7048_v4, %v7058_v11  ;;  %v7057_v42 = vmul.f32 0.03125, %v7053_v18 }
0x3471   :  { %v7059_v21 = vsub.f32 %v7047_v43, %v7057_v42  ;;  %v7062_v22 = vmul.f32 %v7060_v9, %v7060_v9 }
0x3473   :  { %v7066_v24 = vsel %vm185_vm0, %v7062_v22, 0.0  ;;  %v7061_v31 = vmul.f32 %v7059_v21, %v7059_v21 }
0x3474   :  { %7067 = vadd.xlane.f32.xlu0 %v7066_v24  ;;  %v10489_v24 = vld [vmem:[%s13330_s25 + $0x20] sm:$0xff] }
0x3475   :  { %v7063_v7 = vsel %vm185_vm0, %v7061_v31, 0.0 }
0x3476   :  { %7064 = vadd.xlane.f32.xlu1 %v7063_v7 }
0x34fd   :  { %v7068_v41 = vpop.xlane.xlu0 %7067 }
0x34fe   :  { %v7070_v27 = vmul.f32 0.03125, %v7068_v41 }
0x34ff   :  { %v7065_v17 = vpop.xlane.xlu1 %7064 }
0x3500   :  { %v7072_v56 = vadd.f32 1e-05, %v7070_v27  ;;  %v7069_v30 = vmul.f32 0.03125, %v7065_v17 }
0x3502   :  { %12317 = vrsqrt.f32 %v7072_v56  ;;  %v7071_v48 = vadd.f32 1e-05, %v7069_v30 }
0x3504   :  { %12319 = vrsqrt.f32 %v7071_v48 }
0x350f   :  { %v12318_v33 = vpop.eup %12317 }
0x3510   :  { %v7076_v47 = vmul.f32 %v12318_v33, %v7060_v9 }
0x3511   :  { %v12320_v36 = vpop.eup %12319 }
0x3512   :  { %v7075_v20 = vmul.f32 %v12320_v36, %v7059_v21  ;;  %v7084_v44 = vmul.f32 %v10479_v15, %v7076_v47 }
0x3514   :  { %v7083_v50 = vmul.f32 %v10479_v15, %v7075_v20  ;;  %v13829_v53 = vadd.f32 %v10480_v46, %v7084_v44 }
0x3516   :  { %v13827_v51 = vadd.f32 %v10480_v46, %v7083_v50 }
0x3518   :  { %11782 = vmatprep.mubr.msk.f32.mxu0 %vm185_vm0, %v13827_v51 }
0x3519   :  { %11783 = vmatmul.mubr.msk.f32.vlgmr.msra.gmra.mxu0 %vm185_vm0, %v13829_v53 }
0x35d9   :  { %v11784_v28 = vpop.f32.mrf.mxu0 }
0x35da   :  { %v13836_v14 = vadd.f32 %v11784_v28, %v10486_v54 }
0x35db   :  { %v7178_v32 = vpop.f32.mrf.mxu0 }
0x35dc   :  { %v13838_v29 = vadd.f32 %v10486_v54, %v7178_v32  ;;  %7196 = vrot.lane.b32.xlu1 %v13836_v14, %s12411_s14  ;;  %v10490_v32 = vld [vmem:[%s13330_s25 + $0x28] sm:$0xff] }
0x35de   :  { %7194 = vrot.lane.b32.xlu0 %v13838_v29, %s12411_s14  ;;  %11789 = vmatprep.mubr.msk.f32.mxu0 %vm299_vm1, %v13838_v29 }
0x364e   :  { %v7197_v55 = vpop.permute.xlu1 %7196 }
0x364f   :  { %11785 = vmatprep.subr.msk.mxu0 %vm299_vm1, %v7197_v55 }
0x3650   :  { %11786 = vmatpush3.xpose.msk.msra.mxu0 %vm299_vm1, %v7197_v55  ;;  %v7195_v38 = vpop.permute.xlu0 %7194 }
0x3651   :  { %11787 = vmatprep.subr.msk.mxu0 %vm299_vm1, %v7195_v38 }
0x3654   :  { %11788 = vmatpush3.xpose.msk.msra.mxu0 %vm299_vm1, %v7195_v38 }
0x3657   :  { %11790 = vmatmul.mubr.msk.f32.vlgmr.msra.gmra.mxu0 %vm299_vm1, %v13836_v14 }
0x3717   :  { %v11791_v58 = vpop.f32.mrf.mxu0 }
0x3718   :  { %v7278_v37 = vadd.f32 %v13853_v59, %v11791_v58 }
0x3719   :  { %v7272_v16 = vpop.f32.mrf.mxu0 }
0x371a   :  { %v7273_v5 = vadd.f32 %v13857_v35, %v7272_v16  ;;  %v7284_v6 = vsel %vm4327_vm3, %v7278_v37, -inf }
0x371b   :  { %7285 = vmax.xlane.f32.xlu0 %v7284_v6 }
0x371c   :  { %v7281_v19 = vsel %vm4327_vm3, %v7273_v5, -inf }
0x371d   :  { %7282 = vmax.xlane.f32.xlu1 %v7281_v19 }
0x372e   :  { %7305 = vrot.lane.b32.xlu1 %v13836_v14, %s12412_s15 }
0x3732   :  { %7396 = vrot.lane.b32.xlu1 %v13836_v14, %s12414_s20 }
0x3736   :  { %7394 = vrot.lane.b32.xlu1 %v13838_v29, %s12414_s20 }
0x37a4   :  { %v7286_v62 = vpop.xlane.xlu0 %7285 }
0x37a5   :  { %v7288_v0 = vsub.f32 %v7278_v37, %v7286_v62 }
0x37a6   :  { %v7283_v45 = vpop.xlane.xlu1 %7282 }
0x37a7   :  { %v7291_v1 = vmul.f32 1.442695, %v7288_v0  ;;  %v7287_v52 = vsub.f32 %v7273_v5, %v7283_v45 }
0x37a9   :  { %12321 = vpow2.f32 %v7291_v1  ;;  %v7289_v2 = vmul.f32 1.442695, %v7287_v52 }
0x37aa   :  { %v7306_v3 = vpop.permute.xlu1 %7305 }
0x37ab   :  { %12323 = vpow2.f32 %v7289_v2  ;;  %11792 = vmatprep.subr.mxu1 %v7306_v3 }
0x37ac   :  { %11793 = vmatpush3.msra.mxu1 %v7306_v3 }
0x37ae   :  { %v7397_v13 = vpop.permute.xlu1 %7396 }
0x37b2   :  { %v7395_v43 = vpop.permute.xlu1 %7394 }
0x37b6   :  { %v12322_v23 = vpop.eup %12321 }
0x37b7   :  { %v7296_v10 = vsel %vm4327_vm3, %v12322_v23, 0.0 }
0x37b8   :  { %v12324_v49 = vpop.eup %12323  ;;  %7297 = vadd.xlane.f32.xlu0 %v7296_v10 }
0x37b9   :  { %v7293_v4 = vsel %vm4327_vm3, %v12324_v49, 0.0 }
0x37ba   :  { %7294 = vadd.xlane.f32.xlu1 %v7293_v4 }
0x37cb   :  { %7392 = vrot.lane.b32.xlu1 %v13836_v14, %s14248_s6 }
0x37ce   :  { %7303 = vrot.lane.b32.xlu0 %v13838_v29, %s12412_s15  ;;  %s14249_s15 = smov 56  }
0x37d2   :  { %7390 = vrot.lane.b32.xlu0 %v13838_v29, %s14248_s6 }
0x3841   :  { %v7298_v8 = vpop.xlane.xlu0 %7297 }
0x3842   :  { %12325 = vrcp.f32 %v7298_v8 }
0x3843   :  { %v7295_v63 = vpop.xlane.xlu1 %7294 }
0x3844   :  { %12327 = vrcp.f32 %v7295_v63 }
0x3845   :  { %v7304_v12 = vpop.permute.xlu0 %7303 }
0x3846   :  { %11794 = vmatprep.subr.mxu1 %v7304_v12 }
0x3847   :  { %11795 = vmatpush3.msra.mxu1 %v7304_v12  ;;  %v7393_v22 = vpop.permute.xlu1 %7392 }
0x3848   :  { %11799 = vmatprep.subr.msk.mxu1 %vm299_vm1, %v7397_v13 }
0x3849   :  { %v7391_v21 = vpop.permute.xlu0 %7390 }
0x384f   :  { %v12326_v11 = vpop.eup %12325 }
0x3850   :  { %v7302_v42 = vmul.f32 %v12326_v11, %v12322_v23 }
0x3851   :  { %v12328_v18 = vpop.eup %12327 }
0x3852   :  { %v7301_v9 = vmul.f32 %v12328_v18, %v12324_v49 }
0x3854   :  { %11796 = vmatprep.mubr.msk.f32.mxu1 %vm4327_vm3, %v7301_v9 }
0x3855   :  { %11797 = vmatmul.mubr.msk.f32.vlgmr.msra.gmra.mxu1 %vm4327_vm3, %v7302_v42 }
0x3856   :  { %11800 = vmatpush3.xpose.msk.msra.mxu1 %vm299_vm1, %v7397_v13  ;;  %11803 = vmatprep.mubr.msk.f32.mxu1 %vm299_vm1, %v7391_v21 }
0x3857   :  { %11801 = vmatprep.subr.msk.mxu1 %vm299_vm1, %v7395_v43 }
0x385a   :  { %11802 = vmatpush3.xpose.msk.msra.mxu1 %vm299_vm1, %v7395_v43 }
0x385b   :  { %11818 = vmatprep.subr.mxu1 %v10489_v24 }
0x385d   :  { %11804 = vmatmul.mubr.msk.f32.vlgmr.msra.gmra.mxu1 %vm299_vm1, %v7393_v22 }
0x385e   :  { %11819 = vmatpush3.msra.mxu1 %v10489_v24 }
0x3915   :  { %v11798_v31 = vpop.f32.mrf.mxu1 }
0x3917   :  { %v7381_v7 = vpop.f32.mrf.mxu1 }
0x3918   :  { %11820 = vmatprep.mubr.msk.f32.mxu1 %vm299_vm1, %v7381_v7 }
0x3919   :  { %11821 = vmatmul.mubr.msk.f32.vlgmr.msra.gmra.mxu1 %vm299_vm1, %v11798_v31 }
0x391d   :  { %v11805_v26 = vpop.f32.mrf.mxu1 }
0x391e   :  { %v7478_v34 = vadd.f32 %v13853_v59, %v11805_v26 }
0x391f   :  { %v7472_v39 = vpop.f32.mrf.mxu1 }
0x3920   :  { %v7473_v40 = vadd.f32 %v13857_v35, %v7472_v39  ;;  %v7484_v41 = vsel %vm4327_vm3, %v7478_v34, -inf }
0x3921   :  { %7485 = vmax.xlane.f32.xlu1 %v7484_v41 }
0x3922   :  { %v7481_v27 = vsel %vm4327_vm3, %v7473_v40, -inf }
0x3923   :  { %7482 = vmax.xlane.f32.xlu0 %v7481_v27 }
0x3932   :  { %7505 = vrot.lane.b32.xlu1 %v13836_v14, %s14249_s15 }
0x3936   :  { %7758 = vrot.lane.b32.xlu1 %v13836_v14, %s14250_s22 }
0x393a   :  { %7756 = vrot.lane.b32.xlu1 %v13838_v29, %s14250_s22 }
0x393e   :  { %7754 = vrot.lane.b32.xlu1 %v13836_v14, %s14251_s27 }
0x3942   :  { %8039 = vrot.lane.b32.xlu1 %v13838_v29, %s14252_s29 }
0x3946   :  { %8037 = vrot.lane.b32.xlu1 %v13836_v14, %s14253_s30 }
0x39aa   :  { %v7486_v17 = vpop.xlane.xlu1 %7485 }
0x39ab   :  { %v7488_v56 = vsub.f32 %v7478_v34, %v7486_v17 }
0x39ac   :  { %v7483_v30 = vpop.xlane.xlu0 %7482 }
0x39ad   :  { %v7491_v48 = vmul.f32 1.442695, %v7488_v56  ;;  %v7487_v33 = vsub.f32 %v7473_v40, %v7483_v30 }
0x39ae   :  { %v7506_v15 = vpop.permute.xlu1 %7505 }
0x39af   :  { %12329 = vpow2.f32 %v7491_v48  ;;  %v7489_v47 = vmul.f32 1.442695, %v7487_v33  ;;  %11806 = vmatprep.subr.mxu0 %v7506_v15 }
0x39b0   :  { %11807 = vmatpush3.msra.mxu0 %v7506_v15 }
0x39b1   :  { %12331 = vpow2.f32 %v7489_v47 }
0x39b2   :  { %v7759_v16 = vpop.permute.xlu1 %7758 }
0x39b6   :  { %v7757_v19 = vpop.permute.xlu1 %7756 }
0x39ba   :  { %v7755_v45 = vpop.permute.xlu1 %7754 }
0x39bc   :  { %v12330_v36 = vpop.eup %12329 }
0x39bd   :  { %v7496_v20 = vsel %vm4327_vm3, %v12330_v36, 0.0 }
0x39be   :  { %v12332_v44 = vpop.eup %12331  ;;  %7497 = vadd.xlane.f32.xlu0 %v7496_v20  ;;  %v8040_v52 = vpop.permute.xlu1 %8039 }
0x39bf   :  { %v7493_v46 = vsel %vm4327_vm3, %v12332_v44, 0.0 }
0x39c2   :  { %7494 = vadd.xlane.f32.xlu0 %v7493_v46  ;;  %v8038_v2 = vpop.permute.xlu1 %8037 }
0x39d8   :  { %7503 = vrot.lane.b32.xlu0 %v13838_v29, %s14249_s15 }
0x39dc   :  { %7752 = vrot.lane.b32.xlu0 %v13838_v29, %s14251_s27 }
0x39e0   :  { %8041 = vrot.lane.b32.xlu0 %v13836_v14, %s14252_s29 }
0x39e4   :  { %8035 = vrot.lane.b32.xlu0 %v13838_v29, %s14253_s30 }
0x3a47   :  { %v7498_v50 = vpop.xlane.xlu0 %7497 }
0x3a48   :  { %12333 = vrcp.f32 %v7498_v50 }
0x3a4b   :  { %v7495_v54 = vpop.xlane.xlu0 %7494 }
0x3a4c   :  { %12335 = vrcp.f32 %v7495_v54 }
0x3a4f   :  { %v7504_v28 = vpop.permute.xlu0 %7503 }
0x3a50   :  { %11808 = vmatprep.subr.mxu0 %v7504_v28 }
0x3a51   :  { %11809 = vmatpush3.msra.mxu0 %v7504_v28 }
0x3a52   :  { %11813 = vmatprep.subr.mxu0 %v10490_v32 }
0x3a53   :  { %v7753_v5 = vpop.permute.xlu0 %7752 }
0x3a55   :  { %v12334_v55 = vpop.eup %12333 }
0x3a56   :  { %v7502_v37 = vmul.f32 %v12334_v55, %v12330_v36  ;;  %v10491_v36 = vld [vmem:[%s13330_s25 + $0x30] sm:$0xff] }
0x3a57   :  { %v8042_v0 = vpop.permute.xlu0 %8041 }
0x3a59   :  { %v12336_v38 = vpop.eup %12335 }
0x3a5a   :  { %v7501_v58 = vmul.f32 %v12336_v38, %v12332_v44 }
0x3a5b   :  { %v8036_v1 = vpop.permute.xlu0 %8035 }
0x3a5c   :  { %11810 = vmatprep.mubr.msk.f32.mxu0 %vm4327_vm3, %v7501_v58  ;;  %v11822_v58 = vpop.f32.mrf.mxu1 }
0x3a5d   :  { %11811 = vmatmul.mubr.msk.f32.vlgmr.msra.gmra.mxu0 %vm4327_vm3, %v7502_v37 }
0x3a5e   :  { %11814 = vmatpush3.msra.mxu0 %v10490_v32  ;;  %v7743_v37 = vpop.f32.mrf.mxu1 }
0x3a5f   :  { %11823 = vmatprep.subr.msk.mxu0 %vm299_vm1, %v7759_v16 }
0x3b1d   :  { %v11812_v6 = vpop.f32.mrf.mxu0 }
0x3b1f   :  { %v7581_v62 = vpop.f32.mrf.mxu0 }
0x3b20   :  { %11815 = vmatprep.mubr.msk.f32.mxu0 %vm299_vm1, %v7581_v62 }
0x3b21   :  { %11816 = vmatmul.mubr.msk.f32.vlgmr.msra.gmra.mxu0 %vm299_vm1, %v11812_v6 }
0x3b22   :  { %11824 = vmatpush3.xpose.msk.msra.mxu0 %vm299_vm1, %v7759_v16  ;;  %11827 = vmatprep.mubr.msk.f32.mxu0 %vm299_vm1, %v7753_v5 }
0x3b23   :  { %11825 = vmatprep.subr.msk.mxu0 %vm299_vm1, %v7757_v19 }
0x3b26   :  { %11826 = vmatpush3.xpose.msk.msra.mxu0 %vm299_vm1, %v7757_v19 }
0x3b27   :  { %11842 = vmatprep.subr.msk.mxu0 %vm299_vm1, %v8042_v0 }
0x3b29   :  { %11828 = vmatmul.mubr.msk.f32.vlgmr.msra.gmra.mxu0 %vm299_vm1, %v7755_v45 }
0x3b2a   :  { %11843 = vmatpush3.xpose.msk.msra.mxu0 %vm299_vm1, %v8042_v0  ;;  %11846 = vmatprep.mubr.msk.f32.mxu0 %vm299_vm1, %v8036_v1  ;;  %v10492_v1 = vld [vmem:[%s13330_s25 + $0x38] sm:$0xff] }
0x3b2b   :  { %11844 = vmatprep.subr.msk.mxu0 %vm299_vm1, %v8040_v52 }
0x3b2e   :  { %11845 = vmatpush3.xpose.msk.msra.mxu0 %vm299_vm1, %v8040_v52  ;;  %v10542_v52 = vld [vmem:[%s13465_s18 + $0x38] sm:$0xff] }
0x3b31   :  { %11847 = vmatmul.mubr.msk.f32.vlgmr.msra.gmra.mxu0 %vm299_vm1, %v8038_v2 }
0x3be1   :  { %v13930_v3 = vpop.f32.mrf.mxu0 }
0x3be2   :  { %v7749_v2 = vadd.f32 %v11822_v58, %v13930_v3  ;;  %v10540_v3 = vld [vmem:[%s13465_s18 + $0x28] sm:$0xff] }
0x3be3   :  { %v13932_v23 = vpop.f32.mrf.mxu0 }
0x3be9   :  { %v11829_v10 = vpop.f32.mrf.mxu0 }
0x3bea   :  { %v7840_v49 = vadd.f32 %v13853_v59, %v11829_v10 }
0x3beb   :  { %v7834_v4 = vpop.f32.mrf.mxu0 }
0x3bec   :  { %v7835_v13 = vadd.f32 %v13857_v35, %v7834_v4  ;;  %v7846_v43 = vsel %vm4327_vm3, %v7840_v49, -inf }
0x3bed   :  { %7847 = vmax.xlane.f32.xlu1 %v7846_v43 }
0x3bee   :  { %v7843_v8 = vsel %vm4327_vm3, %v7835_v13, -inf }
0x3bef   :  { %7844 = vmax.xlane.f32.xlu0 %v7843_v8 }
0x3bf1   :  { %v11848_v63 = vpop.f32.mrf.mxu0 }
0x3bf2   :  { %v8123_v56 = vadd.f32 %v13853_v59, %v11848_v63 }
0x3bf3   :  { %v8117_v12 = vpop.f32.mrf.mxu0 }
0x3bf4   :  { %v8118_v11 = vadd.f32 %v13857_v35, %v8117_v12  ;;  %v8129_v48 = vsel %vm4327_vm3, %v8123_v56, -inf  ;;  %v10541_v12 = vld [vmem:[%s13465_s18 + $0x30] sm:$0xff] }
0x3bf6   :  { %v8126_v18 = vsel %vm4327_vm3, %v8118_v11, -inf }
0x3bfe   :  { %7867 = vrot.lane.b32.xlu1 %v13836_v14, %s14254_s7 }
0x3c22   :  { %8127 = vmax.xlane.f32.xlu1 %v8126_v18  ;;  %v10532_v18 = vld [vmem:[%s13487_s13 + $0x28] sm:$0xff] }
0x3c76   :  { %v7848_v9 = vpop.xlane.xlu1 %7847 }
0x3c77   :  { %v7850_v42 = vsub.f32 %v7840_v49, %v7848_v9  ;;  %v7744_v49 = vadd.f32 %v7743_v37, %v13932_v23  ;;  %v10539_v23 = vld [vmem:[%s13465_s18 + $0x20] sm:$0xff] }
0x3c78   :  { %v7845_v21 = vpop.xlane.xlu0 %7844  ;;  %v10531_v9 = vld [vmem:[%s13487_s13 + $0x20] sm:$0xff] }
0x3c79   :  { %v7853_v22 = vmul.f32 1.442695, %v7850_v42  ;;  %v7849_v24 = vsub.f32 %v7835_v13, %v7845_v21  ;;  %v10526_v42 = vld [vmem:[%s13433_s24 + $0x1] ss:$0 sm:$0xff] }
0x3c7a   :  { %v7868_v31 = vpop.permute.xlu1 %7867 }
0x3c7b   :  { %12337 = vpow2.f32 %v7853_v22  ;;  %v7851_v7 = vmul.f32 1.442695, %v7849_v24  ;;  %11830 = vmatprep.subr.mxu1 %v7868_v31 }
0x3c7c   :  { %11831 = vmatpush3.msra.mxu1 %v7868_v31 }
0x3c7d   :  { %12339 = vpow2.f32 %v7851_v7  ;;  %v10544_v7 = vld [vmem:[%s13537_s4 + $0x1] ss:$0 sm:$0xff] }
0x3c88   :  { %v12338_v26 = vpop.eup %12337 }
0x3c89   :  { %v7858_v34 = vsel %vm4327_vm3, %v12338_v26, 0.0 }
0x3c8a   :  { %v12340_v39 = vpop.eup %12339  ;;  %7859 = vadd.xlane.f32.xlu0 %v7858_v34 }
0x3c8b   :  { %v7855_v35 = vsel %vm4327_vm3, %v12340_v39, 0.0 }
0x3c8e   :  { %7856 = vadd.xlane.f32.xlu0 %v7855_v35 }
0x3ca4   :  { %7865 = vrot.lane.b32.xlu0 %v13838_v29, %s14254_s7 }
0x3cab   :  { %v8128_v40 = vpop.xlane.xlu1 %8127 }
0x3cac   :  { %v8132_v41 = vsub.f32 %v8118_v11, %v8128_v40  ;;  %v10533_v11 = vld [vmem:[%s13487_s13 + $0x30] sm:$0xff] }
0x3cae   :  { %v8134_v27 = vmul.f32 1.442695, %v8132_v41 }
0x3cb0   :  { %12341 = vpow2.f32 %v8134_v27 }
0x3cbd   :  { %v12342_v17 = vpop.eup %12341 }
0x3cbe   :  { %v8138_v30 = vsel %vm4327_vm3, %v12342_v17, 0.0 }
0x3cbf   :  { %8139 = vadd.xlane.f32.xlu1 %v8138_v30 }
0x3cc3   :  { %8130 = vmax.xlane.f32.xlu0 %v8129_v48 }
0x3cd0   :  { %8150 = vrot.lane.b32.xlu1 %v13836_v14, %s14255_s23 }
0x3d13   :  { %v7860_v33 = vpop.xlane.xlu0 %7859 }
0x3d14   :  { %12343 = vrcp.f32 %v7860_v33 }
0x3d17   :  { %v7857_v15 = vpop.xlane.xlu0 %7856 }
0x3d18   :  { %12345 = vrcp.f32 %v7857_v15 }
0x3d1b   :  { %v7866_v47 = vpop.permute.xlu0 %7865 }
0x3d1c   :  { %11832 = vmatprep.subr.mxu1 %v7866_v47 }
0x3d1d   :  { %11833 = vmatpush3.msra.mxu1 %v7866_v47 }
0x3d1e   :  { %11837 = vmatprep.subr.mxu1 %v10491_v36 }
0x3d21   :  { %v12344_v20 = vpop.eup %12343 }
0x3d22   :  { %v7864_v46 = vmul.f32 %v12344_v20, %v12338_v26 }
0x3d25   :  { %v12346_v59 = vpop.eup %12345 }
0x3d26   :  { %v7863_v44 = vmul.f32 %v12346_v59, %v12340_v39 }
0x3d28   :  { %11834 = vmatprep.mubr.msk.f32.mxu1 %vm4327_vm3, %v7863_v44 }
0x3d29   :  { %11835 = vmatmul.mubr.msk.f32.vlgmr.msra.gmra.mxu1 %vm4327_vm3, %v7864_v46 }
0x3d2a   :  { %11838 = vmatpush3.msra.mxu1 %v10491_v36 }
0x3d48   :  { %v8140_v50 = vpop.xlane.xlu1 %8139 }
0x3d4c   :  { %v8151_v14 = vpop.permute.xlu1 %8150  ;;  %v8131_v54 = vpop.xlane.xlu0 %8130 }
0x3d4d   :  { %v8133_v28 = vsub.f32 %v8123_v56, %v8131_v54  ;;  %11849 = vmatprep.subr.mxu1 %v8151_v14 }
0x3d4f   :  { %v8136_v32 = vmul.f32 1.442695, %v8133_v28 }
0x3d51   :  { %12347 = vpow2.f32 %v8136_v32 }
0x3d52   :  { %12349 = vrcp.f32 %v8140_v50 }
0x3d5e   :  { %v12348_v55 = vpop.eup %12347 }
0x3d5f   :  { %v8141_v38 = vsel %vm4327_vm3, %v12348_v55, 0.0  ;;  %v12350_v16 = vpop.eup %12349 }
0x3d60   :  { %8142 = vadd.xlane.f32.xlu0 %v8141_v38  ;;  %v8146_v62 = vmul.f32 %v12350_v16, %v12342_v17 }
0x3d76   :  { %8148 = vrot.lane.b32.xlu0 %v13838_v29, %s14255_s23 }
0x3de9   :  { %v11836_v5 = vpop.f32.mrf.mxu1  ;;  %v8143_v6 = vpop.xlane.xlu0 %8142 }
0x3dea   :  { %12351 = vrcp.f32 %v8143_v6 }
0x3deb   :  { %v7943_v19 = vpop.f32.mrf.mxu1 }
0x3dec   :  { %11839 = vmatprep.mubr.msk.f32.mxu1 %vm299_vm1, %v7943_v19 }
0x3ded   :  { %11840 = vmatmul.mubr.msk.f32.vlgmr.msra.gmra.mxu1 %vm299_vm1, %v11836_v5  ;;  %v8149_v0 = vpop.permute.xlu0 %8148  ;;  %v10530_v5 = vld [vmem:[%s13520_s8 + $0x1] ss:$0 sm:$0xff] }
0x3dee   :  { %11850 = vmatpush3.msra.mxu1 %v8151_v14  ;;  %11853 = vmatprep.mubr.msk.f32.mxu1 %vm4327_vm3, %v8146_v62 }
0x3def   :  { %11851 = vmatprep.subr.mxu1 %v8149_v0 }
0x3df0   :  { %11852 = vmatpush3.msra.mxu1 %v8149_v0 }
0x3df1   :  { %11856 = vmatprep.subr.mxu1 %v10492_v1 }
0x3df7   :  { %v12352_v29 = vpop.eup %12351 }
0x3df8   :  { %v8147_v45 = vmul.f32 %v12352_v29, %v12348_v55  ;;  %v10529_v55 = vld [vmem:[%s13515_s11 + $0x1] ss:$0 sm:$0xff] }
0x3dfa   :  { %11854 = vmatmul.mubr.msk.f32.vlgmr.msra.gmra.mxu1 %vm4327_vm3, %v8147_v45 }
0x3dfb   :  { %11857 = vmatpush3.msra.mxu1 %v10492_v1  ;;  %v10536_v1 = vld [vmem:[%s13567_s3 + $0x1] ss:$0 sm:$0xff] }
0x3dfc   :  { %11872 = vmatprep.subr.mxu1 %v10542_v52 }
0x3ead   :  { %v11841_v10 = vpop.f32.mrf.mxu1 }
0x3eae   :  { %v8034_v4 = vadd.f32 %v11841_v10, %v7749_v2 }
0x3eaf   :  { %v8024_v13 = vpop.f32.mrf.mxu1 }
0x3eb0   :  { %v8033_v43 = vadd.f32 %v8024_v13, %v7744_v49 }
0x3eba   :  { %v11855_v8 = vpop.f32.mrf.mxu1 }
0x3ebc   :  { %v8226_v63 = vpop.f32.mrf.mxu1 }
0x3ebd   :  { %11858 = vmatprep.mubr.msk.f32.mxu1 %vm299_vm1, %v8226_v63 }
0x3ebe   :  { %11859 = vmatmul.mubr.msk.f32.vlgmr.msra.gmra.mxu1 %vm299_vm1, %v11855_v8  ;;  %v14038_v8 = vld [vmem:[%s13581_s17] sm:$0xff] }
0x3ebf   :  { %11873 = vmatpush3.msra.mxu1 %v10542_v52  ;;  %11880 = vmatprep.mubr.msk.f32.mxu1 %vm185_vm0, %v13491_v25  ;;  %v10534_v25 = vld [vmem:[%s13487_s13 + $0x38] sm:$0xff]  ;;  %s12458_s13 = smov 39  }
0x3ec0   :  { %11874 = vmatprep.subr.mxu1 %v10541_v12  ;;  %11861 = vmatprep.subr.mxu0 %v10534_v25  ;;  %s10187_s4 = sld [smem:[%s14231_s0 + %s12458_s13]]  }
0x3ec1   :  { %11875 = vmatpush3.msra.mxu1 %v10541_v12  ;;  %11862 = vmatpush3.msra.mxu0 %v10534_v25 }
0x3ec2   :  { %11876 = vmatprep.subr.mxu1 %v10540_v3  ;;  %11863 = vmatprep.subr.mxu0 %v10533_v11 }
0x3ec3   :  { %11877 = vmatpush3.msra.mxu1 %v10540_v3  ;;  %11864 = vmatpush3.msra.mxu0 %v10533_v11 }
0x3ec4   :  { %11878 = vmatprep.subr.mxu1 %v10539_v23  ;;  %11865 = vmatprep.subr.mxu0 %v10532_v18 }
0x3ec5   :  { %11879 = vmatpush3.msra.mxu1 %v10539_v23  ;;  %11866 = vmatpush3.msra.mxu0 %v10532_v18 }
0x3ec6   :  { %11881 = vmatmul.mubr.msk.f32.vlgmr.msra.gmra.mxu1 %vm185_vm0, %v13494_v57  ;;  %11867 = vmatprep.subr.mxu0 %v10531_v9 }
0x3ec7   :  { %11883 = vmatprep.mubr.msk.f32.mxu1 %vm185_vm0, %v13502_v60  ;;  %11868 = vmatpush3.msra.mxu0 %v10531_v9 }
0x3eca   :  { %11884 = vmatmul.mubr.msk.f32.gmra.mxu1 %vm185_vm0, %v13505_v61 }
0x3f7e   :  { %v11860_v57 = vpop.f32.mrf.mxu1 }
0x3f7f   :  { %v8317_v21 = vadd.f32 %v11860_v57, %v8034_v4  ;;  %v14034_v4 = vld [vmem:[%s13581_s17 + $0x8] sm:$0xff] }
0x3f80   :  { %v8307_v60 = vpop.f32.mrf.mxu1 }
0x3f81   :  { %v8327_v22 = vadd.f32 %v10526_v42, %v8317_v21  ;;  %v8316_v24 = vadd.f32 %v8307_v60, %v8033_v43 }
0x3f83   :  { %v8326_v61 = vadd.f32 %v10526_v42, %v8316_v24  ;;  %v8329_v31 = vadd.f32 %v8327_v22, %v13829_v53 }
0x3f85   :  { %v8337_v26 = vsel %vm185_vm0, %v8329_v31, 0.0  ;;  %v8328_v34 = vadd.f32 %v8326_v61, %v13827_v51 }
0x3f86   :  { %v11882_v39 = vpop.f32.mrf.mxu1  ;;  %8338 = vadd.xlane.f32.xlu0 %v8337_v26 }
0x3f87   :  { %v13987_v35 = vadd.f32 %v11882_v39, %v10544_v7  ;;  %v8334_v40 = vsel %vm185_vm0, %v8328_v34, 0.0 }
0x3f88   :  { %v8549_v41 = vpop.f32.mrf.mxu1  ;;  %8335 = vadd.xlane.f32.xlu1 %v8334_v40 }
0x3f89   :  { %v13990_v27 = vadd.f32 %v10544_v7, %v8549_v41 }
0x3f8a   :  { %v11885_v17 = vpop.f32.mrf.mxu1 }
0x3f8b   :  { %v13992_v56 = vadd.f32 %v11885_v17, %v10544_v7 }
0x3f8c   :  { %v8559_v19 = vpop.f32.mrf.mxu1 }
0x3f8d   :  { %11886 = vmatprep.subr.msk.mxu0 %vm299_vm1, %v13992_v56  ;;  %v14006_v29 = vadd.f32 %v10544_v7, %v8559_v19 }
0x400f   :  { %v8339_v53 = vpop.xlane.xlu0 %8338 }
0x4010   :  { %v8341_v30 = vmul.f32 0.03125, %v8339_v53 }
0x4011   :  { %v8336_v48 = vpop.xlane.xlu1 %8335 }
0x4012   :  { %v8343_v51 = vsub.f32 %v8329_v31, %v8341_v30  ;;  %v8340_v33 = vmul.f32 0.03125, %v8336_v48 }
0x4014   :  { %v8342_v15 = vsub.f32 %v8328_v34, %v8340_v33  ;;  %v8345_v47 = vmul.f32 %v8343_v51, %v8343_v51 }
0x4016   :  { %v8349_v36 = vsel %vm185_vm0, %v8345_v47, 0.0  ;;  %v8344_v20 = vmul.f32 %v8342_v15, %v8342_v15  ;;  %v10549_v47 = vld [vmem:[%s13630_s19 + $0x20] sm:$0xff] }
0x4017   :  { %8350 = vadd.xlane.f32.xlu0 %v8349_v36 }
0x4018   :  { %v8346_v59 = vsel %vm185_vm0, %v8344_v20, 0.0 }
0x4019   :  { %8347 = vadd.xlane.f32.xlu1 %v8346_v59 }
0x40a0   :  { %v8351_v44 = vpop.xlane.xlu0 %8350 }
0x40a1   :  { %v8353_v46 = vmul.f32 0.03125, %v8351_v44 }
0x40a2   :  { %v8348_v50 = vpop.xlane.xlu1 %8347 }
0x40a3   :  { %v8355_v14 = vadd.f32 1e-05, %v8353_v46  ;;  %v8352_v54 = vmul.f32 0.03125, %v8348_v50 }
0x40a5   :  { %12353 = vrsqrt.f32 %v8355_v14  ;;  %v8354_v28 = vadd.f32 1e-05, %v8352_v54 }
0x40a7   :  { %12355 = vrsqrt.f32 %v8354_v28 }
0x40b2   :  { %v12354_v32 = vpop.eup %12353 }
0x40b3   :  { %v8359_v38 = vmul.f32 %v12354_v32, %v8343_v51 }
0x40b4   :  { %v12356_v58 = vpop.eup %12355 }
0x40b5   :  { %v8358_v37 = vmul.f32 %v12356_v58, %v8342_v15  ;;  %v8367_v16 = vmul.f32 %v10529_v55, %v8359_v38 }
0x40b7   :  { %v8366_v6 = vmul.f32 %v10529_v55, %v8358_v37  ;;  %v14002_v0 = vadd.f32 %v10530_v5, %v8367_v16 }
0x40b9   :  { %v14000_v62 = vadd.f32 %v10530_v5, %v8366_v6 }
0x40bb   :  { %11869 = vmatprep.mubr.msk.f32.mxu0 %vm185_vm0, %v14000_v62 }
0x40bc   :  { %11870 = vmatmul.mubr.msk.f32.vlgmr.msra.gmra.mxu0 %vm185_vm0, %v14002_v0 }
0x40bd   :  { %11887 = vmatpush3.xpose.msk.msra.mxu0 %vm299_vm1, %v13992_v56 }
0x40be   :  { %11888 = vmatprep.subr.msk.mxu0 %vm299_vm1, %v14006_v29 }
0x40c1   :  { %11889 = vmatpush3.xpose.msk.msra.mxu0 %vm299_vm1, %v14006_v29 }
0x40c2   :  { %11890 = vmatprep.subr.msk.mxu0 %vm299_vm1, %v13987_v35 }
0x40c5   :  { %11891 = vmatpush3.xpose.msk.msra.mxu0 %vm299_vm1, %v13987_v35 }
0x40c6   :  { %11892 = vmatprep.subr.msk.mxu0 %vm299_vm1, %v13990_v27 }
0x40c9   :  { %11893 = vmatpush3.xpose.msk.msra.mxu0 %vm299_vm1, %v13990_v27 }
0x417c   :  { %v11871_v45 = vpop.f32.mrf.mxu0 }
0x417d   :  { %v14027_v10 = vadd.f32 %v11871_v45, %v10536_v1 }
0x417e   :  { %v8461_v52 = vpop.f32.mrf.mxu0 }
0x417f   :  { %v14025_v2 = vadd.f32 %v10536_v1, %v8461_v52 }
0x4181   :  { %11894 = vmatprep.mubr.msk.f32.mxu0 %vm299_vm1, %v14025_v2 }
0x4182   :  { %11895 = vmatmul.mubr.msk.f32.vlgmr.msra.gmra.mxu0 %vm299_vm1, %v14027_v10 }
0x4242   :  { %v11896_v49 = vpop.f32.mrf.mxu0 }
0x4243   :  { %v8663_v13 = vadd.f32 %v14034_v4, %v11896_v49 }
0x4244   :  { %v8657_v43 = vpop.f32.mrf.mxu0 }
0x4245   :  { %v8658_v63 = vadd.f32 %v14038_v8, %v8657_v43  ;;  %v8669_v12 = vsel %vm185_vm0, %v8663_v13, -inf }
0x4246   :  { %8670 = vmax.xlane.f32.xlu0 %v8669_v12 }
0x4247   :  { %v8666_v3 = vsel %vm185_vm0, %v8658_v63, -inf }
0x4248   :  { %8667 = vmax.xlane.f32.xlu1 %v8666_v3 }
0x4259   :  { %8694 = vrot.lane.b32.xlu1 %v13992_v56, %s12411_s14 }
0x425c   :  { %8692 = vrot.lane.b32.xlu0 %v14006_v29, %s12411_s14 }
0x425d   :  { %8690 = vrot.lane.b32.xlu1 %v13987_v35, %s12411_s14 }
0x4261   :  { %8688 = vrot.lane.b32.xlu1 %v13990_v27, %s12411_s14  ;;  %s12456_s14 = smov 37  }
0x42cf   :  { %v8671_v23 = vpop.xlane.xlu0 %8670 }
0x42d0   :  { %v8673_v25 = vsub.f32 %v8663_v13, %v8671_v23 }
0x42d1   :  { %v8668_v11 = vpop.xlane.xlu1 %8667 }
0x42d2   :  { %v8676_v18 = vmul.f32 1.442695, %v8673_v25  ;;  %v8672_v9 = vsub.f32 %v8658_v63, %v8668_v11  ;;  %v10550_v63 = vld [vmem:[%s13630_s19 + $0x28] sm:$0xff] }
0x42d3   :  { %v8693_v21 = vpop.permute.xlu0 %8692 }
0x42d4   :  { %12357 = vpow2.f32 %v8676_v18  ;;  %v8674_v57 = vmul.f32 1.442695, %v8672_v9 }
0x42d5   :  { %v8695_v42 = vpop.permute.xlu1 %8694 }
0x42d6   :  { %12359 = vpow2.f32 %v8674_v57  ;;  %11897 = vmatprep.subr.mxu1 %v8695_v42 }
0x42d7   :  { %11898 = vmatpush3.msra.mxu1 %v8695_v42 }
0x42d8   :  { %11899 = vmatprep.subr.mxu1 %v8693_v21 }
0x42d9   :  { %11900 = vmatpush3.msra.mxu1 %v8693_v21  ;;  %v8691_v60 = vpop.permute.xlu1 %8690 }
0x42da   :  { %11901 = vmatprep.subr.mxu1 %v8691_v60 }
0x42db   :  { %11902 = vmatpush3.msra.mxu1 %v8691_v60 }
0x42dd   :  { %v8689_v22 = vpop.permute.xlu1 %8688 }
0x42de   :  { %11903 = vmatprep.subr.mxu1 %v8689_v22 }
0x42df   :  { %11904 = vmatpush3.msra.mxu1 %v8689_v22 }
0x42e1   :  { %v12358_v24 = vpop.eup %12357 }
0x42e2   :  { %v8681_v61 = vsel %vm185_vm0, %v12358_v24, 0.0 }
0x42e3   :  { %v12360_v31 = vpop.eup %12359  ;;  %8682 = vadd.xlane.f32.xlu0 %v8681_v61 }
0x42e4   :  { %v8678_v7 = vsel %vm185_vm0, %v12360_v31, 0.0 }
0x42e5   :  { %8679 = vadd.xlane.f32.xlu1 %v8678_v7 }
0x42f6   :  { %8789 = vrot.lane.b32.xlu1 %v14006_v29, %s14248_s6 }
0x42f9   :  { %8791 = vrot.lane.b32.xlu0 %v13992_v56, %s14248_s6 }
0x42fa   :  { %8785 = vrot.lane.b32.xlu1 %v13990_v27, %s14248_s6 }
0x42fd   :  { %8787 = vrot.lane.b32.xlu0 %v13987_v35, %s14248_s6 }
0x42fe   :  { %8783 = vrot.lane.b32.xlu1 %v14027_v10, %s14248_s6 }
0x4301   :  { %8781 = vrot.lane.b32.xlu0 %v14025_v2, %s14248_s6 }
0x436c   :  { %v8683_v26 = vpop.xlane.xlu0 %8682 }
0x436d   :  { %12361 = vrcp.f32 %v8683_v26 }
0x436e   :  { %v8680_v34 = vpop.xlane.xlu1 %8679 }
0x436f   :  { %12363 = vrcp.f32 %v8680_v34 }
0x4370   :  { %v8792_v39 = vpop.permute.xlu0 %8791 }
0x4371   :  { %11908 = vmatprep.subr.msk.mxu1 %vm299_vm1, %v8792_v39 }
0x4372   :  { %v8790_v51 = vpop.permute.xlu1 %8789 }
0x4374   :  { %v8788_v40 = vpop.permute.xlu0 %8787 }
0x4376   :  { %v8786_v33 = vpop.permute.xlu1 %8785 }
0x4378   :  { %v8782_v48 = vpop.permute.xlu0 %8781 }
0x437a   :  { %v12362_v41 = vpop.eup %12361  ;;  %v8784_v15 = vpop.permute.xlu1 %8783 }
0x437b   :  { %v8687_v30 = vmul.f32 %v12362_v41, %v12358_v24 }
0x437c   :  { %v12364_v17 = vpop.eup %12363 }
0x437d   :  { %v8686_v53 = vmul.f32 %v12364_v17, %v12360_v31 }
0x437f   :  { %11905 = vmatprep.mubr.msk.f32.mxu1 %vm185_vm0, %v8686_v53 }
0x4380   :  { %11906 = vmatmul.mubr.msk.f32.vlgmr.msra.gmra.mxu1 %vm185_vm0, %v8687_v30 }
0x4381   :  { %11909 = vmatpush3.xpose.msk.msra.mxu1 %vm299_vm1, %v8792_v39  ;;  %11916 = vmatprep.mubr.msk.f32.mxu1 %vm299_vm1, %v8782_v48 }
0x4382   :  { %11910 = vmatprep.subr.msk.mxu1 %vm299_vm1, %v8790_v51 }
0x4385   :  { %11911 = vmatpush3.xpose.msk.msra.mxu1 %vm299_vm1, %v8790_v51 }
0x4386   :  { %11912 = vmatprep.subr.msk.mxu1 %vm299_vm1, %v8788_v40 }
0x4389   :  { %11913 = vmatpush3.xpose.msk.msra.mxu1 %vm299_vm1, %v8788_v40 }
0x438a   :  { %11914 = vmatprep.subr.msk.mxu1 %vm299_vm1, %v8786_v33 }
0x438d   :  { %11915 = vmatpush3.xpose.msk.msra.mxu1 %vm299_vm1, %v8786_v33 }
0x438e   :  { %11935 = vmatprep.subr.mxu1 %v10549_v47 }
0x4390   :  { %11917 = vmatmul.mubr.msk.f32.vlgmr.msra.gmra.mxu1 %vm299_vm1, %v8784_v15 }
0x4391   :  { %11936 = vmatpush3.msra.mxu1 %v10549_v47 }
0x4440   :  { %v11907_v36 = vpop.f32.mrf.mxu1 }
0x4442   :  { %v8772_v20 = vpop.f32.mrf.mxu1 }
0x4443   :  { %11937 = vmatprep.mubr.msk.f32.mxu1 %vm299_vm1, %v8772_v20 }
0x4444   :  { %11938 = vmatmul.mubr.msk.f32.vlgmr.msra.gmra.mxu1 %vm299_vm1, %v11907_v36 }
0x4450   :  { %v11918_v59 = vpop.f32.mrf.mxu1 }
0x4451   :  { %v8877_v44 = vadd.f32 %v14034_v4, %v11918_v59 }
0x4452   :  { %v8871_v46 = vpop.f32.mrf.mxu1 }
0x4453   :  { %v8872_v50 = vadd.f32 %v14038_v8, %v8871_v46  ;;  %v8883_v14 = vsel %vm185_vm0, %v8877_v44, -inf }
0x4454   :  { %8884 = vmax.xlane.f32.xlu1 %v8883_v14  ;;  %v10551_v14 = vld [vmem:[%s13630_s19 + $0x30] sm:$0xff] }
0x4455   :  { %v8880_v54 = vsel %vm185_vm0, %v8872_v50, -inf }
0x4456   :  { %8881 = vmax.xlane.f32.xlu0 %v8880_v54 }
0x4465   :  { %8908 = vrot.lane.b32.xlu1 %v13992_v56, %s12414_s20 }
0x4469   :  { %8904 = vrot.lane.b32.xlu1 %v13987_v35, %s12414_s20 }
0x446d   :  { %8902 = vrot.lane.b32.xlu1 %v13990_v27, %s12414_s20 }
0x4471   :  { %9165 = vrot.lane.b32.xlu1 %v14006_v29, %s14251_s27 }
0x4475   :  { %9161 = vrot.lane.b32.xlu1 %v13990_v27, %s14251_s27 }
0x4479   :  { %9159 = vrot.lane.b32.xlu1 %v14027_v10, %s14251_s27 }
0x44dd   :  { %v8885_v28 = vpop.xlane.xlu1 %8884 }
0x44de   :  { %v8887_v32 = vsub.f32 %v8877_v44, %v8885_v28 }
0x44df   :  { %v8882_v55 = vpop.xlane.xlu0 %8881 }
0x44e0   :  { %v8890_v38 = vmul.f32 1.442695, %v8887_v32  ;;  %v8886_v58 = vsub.f32 %v8872_v50, %v8882_v55 }
0x44e1   :  { %v8909_v37 = vpop.permute.xlu1 %8908 }
0x44e2   :  { %12365 = vpow2.f32 %v8890_v38  ;;  %v8888_v16 = vmul.f32 1.442695, %v8886_v58  ;;  %11919 = vmatprep.subr.mxu0 %v8909_v37 }
0x44e3   :  { %11920 = vmatpush3.msra.mxu0 %v8909_v37 }
0x44e4   :  { %12367 = vpow2.f32 %v8888_v16 }
0x44e5   :  { %v8905_v49 = vpop.permute.xlu1 %8904 }
0x44e9   :  { %v8903_v43 = vpop.permute.xlu1 %8902 }
0x44ed   :  { %v9166_v21 = vpop.permute.xlu1 %9165 }
0x44ef   :  { %v12366_v5 = vpop.eup %12365 }
0x44f0   :  { %v8895_v6 = vsel %vm185_vm0, %v12366_v5, 0.0 }
0x44f1   :  { %v12368_v19 = vpop.eup %12367  ;;  %8896 = vadd.xlane.f32.xlu0 %v8895_v6  ;;  %v9162_v60 = vpop.permute.xlu1 %9161 }
0x44f2   :  { %v8892_v45 = vsel %vm185_vm0, %v12368_v19, 0.0 }
0x44f5   :  { %8893 = vadd.xlane.f32.xlu0 %v8892_v45  ;;  %v9160_v22 = vpop.permute.xlu1 %9159 }
0x4504   :  { %v11939_v38 = vpop.f32.mrf.mxu1 }
0x4506   :  { %v9148_v58 = vpop.f32.mrf.mxu1 }
0x450b   :  { %8906 = vrot.lane.b32.xlu0 %v14006_v29, %s12414_s20 }
0x450f   :  { %9167 = vrot.lane.b32.xlu0 %v13992_v56, %s14251_s27 }
0x4513   :  { %9163 = vrot.lane.b32.xlu0 %v13987_v35, %s14251_s27 }
0x4517   :  { %9157 = vrot.lane.b32.xlu0 %v14025_v2, %s14251_s27 }
0x457a   :  { %v8897_v1 = vpop.xlane.xlu0 %8896 }
0x457b   :  { %12369 = vrcp.f32 %v8897_v1 }
0x457e   :  { %v8894_v52 = vpop.xlane.xlu0 %8893 }
0x457f   :  { %12371 = vrcp.f32 %v8894_v52 }
0x4582   :  { %v8907_v13 = vpop.permute.xlu0 %8906 }
0x4583   :  { %11921 = vmatprep.subr.mxu0 %v8907_v13 }
0x4584   :  { %11922 = vmatpush3.msra.mxu0 %v8907_v13 }
0x4585   :  { %11923 = vmatprep.subr.mxu0 %v8905_v49 }
0x4586   :  { %11924 = vmatpush3.msra.mxu0 %v8905_v49  ;;  %v9168_v11 = vpop.permute.xlu0 %9167 }
0x4587   :  { %11925 = vmatprep.subr.mxu0 %v8903_v43 }
0x4588   :  { %11926 = vmatpush3.msra.mxu0 %v8903_v43  ;;  %v12370_v12 = vpop.eup %12369 }
0x4589   :  { %11930 = vmatprep.subr.mxu0 %v10550_v63  ;;  %v8901_v25 = vmul.f32 %v12370_v12, %v12366_v5 }
0x458a   :  { %v9164_v18 = vpop.permute.xlu0 %9163 }
0x458c   :  { %v12372_v3 = vpop.eup %12371 }
0x458d   :  { %v8900_v23 = vmul.f32 %v12372_v3, %v12368_v19 }
0x458e   :  { %v9158_v42 = vpop.permute.xlu0 %9157 }
0x458f   :  { %11927 = vmatprep.mubr.msk.f32.mxu0 %vm185_vm0, %v8900_v23 }
0x4590   :  { %11928 = vmatmul.mubr.msk.f32.vlgmr.msra.gmra.mxu0 %vm185_vm0, %v8901_v25 }
0x4591   :  { %11931 = vmatpush3.msra.mxu0 %v10550_v63 }
0x4592   :  { %11940 = vmatprep.subr.msk.mxu0 %vm299_vm1, %v9168_v11 }
0x4650   :  { %v11929_v9 = vpop.f32.mrf.mxu0 }
0x4652   :  { %v8986_v57 = vpop.f32.mrf.mxu0 }
0x4653   :  { %11932 = vmatprep.mubr.msk.f32.mxu0 %vm299_vm1, %v8986_v57 }
0x4654   :  { %11933 = vmatmul.mubr.msk.f32.vlgmr.msra.gmra.mxu0 %vm299_vm1, %v11929_v9 }
0x4655   :  { %11941 = vmatpush3.xpose.msk.msra.mxu0 %vm299_vm1, %v9168_v11  ;;  %11948 = vmatprep.mubr.msk.f32.mxu0 %vm299_vm1, %v9158_v42 }
0x4656   :  { %11942 = vmatprep.subr.msk.mxu0 %vm299_vm1, %v9166_v21 }
0x4659   :  { %11943 = vmatpush3.xpose.msk.msra.mxu0 %vm299_vm1, %v9166_v21 }
0x465a   :  { %11944 = vmatprep.subr.msk.mxu0 %vm299_vm1, %v9164_v18 }
0x465d   :  { %11945 = vmatpush3.xpose.msk.msra.mxu0 %vm299_vm1, %v9164_v18 }
0x465e   :  { %11946 = vmatprep.subr.msk.mxu0 %vm299_vm1, %v9162_v60 }
0x4661   :  { %11947 = vmatpush3.xpose.msk.msra.mxu0 %vm299_vm1, %v9162_v60 }
0x4664   :  { %11949 = vmatmul.mubr.msk.f32.vlgmr.msra.gmra.mxu0 %vm299_vm1, %v9160_v22 }
0x4714   :  { %v14121_v24 = vpop.f32.mrf.mxu0 }
0x4715   :  { %v9154_v52 = vadd.f32 %v11939_v38, %v14121_v24 }
0x4716   :  { %v14123_v61 = vpop.f32.mrf.mxu0 }
0x4717   :  { %v9149_v13 = vadd.f32 %v9148_v58, %v14123_v61  ;;  %v10602_v58 = vld [vmem:[%s13760_s5 + $0x38] sm:$0xff] }
0x4724   :  { %v11950_v31 = vpop.f32.mrf.mxu0 }
0x4725   :  { %v9253_v7 = vadd.f32 %v14034_v4, %v11950_v31 }
0x4726   :  { %v9247_v26 = vpop.f32.mrf.mxu0 }
0x4727   :  { %v9248_v34 = vadd.f32 %v14038_v8, %v9247_v26  ;;  %v9259_v39 = vsel %vm185_vm0, %v9253_v7, -inf }
0x4728   :  { %9260 = vmax.xlane.f32.xlu1 %v9259_v39 }
0x4729   :  { %v9256_v40 = vsel %vm185_vm0, %v9248_v34, -inf }
0x472a   :  { %9257 = vmax.xlane.f32.xlu0 %v9256_v40 }
0x4739   :  { %9284 = vrot.lane.b32.xlu1 %v13992_v56, %s14250_s22 }
0x473d   :  { %9280 = vrot.lane.b32.xlu1 %v13987_v35, %s14250_s22 }
0x4741   :  { %9278 = vrot.lane.b32.xlu1 %v13990_v27, %s14250_s22 }
0x4745   :  { %9462 = vrot.lane.b32.xlu1 %v14006_v29, %s14253_s30 }
0x4749   :  { %9458 = vrot.lane.b32.xlu1 %v13990_v27, %s14253_s30 }
0x474d   :  { %9456 = vrot.lane.b32.xlu1 %v14027_v10, %s14253_s30 }
0x47b1   :  { %v9261_v41 = vpop.xlane.xlu1 %9260 }
0x47b2   :  { %v9263_v17 = vsub.f32 %v9253_v7, %v9261_v41 }
0x47b3   :  { %v9258_v53 = vpop.xlane.xlu0 %9257 }
0x47b4   :  { %v9266_v30 = vmul.f32 1.442695, %v9263_v17  ;;  %v9262_v48 = vsub.f32 %v9248_v34, %v9258_v53 }
0x47b5   :  { %v9285_v51 = vpop.permute.xlu1 %9284 }
0x47b6   :  { %12373 = vpow2.f32 %v9266_v30  ;;  %v9264_v33 = vmul.f32 1.442695, %v9262_v48  ;;  %11951 = vmatprep.subr.mxu1 %v9285_v51 }
0x47b7   :  { %11952 = vmatpush3.msra.mxu1 %v9285_v51  ;;  %v10594_v51 = vld [vmem:[%s13747_s16 + $0x1] ss:$0 sm:$0xff] }
0x47b8   :  { %12375 = vpow2.f32 %v9264_v33 }
0x47b9   :  { %v9281_v44 = vpop.permute.xlu1 %9280 }
0x47bd   :  { %v9279_v50 = vpop.permute.xlu1 %9278 }
0x47c1   :  { %v9463_v19 = vpop.permute.xlu1 %9462 }
0x47c3   :  { %v12374_v15 = vpop.eup %12373 }
0x47c4   :  { %v9271_v47 = vsel %vm185_vm0, %v12374_v15, 0.0 }
0x47c5   :  { %v12376_v36 = vpop.eup %12375  ;;  %9272 = vadd.xlane.f32.xlu0 %v9271_v47  ;;  %v9459_v45 = vpop.permute.xlu1 %9458 }
0x47c6   :  { %v9268_v20 = vsel %vm185_vm0, %v12376_v36, 0.0 }
0x47c9   :  { %9269 = vadd.xlane.f32.xlu0 %v9268_v20  ;;  %v9457_v1 = vpop.permute.xlu1 %9456 }
0x47df   :  { %9282 = vrot.lane.b32.xlu0 %v14006_v29, %s14250_s22 }
0x47e3   :  { %9464 = vrot.lane.b32.xlu0 %v13992_v56, %s14253_s30 }
0x47e7   :  { %9460 = vrot.lane.b32.xlu0 %v13987_v35, %s14253_s30 }
0x47eb   :  { %9454 = vrot.lane.b32.xlu0 %v14025_v2, %s14253_s30 }
0x484e   :  { %v9273_v10 = vpop.xlane.xlu0 %9272 }
0x484f   :  { %12377 = vrcp.f32 %v9273_v10 }
0x4852   :  { %v9270_v59 = vpop.xlane.xlu0 %9269 }
0x4853   :  { %12379 = vrcp.f32 %v9270_v59 }
0x4856   :  { %v9283_v46 = vpop.permute.xlu0 %9282 }
0x4857   :  { %11953 = vmatprep.subr.mxu1 %v9283_v46 }
0x4858   :  { %11954 = vmatpush3.msra.mxu1 %v9283_v46 }
0x4859   :  { %11955 = vmatprep.subr.mxu1 %v9281_v44 }
0x485a   :  { %11956 = vmatpush3.msra.mxu1 %v9281_v44  ;;  %v9465_v2 = vpop.permute.xlu0 %9464 }
0x485b   :  { %11957 = vmatprep.subr.mxu1 %v9279_v50 }
0x485c   :  { %11958 = vmatpush3.msra.mxu1 %v9279_v50  ;;  %v12378_v54 = vpop.eup %12377 }
0x485d   :  { %11962 = vmatprep.subr.mxu1 %v10551_v14  ;;  %v9277_v55 = vmul.f32 %v12378_v54, %v12374_v15 }
0x485e   :  { %v9461_v37 = vpop.permute.xlu0 %9460 }
0x4860   :  { %v12380_v28 = vpop.eup %12379 }
0x4861   :  { %v9276_v32 = vmul.f32 %v12380_v28, %v12376_v36 }
0x4862   :  { %v9455_v6 = vpop.permute.xlu0 %9454 }
0x4863   :  { %11959 = vmatprep.mubr.msk.f32.mxu1 %vm185_vm0, %v9276_v32 }
0x4864   :  { %11960 = vmatmul.mubr.msk.f32.vlgmr.msra.gmra.mxu1 %vm185_vm0, %v9277_v55 }
0x4865   :  { %11963 = vmatpush3.msra.mxu1 %v10551_v14 }
0x4866   :  { %11967 = vmatprep.subr.msk.mxu1 %vm299_vm1, %v9465_v2 }
0x4924   :  { %v11961_v16 = vpop.f32.mrf.mxu1 }
0x4926   :  { %v9362_v5 = vpop.f32.mrf.mxu1 }
0x4927   :  { %11964 = vmatprep.mubr.msk.f32.mxu1 %vm299_vm1, %v9362_v5  ;;  %v10599_v5 = vld [vmem:[%s13760_s5 + $0x20] sm:$0xff] }
0x4928   :  { %11965 = vmatmul.mubr.msk.f32.vlgmr.msra.gmra.mxu1 %vm299_vm1, %v11961_v16  ;;  %v10600_v16 = vld [vmem:[%s13760_s5 + $0x28] sm:$0xff] }
0x4929   :  { %11968 = vmatpush3.xpose.msk.msra.mxu1 %vm299_vm1, %v9465_v2  ;;  %11975 = vmatprep.mubr.msk.f32.mxu1 %vm299_vm1, %v9455_v6  ;;  %v10614_v6 = vld [vmem:[%s13769_s9 + $0x78] sm:$0xff] }
0x492a   :  { %11969 = vmatprep.subr.msk.mxu1 %vm299_vm1, %v9463_v19 }
0x492d   :  { %11970 = vmatpush3.xpose.msk.msra.mxu1 %vm299_vm1, %v9463_v19  ;;  %v10613_v19 = vld [vmem:[%s13769_s9 + $0x70] sm:$0xff] }
0x492e   :  { %11971 = vmatprep.subr.msk.mxu1 %vm299_vm1, %v9461_v37 }
0x4931   :  { %11972 = vmatpush3.xpose.msk.msra.mxu1 %vm299_vm1, %v9461_v37  ;;  %v10601_v37 = vld [vmem:[%s13760_s5 + $0x30] sm:$0xff] }
0x4932   :  { %11973 = vmatprep.subr.msk.mxu1 %vm299_vm1, %v9459_v45 }
0x4935   :  { %11974 = vmatpush3.xpose.msk.msra.mxu1 %vm299_vm1, %v9459_v45  ;;  %v10612_v45 = vld [vmem:[%s13769_s9 + $0x68] sm:$0xff] }
0x4936   :  { %12005 = vmatprep.subr.mxu1 %v10614_v6 }
0x4938   :  { %11976 = vmatmul.mubr.msk.f32.vlgmr.msra.gmra.mxu1 %vm299_vm1, %v9457_v1  ;;  %v10611_v1 = vld [vmem:[%s13769_s9 + $0x60] sm:$0xff] }
0x4939   :  { %12006 = vmatpush3.msra.mxu1 %v10614_v6 }
0x493a   :  { %12007 = vmatprep.subr.mxu1 %v10613_v19 }
0x493b   :  { %12008 = vmatpush3.msra.mxu1 %v10613_v19 }
0x493c   :  { %12009 = vmatprep.subr.mxu1 %v10612_v45 }
0x493d   :  { %12010 = vmatpush3.msra.mxu1 %v10612_v45  ;;  %v10622_v45 = vld [vmem:[%s13823_s21 + $0x1] ss:$0 sm:$0xff] }
0x493e   :  { %12011 = vmatprep.subr.mxu1 %v10611_v1 }
0x493f   :  { %12012 = vmatpush3.msra.mxu1 %v10611_v1 }
0x49e8   :  { %v11966_v49 = vpop.f32.mrf.mxu1 }
0x49e9   :  { %v9453_v43 = vadd.f32 %v11966_v49, %v9154_v52 }
0x49ea   :  { %v9443_v63 = vpop.f32.mrf.mxu1 }
0x49eb   :  { %v9452_v12 = vadd.f32 %v9443_v63, %v9149_v13 }
0x49f8   :  { %v11977_v3 = vpop.f32.mrf.mxu1 }
0x49f9   :  { %v9550_v23 = vadd.f32 %v14034_v4, %v11977_v3 }
0x49fa   :  { %v9544_v25 = vpop.f32.mrf.mxu1 }
0x49fb   :  { %v9545_v11 = vadd.f32 %v14038_v8, %v9544_v25  ;;  %v9556_v18 = vsel %vm185_vm0, %v9550_v23, -inf }
0x49fc   :  { %9557 = vmax.xlane.f32.xlu1 %v9556_v18 }
0x49fd   :  { %v9553_v9 = vsel %vm185_vm0, %v9545_v11, -inf }
0x49fe   :  { %9554 = vmax.xlane.f32.xlu0 %v9553_v9 }
0x4a0d   :  { %9581 = vrot.lane.b32.xlu1 %v13992_v56, %s14252_s29 }
0x4a11   :  { %9577 = vrot.lane.b32.xlu1 %v13987_v35, %s14252_s29 }
0x4a15   :  { %9575 = vrot.lane.b32.xlu1 %v13990_v27, %s14252_s29 }
0x4a85   :  { %v9558_v57 = vpop.xlane.xlu1 %9557 }
0x4a86   :  { %v9560_v4 = vsub.f32 %v9550_v23, %v9558_v57  ;;  %v10597_v23 = vld [vmem:[%s13778_s2 + $0x1] ss:$0 sm:$0xff]  ;;  %s12457_s2 = smov 38  }
0x4a87   :  { %v9555_v42 = vpop.xlane.xlu0 %9554  ;;  %s10186_s18 = sld [smem:[%s14231_s0 + %s12457_s2]]  }
0x4a88   :  { %v9563_v21 = vmul.f32 1.442695, %v9560_v4  ;;  %v9559_v8 = vsub.f32 %v9545_v11, %v9555_v42  ;;  %v10598_v11 = vld [vmem:[%s13783_s28 + $0x1] ss:$0 sm:$0xff]  ;;  %s10185_s28 = sld [smem:[%s14231_s0 + %s12456_s14]]  }
0x4a89   :  { %v9582_v60 = vpop.permute.xlu1 %9581 }
0x4a8a   :  { %12381 = vpow2.f32 %v9563_v21  ;;  %v9561_v22 = vmul.f32 1.442695, %v9559_v8  ;;  %11978 = vmatprep.subr.mxu0 %v9582_v60  ;;  %v10610_v8 = vld [vmem:[%s13769_s9 + $0x58] sm:$0xff] }
0x4a8b   :  { %11979 = vmatpush3.msra.mxu0 %v9582_v60  ;;  %12013 = vmatprep.subr.mxu1 %v10610_v8  ;;  %v10609_v60 = vld [vmem:[%s13769_s9 + $0x50] sm:$0xff] }
0x4a8c   :  { %12383 = vpow2.f32 %v9561_v22  ;;  %12014 = vmatpush3.msra.mxu1 %v10610_v8  ;;  %v10608_v22 = vld [vmem:[%s13769_s9 + $0x48] sm:$0xff] }
0x4a8d   :  { %v9578_v7 = vpop.permute.xlu1 %9577  ;;  %12015 = vmatprep.subr.mxu1 %v10609_v60 }
0x4a8e   :  { %12016 = vmatpush3.msra.mxu1 %v10609_v60 }
0x4a8f   :  { %12017 = vmatprep.subr.mxu1 %v10608_v22 }
0x4a90   :  { %12018 = vmatpush3.msra.mxu1 %v10608_v22 }
0x4a91   :  { %v9576_v34 = vpop.permute.xlu1 %9575 }
0x4a97   :  { %v12382_v24 = vpop.eup %12381 }
0x4a98   :  { %v9568_v56 = vsel %vm185_vm0, %v12382_v24, 0.0 }
0x4a99   :  { %v12384_v61 = vpop.eup %12383  ;;  %9569 = vadd.xlane.f32.xlu0 %v9568_v56  ;;  %v10604_v56 = vld [vmem:[%s13796_s10 + $0x1] ss:$0 sm:$0xff] }
0x4a9a   :  { %v9565_v35 = vsel %vm185_vm0, %v12384_v61, 0.0 }
0x4a9d   :  { %9566 = vadd.xlane.f32.xlu0 %v9565_v35 }
0x4ab3   :  { %9579 = vrot.lane.b32.xlu0 %v14006_v29, %s14252_s29  ;;  %v10552_v29 = vld [vmem:[%s13630_s19 + $0x38] sm:$0xff] }
0x4b22   :  { %v9570_v27 = vpop.xlane.xlu0 %9569 }
0x4b23   :  { %12385 = vrcp.f32 %v9570_v27 }
0x4b26   :  { %v9567_v31 = vpop.xlane.xlu0 %9566 }
0x4b27   :  { %12387 = vrcp.f32 %v9567_v31 }
0x4b2a   :  { %v9580_v26 = vpop.permute.xlu0 %9579 }
0x4b2b   :  { %11980 = vmatprep.subr.mxu0 %v9580_v26 }
0x4b2c   :  { %11981 = vmatpush3.msra.mxu0 %v9580_v26 }
0x4b2d   :  { %11982 = vmatprep.subr.mxu0 %v9578_v7 }
0x4b2e   :  { %11983 = vmatpush3.msra.mxu0 %v9578_v7 }
0x4b2f   :  { %11984 = vmatprep.subr.mxu0 %v9576_v34 }
0x4b30   :  { %11985 = vmatpush3.msra.mxu0 %v9576_v34  ;;  %v12386_v39 = vpop.eup %12385  ;;  %v10616_v34 = vld [vmem:[%s13804_s26 + $0x1] ss:$0 sm:$0xff] }
0x4b31   :  { %v9574_v17 = vmul.f32 %v12386_v39, %v12382_v24  ;;  %11989 = vmatprep.subr.mxu0 %v10552_v29  ;;  %v10607_v24 = vld [vmem:[%s13769_s9 + $0x40] sm:$0xff] }
0x4b32   :  { %12019 = vmatprep.subr.mxu1 %v10607_v24 }
0x4b33   :  { %12020 = vmatpush3.msra.mxu1 %v10607_v24 }
0x4b34   :  { %v12388_v40 = vpop.eup %12387 }
0x4b35   :  { %v9573_v41 = vmul.f32 %v12388_v40, %v12384_v61 }
0x4b37   :  { %11986 = vmatprep.mubr.msk.f32.mxu0 %vm185_vm0, %v9573_v41 }
0x4b38   :  { %11987 = vmatmul.mubr.msk.f32.vlgmr.msra.gmra.mxu0 %vm185_vm0, %v9574_v17 }
0x4b39   :  { %11990 = vmatpush3.msra.mxu0 %v10552_v29 }
0x4b3a   :  { %11994 = vmatprep.subr.mxu0 %v10602_v58 }
0x4bf8   :  { %v11988_v53 = vpop.f32.mrf.mxu0 }
0x4bfa   :  { %v9659_v30 = vpop.f32.mrf.mxu0 }
0x4bfb   :  { %11991 = vmatprep.mubr.msk.f32.mxu0 %vm299_vm1, %v9659_v30 }
0x4bfc   :  { %11992 = vmatmul.mubr.msk.f32.vlgmr.msra.gmra.mxu0 %vm299_vm1, %v11988_v53 }
0x4bfd   :  { %11995 = vmatpush3.msra.mxu0 %v10602_v58 }
0x4bfe   :  { %11996 = vmatprep.subr.mxu0 %v10601_v37 }
0x4bff   :  { %11997 = vmatpush3.msra.mxu0 %v10601_v37  ;;  %v10621_v37 = vld [vmem:[%s13818_s1 + $0x1] ss:$0 sm:$0xff] }
0x4c00   :  { %11998 = vmatprep.subr.mxu0 %v10600_v16 }
0x4c01   :  { %11999 = vmatpush3.msra.mxu0 %v10600_v16 }
0x4c02   :  { %12000 = vmatprep.subr.mxu0 %v10599_v5 }
0x4c03   :  { %12001 = vmatpush3.msra.mxu0 %v10599_v5 }
0x4cbc   :  { %v11993_v48 = vpop.f32.mrf.mxu0 }
0x4cbd   :  { %v9750_v33 = vadd.f32 %v11993_v48, %v9453_v43 }
0x4cbe   :  { %v9740_v15 = vpop.f32.mrf.mxu0 }
0x4cbf   :  { %v9760_v47 = vadd.f32 %v10594_v51, %v9750_v33  ;;  %v9749_v36 = vadd.f32 %v9740_v15, %v9452_v12 }
0x4cc1   :  { %v9759_v20 = vadd.f32 %v10594_v51, %v9749_v36  ;;  %v9762_v10 = vadd.f32 %v9760_v47, %v14002_v0 }
0x4cc3   :  { %v9770_v59 = vsel %vm185_vm0, %v9762_v10, 0.0  ;;  %v9761_v44 = vadd.f32 %v9759_v20, %v14000_v62 }
0x4cc4   :  { %9771 = vadd.xlane.f32.xlu1 %v9770_v59 }
0x4cc5   :  { %v9767_v46 = vsel %vm185_vm0, %v9761_v44, 0.0 }
0x4cc6   :  { %9768 = vadd.xlane.f32.xlu0 %v9767_v46 }
0x4d4d   :  { %v9772_v50 = vpop.xlane.xlu1 %9771 }
0x4d4e   :  { %v9774_v14 = vmul.f32 0.03125, %v9772_v50  ;;  %v10054_v50 = vld [vmem:[%s10185_s28 + $0x18] sm:$0xff] }
0x4d4f   :  { %v9769_v54 = vpop.xlane.xlu0 %9768  ;;  %12024 = vmatprep.subr.mxu0 %v10054_v50 }
0x4d50   :  { %v9773_v28 = vmul.f32 0.03125, %v9769_v54  ;;  %v9776_v32 = vsub.f32 %v9762_v10, %v9774_v14  ;;  %v10053_v14 = vld [vmem:[%s10185_s28 + $0x10] sm:$0xff]  ;;  %v10052_v54 = vld [vmem:[%s10185_s28 + $0x8] sm:$0xff] }
0x4d52   :  { %v9775_v55 = vsub.f32 %v9761_v44, %v9773_v28  ;;  %v9778_v38 = vmul.f32 %v9776_v32, %v9776_v32  ;;  %v10051_v28 = vld [vmem:[%s10185_s28] sm:$0xff] }
0x4d54   :  { %v9777_v2 = vmul.f32 %v9775_v55, %v9775_v55  ;;  %v9782_v62 = vsel %vm185_vm0, %v9778_v38, 0.0 }
0x4d56   :  { %v9779_v0 = vsel %vm185_vm0, %v9777_v2, 0.0 }
0x4d57   :  { %9780 = vadd.xlane.f32.xlu0 %v9779_v0 }
0x4d5b   :  { %9783 = vadd.xlane.f32.xlu0 %v9782_v62 }
0x4de0   :  { %v9781_v52 = vpop.xlane.xlu0 %9780 }
0x4de1   :  { %v9785_v49 = vmul.f32 0.03125, %v9781_v52 }
0x4de3   :  { %v9787_v13 = vadd.f32 1e-05, %v9785_v49 }
0x4de4   :  { %v9784_v43 = vpop.xlane.xlu0 %9783 }
0x4de5   :  { %12389 = vrsqrt.f32 %v9787_v13  ;;  %v9786_v63 = vmul.f32 0.03125, %v9784_v43  ;;  %v10623_v13 = vld [vmem:[%s10186_s18] ss:$0 sm:$0xff] }
0x4de7   :  { %v9788_v12 = vadd.f32 1e-05, %v9786_v63 }
0x4de9   :  { %12391 = vrsqrt.f32 %v9788_v12 }
0x4df2   :  { %v12390_v3 = vpop.eup %12389 }
0x4df3   :  { %v9791_v25 = vmul.f32 %v12390_v3, %v9775_v55 }
0x4df5   :  { %v9799_v18 = vmul.f32 %v10597_v23, %v9791_v25 }
0x4df6   :  { %v12392_v9 = vpop.eup %12391 }
0x4df7   :  { %v9792_v57 = vmul.f32 %v12392_v9, %v9776_v32  ;;  %v9807_v4 = vadd.f32 %v10598_v11, %v9799_v18 }
0x4df9   :  { %v9800_v42 = vmul.f32 %v10597_v23, %v9792_v57  ;;  %12002 = vmatprep.mubr.msk.f32.mxu0 %vm185_vm0, %v9807_v4 }
0x4dfb   :  { %v9808_v21 = vadd.f32 %v10598_v11, %v9800_v42 }
0x4dfd   :  { %12003 = vmatmul.mubr.msk.f32.vlgmr.msra.gmra.mxu0 %vm185_vm0, %v9808_v21 }
0x4dfe   :  { %12025 = vmatpush3.msra.mxu0 %v10054_v50 }
0x4dff   :  { %12026 = vmatprep.subr.mxu0 %v10053_v14 }
0x4e00   :  { %12027 = vmatpush3.msra.mxu0 %v10053_v14 }
0x4e01   :  { %12028 = vmatprep.subr.mxu0 %v10052_v54 }
0x4e02   :  { %12029 = vmatpush3.msra.mxu0 %v10052_v54 }
0x4e03   :  { %12030 = vmatprep.subr.mxu0 %v10051_v28 }
0x4e04   :  { %12031 = vmatpush3.msra.mxu0 %v10051_v28 }
0x4ebd   :  { %v12004_v61 = vpop.f32.mrf.mxu0 }
0x4ebe   :  { %v9900_v35 = vadd.f32 %v12004_v61, %v10604_v56 }
0x4ebf   :  { %v9894_v27 = vpop.f32.mrf.mxu0 }
0x4ec0   :  { %v9895_v31 = vadd.f32 %v10604_v56, %v9894_v27  ;;  %v9904_v26 = vmax.f32 %v9900_v35, 0.0 }
0x4ec2   :  { %v9903_v7 = vmax.f32 %v9895_v31, 0.0 }
0x4ec4   :  { %12021 = vmatprep.mubr.msk.f32.mxu1 %vm1977_vm2, %v9903_v7 }
0x4ec5   :  { %12022 = vmatmul.mubr.msk.f32.vlgmr.msra.gmra.mxu1 %vm1977_vm2, %v9904_v26 }
0x4f85   :  { %v12023_v39 = vpop.f32.mrf.mxu1 }
0x4f86   :  { %v10000_v40 = vadd.f32 %v12023_v39, %v10616_v34 }
0x4f87   :  { %v9994_v41 = vpop.f32.mrf.mxu1 }
0x4f88   :  { %v10004_v17 = vadd.f32 %v10000_v40, %v9808_v21  ;;  %v9995_v29 = vadd.f32 %v10616_v34, %v9994_v41 }
0x4f8a   :  { %v10003_v53 = vadd.f32 %v9995_v29, %v9807_v4  ;;  %v10012_v30 = vsel %vm185_vm0, %v10004_v17, 0.0 }
0x4f8b   :  { %10013 = vadd.xlane.f32.xlu0 %v10012_v30 }
0x4f8c   :  { %v10009_v48 = vsel %vm185_vm0, %v10003_v53, 0.0 }
0x4f8d   :  { %10010 = vadd.xlane.f32.xlu1 %v10009_v48 }
0x5014   :  { %v10014_v51 = vpop.xlane.xlu0 %10013 }
0x5015   :  { %v10016_v33 = vmul.f32 0.03125, %v10014_v51 }
0x5016   :  { %v10011_v15 = vpop.xlane.xlu1 %10010 }
0x5017   :  { %v10018_v47 = vsub.f32 %v10004_v17, %v10016_v33  ;;  %v10015_v36 = vmul.f32 0.03125, %v10011_v15 }
0x5019   :  { %v10017_v20 = vsub.f32 %v10003_v53, %v10015_v36  ;;  %v10020_v10 = vmul.f32 %v10018_v47, %v10018_v47 }
0x501b   :  { %v10024_v59 = vsel %vm185_vm0, %v10020_v10, 0.0  ;;  %v10019_v44 = vmul.f32 %v10017_v20, %v10017_v20 }
0x501c   :  { %10025 = vadd.xlane.f32.xlu0 %v10024_v59 }
0x501d   :  { %v10021_v46 = vsel %vm185_vm0, %v10019_v44, 0.0 }
0x501e   :  { %10022 = vadd.xlane.f32.xlu1 %v10021_v46 }
0x50a5   :  { %v10026_v32 = vpop.xlane.xlu0 %10025 }
0x50a6   :  { %v10028_v55 = vmul.f32 0.03125, %v10026_v32 }
0x50a7   :  { %v10023_v2 = vpop.xlane.xlu1 %10022 }
0x50a8   :  { %v10030_v0 = vadd.f32 1e-05, %v10028_v55  ;;  %v10027_v38 = vmul.f32 0.03125, %v10023_v2 }
0x50aa   :  { %12393 = vrsqrt.f32 %v10030_v0  ;;  %v10029_v62 = vadd.f32 1e-05, %v10027_v38 }
0x50ac   :  { %12395 = vrsqrt.f32 %v10029_v62 }
0x50b7   :  { %v12394_v58 = vpop.eup %12393 }
0x50b8   :  { %v10034_v16 = vmul.f32 %v12394_v58, %v10018_v47 }
0x50b9   :  { %v12396_v5 = vpop.eup %12395 }
0x50ba   :  { %v10033_v6 = vmul.f32 %v12396_v5, %v10017_v20  ;;  %v10042_v19 = vmul.f32 %v10621_v37, %v10034_v16 }
0x50bc   :  { %v10041_v1 = vmul.f32 %v10621_v37, %v10033_v6  ;;  %v10050_v49 = vadd.f32 %v10622_v45, %v10042_v19 }
0x50be   :  { %v10049_v52 = vadd.f32 %v10622_v45, %v10041_v1 }
0x50c0   :  { %12032 = vmatprep.mubr.msk.f32.mxu0 %vm185_vm0, %v10049_v52 }
0x50c1   :  { %12033 = vmatmul.mubr.msk.f32.vlgmr.msra.gmra.mxu0 %vm185_vm0, %v10050_v49 }
0x5181   :  { %v12034_v43 = vpop.f32.mrf.mxu0 }
0x5182   :  { %v10140_v63 = vadd.f32 %v12034_v43, %v10623_v13 }
0x5183   :  { %v10134_v12 = vpop.f32.mrf.mxu0 }
0x5184   :  { %10144 = vst [vmem:[%s10187_s4 + $0x8] sm:$0xff] %v10140_v63  ;;  %v10135_v3 = vadd.f32 %v10623_v13, %v10134_v12 }
0x5186   :  { %10143 = vst [vmem:[%s10187_s4] sm:$0xff] %v10135_v3 }

</bundles_post_ra>
